<compile_context>
chip_gen: v5e
topology: v5e:2x2
jax: 0.10.0
libtpu: 0.0.40
codegen_flags: <defaults>
</compile_context>

<pallas_src>
import functools

import jax
import jax.numpy as jnp
from jax.experimental import pallas as pl
from jax.experimental.pallas import tpu as pltpu


def _round_up(n, m):
    return ((n + m - 1) // m) * m


# ----------------------------- fused Pallas kernel -------------------------- #

def _make_gsc_kernel(C, H, W, D, Hstr, PADH, eps, matmul_dtype):
    Hp, Wp, Dp = H + 2, W + 2, D + 2
    Nflat = Hp * Hstr              # full padded volume, plane-stride padded to 128
    Wout = H * Hstr                # planes h = 1..H (all positions we ever need)
    inv_n = 1.0 / float(H * W * D)
    f32 = jnp.float32
    # The 9 within-plane (kw, kd) tap offsets; kh is handled via aligned Hstr shifts.
    offs9 = [((kw, kd), (kw - 1) * Dp + (kd - 1))
             for kw in range(3) for kd in range(3)]

    def kernel(x_ref, w1_ref, b13_ref, w2_ref, b2_ref, w4_ref, b4_ref,
               mask_ref, o_ref):
        x_f32 = x_ref[0].astype(f32)                  # (C, Nbuf)
        x_mm = x_f32.astype(matmul_dtype)             # cast once -> bf16 slice traffic
        # Hoisted sublane broadcast of the interior mask (reused ~6 times).
        maskC = jnp.broadcast_to(mask_ref[...], (C, Wout))

        def conv3x3(v_mm, w_ref, rows):
            # v_mm: (C, Nbuf) full-layout input, zero outside its valid voxels.
            # 9 lane-misaligned (kw,kd) slices; per-kh taps are 128-aligned sub-slices;
            # 27 small MXU matmuls accumulate in f32 (no im2col stack materialized).
            w = w_ref[...]                            # (rows, 27*C) in matmul dtype
            acc = jnp.zeros((rows, Wout), f32)
            for (kw, kd), off in offs9:
                sj = v_mm[:, PADH + off: PADH + off + Nflat]      # (C, Nflat)
                part = None
                for kh in range(3):
                    t = kh * 9 + kw * 3 + kd
                    r = jnp.dot(w[:, t * C:(t + 1) * C],
                                sj[:, kh * Hstr: kh * Hstr + Wout],
                                preferred_element_type=f32)
                    part = r if part is None else part + r
                acc = acc + part
            return acc

        def inorm_relu(pre):
            # pre is zero outside the interior, so plain sums give interior statistics.
            mean = jnp.sum(pre, axis=1, keepdims=True) * inv_n
            var = jnp.sum(pre * pre, axis=1, keepdims=True) * inv_n - mean * mean
            var = jnp.maximum(var, 0.0)               # guard against cancellation -> NaN
            y = (pre - mean) * jax.lax.rsqrt(var + eps)
            return jnp.maximum(y, 0.0) * maskC

        b13 = b13_ref[...].astype(f32)                # (2C, 1)
        acc1 = conv3x3(x_mm, w1_ref, 2 * C)           # proj (+ fused proj3 rows)
        x1 = inorm_relu((acc1[:C] + b13[:C]) * maskC)       # proj  -> norm  -> relu
        x2 = inorm_relu((acc1[C:] + b13[C:]) * maskC)       # proj3 -> norm3 -> relu

        # Re-embed x1 into the full halo'd layout (aligned, zero-plane concat).
        zl = jnp.zeros((C, PADH + Hstr), matmul_dtype)
        zr = jnp.zeros((C, Hstr + PADH), matmul_dtype)
        x1full = jnp.concatenate([zl, x1.astype(matmul_dtype), zr], axis=1)

        acc2 = conv3x3(x1full, w2_ref, C)             # proj2
        x1 = inorm_relu((acc2 + b2_ref[...].astype(f32)) * maskC)

        xm = x1 * x2
        acc4 = jnp.dot(w4_ref[...], xm.astype(matmul_dtype),
                       preferred_element_type=f32)    # proj4 (1x1x1)
        x4 = inorm_relu((acc4 + b4_ref[...].astype(f32)) * maskC)

        x_res = x_f32[:, PADH + Hstr: PADH + Hstr + Wout]   # aligned residual slice
        o_ref[0] = (x4 + x_res).astype(o_ref.dtype)

    return kernel


# ------------------------------ public wrapper ------------------------------ #

def gsc_forward(x, params, eps=1e-5, matmul_dtype=jnp.bfloat16):
    """x: (B, C, H, W, D). params: PyTorch-shaped conv weights/biases."""
    B, C, H, W, D = x.shape
    Hp, Wp, Dp = H + 2, W + 2, D + 2
    plane = Wp * Dp
    Hstr = _round_up(plane, 128)       # 128-aligned H-plane stride
    PADH = _round_up(Dp + 1, 128)      # halo so all 9 tap slices stay in-bounds
    Nflat = Hp * Hstr
    Wout = H * Hstr
    Nbuf = Nflat + 2 * PADH

    # Channels-first, padded volume flattened with the aligned plane stride + halo.
    # (At production sizes the padding would better be done by DMAing the unpadded
    #  block into zeroed VMEM scratch; negligible at this test size.)
    xp = jnp.pad(x, ((0, 0), (0, 0), (1, 1), (1, 1), (1, 1)))
    xp = jnp.pad(xp.reshape(B, C, Hp, plane),
                 ((0, 0), (0, 0), (0, 0), (0, Hstr - plane)))
    xfull = jnp.pad(xp.reshape(B, C, Nflat), ((0, 0), (0, 0), (PADH, PADH)))

    # Interior mask on planes h = 1..H.
    m = jnp.zeros((H, Wp, Dp), jnp.float32).at[:, 1:W + 1, 1:D + 1].set(1.0)
    m = jnp.pad(m.reshape(H, plane), ((0, 0), (0, Hstr - plane))).reshape(1, Wout)

    cd = matmul_dtype

    def flat3(w):   # (C, C, 3, 3, 3) -> (C, 27*C), column index = t*C + c_in
        return w.reshape(C, C, 27).transpose(0, 2, 1).reshape(C, 27 * C)

    # proj3 fused as C extra output rows that only touch the centre tap (t = 13).
    w3aug = jnp.zeros((C, 27 * C), jnp.float32).at[:, 13 * C:14 * C].set(
        params["proj3_w"].reshape(C, C))
    w1a = jnp.concatenate([flat3(params["proj_w"]), w3aug], axis=0).astype(cd)
    b13 = jnp.concatenate([params["proj_b"], params["proj3_b"]]).reshape(2 * C, 1)
    w2 = flat3(params["proj2_w"]).astype(cd)
    b2 = params["proj2_b"].reshape(C, 1)
    w4 = params["proj4_w"].reshape(C, C).astype(cd)
    b4 = params["proj4_b"].reshape(C, 1)

    kernel = _make_gsc_kernel(C, H, W, D, Hstr, PADH, eps, matmul_dtype)

    flops = 2 * B * Wout * ((2 * C) * (27 * C) + C * (27 * C) + C * C)
    bytes_accessed = 4 * B * C * (Nbuf + Wout) + 2 * (3 * C) * 27 * C + 4 * C * C

    out_flat = pl.pallas_call(
        kernel,
        out_shape=jax.ShapeDtypeStruct((B, C, Wout), x.dtype),
        grid=(B,),
        in_specs=[
            pl.BlockSpec((1, C, Nbuf), lambda b: (b, 0, 0)),      # x (halo'd flat)
            pl.BlockSpec((2 * C, 27 * C), lambda b: (0, 0)),      # proj|proj3 weights
            pl.BlockSpec((2 * C, 1), lambda b: (0, 0)),           # proj|proj3 biases
            pl.BlockSpec((C, 27 * C), lambda b: (0, 0)),          # proj2 weight
            pl.BlockSpec((C, 1), lambda b: (0, 0)),               # proj2 bias
            pl.BlockSpec((C, C), lambda b: (0, 0)),               # proj4 weight
            pl.BlockSpec((C, 1), lambda b: (0, 0)),               # proj4 bias
            pl.BlockSpec((1, Wout), lambda b: (0, 0)),            # interior mask
        ],
        out_specs=pl.BlockSpec((1, C, Wout), lambda b: (b, 0, 0)),
        compiler_params=pltpu.CompilerParams(
            dimension_semantics=("parallel",)),
        cost_estimate=pl.CostEstimate(flops=flops, transcendentals=4 * B * C,
                                      bytes_accessed=bytes_accessed),
    )(xfull, w1a, b13, w2, b2, w4, b4, m)

    out = out_flat.reshape(B, C, H, Hstr)[:, :, :, :plane]
    return out.reshape(B, C, H, Wp, Dp)[:, :, :, 1:W + 1, 1:D + 1]


# --------------------------- pure-JAX reference ----------------------------- #

def _gsc_reference(x, params, eps=1e-5):
    def conv3d(v, w, b, k):
        dn = jax.lax.conv_dimension_numbers(v.shape, w.shape, ("NCDHW", "OIDHW", "NCDHW"))
        out = jax.lax.conv_general_dilated(v, w, (1, 1, 1), [(k // 2, k // 2)] * 3,
                                           dimension_numbers=dn)
        return out + b.reshape(1, -1, 1, 1, 1)

    def inorm_relu(v):
        mean = v.mean(axis=(2, 3, 4), keepdims=True)
        var = v.var(axis=(2, 3, 4), keepdims=True)
        return jnp.maximum((v - mean) * jax.lax.rsqrt(var + eps), 0.0)

    x1 = inorm_relu(conv3d(x, params["proj_w"], params["proj_b"], 3))
    x1 = inorm_relu(conv3d(x1, params["proj2_w"], params["proj2_b"], 3))
    x2 = inorm_relu(conv3d(x, params["proj3_w"], params["proj3_b"], 1))
    xm = x1 * x2
    x4 = inorm_relu(conv3d(xm, params["proj4_w"], params["proj4_b"], 1))
    return x4 + x


# ----------------------------------- main ------------------------------------ #

def init_params(key, C):
    """Deterministic synthetic init with PyTorch-shaped tensors."""
    ks = jax.random.split(key, 8)

    def u(k, shape, fan_in):
        bound = 1.0 / (fan_in ** 0.5)
        return jax.random.uniform(k, shape, jnp.float32, -bound, bound)

    return dict(
        proj_w=u(ks[0], (C, C, 3, 3, 3), C * 27),  proj_b=u(ks[1], (C,), C * 27),
        proj2_w=u(ks[2], (C, C, 3, 3, 3), C * 27), proj2_b=u(ks[3], (C,), C * 27),
        proj3_w=u(ks[4], (C, C, 1, 1, 1), C),      proj3_b=u(ks[5], (C,), C),
        proj4_w=u(ks[6], (C, C, 1, 1, 1), C),      proj4_b=u(ks[7], (C,), C),
    )


if __name__ == "__main__":
    B, C, H, W, D = 2, 8, 8, 8, 8
    key = jax.random.PRNGKey(0)
    kx, kp = jax.random.split(key)
    x = jax.random.normal(kx, (B, C, H, W, D), jnp.float32)
    params = init_params(kp, C)

    ref = _gsc_reference(x, params)

    # Precise mode (f32 MXU operands): tight structural-correctness check.
    fwd32 = jax.jit(functools.partial(gsc_forward, eps=1e-5, matmul_dtype=jnp.float32))
    out32 = jax.block_until_ready(fwd32(x, params))
    assert out32.shape == (B, C, H, W, D), out32.shape
    assert bool(jnp.all(jnp.isfinite(out32)))
    err32 = float(jnp.max(jnp.abs(out32 - ref)))
    assert err32 < 1e-3, f"f32-mode max abs err {err32}"

    # Fast mode (bf16 MXU operands, f32 accumulation/norms): default perf path.
    fwd = jax.jit(functools.partial(gsc_forward, eps=1e-5, matmul_dtype=jnp.bfloat16))
    out = jax.block_until_ready(fwd(x, params))
    assert out.shape == (B, C, H, W, D), out.shape
    assert bool(jnp.all(jnp.isfinite(out)))
    errbf = float(jnp.max(jnp.abs(out - ref)))
    assert errbf < 1.5e-1, f"bf16-mode max abs err {errbf}"

    print("KERNEL_OK")
</pallas_src>

<mosaic_0001>
module attributes {stable_mosaic.version = 11 : i64} {
  func.func @kernel(%arg0: i32, %arg1: memref<1x8x1536xf32, #tpu.memory_space<vmem>>, %arg2: memref<16x216xf32, #tpu.memory_space<vmem>>, %arg3: memref<16x1xf32, #tpu.memory_space<vmem>>, %arg4: memref<8x216xf32, #tpu.memory_space<vmem>>, %arg5: memref<8x1xf32, #tpu.memory_space<vmem>>, %arg6: memref<8x8xf32, #tpu.memory_space<vmem>>, %arg7: memref<8x1xf32, #tpu.memory_space<vmem>>, %arg8: memref<1x1024xf32, #tpu.memory_space<vmem>>, %arg9: memref<1x8x1024xf32, #tpu.memory_space<vmem>>) attributes {dimension_semantics = [#tpu.dimension_semantics<parallel>], iteration_bounds = array<i64: 2>, scalar_prefetch = 0 : i64, scratch_operands = 0 : i64, tpu.core_type = #tpu.core_type<tc>, window_params = [{transform_indices = @transform_0, window_bounds = array<i64: 1, 8, 1536>}, {pipeline_mode = #tpu.pipeline_mode<synchronous>, transform_indices = @transform_1, window_bounds = array<i64: 16, 216>}, {pipeline_mode = #tpu.pipeline_mode<synchronous>, transform_indices = @transform_2, window_bounds = array<i64: 16, 1>}, {pipeline_mode = #tpu.pipeline_mode<synchronous>, transform_indices = @transform_3, window_bounds = array<i64: 8, 216>}, {pipeline_mode = #tpu.pipeline_mode<synchronous>, transform_indices = @transform_4, window_bounds = array<i64: 8, 1>}, {pipeline_mode = #tpu.pipeline_mode<synchronous>, transform_indices = @transform_5, window_bounds = array<i64: 8, 8>}, {pipeline_mode = #tpu.pipeline_mode<synchronous>, transform_indices = @transform_6, window_bounds = array<i64: 8, 1>}, {pipeline_mode = #tpu.pipeline_mode<synchronous>, transform_indices = @transform_7, window_bounds = array<i64: 1, 1024>}, {transform_indices = @transform_8, window_bounds = array<i64: 1, 8, 1024>}]} {
    %c0 = arith.constant 0 : index
    %c0_0 = arith.constant 0 : index
    %c0_1 = arith.constant 0 : index
    %0 = vector.load %arg1[%c0, %c0_0, %c0_1] : memref<1x8x1536xf32, #tpu.memory_space<vmem>>, vector<1x8x1536xf32>
    %1 = vector.shape_cast %0 : vector<1x8x1536xf32> to vector<8x1536xf32>
    %c0_2 = arith.constant 0 : index
    %c0_3 = arith.constant 0 : index
    %2 = vector.load %arg8[%c0_2, %c0_3] : memref<1x1024xf32, #tpu.memory_space<vmem>>, vector<1x1024xf32>
    %3 = vector.shape_cast %2 : vector<1x1024xf32> to vector<1x1024xf32>
    %4 = vector.broadcast %3 : vector<1x1024xf32> to vector<8x1024xf32>
    %c0_4 = arith.constant 0 : index
    %c0_5 = arith.constant 0 : index
    %5 = vector.load %arg3[%c0_4, %c0_5] : memref<16x1xf32, #tpu.memory_space<vmem>>, vector<16x1xf32>
    %c0_6 = arith.constant 0 : index
    %c0_7 = arith.constant 0 : index
    %6 = vector.load %arg2[%c0_6, %c0_7] : memref<16x216xf32, #tpu.memory_space<vmem>>, vector<16x216xf32>
    %cst = arith.constant 0.000000e+00 : f32
    %7 = vector.broadcast %cst : f32 to vector<16x1024xf32>
    %8 = vector.extract_strided_slice %1 {offsets = [0, 117], sizes = [8, 1280], strides = [1, 1]} : vector<8x1536xf32> to vector<8x1280xf32>
    %9 = vector.extract_strided_slice %6 {offsets = [0, 0], sizes = [16, 8], strides = [1, 1]} : vector<16x216xf32> to vector<16x8xf32>
    %10 = vector.extract_strided_slice %8 {offsets = [0, 0], sizes = [8, 1024], strides = [1, 1]} : vector<8x1280xf32> to vector<8x1024xf32>
    %cst_8 = arith.constant dense<0.000000e+00> : vector<16x1024xf32>
    %11 = tpu.matmul %9, %10, %cst_8 {dimension_numbers = #tpu.dot_dimension_numbers<[1], [0], [0], [1], [0, 0, 1, 1], [], []>} : vector<16x8xf32>, vector<8x1024xf32>, vector<16x1024xf32> -> vector<16x1024xf32>
    %12 = vector.extract_strided_slice %6 {offsets = [0, 72], sizes = [16, 8], strides = [1, 1]} : vector<16x216xf32> to vector<16x8xf32>
    %13 = vector.extract_strided_slice %8 {offsets = [0, 128], sizes = [8, 1024], strides = [1, 1]} : vector<8x1280xf32> to vector<8x1024xf32>
    %cst_9 = arith.constant dense<0.000000e+00> : vector<16x1024xf32>
    %14 = tpu.matmul %12, %13, %cst_9 {dimension_numbers = #tpu.dot_dimension_numbers<[1], [0], [0], [1], [0, 0, 1, 1], [], []>} : vector<16x8xf32>, vector<8x1024xf32>, vector<16x1024xf32> -> vector<16x1024xf32>
    %15 = arith.addf %11, %14 : vector<16x1024xf32>
    %16 = vector.extract_strided_slice %6 {offsets = [0, 144], sizes = [16, 8], strides = [1, 1]} : vector<16x216xf32> to vector<16x8xf32>
    %17 = vector.extract_strided_slice %8 {offsets = [0, 256], sizes = [8, 1024], strides = [1, 1]} : vector<8x1280xf32> to vector<8x1024xf32>
    %cst_10 = arith.constant dense<0.000000e+00> : vector<16x1024xf32>
    %18 = tpu.matmul %16, %17, %cst_10 {dimension_numbers = #tpu.dot_dimension_numbers<[1], [0], [0], [1], [0, 0, 1, 1], [], []>} : vector<16x8xf32>, vector<8x1024xf32>, vector<16x1024xf32> -> vector<16x1024xf32>
    %19 = arith.addf %15, %18 : vector<16x1024xf32>
    %20 = arith.addf %7, %19 : vector<16x1024xf32>
    %21 = vector.extract_strided_slice %1 {offsets = [0, 118], sizes = [8, 1280], strides = [1, 1]} : vector<8x1536xf32> to vector<8x1280xf32>
    %22 = vector.extract_strided_slice %6 {offsets = [0, 8], sizes = [16, 8], strides = [1, 1]} : vector<16x216xf32> to vector<16x8xf32>
    %23 = vector.extract_strided_slice %21 {offsets = [0, 0], sizes = [8, 1024], strides = [1, 1]} : vector<8x1280xf32> to vector<8x1024xf32>
    %cst_11 = arith.constant dense<0.000000e+00> : vector<16x1024xf32>
    %24 = tpu.matmul %22, %23, %cst_11 {dimension_numbers = #tpu.dot_dimension_numbers<[1], [0], [0], [1], [0, 0, 1, 1], [], []>} : vector<16x8xf32>, vector<8x1024xf32>, vector<16x1024xf32> -> vector<16x1024xf32>
    %25 = vector.extract_strided_slice %6 {offsets = [0, 80], sizes = [16, 8], strides = [1, 1]} : vector<16x216xf32> to vector<16x8xf32>
    %26 = vector.extract_strided_slice %21 {offsets = [0, 128], sizes = [8, 1024], strides = [1, 1]} : vector<8x1280xf32> to vector<8x1024xf32>
    %cst_12 = arith.constant dense<0.000000e+00> : vector<16x1024xf32>
    %27 = tpu.matmul %25, %26, %cst_12 {dimension_numbers = #tpu.dot_dimension_numbers<[1], [0], [0], [1], [0, 0, 1, 1], [], []>} : vector<16x8xf32>, vector<8x1024xf32>, vector<16x1024xf32> -> vector<16x1024xf32>
    %28 = arith.addf %24, %27 : vector<16x1024xf32>
    %29 = vector.extract_strided_slice %6 {offsets = [0, 152], sizes = [16, 8], strides = [1, 1]} : vector<16x216xf32> to vector<16x8xf32>
    %30 = vector.extract_strided_slice %21 {offsets = [0, 256], sizes = [8, 1024], strides = [1, 1]} : vector<8x1280xf32> to vector<8x1024xf32>
    %cst_13 = arith.constant dense<0.000000e+00> : vector<16x1024xf32>
    %31 = tpu.matmul %29, %30, %cst_13 {dimension_numbers = #tpu.dot_dimension_numbers<[1], [0], [0], [1], [0, 0, 1, 1], [], []>} : vector<16x8xf32>, vector<8x1024xf32>, vector<16x1024xf32> -> vector<16x1024xf32>
    %32 = arith.addf %28, %31 : vector<16x1024xf32>
    %33 = arith.addf %20, %32 : vector<16x1024xf32>
    %34 = vector.extract_strided_slice %1 {offsets = [0, 119], sizes = [8, 1280], strides = [1, 1]} : vector<8x1536xf32> to vector<8x1280xf32>
    %35 = vector.extract_strided_slice %6 {offsets = [0, 16], sizes = [16, 8], strides = [1, 1]} : vector<16x216xf32> to vector<16x8xf32>
    %36 = vector.extract_strided_slice %34 {offsets = [0, 0], sizes = [8, 1024], strides = [1, 1]} : vector<8x1280xf32> to vector<8x1024xf32>
    %cst_14 = arith.constant dense<0.000000e+00> : vector<16x1024xf32>
    %37 = tpu.matmul %35, %36, %cst_14 {dimension_numbers = #tpu.dot_dimension_numbers<[1], [0], [0], [1], [0, 0, 1, 1], [], []>} : vector<16x8xf32>, vector<8x1024xf32>, vector<16x1024xf32> -> vector<16x1024xf32>
    %38 = vector.extract_strided_slice %6 {offsets = [0, 88], sizes = [16, 8], strides = [1, 1]} : vector<16x216xf32> to vector<16x8xf32>
    %39 = vector.extract_strided_slice %34 {offsets = [0, 128], sizes = [8, 1024], strides = [1, 1]} : vector<8x1280xf32> to vector<8x1024xf32>
    %cst_15 = arith.constant dense<0.000000e+00> : vector<16x1024xf32>
    %40 = tpu.matmul %38, %39, %cst_15 {dimension_numbers = #tpu.dot_dimension_numbers<[1], [0], [0], [1], [0, 0, 1, 1], [], []>} : vector<16x8xf32>, vector<8x1024xf32>, vector<16x1024xf32> -> vector<16x1024xf32>
    %41 = arith.addf %37, %40 : vector<16x1024xf32>
    %42 = vector.extract_strided_slice %6 {offsets = [0, 160], sizes = [16, 8], strides = [1, 1]} : vector<16x216xf32> to vector<16x8xf32>
    %43 = vector.extract_strided_slice %34 {offsets = [0, 256], sizes = [8, 1024], strides = [1, 1]} : vector<8x1280xf32> to vector<8x1024xf32>
    %cst_16 = arith.constant dense<0.000000e+00> : vector<16x1024xf32>
    %44 = tpu.matmul %42, %43, %cst_16 {dimension_numbers = #tpu.dot_dimension_numbers<[1], [0], [0], [1], [0, 0, 1, 1], [], []>} : vector<16x8xf32>, vector<8x1024xf32>, vector<16x1024xf32> -> vector<16x1024xf32>
    %45 = arith.addf %41, %44 : vector<16x1024xf32>
    %46 = arith.addf %33, %45 : vector<16x1024xf32>
    %47 = vector.extract_strided_slice %1 {offsets = [0, 127], sizes = [8, 1280], strides = [1, 1]} : vector<8x1536xf32> to vector<8x1280xf32>
    %48 = vector.extract_strided_slice %6 {offsets = [0, 24], sizes = [16, 8], strides = [1, 1]} : vector<16x216xf32> to vector<16x8xf32>
    %49 = vector.extract_strided_slice %47 {offsets = [0, 0], sizes = [8, 1024], strides = [1, 1]} : vector<8x1280xf32> to vector<8x1024xf32>
    %cst_17 = arith.constant dense<0.000000e+00> : vector<16x1024xf32>
    %50 = tpu.matmul %48, %49, %cst_17 {dimension_numbers = #tpu.dot_dimension_numbers<[1], [0], [0], [1], [0, 0, 1, 1], [], []>} : vector<16x8xf32>, vector<8x1024xf32>, vector<16x1024xf32> -> vector<16x1024xf32>
    %51 = vector.extract_strided_slice %6 {offsets = [0, 96], sizes = [16, 8], strides = [1, 1]} : vector<16x216xf32> to vector<16x8xf32>
    %52 = vector.extract_strided_slice %47 {offsets = [0, 128], sizes = [8, 1024], strides = [1, 1]} : vector<8x1280xf32> to vector<8x1024xf32>
    %cst_18 = arith.constant dense<0.000000e+00> : vector<16x1024xf32>
    %53 = tpu.matmul %51, %52, %cst_18 {dimension_numbers = #tpu.dot_dimension_numbers<[1], [0], [0], [1], [0, 0, 1, 1], [], []>} : vector<16x8xf32>, vector<8x1024xf32>, vector<16x1024xf32> -> vector<16x1024xf32>
    %54 = arith.addf %50, %53 : vector<16x1024xf32>
    %55 = vector.extract_strided_slice %6 {offsets = [0, 168], sizes = [16, 8], strides = [1, 1]} : vector<16x216xf32> to vector<16x8xf32>
    %56 = vector.extract_strided_slice %47 {offsets = [0, 256], sizes = [8, 1024], strides = [1, 1]} : vector<8x1280xf32> to vector<8x1024xf32>
    %cst_19 = arith.constant dense<0.000000e+00> : vector<16x1024xf32>
    %57 = tpu.matmul %55, %56, %cst_19 {dimension_numbers = #tpu.dot_dimension_numbers<[1], [0], [0], [1], [0, 0, 1, 1], [], []>} : vector<16x8xf32>, vector<8x1024xf32>, vector<16x1024xf32> -> vector<16x1024xf32>
    %58 = arith.addf %54, %57 : vector<16x1024xf32>
    %59 = arith.addf %46, %58 : vector<16x1024xf32>
    %60 = vector.extract_strided_slice %1 {offsets = [0, 128], sizes = [8, 1280], strides = [1, 1]} : vector<8x1536xf32> to vector<8x1280xf32>
    %61 = vector.extract_strided_slice %6 {offsets = [0, 32], sizes = [16, 8], strides = [1, 1]} : vector<16x216xf32> to vector<16x8xf32>
    %62 = vector.extract_strided_slice %60 {offsets = [0, 0], sizes = [8, 1024], strides = [1, 1]} : vector<8x1280xf32> to vector<8x1024xf32>
    %cst_20 = arith.constant dense<0.000000e+00> : vector<16x1024xf32>
    %63 = tpu.matmul %61, %62, %cst_20 {dimension_numbers = #tpu.dot_dimension_numbers<[1], [0], [0], [1], [0, 0, 1, 1], [], []>} : vector<16x8xf32>, vector<8x1024xf32>, vector<16x1024xf32> -> vector<16x1024xf32>
    %64 = vector.extract_strided_slice %6 {offsets = [0, 104], sizes = [16, 8], strides = [1, 1]} : vector<16x216xf32> to vector<16x8xf32>
    %65 = vector.extract_strided_slice %60 {offsets = [0, 128], sizes = [8, 1024], strides = [1, 1]} : vector<8x1280xf32> to vector<8x1024xf32>
    %cst_21 = arith.constant dense<0.000000e+00> : vector<16x1024xf32>
    %66 = tpu.matmul %64, %65, %cst_21 {dimension_numbers = #tpu.dot_dimension_numbers<[1], [0], [0], [1], [0, 0, 1, 1], [], []>} : vector<16x8xf32>, vector<8x1024xf32>, vector<16x1024xf32> -> vector<16x1024xf32>
    %67 = arith.addf %63, %66 : vector<16x1024xf32>
    %68 = vector.extract_strided_slice %6 {offsets = [0, 176], sizes = [16, 8], strides = [1, 1]} : vector<16x216xf32> to vector<16x8xf32>
    %69 = vector.extract_strided_slice %60 {offsets = [0, 256], sizes = [8, 1024], strides = [1, 1]} : vector<8x1280xf32> to vector<8x1024xf32>
    %cst_22 = arith.constant dense<0.000000e+00> : vector<16x1024xf32>
    %70 = tpu.matmul %68, %69, %cst_22 {dimension_numbers = #tpu.dot_dimension_numbers<[1], [0], [0], [1], [0, 0, 1, 1], [], []>} : vector<16x8xf32>, vector<8x1024xf32>, vector<16x1024xf32> -> vector<16x1024xf32>
    %71 = arith.addf %67, %70 : vector<16x1024xf32>
    %72 = arith.addf %59, %71 : vector<16x1024xf32>
    %73 = vector.extract_strided_slice %1 {offsets = [0, 129], sizes = [8, 1280], strides = [1, 1]} : vector<8x1536xf32> to vector<8x1280xf32>
    %74 = vector.extract_strided_slice %6 {offsets = [0, 40], sizes = [16, 8], strides = [1, 1]} : vector<16x216xf32> to vector<16x8xf32>
    %75 = vector.extract_strided_slice %73 {offsets = [0, 0], sizes = [8, 1024], strides = [1, 1]} : vector<8x1280xf32> to vector<8x1024xf32>
    %cst_23 = arith.constant dense<0.000000e+00> : vector<16x1024xf32>
    %76 = tpu.matmul %74, %75, %cst_23 {dimension_numbers = #tpu.dot_dimension_numbers<[1], [0], [0], [1], [0, 0, 1, 1], [], []>} : vector<16x8xf32>, vector<8x1024xf32>, vector<16x1024xf32> -> vector<16x1024xf32>
    %77 = vector.extract_strided_slice %6 {offsets = [0, 112], sizes = [16, 8], strides = [1, 1]} : vector<16x216xf32> to vector<16x8xf32>
    %78 = vector.extract_strided_slice %73 {offsets = [0, 128], sizes = [8, 1024], strides = [1, 1]} : vector<8x1280xf32> to vector<8x1024xf32>
    %cst_24 = arith.constant dense<0.000000e+00> : vector<16x1024xf32>
    %79 = tpu.matmul %77, %78, %cst_24 {dimension_numbers = #tpu.dot_dimension_numbers<[1], [0], [0], [1], [0, 0, 1, 1], [], []>} : vector<16x8xf32>, vector<8x1024xf32>, vector<16x1024xf32> -> vector<16x1024xf32>
    %80 = arith.addf %76, %79 : vector<16x1024xf32>
    %81 = vector.extract_strided_slice %6 {offsets = [0, 184], sizes = [16, 8], strides = [1, 1]} : vector<16x216xf32> to vector<16x8xf32>
    %82 = vector.extract_strided_slice %73 {offsets = [0, 256], sizes = [8, 1024], strides = [1, 1]} : vector<8x1280xf32> to vector<8x1024xf32>
    %cst_25 = arith.constant dense<0.000000e+00> : vector<16x1024xf32>
    %83 = tpu.matmul %81, %82, %cst_25 {dimension_numbers = #tpu.dot_dimension_numbers<[1], [0], [0], [1], [0, 0, 1, 1], [], []>} : vector<16x8xf32>, vector<8x1024xf32>, vector<16x1024xf32> -> vector<16x1024xf32>
    %84 = arith.addf %80, %83 : vector<16x1024xf32>
    %85 = arith.addf %72, %84 : vector<16x1024xf32>
    %86 = vector.extract_strided_slice %1 {offsets = [0, 137], sizes = [8, 1280], strides = [1, 1]} : vector<8x1536xf32> to vector<8x1280xf32>
    %87 = vector.extract_strided_slice %6 {offsets = [0, 48], sizes = [16, 8], strides = [1, 1]} : vector<16x216xf32> to vector<16x8xf32>
    %88 = vector.extract_strided_slice %86 {offsets = [0, 0], sizes = [8, 1024], strides = [1, 1]} : vector<8x1280xf32> to vector<8x1024xf32>
    %cst_26 = arith.constant dense<0.000000e+00> : vector<16x1024xf32>
    %89 = tpu.matmul %87, %88, %cst_26 {dimension_numbers = #tpu.dot_dimension_numbers<[1], [0], [0], [1], [0, 0, 1, 1], [], []>} : vector<16x8xf32>, vector<8x1024xf32>, vector<16x1024xf32> -> vector<16x1024xf32>
    %90 = vector.extract_strided_slice %6 {offsets = [0, 120], sizes = [16, 8], strides = [1, 1]} : vector<16x216xf32> to vector<16x8xf32>
    %91 = vector.extract_strided_slice %86 {offsets = [0, 128], sizes = [8, 1024], strides = [1, 1]} : vector<8x1280xf32> to vector<8x1024xf32>
    %cst_27 = arith.constant dense<0.000000e+00> : vector<16x1024xf32>
    %92 = tpu.matmul %90, %91, %cst_27 {dimension_numbers = #tpu.dot_dimension_numbers<[1], [0], [0], [1], [0, 0, 1, 1], [], []>} : vector<16x8xf32>, vector<8x1024xf32>, vector<16x1024xf32> -> vector<16x1024xf32>
    %93 = arith.addf %89, %92 : vector<16x1024xf32>
    %94 = vector.extract_strided_slice %6 {offsets = [0, 192], sizes = [16, 8], strides = [1, 1]} : vector<16x216xf32> to vector<16x8xf32>
    %95 = vector.extract_strided_slice %86 {offsets = [0, 256], sizes = [8, 1024], strides = [1, 1]} : vector<8x1280xf32> to vector<8x1024xf32>
    %cst_28 = arith.constant dense<0.000000e+00> : vector<16x1024xf32>
    %96 = tpu.matmul %94, %95, %cst_28 {dimension_numbers = #tpu.dot_dimension_numbers<[1], [0], [0], [1], [0, 0, 1, 1], [], []>} : vector<16x8xf32>, vector<8x1024xf32>, vector<16x1024xf32> -> vector<16x1024xf32>
    %97 = arith.addf %93, %96 : vector<16x1024xf32>
    %98 = arith.addf %85, %97 : vector<16x1024xf32>
    %99 = vector.extract_strided_slice %1 {offsets = [0, 138], sizes = [8, 1280], strides = [1, 1]} : vector<8x1536xf32> to vector<8x1280xf32>
    %100 = vector.extract_strided_slice %6 {offsets = [0, 56], sizes = [16, 8], strides = [1, 1]} : vector<16x216xf32> to vector<16x8xf32>
    %101 = vector.extract_strided_slice %99 {offsets = [0, 0], sizes = [8, 1024], strides = [1, 1]} : vector<8x1280xf32> to vector<8x1024xf32>
    %cst_29 = arith.constant dense<0.000000e+00> : vector<16x1024xf32>
    %102 = tpu.matmul %100, %101, %cst_29 {dimension_numbers = #tpu.dot_dimension_numbers<[1], [0], [0], [1], [0, 0, 1, 1], [], []>} : vector<16x8xf32>, vector<8x1024xf32>, vector<16x1024xf32> -> vector<16x1024xf32>
    %103 = vector.extract_strided_slice %6 {offsets = [0, 128], sizes = [16, 8], strides = [1, 1]} : vector<16x216xf32> to vector<16x8xf32>
    %104 = vector.extract_strided_slice %99 {offsets = [0, 128], sizes = [8, 1024], strides = [1, 1]} : vector<8x1280xf32> to vector<8x1024xf32>
    %cst_30 = arith.constant dense<0.000000e+00> : vector<16x1024xf32>
    %105 = tpu.matmul %103, %104, %cst_30 {dimension_numbers = #tpu.dot_dimension_numbers<[1], [0], [0], [1], [0, 0, 1, 1], [], []>} : vector<16x8xf32>, vector<8x1024xf32>, vector<16x1024xf32> -> vector<16x1024xf32>
    %106 = arith.addf %102, %105 : vector<16x1024xf32>
    %107 = vector.extract_strided_slice %6 {offsets = [0, 200], sizes = [16, 8], strides = [1, 1]} : vector<16x216xf32> to vector<16x8xf32>
    %108 = vector.extract_strided_slice %99 {offsets = [0, 256], sizes = [8, 1024], strides = [1, 1]} : vector<8x1280xf32> to vector<8x1024xf32>
    %cst_31 = arith.constant dense<0.000000e+00> : vector<16x1024xf32>
    %109 = tpu.matmul %107, %108, %cst_31 {dimension_numbers = #tpu.dot_dimension_numbers<[1], [0], [0], [1], [0, 0, 1, 1], [], []>} : vector<16x8xf32>, vector<8x1024xf32>, vector<16x1024xf32> -> vector<16x1024xf32>
    %110 = arith.addf %106, %109 : vector<16x1024xf32>
    %111 = arith.addf %98, %110 : vector<16x1024xf32>
    %112 = vector.extract_strided_slice %1 {offsets = [0, 139], sizes = [8, 1280], strides = [1, 1]} : vector<8x1536xf32> to vector<8x1280xf32>
    %113 = vector.extract_strided_slice %6 {offsets = [0, 64], sizes = [16, 8], strides = [1, 1]} : vector<16x216xf32> to vector<16x8xf32>
    %114 = vector.extract_strided_slice %112 {offsets = [0, 0], sizes = [8, 1024], strides = [1, 1]} : vector<8x1280xf32> to vector<8x1024xf32>
    %cst_32 = arith.constant dense<0.000000e+00> : vector<16x1024xf32>
    %115 = tpu.matmul %113, %114, %cst_32 {dimension_numbers = #tpu.dot_dimension_numbers<[1], [0], [0], [1], [0, 0, 1, 1], [], []>} : vector<16x8xf32>, vector<8x1024xf32>, vector<16x1024xf32> -> vector<16x1024xf32>
    %116 = vector.extract_strided_slice %6 {offsets = [0, 136], sizes = [16, 8], strides = [1, 1]} : vector<16x216xf32> to vector<16x8xf32>
    %117 = vector.extract_strided_slice %112 {offsets = [0, 128], sizes = [8, 1024], strides = [1, 1]} : vector<8x1280xf32> to vector<8x1024xf32>
    %cst_33 = arith.constant dense<0.000000e+00> : vector<16x1024xf32>
    %118 = tpu.matmul %116, %117, %cst_33 {dimension_numbers = #tpu.dot_dimension_numbers<[1], [0], [0], [1], [0, 0, 1, 1], [], []>} : vector<16x8xf32>, vector<8x1024xf32>, vector<16x1024xf32> -> vector<16x1024xf32>
    %119 = arith.addf %115, %118 : vector<16x1024xf32>
    %120 = vector.extract_strided_slice %6 {offsets = [0, 208], sizes = [16, 8], strides = [1, 1]} : vector<16x216xf32> to vector<16x8xf32>
    %121 = vector.extract_strided_slice %112 {offsets = [0, 256], sizes = [8, 1024], strides = [1, 1]} : vector<8x1280xf32> to vector<8x1024xf32>
    %cst_34 = arith.constant dense<0.000000e+00> : vector<16x1024xf32>
    %122 = tpu.matmul %120, %121, %cst_34 {dimension_numbers = #tpu.dot_dimension_numbers<[1], [0], [0], [1], [0, 0, 1, 1], [], []>} : vector<16x8xf32>, vector<8x1024xf32>, vector<16x1024xf32> -> vector<16x1024xf32>
    %123 = arith.addf %119, %122 : vector<16x1024xf32>
    %124 = arith.addf %111, %123 : vector<16x1024xf32>
    %125 = vector.extract_strided_slice %124 {offsets = [0, 0], sizes = [8, 1024], strides = [1, 1]} : vector<16x1024xf32> to vector<8x1024xf32>
    %126 = vector.extract_strided_slice %5 {offsets = [0, 0], sizes = [8, 1], strides = [1, 1]} : vector<16x1xf32> to vector<8x1xf32>
    %127 = vector.broadcast %126 : vector<8x1xf32> to vector<8x1024xf32>
    %128 = arith.addf %125, %127 : vector<8x1024xf32>
    %129 = arith.mulf %128, %4 : vector<8x1024xf32>
    %cst_35 = arith.constant dense<0.000000e+00> : vector<8xf32>
    %130 = vector.multi_reduction <add>, %129, %cst_35 [1] : vector<8x1024xf32> to vector<8xf32>
    %131 = vector.shape_cast %130 : vector<8xf32> to vector<8x1xf32>
    %cst_36 = arith.constant 0.001953125 : f32
    %132 = vector.broadcast %cst_36 : f32 to vector<8x1xf32>
    %133 = arith.mulf %131, %132 : vector<8x1xf32>
    %134 = arith.mulf %129, %129 : vector<8x1024xf32>
    %cst_37 = arith.constant dense<0.000000e+00> : vector<8xf32>
    %135 = vector.multi_reduction <add>, %134, %cst_37 [1] : vector<8x1024xf32> to vector<8xf32>
    %136 = vector.shape_cast %135 : vector<8xf32> to vector<8x1xf32>
    %cst_38 = arith.constant 0.001953125 : f32
    %137 = vector.broadcast %cst_38 : f32 to vector<8x1xf32>
    %138 = arith.mulf %136, %137 : vector<8x1xf32>
    %139 = arith.mulf %133, %133 : vector<8x1xf32>
    %140 = arith.subf %138, %139 : vector<8x1xf32>
    %cst_39 = arith.constant 0.000000e+00 : f32
    %141 = vector.broadcast %cst_39 : f32 to vector<8x1xf32>
    %142 = arith.maximumf %140, %141 : vector<8x1xf32>
    %143 = vector.broadcast %133 : vector<8x1xf32> to vector<8x1024xf32>
    %144 = arith.subf %129, %143 : vector<8x1024xf32>
    %cst_40 = arith.constant 9.99999974E-6 : f32
    %145 = vector.broadcast %cst_40 : f32 to vector<8x1xf32>
    %146 = arith.addf %142, %145 : vector<8x1xf32>
    %147 = math.rsqrt %146 : vector<8x1xf32>
    %148 = vector.broadcast %147 : vector<8x1xf32> to vector<8x1024xf32>
    %149 = arith.mulf %144, %148 : vector<8x1024xf32>
    %cst_41 = arith.constant 0.000000e+00 : f32
    %150 = vector.broadcast %cst_41 : f32 to vector<8x1024xf32>
    %151 = arith.maximumf %149, %150 : vector<8x1024xf32>
    %152 = arith.mulf %151, %4 : vector<8x1024xf32>
    %153 = vector.extract_strided_slice %124 {offsets = [8, 0], sizes = [8, 1024], strides = [1, 1]} : vector<16x1024xf32> to vector<8x1024xf32>
    %154 = vector.extract_strided_slice %5 {offsets = [8, 0], sizes = [8, 1], strides = [1, 1]} : vector<16x1xf32> to vector<8x1xf32>
    %155 = vector.broadcast %154 : vector<8x1xf32> to vector<8x1024xf32>
    %156 = arith.addf %153, %155 : vector<8x1024xf32>
    %157 = arith.mulf %156, %4 : vector<8x1024xf32>
    %cst_42 = arith.constant dense<0.000000e+00> : vector<8xf32>
    %158 = vector.multi_reduction <add>, %157, %cst_42 [1] : vector<8x1024xf32> to vector<8xf32>
    %159 = vector.shape_cast %158 : vector<8xf32> to vector<8x1xf32>
    %cst_43 = arith.constant 0.001953125 : f32
    %160 = vector.broadcast %cst_43 : f32 to vector<8x1xf32>
    %161 = arith.mulf %159, %160 : vector<8x1xf32>
    %162 = arith.mulf %157, %157 : vector<8x1024xf32>
    %cst_44 = arith.constant dense<0.000000e+00> : vector<8xf32>
    %163 = vector.multi_reduction <add>, %162, %cst_44 [1] : vector<8x1024xf32> to vector<8xf32>
    %164 = vector.shape_cast %163 : vector<8xf32> to vector<8x1xf32>
    %cst_45 = arith.constant 0.001953125 : f32
    %165 = vector.broadcast %cst_45 : f32 to vector<8x1xf32>
    %166 = arith.mulf %164, %165 : vector<8x1xf32>
    %167 = arith.mulf %161, %161 : vector<8x1xf32>
    %168 = arith.subf %166, %167 : vector<8x1xf32>
    %cst_46 = arith.constant 0.000000e+00 : f32
    %169 = vector.broadcast %cst_46 : f32 to vector<8x1xf32>
    %170 = arith.maximumf %168, %169 : vector<8x1xf32>
    %171 = vector.broadcast %161 : vector<8x1xf32> to vector<8x1024xf32>
    %172 = arith.subf %157, %171 : vector<8x1024xf32>
    %cst_47 = arith.constant 9.99999974E-6 : f32
    %173 = vector.broadcast %cst_47 : f32 to vector<8x1xf32>
    %174 = arith.addf %170, %173 : vector<8x1xf32>
    %175 = math.rsqrt %174 : vector<8x1xf32>
    %176 = vector.broadcast %175 : vector<8x1xf32> to vector<8x1024xf32>
    %177 = arith.mulf %172, %176 : vector<8x1024xf32>
    %cst_48 = arith.constant 0.000000e+00 : f32
    %178 = vector.broadcast %cst_48 : f32 to vector<8x1024xf32>
    %179 = arith.maximumf %177, %178 : vector<8x1024xf32>
    %180 = arith.mulf %179, %4 : vector<8x1024xf32>
    %cst_49 = arith.constant 0.000000e+00 : f32
    %181 = vector.broadcast %cst_49 : f32 to vector<8x256xf32>
    %cst_50 = arith.constant 0.000000e+00 : f32
    %182 = vector.broadcast %cst_50 : f32 to vector<8x256xf32>
    %183 = tpu.concatenate %181, %152, %182 in 1 : vector<8x256xf32>, vector<8x1024xf32>, vector<8x256xf32> -> vector<8x1536xf32>
    %c0_51 = arith.constant 0 : index
    %c0_52 = arith.constant 0 : index
    %184 = vector.load %arg4[%c0_51, %c0_52] : memref<8x216xf32, #tpu.memory_space<vmem>>, vector<8x216xf32>
    %cst_53 = arith.constant 0.000000e+00 : f32
    %185 = vector.broadcast %cst_53 : f32 to vector<8x1024xf32>
    %186 = vector.extract_strided_slice %183 {offsets = [0, 117], sizes = [8, 1280], strides = [1, 1]} : vector<8x1536xf32> to vector<8x1280xf32>
    %187 = vector.extract_strided_slice %184 {offsets = [0, 0], sizes = [8, 8], strides = [1, 1]} : vector<8x216xf32> to vector<8x8xf32>
    %188 = vector.extract_strided_slice %186 {offsets = [0, 0], sizes = [8, 1024], strides = [1, 1]} : vector<8x1280xf32> to vector<8x1024xf32>
    %cst_54 = arith.constant dense<0.000000e+00> : vector<8x1024xf32>
    %189 = tpu.matmul %187, %188, %cst_54 {dimension_numbers = #tpu.dot_dimension_numbers<[1], [0], [0], [1], [0, 0, 1, 1], [], []>} : vector<8x8xf32>, vector<8x1024xf32>, vector<8x1024xf32> -> vector<8x1024xf32>
    %190 = vector.extract_strided_slice %184 {offsets = [0, 72], sizes = [8, 8], strides = [1, 1]} : vector<8x216xf32> to vector<8x8xf32>
    %191 = vector.extract_strided_slice %186 {offsets = [0, 128], sizes = [8, 1024], strides = [1, 1]} : vector<8x1280xf32> to vector<8x1024xf32>
    %cst_55 = arith.constant dense<0.000000e+00> : vector<8x1024xf32>
    %192 = tpu.matmul %190, %191, %cst_55 {dimension_numbers = #tpu.dot_dimension_numbers<[1], [0], [0], [1], [0, 0, 1, 1], [], []>} : vector<8x8xf32>, vector<8x1024xf32>, vector<8x1024xf32> -> vector<8x1024xf32>
    %193 = arith.addf %189, %192 : vector<8x1024xf32>
    %194 = vector.extract_strided_slice %184 {offsets = [0, 144], sizes = [8, 8], strides = [1, 1]} : vector<8x216xf32> to vector<8x8xf32>
    %195 = vector.extract_strided_slice %186 {offsets = [0, 256], sizes = [8, 1024], strides = [1, 1]} : vector<8x1280xf32> to vector<8x1024xf32>
    %cst_56 = arith.constant dense<0.000000e+00> : vector<8x1024xf32>
    %196 = tpu.matmul %194, %195, %cst_56 {dimension_numbers = #tpu.dot_dimension_numbers<[1], [0], [0], [1], [0, 0, 1, 1], [], []>} : vector<8x8xf32>, vector<8x1024xf32>, vector<8x1024xf32> -> vector<8x1024xf32>
    %197 = arith.addf %193, %196 : vector<8x1024xf32>
    %198 = arith.addf %185, %197 : vector<8x1024xf32>
    %199 = vector.extract_strided_slice %183 {offsets = [0, 118], sizes = [8, 1280], strides = [1, 1]} : vector<8x1536xf32> to vector<8x1280xf32>
    %200 = vector.extract_strided_slice %184 {offsets = [0, 8], sizes = [8, 8], strides = [1, 1]} : vector<8x216xf32> to vector<8x8xf32>
    %201 = vector.extract_strided_slice %199 {offsets = [0, 0], sizes = [8, 1024], strides = [1, 1]} : vector<8x1280xf32> to vector<8x1024xf32>
    %cst_57 = arith.constant dense<0.000000e+00> : vector<8x1024xf32>
    %202 = tpu.matmul %200, %201, %cst_57 {dimension_numbers = #tpu.dot_dimension_numbers<[1], [0], [0], [1], [0, 0, 1, 1], [], []>} : vector<8x8xf32>, vector<8x1024xf32>, vector<8x1024xf32> -> vector<8x1024xf32>
    %203 = vector.extract_strided_slice %184 {offsets = [0, 80], sizes = [8, 8], strides = [1, 1]} : vector<8x216xf32> to vector<8x8xf32>
    %204 = vector.extract_strided_slice %199 {offsets = [0, 128], sizes = [8, 1024], strides = [1, 1]} : vector<8x1280xf32> to vector<8x1024xf32>
    %cst_58 = arith.constant dense<0.000000e+00> : vector<8x1024xf32>
    %205 = tpu.matmul %203, %204, %cst_58 {dimension_numbers = #tpu.dot_dimension_numbers<[1], [0], [0], [1], [0, 0, 1, 1], [], []>} : vector<8x8xf32>, vector<8x1024xf32>, vector<8x1024xf32> -> vector<8x1024xf32>
    %206 = arith.addf %202, %205 : vector<8x1024xf32>
    %207 = vector.extract_strided_slice %184 {offsets = [0, 152], sizes = [8, 8], strides = [1, 1]} : vector<8x216xf32> to vector<8x8xf32>
    %208 = vector.extract_strided_slice %199 {offsets = [0, 256], sizes = [8, 1024], strides = [1, 1]} : vector<8x1280xf32> to vector<8x1024xf32>
    %cst_59 = arith.constant dense<0.000000e+00> : vector<8x1024xf32>
    %209 = tpu.matmul %207, %208, %cst_59 {dimension_numbers = #tpu.dot_dimension_numbers<[1], [0], [0], [1], [0, 0, 1, 1], [], []>} : vector<8x8xf32>, vector<8x1024xf32>, vector<8x1024xf32> -> vector<8x1024xf32>
    %210 = arith.addf %206, %209 : vector<8x1024xf32>
    %211 = arith.addf %198, %210 : vector<8x1024xf32>
    %212 = vector.extract_strided_slice %183 {offsets = [0, 119], sizes = [8, 1280], strides = [1, 1]} : vector<8x1536xf32> to vector<8x1280xf32>
    %213 = vector.extract_strided_slice %184 {offsets = [0, 16], sizes = [8, 8], strides = [1, 1]} : vector<8x216xf32> to vector<8x8xf32>
    %214 = vector.extract_strided_slice %212 {offsets = [0, 0], sizes = [8, 1024], strides = [1, 1]} : vector<8x1280xf32> to vector<8x1024xf32>
    %cst_60 = arith.constant dense<0.000000e+00> : vector<8x1024xf32>
    %215 = tpu.matmul %213, %214, %cst_60 {dimension_numbers = #tpu.dot_dimension_numbers<[1], [0], [0], [1], [0, 0, 1, 1], [], []>} : vector<8x8xf32>, vector<8x1024xf32>, vector<8x1024xf32> -> vector<8x1024xf32>
    %216 = vector.extract_strided_slice %184 {offsets = [0, 88], sizes = [8, 8], strides = [1, 1]} : vector<8x216xf32> to vector<8x8xf32>
    %217 = vector.extract_strided_slice %212 {offsets = [0, 128], sizes = [8, 1024], strides = [1, 1]} : vector<8x1280xf32> to vector<8x1024xf32>
    %cst_61 = arith.constant dense<0.000000e+00> : vector<8x1024xf32>
    %218 = tpu.matmul %216, %217, %cst_61 {dimension_numbers = #tpu.dot_dimension_numbers<[1], [0], [0], [1], [0, 0, 1, 1], [], []>} : vector<8x8xf32>, vector<8x1024xf32>, vector<8x1024xf32> -> vector<8x1024xf32>
    %219 = arith.addf %215, %218 : vector<8x1024xf32>
    %220 = vector.extract_strided_slice %184 {offsets = [0, 160], sizes = [8, 8], strides = [1, 1]} : vector<8x216xf32> to vector<8x8xf32>
    %221 = vector.extract_strided_slice %212 {offsets = [0, 256], sizes = [8, 1024], strides = [1, 1]} : vector<8x1280xf32> to vector<8x1024xf32>
    %cst_62 = arith.constant dense<0.000000e+00> : vector<8x1024xf32>
    %222 = tpu.matmul %220, %221, %cst_62 {dimension_numbers = #tpu.dot_dimension_numbers<[1], [0], [0], [1], [0, 0, 1, 1], [], []>} : vector<8x8xf32>, vector<8x1024xf32>, vector<8x1024xf32> -> vector<8x1024xf32>
    %223 = arith.addf %219, %222 : vector<8x1024xf32>
    %224 = arith.addf %211, %223 : vector<8x1024xf32>
    %225 = vector.extract_strided_slice %183 {offsets = [0, 127], sizes = [8, 1280], strides = [1, 1]} : vector<8x1536xf32> to vector<8x1280xf32>
    %226 = vector.extract_strided_slice %184 {offsets = [0, 24], sizes = [8, 8], strides = [1, 1]} : vector<8x216xf32> to vector<8x8xf32>
    %227 = vector.extract_strided_slice %225 {offsets = [0, 0], sizes = [8, 1024], strides = [1, 1]} : vector<8x1280xf32> to vector<8x1024xf32>
    %cst_63 = arith.constant dense<0.000000e+00> : vector<8x1024xf32>
    %228 = tpu.matmul %226, %227, %cst_63 {dimension_numbers = #tpu.dot_dimension_numbers<[1], [0], [0], [1], [0, 0, 1, 1], [], []>} : vector<8x8xf32>, vector<8x1024xf32>, vector<8x1024xf32> -> vector<8x1024xf32>
    %229 = vector.extract_strided_slice %184 {offsets = [0, 96], sizes = [8, 8], strides = [1, 1]} : vector<8x216xf32> to vector<8x8xf32>
    %230 = vector.extract_strided_slice %225 {offsets = [0, 128], sizes = [8, 1024], strides = [1, 1]} : vector<8x1280xf32> to vector<8x1024xf32>
    %cst_64 = arith.constant dense<0.000000e+00> : vector<8x1024xf32>
    %231 = tpu.matmul %229, %230, %cst_64 {dimension_numbers = #tpu.dot_dimension_numbers<[1], [0], [0], [1], [0, 0, 1, 1], [], []>} : vector<8x8xf32>, vector<8x1024xf32>, vector<8x1024xf32> -> vector<8x1024xf32>
    %232 = arith.addf %228, %231 : vector<8x1024xf32>
    %233 = vector.extract_strided_slice %184 {offsets = [0, 168], sizes = [8, 8], strides = [1, 1]} : vector<8x216xf32> to vector<8x8xf32>
    %234 = vector.extract_strided_slice %225 {offsets = [0, 256], sizes = [8, 1024], strides = [1, 1]} : vector<8x1280xf32> to vector<8x1024xf32>
    %cst_65 = arith.constant dense<0.000000e+00> : vector<8x1024xf32>
    %235 = tpu.matmul %233, %234, %cst_65 {dimension_numbers = #tpu.dot_dimension_numbers<[1], [0], [0], [1], [0, 0, 1, 1], [], []>} : vector<8x8xf32>, vector<8x1024xf32>, vector<8x1024xf32> -> vector<8x1024xf32>
    %236 = arith.addf %232, %235 : vector<8x1024xf32>
    %237 = arith.addf %224, %236 : vector<8x1024xf32>
    %238 = vector.extract_strided_slice %183 {offsets = [0, 128], sizes = [8, 1280], strides = [1, 1]} : vector<8x1536xf32> to vector<8x1280xf32>
    %239 = vector.extract_strided_slice %184 {offsets = [0, 32], sizes = [8, 8], strides = [1, 1]} : vector<8x216xf32> to vector<8x8xf32>
    %240 = vector.extract_strided_slice %238 {offsets = [0, 0], sizes = [8, 1024], strides = [1, 1]} : vector<8x1280xf32> to vector<8x1024xf32>
    %cst_66 = arith.constant dense<0.000000e+00> : vector<8x1024xf32>
    %241 = tpu.matmul %239, %240, %cst_66 {dimension_numbers = #tpu.dot_dimension_numbers<[1], [0], [0], [1], [0, 0, 1, 1], [], []>} : vector<8x8xf32>, vector<8x1024xf32>, vector<8x1024xf32> -> vector<8x1024xf32>
    %242 = vector.extract_strided_slice %184 {offsets = [0, 104], sizes = [8, 8], strides = [1, 1]} : vector<8x216xf32> to vector<8x8xf32>
    %243 = vector.extract_strided_slice %238 {offsets = [0, 128], sizes = [8, 1024], strides = [1, 1]} : vector<8x1280xf32> to vector<8x1024xf32>
    %cst_67 = arith.constant dense<0.000000e+00> : vector<8x1024xf32>
    %244 = tpu.matmul %242, %243, %cst_67 {dimension_numbers = #tpu.dot_dimension_numbers<[1], [0], [0], [1], [0, 0, 1, 1], [], []>} : vector<8x8xf32>, vector<8x1024xf32>, vector<8x1024xf32> -> vector<8x1024xf32>
    %245 = arith.addf %241, %244 : vector<8x1024xf32>
    %246 = vector.extract_strided_slice %184 {offsets = [0, 176], sizes = [8, 8], strides = [1, 1]} : vector<8x216xf32> to vector<8x8xf32>
    %247 = vector.extract_strided_slice %238 {offsets = [0, 256], sizes = [8, 1024], strides = [1, 1]} : vector<8x1280xf32> to vector<8x1024xf32>
    %cst_68 = arith.constant dense<0.000000e+00> : vector<8x1024xf32>
    %248 = tpu.matmul %246, %247, %cst_68 {dimension_numbers = #tpu.dot_dimension_numbers<[1], [0], [0], [1], [0, 0, 1, 1], [], []>} : vector<8x8xf32>, vector<8x1024xf32>, vector<8x1024xf32> -> vector<8x1024xf32>
    %249 = arith.addf %245, %248 : vector<8x1024xf32>
    %250 = arith.addf %237, %249 : vector<8x1024xf32>
    %251 = vector.extract_strided_slice %183 {offsets = [0, 129], sizes = [8, 1280], strides = [1, 1]} : vector<8x1536xf32> to vector<8x1280xf32>
    %252 = vector.extract_strided_slice %184 {offsets = [0, 40], sizes = [8, 8], strides = [1, 1]} : vector<8x216xf32> to vector<8x8xf32>
    %253 = vector.extract_strided_slice %251 {offsets = [0, 0], sizes = [8, 1024], strides = [1, 1]} : vector<8x1280xf32> to vector<8x1024xf32>
    %cst_69 = arith.constant dense<0.000000e+00> : vector<8x1024xf32>
    %254 = tpu.matmul %252, %253, %cst_69 {dimension_numbers = #tpu.dot_dimension_numbers<[1], [0], [0], [1], [0, 0, 1, 1], [], []>} : vector<8x8xf32>, vector<8x1024xf32>, vector<8x1024xf32> -> vector<8x1024xf32>
    %255 = vector.extract_strided_slice %184 {offsets = [0, 112], sizes = [8, 8], strides = [1, 1]} : vector<8x216xf32> to vector<8x8xf32>
    %256 = vector.extract_strided_slice %251 {offsets = [0, 128], sizes = [8, 1024], strides = [1, 1]} : vector<8x1280xf32> to vector<8x1024xf32>
    %cst_70 = arith.constant dense<0.000000e+00> : vector<8x1024xf32>
    %257 = tpu.matmul %255, %256, %cst_70 {dimension_numbers = #tpu.dot_dimension_numbers<[1], [0], [0], [1], [0, 0, 1, 1], [], []>} : vector<8x8xf32>, vector<8x1024xf32>, vector<8x1024xf32> -> vector<8x1024xf32>
    %258 = arith.addf %254, %257 : vector<8x1024xf32>
    %259 = vector.extract_strided_slice %184 {offsets = [0, 184], sizes = [8, 8], strides = [1, 1]} : vector<8x216xf32> to vector<8x8xf32>
    %260 = vector.extract_strided_slice %251 {offsets = [0, 256], sizes = [8, 1024], strides = [1, 1]} : vector<8x1280xf32> to vector<8x1024xf32>
    %cst_71 = arith.constant dense<0.000000e+00> : vector<8x1024xf32>
    %261 = tpu.matmul %259, %260, %cst_71 {dimension_numbers = #tpu.dot_dimension_numbers<[1], [0], [0], [1], [0, 0, 1, 1], [], []>} : vector<8x8xf32>, vector<8x1024xf32>, vector<8x1024xf32> -> vector<8x1024xf32>
    %262 = arith.addf %258, %261 : vector<8x1024xf32>
    %263 = arith.addf %250, %262 : vector<8x1024xf32>
    %264 = vector.extract_strided_slice %183 {offsets = [0, 137], sizes = [8, 1280], strides = [1, 1]} : vector<8x1536xf32> to vector<8x1280xf32>
    %265 = vector.extract_strided_slice %184 {offsets = [0, 48], sizes = [8, 8], strides = [1, 1]} : vector<8x216xf32> to vector<8x8xf32>
    %266 = vector.extract_strided_slice %264 {offsets = [0, 0], sizes = [8, 1024], strides = [1, 1]} : vector<8x1280xf32> to vector<8x1024xf32>
    %cst_72 = arith.constant dense<0.000000e+00> : vector<8x1024xf32>
    %267 = tpu.matmul %265, %266, %cst_72 {dimension_numbers = #tpu.dot_dimension_numbers<[1], [0], [0], [1], [0, 0, 1, 1], [], []>} : vector<8x8xf32>, vector<8x1024xf32>, vector<8x1024xf32> -> vector<8x1024xf32>
    %268 = vector.extract_strided_slice %184 {offsets = [0, 120], sizes = [8, 8], strides = [1, 1]} : vector<8x216xf32> to vector<8x8xf32>
    %269 = vector.extract_strided_slice %264 {offsets = [0, 128], sizes = [8, 1024], strides = [1, 1]} : vector<8x1280xf32> to vector<8x1024xf32>
    %cst_73 = arith.constant dense<0.000000e+00> : vector<8x1024xf32>
    %270 = tpu.matmul %268, %269, %cst_73 {dimension_numbers = #tpu.dot_dimension_numbers<[1], [0], [0], [1], [0, 0, 1, 1], [], []>} : vector<8x8xf32>, vector<8x1024xf32>, vector<8x1024xf32> -> vector<8x1024xf32>
    %271 = arith.addf %267, %270 : vector<8x1024xf32>
    %272 = vector.extract_strided_slice %184 {offsets = [0, 192], sizes = [8, 8], strides = [1, 1]} : vector<8x216xf32> to vector<8x8xf32>
    %273 = vector.extract_strided_slice %264 {offsets = [0, 256], sizes = [8, 1024], strides = [1, 1]} : vector<8x1280xf32> to vector<8x1024xf32>
    %cst_74 = arith.constant dense<0.000000e+00> : vector<8x1024xf32>
    %274 = tpu.matmul %272, %273, %cst_74 {dimension_numbers = #tpu.dot_dimension_numbers<[1], [0], [0], [1], [0, 0, 1, 1], [], []>} : vector<8x8xf32>, vector<8x1024xf32>, vector<8x1024xf32> -> vector<8x1024xf32>
    %275 = arith.addf %271, %274 : vector<8x1024xf32>
    %276 = arith.addf %263, %275 : vector<8x1024xf32>
    %277 = vector.extract_strided_slice %183 {offsets = [0, 138], sizes = [8, 1280], strides = [1, 1]} : vector<8x1536xf32> to vector<8x1280xf32>
    %278 = vector.extract_strided_slice %184 {offsets = [0, 56], sizes = [8, 8], strides = [1, 1]} : vector<8x216xf32> to vector<8x8xf32>
    %279 = vector.extract_strided_slice %277 {offsets = [0, 0], sizes = [8, 1024], strides = [1, 1]} : vector<8x1280xf32> to vector<8x1024xf32>
    %cst_75 = arith.constant dense<0.000000e+00> : vector<8x1024xf32>
    %280 = tpu.matmul %278, %279, %cst_75 {dimension_numbers = #tpu.dot_dimension_numbers<[1], [0], [0], [1], [0, 0, 1, 1], [], []>} : vector<8x8xf32>, vector<8x1024xf32>, vector<8x1024xf32> -> vector<8x1024xf32>
    %281 = vector.extract_strided_slice %184 {offsets = [0, 128], sizes = [8, 8], strides = [1, 1]} : vector<8x216xf32> to vector<8x8xf32>
    %282 = vector.extract_strided_slice %277 {offsets = [0, 128], sizes = [8, 1024], strides = [1, 1]} : vector<8x1280xf32> to vector<8x1024xf32>
    %cst_76 = arith.constant dense<0.000000e+00> : vector<8x1024xf32>
    %283 = tpu.matmul %281, %282, %cst_76 {dimension_numbers = #tpu.dot_dimension_numbers<[1], [0], [0], [1], [0, 0, 1, 1], [], []>} : vector<8x8xf32>, vector<8x1024xf32>, vector<8x1024xf32> -> vector<8x1024xf32>
    %284 = arith.addf %280, %283 : vector<8x1024xf32>
    %285 = vector.extract_strided_slice %184 {offsets = [0, 200], sizes = [8, 8], strides = [1, 1]} : vector<8x216xf32> to vector<8x8xf32>
    %286 = vector.extract_strided_slice %277 {offsets = [0, 256], sizes = [8, 1024], strides = [1, 1]} : vector<8x1280xf32> to vector<8x1024xf32>
    %cst_77 = arith.constant dense<0.000000e+00> : vector<8x1024xf32>
    %287 = tpu.matmul %285, %286, %cst_77 {dimension_numbers = #tpu.dot_dimension_numbers<[1], [0], [0], [1], [0, 0, 1, 1], [], []>} : vector<8x8xf32>, vector<8x1024xf32>, vector<8x1024xf32> -> vector<8x1024xf32>
    %288 = arith.addf %284, %287 : vector<8x1024xf32>
    %289 = arith.addf %276, %288 : vector<8x1024xf32>
    %290 = vector.extract_strided_slice %183 {offsets = [0, 139], sizes = [8, 1280], strides = [1, 1]} : vector<8x1536xf32> to vector<8x1280xf32>
    %291 = vector.extract_strided_slice %184 {offsets = [0, 64], sizes = [8, 8], strides = [1, 1]} : vector<8x216xf32> to vector<8x8xf32>
    %292 = vector.extract_strided_slice %290 {offsets = [0, 0], sizes = [8, 1024], strides = [1, 1]} : vector<8x1280xf32> to vector<8x1024xf32>
    %cst_78 = arith.constant dense<0.000000e+00> : vector<8x1024xf32>
    %293 = tpu.matmul %291, %292, %cst_78 {dimension_numbers = #tpu.dot_dimension_numbers<[1], [0], [0], [1], [0, 0, 1, 1], [], []>} : vector<8x8xf32>, vector<8x1024xf32>, vector<8x1024xf32> -> vector<8x1024xf32>
    %294 = vector.extract_strided_slice %184 {offsets = [0, 136], sizes = [8, 8], strides = [1, 1]} : vector<8x216xf32> to vector<8x8xf32>
    %295 = vector.extract_strided_slice %290 {offsets = [0, 128], sizes = [8, 1024], strides = [1, 1]} : vector<8x1280xf32> to vector<8x1024xf32>
    %cst_79 = arith.constant dense<0.000000e+00> : vector<8x1024xf32>
    %296 = tpu.matmul %294, %295, %cst_79 {dimension_numbers = #tpu.dot_dimension_numbers<[1], [0], [0], [1], [0, 0, 1, 1], [], []>} : vector<8x8xf32>, vector<8x1024xf32>, vector<8x1024xf32> -> vector<8x1024xf32>
    %297 = arith.addf %293, %296 : vector<8x1024xf32>
    %298 = vector.extract_strided_slice %184 {offsets = [0, 208], sizes = [8, 8], strides = [1, 1]} : vector<8x216xf32> to vector<8x8xf32>
    %299 = vector.extract_strided_slice %290 {offsets = [0, 256], sizes = [8, 1024], strides = [1, 1]} : vector<8x1280xf32> to vector<8x1024xf32>
    %cst_80 = arith.constant dense<0.000000e+00> : vector<8x1024xf32>
    %300 = tpu.matmul %298, %299, %cst_80 {dimension_numbers = #tpu.dot_dimension_numbers<[1], [0], [0], [1], [0, 0, 1, 1], [], []>} : vector<8x8xf32>, vector<8x1024xf32>, vector<8x1024xf32> -> vector<8x1024xf32>
    %301 = arith.addf %297, %300 : vector<8x1024xf32>
    %302 = arith.addf %289, %301 : vector<8x1024xf32>
    %c0_81 = arith.constant 0 : index
    %c0_82 = arith.constant 0 : index
    %303 = vector.load %arg5[%c0_81, %c0_82] : memref<8x1xf32, #tpu.memory_space<vmem>>, vector<8x1xf32>
    %304 = vector.broadcast %303 : vector<8x1xf32> to vector<8x1024xf32>
    %305 = arith.addf %302, %304 : vector<8x1024xf32>
    %306 = arith.mulf %305, %4 : vector<8x1024xf32>
    %cst_83 = arith.constant dense<0.000000e+00> : vector<8xf32>
    %307 = vector.multi_reduction <add>, %306, %cst_83 [1] : vector<8x1024xf32> to vector<8xf32>
    %308 = vector.shape_cast %307 : vector<8xf32> to vector<8x1xf32>
    %cst_84 = arith.constant 0.001953125 : f32
    %309 = vector.broadcast %cst_84 : f32 to vector<8x1xf32>
    %310 = arith.mulf %308, %309 : vector<8x1xf32>
    %311 = arith.mulf %306, %306 : vector<8x1024xf32>
    %cst_85 = arith.constant dense<0.000000e+00> : vector<8xf32>
    %312 = vector.multi_reduction <add>, %311, %cst_85 [1] : vector<8x1024xf32> to vector<8xf32>
    %313 = vector.shape_cast %312 : vector<8xf32> to vector<8x1xf32>
    %cst_86 = arith.constant 0.001953125 : f32
    %314 = vector.broadcast %cst_86 : f32 to vector<8x1xf32>
    %315 = arith.mulf %313, %314 : vector<8x1xf32>
    %316 = arith.mulf %310, %310 : vector<8x1xf32>
    %317 = arith.subf %315, %316 : vector<8x1xf32>
    %cst_87 = arith.constant 0.000000e+00 : f32
    %318 = vector.broadcast %cst_87 : f32 to vector<8x1xf32>
    %319 = arith.maximumf %317, %318 : vector<8x1xf32>
    %320 = vector.broadcast %310 : vector<8x1xf32> to vector<8x1024xf32>
    %321 = arith.subf %306, %320 : vector<8x1024xf32>
    %cst_88 = arith.constant 9.99999974E-6 : f32
    %322 = vector.broadcast %cst_88 : f32 to vector<8x1xf32>
    %323 = arith.addf %319, %322 : vector<8x1xf32>
    %324 = math.rsqrt %323 : vector<8x1xf32>
    %325 = vector.broadcast %324 : vector<8x1xf32> to vector<8x1024xf32>
    %326 = arith.mulf %321, %325 : vector<8x1024xf32>
    %cst_89 = arith.constant 0.000000e+00 : f32
    %327 = vector.broadcast %cst_89 : f32 to vector<8x1024xf32>
    %328 = arith.maximumf %326, %327 : vector<8x1024xf32>
    %329 = arith.mulf %328, %4 : vector<8x1024xf32>
    %330 = arith.mulf %329, %180 : vector<8x1024xf32>
    %c0_90 = arith.constant 0 : index
    %c0_91 = arith.constant 0 : index
    %331 = vector.load %arg6[%c0_90, %c0_91] : memref<8x8xf32, #tpu.memory_space<vmem>>, vector<8x8xf32>
    %cst_92 = arith.constant dense<0.000000e+00> : vector<8x1024xf32>
    %332 = tpu.matmul %331, %330, %cst_92 {dimension_numbers = #tpu.dot_dimension_numbers<[1], [0], [0], [1], [0, 0, 1, 1], [], []>} : vector<8x8xf32>, vector<8x1024xf32>, vector<8x1024xf32> -> vector<8x1024xf32>
    %c0_93 = arith.constant 0 : index
    %c0_94 = arith.constant 0 : index
    %333 = vector.load %arg7[%c0_93, %c0_94] : memref<8x1xf32, #tpu.memory_space<vmem>>, vector<8x1xf32>
    %334 = vector.broadcast %333 : vector<8x1xf32> to vector<8x1024xf32>
    %335 = arith.addf %332, %334 : vector<8x1024xf32>
    %336 = arith.mulf %335, %4 : vector<8x1024xf32>
    %cst_95 = arith.constant dense<0.000000e+00> : vector<8xf32>
    %337 = vector.multi_reduction <add>, %336, %cst_95 [1] : vector<8x1024xf32> to vector<8xf32>
    %338 = vector.shape_cast %337 : vector<8xf32> to vector<8x1xf32>
    %cst_96 = arith.constant 0.001953125 : f32
    %339 = vector.broadcast %cst_96 : f32 to vector<8x1xf32>
    %340 = arith.mulf %338, %339 : vector<8x1xf32>
    %341 = arith.mulf %336, %336 : vector<8x1024xf32>
    %cst_97 = arith.constant dense<0.000000e+00> : vector<8xf32>
    %342 = vector.multi_reduction <add>, %341, %cst_97 [1] : vector<8x1024xf32> to vector<8xf32>
    %343 = vector.shape_cast %342 : vector<8xf32> to vector<8x1xf32>
    %cst_98 = arith.constant 0.001953125 : f32
    %344 = vector.broadcast %cst_98 : f32 to vector<8x1xf32>
    %345 = arith.mulf %343, %344 : vector<8x1xf32>
    %346 = arith.mulf %340, %340 : vector<8x1xf32>
    %347 = arith.subf %345, %346 : vector<8x1xf32>
    %cst_99 = arith.constant 0.000000e+00 : f32
    %348 = vector.broadcast %cst_99 : f32 to vector<8x1xf32>
    %349 = arith.maximumf %347, %348 : vector<8x1xf32>
    %350 = vector.broadcast %340 : vector<8x1xf32> to vector<8x1024xf32>
    %351 = arith.subf %336, %350 : vector<8x1024xf32>
    %cst_100 = arith.constant 9.99999974E-6 : f32
    %352 = vector.broadcast %cst_100 : f32 to vector<8x1xf32>
    %353 = arith.addf %349, %352 : vector<8x1xf32>
    %354 = math.rsqrt %353 : vector<8x1xf32>
    %355 = vector.broadcast %354 : vector<8x1xf32> to vector<8x1024xf32>
    %356 = arith.mulf %351, %355 : vector<8x1024xf32>
    %cst_101 = arith.constant 0.000000e+00 : f32
    %357 = vector.broadcast %cst_101 : f32 to vector<8x1024xf32>
    %358 = arith.maximumf %356, %357 : vector<8x1024xf32>
    %359 = arith.mulf %358, %4 : vector<8x1024xf32>
    %360 = vector.extract_strided_slice %1 {offsets = [0, 256], sizes = [8, 1024], strides = [1, 1]} : vector<8x1536xf32> to vector<8x1024xf32>
    %361 = arith.addf %359, %360 : vector<8x1024xf32>
    %c0_102 = arith.constant 0 : index
    %c0_103 = arith.constant 0 : index
    %c0_104 = arith.constant 0 : index
    %362 = vector.load %arg9[%c0_102, %c0_103, %c0_104] : memref<1x8x1024xf32, #tpu.memory_space<vmem>>, vector<1x8x1024xf32>
    %363 = vector.shape_cast %362 : vector<1x8x1024xf32> to vector<8x1024xf32>
    %364 = vector.shape_cast %361 : vector<8x1024xf32> to vector<1x8x1024xf32>
    tpu.vector_store %arg9[%c0_102, %c0_103, %c0_104], %364 {strides = array<i32>} : memref<1x8x1024xf32, #tpu.memory_space<vmem>>, vector<1x8x1024xf32>,
    return
  }
  func.func @transform_0(%arg0: i32) -> (i32, i32, i32) {
    %c0_i32 = arith.constant 0 : i32
    %c0_i32_0 = arith.constant 0 : i32
    %c0_i32_1 = arith.constant 0 : i32
    return %arg0, %c0_i32, %c0_i32_0 : i32, i32, i32
  }
  func.func @transform_1(%arg0: i32) -> (i32, i32) {
    %c0_i32 = arith.constant 0 : i32
    %c0_i32_0 = arith.constant 0 : i32
    %c0_i32_1 = arith.constant 0 : i32
    return %c0_i32, %c0_i32_0 : i32, i32
  }
  func.func @transform_2(%arg0: i32) -> (i32, i32) {
    %c0_i32 = arith.constant 0 : i32
    %c0_i32_0 = arith.constant 0 : i32
    %c0_i32_1 = arith.constant 0 : i32
    return %c0_i32, %c0_i32_0 : i32, i32
  }
  func.func @transform_3(%arg0: i32) -> (i32, i32) {
    %c0_i32 = arith.constant 0 : i32
    %c0_i32_0 = arith.constant 0 : i32
    %c0_i32_1 = arith.constant 0 : i32
    return %c0_i32, %c0_i32_0 : i32, i32
  }
  func.func @transform_4(%arg0: i32) -> (i32, i32) {
    %c0_i32 = arith.constant 0 : i32
    %c0_i32_0 = arith.constant 0 : i32
    %c0_i32_1 = arith.constant 0 : i32
    return %c0_i32, %c0_i32_0 : i32, i32
  }
  func.func @transform_5(%arg0: i32) -> (i32, i32) {
    %c0_i32 = arith.constant 0 : i32
    %c0_i32_0 = arith.constant 0 : i32
    %c0_i32_1 = arith.constant 0 : i32
    return %c0_i32, %c0_i32_0 : i32, i32
  }
  func.func @transform_6(%arg0: i32) -> (i32, i32) {
    %c0_i32 = arith.constant 0 : i32
    %c0_i32_0 = arith.constant 0 : i32
    %c0_i32_1 = arith.constant 0 : i32
    return %c0_i32, %c0_i32_0 : i32, i32
  }
  func.func @transform_7(%arg0: i32) -> (i32, i32) {
    %c0_i32 = arith.constant 0 : i32
    %c0_i32_0 = arith.constant 0 : i32
    %c0_i32_1 = arith.constant 0 : i32
    return %c0_i32, %c0_i32_0 : i32, i32
  }
  func.func @transform_8(%arg0: i32) -> (i32, i32, i32) {
    %c0_i32 = arith.constant 0 : i32
    %c0_i32_0 = arith.constant 0 : i32
    %c0_i32_1 = arith.constant 0 : i32
    return %arg0, %c0_i32, %c0_i32_0 : i32, i32, i32
  }
}

</mosaic_0001>

<bundles_post_ra>
// kernel: gsc_forward.1
= control target key start
LH: loop header
LB: loop body
LE: loop exit
PB: predicated region body
PF: predicated region fallthrough
CT: control target
= control target key end

     0   :  { %s12807_s27 = smov 0   ;;  %s16795_s0 = inlined_call_operand.vmem [shape: f32[2,8,1536], index: 0, kind: input, shape index: {}]   ;;  %s16796_s1 = inlined_call_operand.vmem [shape: f32[16,216], index: 1, kind: input, shape index: {}]   ;;  %s16797_s2 = inlined_call_operand.vmem [shape: f32[16,1], index: 2, kind: input, shape index: {}]   ;;  %s16798_s3 = inlined_call_operand.vmem [shape: f32[8,216], index: 3, kind: input, shape index: {}]   ;;  %s16799_s4 = inlined_call_operand.vmem [shape: f32[8,1], index: 4, kind: input, shape index: {}]   ;;  %s16800_s5 = inlined_call_operand.vmem [shape: f32[8,8], index: 5, kind: input, shape index: {}]   ;;  %s16801_s6 = inlined_call_operand.vmem [shape: f32[8,1], index: 6, kind: input, shape index: {}]   ;;  %s16802_s7 = inlined_call_operand.vmem [shape: f32[1,1024], index: 7, kind: input, shape index: {}]   ;;  %s16803_s8 = inlined_call_operand.vmem [shape: f32[2,8,1024], index: 8, kind: output, shape index: {}]  }
   0x1 LB: > { %s11661_s28 = sadd.s32 4294967295, %s12735_s27   ;;  %p11665_p0 = scmp.ge.s32.totalorder %s12735_s27, 1  ;;  %s12735_s27 = sphi %s12807_s27, %s18_s27  }
   0x2   : > { %p262_p1 = scmp.lt.s32.totalorder %s12735_s27, 3 }
   0x4   : > { %p263_p2 = pnand %p11665_p0, %p262_p1 }
   0x6   : > { %266 = sbr.rel (%p263_p2) target bundleno = 2457 (0x999), region = 52 }
   0xb   : > { %p296_p3 = scmp.lt.s32.totalorder %s11661_s28, 1  ;;  %v12818_v0 = vld [vmem:[%s16796_s1 + $0x10] sm:$0xff]  ;;  %s12737_s9 = smov 56   ;;  %v12851_v10 = vld [vmem:[%s16796_s1] sm:$0xff]  ;;  %v12865_v14 = vld [vmem:[%s16796_s1 + $0x8] sm:$0xff]  ;;  %vm375_vm0 = vcmask 89088  }
   0xc   : > { %346 = vrot.lane.b32.xlu2 %v12818_v0, %s12737_s9  ;;  %s12738_s14 = smov 11   ;;  %s12739_s19 = smov 112   ;;  %v12883_v17 = vld [vmem:[%s16796_s1 + $0x18] sm:$0xff]  ;;  %vm392_vm1 = vcmask 64512   ;;  %vm1027_vm2 = vcmask 80896   ;;  %vm1678_vm3 = vcmask 72704  }
   0xd   : > { %s17048_s28 = smov (!%p296_p3, %s11661_s28), 1  ;;  %s12740_s20 = smov 10   ;;  %vm2329_vm4 = vcmask 7168   ;;  %vm3588_vm5 = vcmask 1039360   ;;  %vm4240_vm6 = vcmask 973824   ;;  %vm4887_vm7 = vcmask 965632  }
   0xe   : > { %s12328_s10 = smul.u32 96, %s17048_s28  ;;  %s12741_s23 = smov 48   ;;  %vm5538_vm8 = vcmask 957440  }
   0xf   : > { %s12742_s24 = smov 120   ;;  %s12743_s25 = smov 104  }
  0x10   : > { %s12828_s13 = scalar_lea.vmem %s16795_s0, %s12328_s10  ;;  %s12744_s26 = smov 40  }
  0x11   : > { %v309_v1 = vld [vmem:[%s12828_s13 + $0x18] sm:$0xff]  ;;  %v310_v2 = vld [vmem:[%s12828_s13 + $0x20] sm:$0xff]  ;;  %v307_v3 = vld [vmem:[%s12828_s13 + $0x8] sm:$0xff]  ;;  %s12745_s29 = smov 96   ;;  %s12746_s30 = smov 9  }
  0x12   : > { %v12833_v4 = vpack.i.bf16 %v310_v2, %v309_v1  ;;  %v308_v5 = vld [vmem:[%s12828_s13 + $0x10] sm:$0xff]  ;;  %v313_v7 = vld [vmem:[%s12828_s13 + $0x38] sm:$0xff]  ;;  %v314_v8 = vld [vmem:[%s12828_s13 + $0x40] sm:$0xff]  ;;  %s16808_s10 = smov 32   ;;  %s12748_s11 = smov 88  }
  0x13   : > { %v12836_v6 = vpack.i.bf16 %v308_v5, %v307_v3  ;;  %v12844_v9 = vpack.i.bf16 %v314_v8, %v313_v7  ;;  %v12854_v11 = vld [vmem:[%s12828_s13 + $0x28] sm:$0xff]  ;;  %v312_v12 = vld [vmem:[%s12828_s13 + $0x30] sm:$0xff]  ;;  %v12872_v16 = vld [vmem:[%s12828_s13] sm:$0xff]  ;;  %s12749_s12 = smov 1   ;;  %s12750_s15 = smov 24  }
  0x14   : > { %12363 = vrot.lane.b32.xlu0 %v12833_v4, %s12738_s14  ;;  %v315_v13 = vld [vmem:[%s12828_s13 + $0x48] sm:$0xff]  ;;  %v12886_v18 = vld [vmem:[%s12828_s13 + $0x50] sm:$0xff]  ;;  %s16824_s16 = smov 80   ;;  %s16809_s17 = smov 16  }
  0x15   : > { %12368 = vrot.lane.b32.xlu1 %v12836_v6, %s12738_s14  ;;  %12373 = vrot.lane.b32.xlu2 %v12844_v9, %s12738_s14  ;;  %v12869_v15 = vpack.i.bf16 %v315_v13, %v312_v12  ;;  %s12753_s22 = smov 72   ;;  %s12754_s18 = smov 127  }
  0x16   : > { %s16832_s21 = smov 119  }
  0x1c   : > { %344 = vrot.lane.b32.xlu0 %v12851_v10, %s12737_s9 }
  0x1d   : > { %365 = vrot.lane.b32.xlu1 %v12854_v11, %s12738_s14  ;;  %776 = vrot.lane.b32.xlu2 %v12865_v14, %s12739_s19 }
  0x24   : > { %12378 = vrot.lane.b32.xlu0 %v12869_v15, %s12738_s14 }
  0x25   : > { %582 = vrot.lane.b32.xlu1 %v12872_v16, %s12738_s14  ;;  %12383 = vrot.lane.b32.xlu2 %v12833_v4, %s12740_s20 }
  0x2c   : > { %778 = vrot.lane.b32.xlu0 %v12883_v17, %s12739_s19 }
  0x2d   : > { %781 = vrot.lane.b32.xlu1 %v12886_v18, %s12738_s14  ;;  %1017 = vrot.lane.b32.xlu2 %v12854_v11, %s12740_s20 }
  0x34   : > { %1005 = vrot.lane.b32.xlu0 %v12851_v10, %s12741_s23 }
  0x35   : > { %12388 = vrot.lane.b32.xlu1 %v12836_v6, %s12740_s20  ;;  %12398 = vrot.lane.b32.xlu2 %v12869_v15, %s12740_s20 }
  0x3c   : > { %1007 = vrot.lane.b32.xlu0 %v12818_v0, %s12741_s23 }
  0x3d   : > { %12393 = vrot.lane.b32.xlu1 %v12844_v9, %s12740_s20  ;;  %1234 = vrot.lane.b32.xlu2 %v12818_v0, %s12742_s24 }
  0x44   : > { %1232 = vrot.lane.b32.xlu0 %v12851_v10, %s12742_s24 }
  0x45   : > { %1236 = vrot.lane.b32.xlu1 %v12872_v16, %s12740_s20  ;;  %1432 = vrot.lane.b32.xlu2 %v12886_v18, %s12740_s20 }
  0x4c   : > { %1428 = vrot.lane.b32.xlu0 %v12865_v14, %s12743_s25 }
  0x4d   : > { %1430 = vrot.lane.b32.xlu1 %v12883_v17, %s12743_s25  ;;  %12408 = vrot.lane.b32.xlu2 %v12836_v6, %s12746_s30 }
  0x54   : > { %12403 = vrot.lane.b32.xlu0 %v12833_v4, %s12746_s30 }
  0x55   : > { %1656 = vrot.lane.b32.xlu1 %v12851_v10, %s12744_s26  ;;  %12413 = vrot.lane.b32.xlu2 %v12844_v9, %s12746_s30 }
  0x5c   : > { %1668 = vrot.lane.b32.xlu0 %v12854_v11, %s12746_s30 }
  0x5d   : > { %1658 = vrot.lane.b32.xlu1 %v12818_v0, %s12744_s26  ;;  %1887 = vrot.lane.b32.xlu2 %v12872_v16, %s12746_s30 }
  0x64   : > { %12418 = vrot.lane.b32.xlu0 %v12869_v15, %s12746_s30 }
  0x65   : > { %1883 = vrot.lane.b32.xlu1 %v12851_v10, %s12739_s19  ;;  %2081 = vrot.lane.b32.xlu2 %v12883_v17, %s12745_s29 }
  0x66   : > { %v347_v19 = vpop.permute.xlu2 %346 }
  0x6c   : > { %1885 = vrot.lane.b32.xlu0 %v12818_v0, %s12739_s19 }
  0x6d   : > { %2079 = vrot.lane.b32.xlu1 %v12865_v14, %s12745_s29  ;;  %2307 = vrot.lane.b32.xlu2 %v12851_v10, %s16808_s10 }
  0x6f   : > { %v12374_v20 = vpop.permute.xlu2 %12373 }
  0x70   : > { %v12376_v21 = vunpack.i.h.bf16 %v12374_v20  ;;  %v12375_v22 = vunpack.i.l.bf16 %v12374_v20 }
  0x72   : > { %v12924_v30 = vsel %vm375_vm0, %v12375_v22, %v12376_v21 }
  0x74   : > { %2083 = vrot.lane.b32.xlu0 %v12886_v18, %s12746_s30 }
  0x75   : > { %2309 = vrot.lane.b32.xlu2 %v12818_v0, %s16808_s10  ;;  %12423 = vrot.lane.b32.xlu1 %v12833_v4, %s12749_s12  ;;  %s12756_s10 = smov 64  }
  0x77   : > { %v12973_v44 = vpop.permute.xlu2 %776 }
  0x7c   : > { %12428 = vrot.lane.b32.xlu0 %v12836_v6, %s12749_s12 }
  0x7d   : > { %2534 = vrot.lane.b32.xlu2 %v12851_v10, %s12743_s25  ;;  %2319 = vrot.lane.b32.xlu1 %v12854_v11, %s12749_s12 }
  0x7f   : > { %v12384_v47 = vpop.permute.xlu2 %12383 }
  0x80   : > { %v12385_v49 = vunpack.i.l.bf16 %v12384_v47  ;;  %v12386_v51 = vunpack.i.h.bf16 %v12384_v47 }
  0x82   : > { %v13007_v55 = vsel %vm1027_vm2, %v12385_v49, %v12386_v51 }
  0x84   : > { %12433 = vrot.lane.b32.xlu0 %v12844_v9, %s12749_s12 }
  0x85   : > { %2730 = vrot.lane.b32.xlu2 %v12865_v14, %s12748_s11  ;;  %12438 = vrot.lane.b32.xlu1 %v12869_v15, %s12749_s12 }
  0x86   : > { %v12364_v23 = vpop.permute.xlu0 %12363 }
  0x87   : > { %v12366_v24 = vunpack.i.h.bf16 %v12364_v23  ;;  %v12365_v25 = vunpack.i.l.bf16 %v12364_v23  ;;  %v12369_v26 = vpop.permute.xlu1 %12368  ;;  %v1018_v53 = vpop.permute.xlu2 %1017 }
  0x88   : > { %v12371_v27 = vunpack.i.h.bf16 %v12369_v26  ;;  %v12370_v28 = vunpack.i.l.bf16 %v12369_v26  ;;  %v13018_v57 = vsel %vm1027_vm2, %v12386_v51, %v1018_v53 }
  0x89   : > { %v378_v29 = vsel %vm375_vm0, %v12365_v25, %v12366_v24 }
  0x8a   : > { %v376_v31 = vsel %vm375_vm0, %v12370_v28, %v12371_v27  ;;  %v377_v32 = vsel %vm375_vm0, %v12371_v27, %v12365_v25  ;;  %458 = vmatpush.msra.mxu2 %v378_v29 }
  0x8b   : > { %412 = vmatpush.msra.mxu0 %v376_v31  ;;  %435 = vmatpush.msra.mxu1 %v377_v32 }
  0x8c   : > { %550 = vmatpush.msrb.mxu2 %v12924_v30  ;;  %2538 = vrot.lane.b32.xlu0 %v12872_v16, %s12749_s12 }
  0x8d   : > { %2536 = vrot.lane.b32.xlu1 %v12818_v0, %s12743_s25  ;;  %2958 = vrot.lane.b32.xlu2 %v12851_v10, %s12750_s15 }
  0x8e   : > { %v345_v33 = vpop.permute.xlu0 %344 }
  0x8f   : > { %v366_v34 = vpop.permute.xlu1 %365  ;;  %11669 = vmatmul.msk.f32.vlgmr.msra.gmra.mxu0 %vm392_vm1, %v345_v33  ;;  %11671 = vmatmul.msk.f32.vlgmr.msra.gmra.mxu1 %vm392_vm1, %v345_v33  ;;  %v13026_v59 = vpop.permute.xlu2 %12398 }
  0x90   : > { %11673 = vmatmul.msk.f32.vlgmr.msra.gmra.mxu2 %vm392_vm1, %v345_v33  ;;  %v379_v35 = vsel %vm375_vm0, %v12366_v24, %v366_v34  ;;  %v12400_v61 = vunpack.i.l.bf16 %v13026_v59  ;;  %v12401_v1 = vunpack.i.h.bf16 %v13026_v59 }
  0x91   : > { %651 = vmatpush.msra.mxu2 %v377_v32  ;;  %481 = vmatpush.msra.mxu3 %v379_v35 }
  0x92   : > { %11675 = vmatmul.msk.f32.vlgmr.msra.gmra.mxu3 %vm392_vm1, %v345_v33  ;;  %v13037_v2 = vsel %vm1027_vm2, %v1018_v53, %v12400_v61 }
  0x94   : > { %2732 = vrot.lane.b32.xlu0 %v12883_v17, %s12748_s11 }
  0x95   : > { %2734 = vrot.lane.b32.xlu1 %v12886_v18, %s12749_s12  ;;  %3152 = vrot.lane.b32.xlu2 %v12818_v0, %s12745_s29 }
  0x96   : > { %v12379_v36 = vpop.permute.xlu0 %12378 }
  0x97   : > { %v12381_v37 = vunpack.i.h.bf16 %v12379_v36  ;;  %v12380_v38 = vunpack.i.l.bf16 %v12379_v36  ;;  %11670 = vmatmul.msk.f32.gmra.mxu0 %vm392_vm1, %v347_v19  ;;  %11672 = vmatmul.msk.f32.gmra.mxu1 %vm392_vm1, %v347_v19  ;;  %v583_v39 = vpop.permute.xlu1 %582  ;;  %v1235_v24 = vpop.permute.xlu2 %1234 }
  0x98   : > { %11674 = vmatmul.msk.f32.gmra.mxu2 %vm392_vm1, %v347_v19  ;;  %v584_v43 = vsel %vm375_vm0, %v583_v39, %v12370_v28 }
  0x99   : > { %v380_v40 = vsel %vm375_vm0, %v366_v34, %v12380_v38  ;;  %v381_v41 = vsel %vm375_vm0, %v12380_v38, %v12375_v22  ;;  %v383_v42 = vsel %vm375_vm0, %v12376_v21, %v12381_v37 }
  0x9a   : > { %11676 = vmatmul.msk.f32.gmra.mxu3 %vm392_vm1, %v347_v19  ;;  %504 = vmatpush.msrb.mxu0 %v380_v40 }
  0x9b   : > { %527 = vmatpush.msrb.mxu1 %v381_v41  ;;  %573 = vmatpush.msrb.mxu3 %v383_v42 }
  0x9c   : > { %605 = vmatpush.msra.mxu0 %v584_v43  ;;  %2960 = vrot.lane.b32.xlu0 %v12818_v0, %s12750_s15 }
  0x9d   : > { %628 = vmatpush.msra.mxu1 %v376_v31  ;;  %674 = vmatpush.msra.mxu3 %v378_v29 }
  0x9e   : > { %v779_v58 = vpop.permute.xlu0 %778  ;;  %3150 = vrot.lane.b32.xlu1 %v12851_v10, %s12745_s29 }
  0x9f   : > { %11677 = vmatmul.msk.f32.vlgmr.msrb.gmra.mxu0 %vm392_vm1, %v345_v33  ;;  %11679 = vmatmul.msk.f32.vlgmr.msrb.gmra.mxu1 %vm392_vm1, %v345_v33  ;;  %v782_v45 = vpop.permute.xlu1 %781 }
  0xa0   : > { %11681 = vmatmul.msk.f32.vlgmr.msrb.gmra.mxu2 %vm392_vm1, %v345_v33  ;;  %697 = vmatpush.msrb.mxu0 %v379_v35  ;;  %v783_v46 = vsel %vm375_vm0, %v12381_v37, %v782_v45 }
  0xa1   : > { %720 = vmatpush.msrb.mxu1 %v380_v40  ;;  %743 = vmatpush.msrb.mxu2 %v381_v41 }
  0xa2   : > { %11683 = vmatmul.msk.f32.vlgmr.msrb.gmra.mxu3 %vm392_vm1, %v345_v33 }
  0xa3   : > { %766 = vmatpush.msrb.mxu3 %v12924_v30 }
  0xa4   : > { %3342 = vrot.lane.b32.xlu0 %v12865_v14, %s16824_s16 }
  0xa6   : > { %v1006_v12 = vpop.permute.xlu0 %1005  ;;  %3344 = vrot.lane.b32.xlu1 %v12883_v17, %s16824_s16 }
  0xa7   : > { %11678 = vmatmul.msk.f32.gmra.mxu0 %vm392_vm1, %v347_v19  ;;  %11680 = vmatmul.msk.f32.gmra.mxu1 %vm392_vm1, %v347_v19  ;;  %v12389_v48 = vpop.permute.xlu1 %12388 }
  0xa8   : > { %11682 = vmatmul.msk.f32.gmra.mxu2 %vm392_vm1, %v347_v19  ;;  %v12391_v50 = vunpack.i.h.bf16 %v12389_v48  ;;  %v12390_v52 = vunpack.i.l.bf16 %v12389_v48 }
  0xaa   : > { %11684 = vmatmul.msk.f32.gmra.mxu3 %vm392_vm1, %v347_v19  ;;  %v13004_v54 = vsel %vm1027_vm2, %v12391_v50, %v12385_v49  ;;  %v1028_v56 = vsel %vm1027_vm2, %v12390_v52, %v12391_v50 }
  0xac   : > { %3566 = vrot.lane.b32.xlu0 %v12851_v10, %s16809_s17 }
  0xae   : > { %v1008_v19 = vpop.permute.xlu0 %1007 }
  0xaf   : > { %11685 = vmatmul.msk.f32.vlgmr.msra.gmra.mxu0 %vm392_vm1, %v12851_v10  ;;  %11687 = vmatmul.msk.f32.vlgmr.msra.gmra.mxu1 %vm392_vm1, %v12851_v10  ;;  %v12394_v60 = vpop.permute.xlu1 %12393 }
  0xb0   : > { %11689 = vmatmul.msk.f32.vlgmr.msra.gmra.mxu2 %vm392_vm1, %v12851_v10  ;;  %804 = vmatpush.msra.mxu0 %v377_v32  ;;  %v12396_v62 = vunpack.i.h.bf16 %v12394_v60  ;;  %v12395_v63 = vunpack.i.l.bf16 %v12394_v60 }
  0xb1   : > { %827 = vmatpush.msra.mxu1 %v378_v29  ;;  %850 = vmatpush.msra.mxu2 %v379_v35  ;;  %v1433_v29 = vpop.permute.xlu2 %1432 }
  0xb2   : > { %11691 = vmatmul.msk.f32.vlgmr.msra.gmra.mxu3 %vm392_vm1, %v12851_v10  ;;  %v13040_v3 = vsel %vm1027_vm2, %v12400_v61, %v12395_v63  ;;  %v13043_v5 = vsel %vm1027_vm2, %v12395_v63, %v12396_v62  ;;  %v13055_v7 = vsel %vm1027_vm2, %v12396_v62, %v12401_v1 }
  0xb3   : > { %873 = vmatpush.msra.mxu3 %v380_v40 }
  0xb4   : > { %3568 = vrot.lane.b32.xlu0 %v12818_v0, %s16809_s17  ;;  %s16834_s17 = smov 8  }
  0xb6   : > { %v1233_v20 = vpop.permute.xlu0 %1232 }
  0xb7   : > { %11686 = vmatmul.msk.f32.gmra.mxu0 %vm392_vm1, %v12818_v0  ;;  %11688 = vmatmul.msk.f32.gmra.mxu1 %vm392_vm1, %v12818_v0  ;;  %v1237_v8 = vpop.permute.xlu1 %1236 }
  0xb8   : > { %11690 = vmatmul.msk.f32.gmra.mxu2 %vm392_vm1, %v12818_v0  ;;  %v1238_v13 = vsel %vm1027_vm2, %v1237_v8, %v12390_v52 }
  0xb9   : > { %v13170_v34 = vpop.permute.xlu2 %12408 }
  0xba   : > { %11692 = vmatmul.msk.f32.gmra.mxu3 %vm392_vm1, %v12818_v0  ;;  %v12411_v36 = vunpack.i.h.bf16 %v13170_v34  ;;  %v12410_v38 = vunpack.i.l.bf16 %v13170_v34 }
  0xbc   : > { %v13198_v45 = vsel %vm1678_vm3, %v12410_v38, %v12411_v36  ;;  %3793 = vrot.lane.b32.xlu0 %v12851_v10, %s12748_s11 }
  0xbe   : > { %v13128_v11 = vpop.permute.xlu0 %1428 }
  0xbf   : > { %11693 = vmatmul.msk.f32.vlgmr.msrb.gmra.mxu0 %vm392_vm1, %v12851_v10  ;;  %11695 = vmatmul.msk.f32.vlgmr.msrb.gmra.mxu1 %vm392_vm1, %v12851_v10  ;;  %v1431_v48 = vpop.permute.xlu1 %1430 }
  0xc0   : > { %11697 = vmatmul.msk.f32.vlgmr.msrb.gmra.mxu2 %vm392_vm1, %v12851_v10  ;;  %896 = vmatpush.msrb.mxu0 %v381_v41 }
  0xc1   : > { %919 = vmatpush.msrb.mxu1 %v12924_v30  ;;  %942 = vmatpush.msrb.mxu2 %v383_v42  ;;  %v1434_v30 = vsel %vm1027_vm2, %v12401_v1, %v1433_v29 }
  0xc2   : > { %11699 = vmatmul.msk.f32.vlgmr.msrb.gmra.mxu3 %vm392_vm1, %v12851_v10 }
  0xc3   : > { %965 = vmatpush.msrb.mxu3 %v783_v46 }
  0xc6   : > { %v12404_v15 = vpop.permute.xlu0 %12403 }
  0xc7   : > { %11694 = vmatmul.msk.f32.gmra.mxu0 %vm392_vm1, %v12818_v0  ;;  %11696 = vmatmul.msk.f32.gmra.mxu1 %vm392_vm1, %v12818_v0  ;;  %v12405_v35 = vunpack.i.l.bf16 %v12404_v15  ;;  %v12406_v37 = vunpack.i.h.bf16 %v12404_v15 }
  0xc8   : > { %11698 = vmatmul.msk.f32.gmra.mxu2 %vm392_vm1, %v12818_v0 }
  0xc9   : > { %v13193_v18 = vsel %vm1678_vm3, %v12405_v35, %v12406_v37 }
  0xca   : > { %11700 = vmatmul.msk.f32.gmra.mxu3 %vm392_vm1, %v12818_v0 }
  0xce   : > { %v1669_v40 = vpop.permute.xlu0 %1668 }
  0xcf   : > { %11701 = vmatmul.msk.f32.vlgmr.msra.gmra.mxu0 %vm392_vm1, %v12973_v44  ;;  %11703 = vmatmul.msk.f32.vlgmr.msra.gmra.mxu1 %vm392_vm1, %v12973_v44  ;;  %v13208_v46 = vsel %vm1678_vm3, %v12406_v37, %v1669_v40 }
  0xd0   : > { %11705 = vmatmul.msk.f32.vlgmr.msra.gmra.mxu2 %vm392_vm1, %v12973_v44  ;;  %1086 = vmatpush.msra.mxu1 %v13004_v54 }
  0xd1   : > { %1109 = vmatpush.msra.mxu2 %v13007_v55  ;;  %1063 = vmatpush.msra.mxu0 %v1028_v56 }
  0xd2   : > { %11707 = vmatmul.msk.f32.vlgmr.msra.gmra.mxu3 %vm392_vm1, %v12973_v44 }
  0xd3   : > { %1132 = vmatpush.msra.mxu3 %v13018_v57 }
  0xd7   : > { %11702 = vmatmul.msk.f32.gmra.mxu0 %vm392_vm1, %v779_v58  ;;  %11704 = vmatmul.msk.f32.gmra.mxu1 %vm392_vm1, %v779_v58 }
  0xd8   : > { %11706 = vmatmul.msk.f32.gmra.mxu2 %vm392_vm1, %v779_v58 }
  0xda   : > { %11708 = vmatmul.msk.f32.gmra.mxu3 %vm392_vm1, %v779_v58 }
  0xdf   : > { %11709 = vmatmul.msk.f32.vlgmr.msrb.gmra.mxu0 %vm392_vm1, %v12973_v44  ;;  %11711 = vmatmul.msk.f32.vlgmr.msrb.gmra.mxu1 %vm392_vm1, %v12973_v44 }
  0xe0   : > { %11713 = vmatmul.msk.f32.vlgmr.msrb.gmra.mxu2 %vm392_vm1, %v12973_v44  ;;  %1155 = vmatpush.msrb.mxu0 %v13037_v2 }
  0xe1   : > { %1178 = vmatpush.msrb.mxu1 %v13040_v3  ;;  %1201 = vmatpush.msrb.mxu2 %v13043_v5 }
  0xe2   : > { %11715 = vmatmul.msk.f32.vlgmr.msrb.gmra.mxu3 %vm392_vm1, %v12973_v44  ;;  %v13186_v44 = vsel %vm1678_vm3, %v12411_v36, %v12405_v35 }
  0xe3   : > { %1224 = vmatpush.msrb.mxu3 %v13055_v7 }
  0xe7   : > { %11710 = vmatmul.msk.f32.gmra.mxu0 %vm392_vm1, %v779_v58  ;;  %11712 = vmatmul.msk.f32.gmra.mxu1 %vm392_vm1, %v779_v58 }
  0xe8   : > { %11714 = vmatmul.msk.f32.gmra.mxu2 %vm392_vm1, %v779_v58 }
  0xea   : > { %11716 = vmatmul.msk.f32.gmra.mxu3 %vm392_vm1, %v779_v58 }
  0xef   : > { %11717 = vmatmul.msk.f32.vlgmr.msra.gmra.mxu0 %vm392_vm1, %v1006_v12  ;;  %11719 = vmatmul.msk.f32.vlgmr.msra.gmra.mxu1 %vm392_vm1, %v1006_v12 }
  0xf0   : > { %11721 = vmatmul.msk.f32.vlgmr.msra.gmra.mxu2 %vm392_vm1, %v1006_v12  ;;  %1259 = vmatpush.msra.mxu0 %v1238_v13 }
  0xf1   : > { %1282 = vmatpush.msra.mxu1 %v1028_v56  ;;  %1305 = vmatpush.msra.mxu2 %v13004_v54 }
  0xf2   : > { %11723 = vmatmul.msk.f32.vlgmr.msra.gmra.mxu3 %vm392_vm1, %v1006_v12 }
  0xf3   : > { %1328 = vmatpush.msra.mxu3 %v13007_v55 }
  0xf7   : > { %11718 = vmatmul.msk.f32.gmra.mxu0 %vm392_vm1, %v1008_v19  ;;  %11720 = vmatmul.msk.f32.gmra.mxu1 %vm392_vm1, %v1008_v19 }
  0xf8   : > { %11722 = vmatmul.msk.f32.gmra.mxu2 %vm392_vm1, %v1008_v19 }
  0xfa   : > { %11724 = vmatmul.msk.f32.gmra.mxu3 %vm392_vm1, %v1008_v19 }
  0xff   : > { %11725 = vmatmul.msk.f32.vlgmr.msrb.gmra.mxu0 %vm392_vm1, %v1006_v12  ;;  %11727 = vmatmul.msk.f32.vlgmr.msrb.gmra.mxu1 %vm392_vm1, %v1006_v12 }
 0x100   : > { %11729 = vmatmul.msk.f32.vlgmr.msrb.gmra.mxu2 %vm392_vm1, %v1006_v12  ;;  %1351 = vmatpush.msrb.mxu0 %v13018_v57 }
 0x101   : > { %1374 = vmatpush.msrb.mxu1 %v13037_v2  ;;  %1397 = vmatpush.msrb.mxu2 %v13040_v3 }
 0x102   : > { %11731 = vmatmul.msk.f32.vlgmr.msrb.gmra.mxu3 %vm392_vm1, %v1006_v12 }
 0x103   : > { %1420 = vmatpush.msrb.mxu3 %v13043_v5 }
 0x107   : > { %11726 = vmatmul.msk.f32.gmra.mxu0 %vm392_vm1, %v1008_v19  ;;  %11728 = vmatmul.msk.f32.gmra.mxu1 %vm392_vm1, %v1008_v19 }
 0x108   : > { %11730 = vmatmul.msk.f32.gmra.mxu2 %vm392_vm1, %v1008_v19 }
 0x10a   : > { %11732 = vmatmul.msk.f32.gmra.mxu3 %vm392_vm1, %v1008_v19 }
 0x10c   : > { %v13099_v21 = vpop.f32.mrf.mxu0  ;;  %v13101_v22 = vpop.f32.mrf.mxu1 }
 0x10f   : > { %11733 = vmatmul.msk.f32.vlgmr.msra.gmra.mxu0 %vm392_vm1, %v1233_v20  ;;  %11735 = vmatmul.msk.f32.vlgmr.msra.gmra.mxu1 %vm392_vm1, %v1233_v20 }
 0x110   : > { %11737 = vmatmul.msk.f32.vlgmr.msra.gmra.mxu2 %vm392_vm1, %v1233_v20  ;;  %1455 = vmatpush.msra.mxu0 %v13004_v54  ;;  %v13223_v54 = vpop.permute.xlu0 %12418 }
 0x111   : > { %1478 = vmatpush.msra.mxu1 %v13007_v55  ;;  %1501 = vmatpush.msra.mxu2 %v13018_v57  ;;  %v12414_v55 = vpop.permute.xlu2 %12413  ;;  %v12420_v56 = vunpack.i.l.bf16 %v13223_v54  ;;  %v12421_v63 = vunpack.i.h.bf16 %v13223_v54 }
 0x112   : > { %11739 = vmatmul.msk.f32.vlgmr.msra.gmra.mxu3 %vm392_vm1, %v1233_v20  ;;  %v12416_v57 = vunpack.i.h.bf16 %v12414_v55  ;;  %v12415_v58 = vunpack.i.l.bf16 %v12414_v55 }
 0x113   : > { %1524 = vmatpush.msra.mxu3 %v13037_v2  ;;  %v13115_v4 = vpop.f32.mrf.mxu2  ;;  %v13237_v2 = vsel %vm1678_vm3, %v1669_v40, %v12420_v56 }
 0x114   : > { %v13117_v6 = vpop.f32.mrf.mxu0  ;;  %v13119_v23 = vpop.f32.mrf.mxu1  ;;  %v13256_v8 = vsel %vm1678_vm3, %v12416_v57, %v12421_v63 }
 0x115   : > { %v13121_v25 = vpop.f32.mrf.mxu3 }
 0x117   : > { %11734 = vmatmul.msk.f32.gmra.mxu0 %vm392_vm1, %v1235_v24  ;;  %11736 = vmatmul.msk.f32.gmra.mxu1 %vm392_vm1, %v1235_v24 }
 0x118   : > { %11738 = vmatmul.msk.f32.gmra.mxu2 %vm392_vm1, %v1235_v24 }
 0x11a   : > { %11740 = vmatmul.msk.f32.gmra.mxu3 %vm392_vm1, %v1235_v24 }
 0x11b   : > { %v13133_v26 = vpop.f32.mrf.mxu2 }
 0x11c   : > { %v13135_v27 = vpop.f32.mrf.mxu0  ;;  %v13137_v28 = vpop.f32.mrf.mxu1 }
 0x11d   : > { %v13139_v9 = vpop.f32.mrf.mxu3 }
 0x11f   : > { %11741 = vmatmul.msk.f32.vlgmr.msrb.gmra.mxu0 %vm392_vm1, %v1233_v20  ;;  %11743 = vmatmul.msk.f32.vlgmr.msrb.gmra.mxu1 %vm392_vm1, %v1233_v20 }
 0x120   : > { %11745 = vmatmul.msk.f32.vlgmr.msrb.gmra.mxu2 %vm392_vm1, %v1233_v20  ;;  %1547 = vmatpush.msrb.mxu0 %v13040_v3 }
 0x121   : > { %1570 = vmatpush.msrb.mxu1 %v13043_v5  ;;  %1593 = vmatpush.msrb.mxu2 %v13055_v7  ;;  %v13241_v5 = vsel %vm1678_vm3, %v12420_v56, %v12415_v58  ;;  %v13244_v7 = vsel %vm1678_vm3, %v12415_v58, %v12416_v57 }
 0x122   : > { %11747 = vmatmul.msk.f32.vlgmr.msrb.gmra.mxu3 %vm392_vm1, %v1233_v20 }
 0x123   : > { %1616 = vmatpush.msrb.mxu3 %v1434_v30  ;;  %v13155_v16 = vpop.f32.mrf.mxu2 }
 0x124   : > { %v13157_v31 = vpop.f32.mrf.mxu0  ;;  %v13159_v32 = vpop.f32.mrf.mxu1 }
 0x125   : > { %16858 = vst [vmem:[#allocation2_spill] sm:$0xff] %v13159_v32  ;;  %v13161_v33 = vpop.f32.mrf.mxu3 }
 0x127   : > { %11742 = vmatmul.msk.f32.gmra.mxu0 %vm392_vm1, %v1235_v24  ;;  %11744 = vmatmul.msk.f32.gmra.mxu1 %vm392_vm1, %v1235_v24 }
 0x128   : > { %11746 = vmatmul.msk.f32.gmra.mxu2 %vm392_vm1, %v1235_v24 }
 0x12a   : > { %11748 = vmatmul.msk.f32.gmra.mxu3 %vm392_vm1, %v1235_v24 }
 0x12b   : > { %v13177_v39 = vpop.f32.mrf.mxu2 }
 0x12c   : > { %v13179_v41 = vpop.f32.mrf.mxu0  ;;  %v13181_v42 = vpop.f32.mrf.mxu1 }
 0x12d   : > { %v13183_v43 = vpop.f32.mrf.mxu3 }
 0x12f   : > { %11749 = vmatmul.msk.f32.vlgmr.msra.gmra.mxu0 %vm392_vm1, %v13128_v11  ;;  %11751 = vmatmul.msk.f32.vlgmr.msra.gmra.mxu1 %vm392_vm1, %v13128_v11 }
 0x130   : > { %11753 = vmatmul.msk.f32.vlgmr.msra.gmra.mxu2 %vm392_vm1, %v13128_v11  ;;  %1737 = vmatpush.msra.mxu1 %v13186_v44 }
 0x131   : > { %1760 = vmatpush.msra.mxu2 %v13193_v18  ;;  %1714 = vmatpush.msra.mxu0 %v13198_v45 }
 0x132   : > { %11755 = vmatmul.msk.f32.vlgmr.msra.gmra.mxu3 %vm392_vm1, %v13128_v11 }
 0x133   : > { %v653_v47 = vpop.f32.mrf.mxu2  ;;  %1783 = vmatpush.msra.mxu3 %v13208_v46 }
 0x134   : > { %v654_v49 = vadd.f32 %v653_v47, %v13115_v4  ;;  %v13218_v50 = vpop.f32.mrf.mxu0  ;;  %v13220_v51 = vpop.f32.mrf.mxu1 }
 0x135   : > { %v676_v52 = vpop.f32.mrf.mxu3 }
 0x136   : > { %v677_v53 = vadd.f32 %v676_v52, %v13121_v25  ;;  %v1657_v25 = vpop.permute.xlu1 %1656 }
 0x137   : > { %11750 = vmatmul.msk.f32.gmra.mxu0 %vm392_vm1, %v1431_v48  ;;  %11752 = vmatmul.msk.f32.gmra.mxu1 %vm392_vm1, %v1431_v48 }
 0x138   : > { %11754 = vmatmul.msk.f32.gmra.mxu2 %vm392_vm1, %v1431_v48 }
 0x13a   : > { %11756 = vmatmul.msk.f32.gmra.mxu3 %vm392_vm1, %v1431_v48 }
 0x13b   : > { %v656_v59 = vpop.f32.mrf.mxu2 }
 0x13c   : > { %v657_v60 = vadd.f32 %v656_v59, %v13133_v26  ;;  %v13231_v61 = vpop.f32.mrf.mxu1  ;;  %v13233_v62 = vpop.f32.mrf.mxu0 }
 0x13d   : > { %v679_v1 = vpop.f32.mrf.mxu3 }
 0x13e   : > { %v680_v3 = vadd.f32 %v679_v1, %v13139_v9  ;;  %v1659_v35 = vpop.permute.xlu1 %1658 }
 0x13f   : > { %11757 = vmatmul.msk.f32.vlgmr.msrb.gmra.mxu0 %vm392_vm1, %v13128_v11  ;;  %11759 = vmatmul.msk.f32.vlgmr.msrb.gmra.mxu1 %vm392_vm1, %v13128_v11 }
 0x140   : > { %11761 = vmatmul.msk.f32.vlgmr.msrb.gmra.mxu2 %vm392_vm1, %v13128_v11  ;;  %1806 = vmatpush.msrb.mxu0 %v13237_v2 }
 0x141   : > { %1829 = vmatpush.msrb.mxu1 %v13241_v5  ;;  %1852 = vmatpush.msrb.mxu2 %v13244_v7 }
 0x142   : > { %11763 = vmatmul.msk.f32.vlgmr.msrb.gmra.mxu3 %vm392_vm1, %v13128_v11  ;;  %v1888_v11 = vpop.permute.xlu2 %1887 }
 0x143   : > { %v745_v12 = vpop.f32.mrf.mxu2  ;;  %1875 = vmatpush.msrb.mxu3 %v13256_v8 }
 0x144   : > { %v746_v13 = vadd.f32 %v745_v12, %v13155_v16  ;;  %v13264_v19 = vpop.f32.mrf.mxu0  ;;  %v13266_v20 = vpop.f32.mrf.mxu1  ;;  %v1889_v16 = vsel %vm1678_vm3, %v1888_v11, %v12410_v38 }
 0x145   : > { %16859 = vst [vmem:[#allocation3_spill] sm:$0xff] %v13266_v20  ;;  %v768_v4 = vpop.f32.mrf.mxu3  ;;  %v1886_v11 = vpop.permute.xlu0 %1885 }
 0x146   : > { %v769_v24 = vadd.f32 %v768_v4, %v13161_v33  ;;  %v1884_v59 = vpop.permute.xlu1 %1883 }
 0x147   : > { %11758 = vmatmul.msk.f32.gmra.mxu0 %vm392_vm1, %v1431_v48  ;;  %11760 = vmatmul.msk.f32.gmra.mxu1 %vm392_vm1, %v1431_v48 }
 0x148   : > { %11762 = vmatmul.msk.f32.gmra.mxu2 %vm392_vm1, %v1431_v48 }
 0x14a   : > { %11764 = vmatmul.msk.f32.gmra.mxu3 %vm392_vm1, %v1431_v48 }
 0x14b   : > { %v748_v26 = vpop.f32.mrf.mxu2 }
 0x14c   : > { %v749_v9 = vadd.f32 %v748_v26, %v13177_v39  ;;  %v13274_v29 = vpop.f32.mrf.mxu1  ;;  %v13276_v15 = vpop.f32.mrf.mxu0 }
 0x14d   : > { %v771_v30 = vpop.f32.mrf.mxu3 }
 0x14e   : > { %v772_v33 = vadd.f32 %v771_v30, %v13183_v43  ;;  %v2084_v30 = vpop.permute.xlu0 %2083 }
 0x14f   : > { %11765 = vmatmul.msk.f32.vlgmr.msra.gmra.mxu0 %vm392_vm1, %v1657_v25  ;;  %11767 = vmatmul.msk.f32.vlgmr.msra.gmra.mxu1 %vm392_vm1, %v1657_v25 }
 0x150   : > { %11769 = vmatmul.msk.f32.vlgmr.msra.gmra.mxu2 %vm392_vm1, %v1657_v25  ;;  %1910 = vmatpush.msra.mxu0 %v1889_v16 }
 0x151   : > { %1933 = vmatpush.msra.mxu1 %v13198_v45  ;;  %1956 = vmatpush.msra.mxu2 %v13186_v44 }
 0x152   : > { %11771 = vmatmul.msk.f32.vlgmr.msra.gmra.mxu3 %vm392_vm1, %v1657_v25 }
 0x153   : > { %1979 = vmatpush.msra.mxu3 %v13193_v18  ;;  %v852_v34 = vpop.f32.mrf.mxu2 }
 0x154   : > { %v13289_v36 = vadd.f32 %v852_v34, %v654_v49  ;;  %v13291_v37 = vpop.f32.mrf.mxu1  ;;  %v13293_v38 = vpop.f32.mrf.mxu0 }
 0x155   : > { %v875_v39 = vpop.f32.mrf.mxu3 }
 0x156   : > { %v13295_v40 = vadd.f32 %v875_v39, %v677_v53  ;;  %v13392_v54 = vpop.permute.xlu0 %12428 }
 0x157   : > { %11766 = vmatmul.msk.f32.gmra.mxu0 %vm392_vm1, %v1659_v35  ;;  %11768 = vmatmul.msk.f32.gmra.mxu1 %vm392_vm1, %v1659_v35 }
 0x158   : > { %11770 = vmatmul.msk.f32.gmra.mxu2 %vm392_vm1, %v1659_v35 }
 0x15a   : > { %11772 = vmatmul.msk.f32.gmra.mxu3 %vm392_vm1, %v1659_v35 }
 0x15b   : > { %v855_v43 = vpop.f32.mrf.mxu2 }
 0x15c   : > { %v13301_v45 = vadd.f32 %v855_v43, %v657_v60  ;;  %v13303_v47 = vpop.f32.mrf.mxu1  ;;  %v13305_v48 = vpop.f32.mrf.mxu0 }
 0x15d   : > { %v878_v49 = vpop.f32.mrf.mxu3 }
 0x15e   : > { %v13311_v52 = vadd.f32 %v878_v49, %v680_v3  ;;  %v16804_v49 = vunpack.i.l.bf16 %v13392_v54 }
 0x15f   : > { %11773 = vmatmul.msk.f32.vlgmr.msrb.gmra.mxu0 %vm392_vm1, %v1657_v25  ;;  %11775 = vmatmul.msk.f32.vlgmr.msrb.gmra.mxu1 %vm392_vm1, %v1657_v25 }
 0x160   : > { %11777 = vmatmul.msk.f32.vlgmr.msrb.gmra.mxu2 %vm392_vm1, %v1657_v25  ;;  %2002 = vmatpush.msrb.mxu0 %v13208_v46 }
 0x161   : > { %2025 = vmatpush.msrb.mxu1 %v13237_v2  ;;  %2048 = vmatpush.msrb.mxu2 %v13241_v5 }
 0x162   : > { %11779 = vmatmul.msk.f32.vlgmr.msrb.gmra.mxu3 %vm392_vm1, %v1657_v25 }
 0x163   : > { %2071 = vmatpush.msrb.mxu3 %v13244_v7  ;;  %v944_v14 = vpop.f32.mrf.mxu2 }
 0x164   : > { %v13321_v17 = vadd.f32 %v944_v14, %v746_v13  ;;  %v13323_v53 = vpop.f32.mrf.mxu0  ;;  %v13325_v55 = vpop.f32.mrf.mxu1 }
 0x165   : > { %16861 = vst [vmem:[#allocation5_spill] sm:$0xff] %v13323_v53  ;;  %v967_v56 = vpop.f32.mrf.mxu3 }
 0x166   : > { %16860 = vst [vmem:[#allocation4_spill] sm:$0xff] %v13321_v17  ;;  %v13327_v57 = vadd.f32 %v967_v56, %v769_v24 }
 0x167   : > { %16862 = vst [vmem:[#allocation6_spill] sm:$0xff] %v13325_v55  ;;  %11774 = vmatmul.msk.f32.gmra.mxu0 %vm392_vm1, %v1659_v35  ;;  %11776 = vmatmul.msk.f32.gmra.mxu1 %vm392_vm1, %v1659_v35 }
 0x168   : > { %16863 = vst [vmem:[#allocation7_spill] sm:$0xff] %v13327_v57  ;;  %11778 = vmatmul.msk.f32.gmra.mxu2 %vm392_vm1, %v1659_v35 }
 0x16a   : > { %11780 = vmatmul.msk.f32.gmra.mxu3 %vm392_vm1, %v1659_v35 }
 0x16b   : > { %v947_v58 = vpop.f32.mrf.mxu2 }
 0x16c   : > { %v13333_v60 = vadd.f32 %v947_v58, %v749_v9  ;;  %v13335_v1 = vpop.f32.mrf.mxu0  ;;  %v13337_v3 = vpop.f32.mrf.mxu1 }
 0x16d   : > { %v970_v12 = vpop.f32.mrf.mxu3 }
 0x16e   : > { %16864 = vst [vmem:[#allocation8_spill] sm:$0xff] %v13333_v60  ;;  %v13339_v13 = vadd.f32 %v970_v12, %v772_v33  ;;  %v2085_v33 = vsel %vm1678_vm3, %v12421_v63, %v2084_v30  ;;  %v12434_v60 = vpop.permute.xlu0 %12433 }
 0x16f   : > { %11781 = vmatmul.msk.f32.vlgmr.msra.gmra.mxu0 %vm392_vm1, %v1884_v59  ;;  %11783 = vmatmul.msk.f32.vlgmr.msra.gmra.mxu1 %vm392_vm1, %v1884_v59 }
 0x170   : > { %16865 = vst [vmem:[#allocation9_spill] sm:$0xff] %v13339_v13  ;;  %11785 = vmatmul.msk.f32.vlgmr.msra.gmra.mxu2 %vm392_vm1, %v1884_v59  ;;  %2106 = vmatpush.msra.mxu0 %v13186_v44  ;;  %v13356_v44 = vpop.permute.xlu1 %2079 }
 0x171   : > { %2129 = vmatpush.msra.mxu1 %v13193_v18  ;;  %2152 = vmatpush.msra.mxu2 %v13208_v46 }
 0x172   : > { %11787 = vmatmul.msk.f32.vlgmr.msra.gmra.mxu3 %vm392_vm1, %v1884_v59 }
 0x173   : > { %2175 = vmatpush.msra.mxu3 %v13237_v2  ;;  %v1111_v4 = vpop.f32.mrf.mxu2 }
 0x174   : > { %v13349_v24 = vpop.f32.mrf.mxu0  ;;  %v13351_v25 = vpop.f32.mrf.mxu1 }
 0x175   : > { %v1134_v26 = vpop.f32.mrf.mxu3 }
 0x177   : > { %11782 = vmatmul.msk.f32.gmra.mxu0 %vm392_vm1, %v1886_v11  ;;  %11784 = vmatmul.msk.f32.gmra.mxu1 %vm392_vm1, %v1886_v11 }
 0x178   : > { %11786 = vmatmul.msk.f32.gmra.mxu2 %vm392_vm1, %v1886_v11  ;;  %v12424_v16 = vpop.permute.xlu1 %12423 }
 0x179   : > { %v12425_v63 = vunpack.i.l.bf16 %v12424_v16 }
 0x17a   : > { %11788 = vmatmul.msk.f32.gmra.mxu3 %vm392_vm1, %v1886_v11 }
 0x17b   : > { %v13359_v18 = vpop.f32.mrf.mxu2 }
 0x17c   : > { %v13361_v46 = vpop.f32.mrf.mxu0  ;;  %v13363_v2 = vpop.f32.mrf.mxu1 }
 0x17d   : > { %v13365_v9 = vpop.f32.mrf.mxu3 }
 0x17f   : > { %11789 = vmatmul.msk.f32.vlgmr.msrb.gmra.mxu0 %vm392_vm1, %v1884_v59  ;;  %11791 = vmatmul.msk.f32.vlgmr.msrb.gmra.mxu1 %vm392_vm1, %v1884_v59 }
 0x180   : > { %11793 = vmatmul.msk.f32.vlgmr.msrb.gmra.mxu2 %vm392_vm1, %v1884_v59  ;;  %2198 = vmatpush.msrb.mxu0 %v13241_v5  ;;  %v12431_v5 = vunpack.i.h.bf16 %v13392_v54  ;;  %v2320_v0 = vpop.permute.xlu1 %2319 }
 0x181   : > { %2221 = vmatpush.msrb.mxu1 %v13244_v7  ;;  %2244 = vmatpush.msrb.mxu2 %v13256_v8  ;;  %v12426_v7 = vunpack.i.h.bf16 %v12424_v16  ;;  %v2082_v16 = vpop.permute.xlu2 %2081 }
 0x182   : > { %11795 = vmatmul.msk.f32.vlgmr.msrb.gmra.mxu3 %vm392_vm1, %v1884_v59  ;;  %v13406_v59 = vsel %vm2329_vm4, %v12431_v5, %v12425_v63 }
 0x183   : > { %2267 = vmatpush.msrb.mxu3 %v2085_v33  ;;  %v13379_v34 = vpop.f32.mrf.mxu2  ;;  %v13411_v12 = vsel %vm2329_vm4, %v12425_v63, %v12426_v7  ;;  %v13426_v10 = vsel %vm2329_vm4, %v12426_v7, %v2320_v0 }
 0x184   : > { %v13381_v35 = vpop.f32.mrf.mxu0  ;;  %v13383_v39 = vpop.f32.mrf.mxu1 }
 0x185   : > { %16866 = vst [vmem:[#allocation10_spill] sm:$0xff] %v13381_v35  ;;  %v13385_v43 = vpop.f32.mrf.mxu3 }
 0x186   : > { %16867 = vst [vmem:[#allocation11_spill] sm:$0xff] %v13383_v39 }
 0x187   : > { %11790 = vmatmul.msk.f32.gmra.mxu0 %vm392_vm1, %v1886_v11  ;;  %11792 = vmatmul.msk.f32.gmra.mxu1 %vm392_vm1, %v1886_v11 }
 0x188   : > { %11794 = vmatmul.msk.f32.gmra.mxu2 %vm392_vm1, %v1886_v11  ;;  %v13441_v13 = vpop.permute.xlu1 %12438 }
 0x189   : > { %16868 = vst [vmem:[#allocation12_spill] sm:$0xff] %v13441_v13  ;;  %v12440_v57 = vunpack.i.l.bf16 %v13441_v13  ;;  %v16805_v53 = vunpack.i.h.bf16 %v13441_v13 }
 0x18a   : > { %11796 = vmatmul.msk.f32.gmra.mxu3 %vm392_vm1, %v1886_v11  ;;  %v13420_v11 = vsel %vm2329_vm4, %v16804_v49, %v12431_v5 }
 0x18b   : > { %v13396_v8 = vpop.f32.mrf.mxu2  ;;  %v13457_v35 = vsel %vm2329_vm4, %v2320_v0, %v12440_v57 }
 0x18c   : > { %v13399_v14 = vpop.f32.mrf.mxu0  ;;  %v13401_v56 = vpop.f32.mrf.mxu1 }
 0x18d   : > { %v13403_v58 = vpop.f32.mrf.mxu3 }
 0x18f   : > { %11797 = vmatmul.msk.f32.vlgmr.msra.gmra.mxu0 %vm392_vm1, %v13356_v44  ;;  %11799 = vmatmul.msk.f32.vlgmr.msra.gmra.mxu1 %vm392_vm1, %v13356_v44 }
 0x190   : > { %11801 = vmatmul.msk.f32.vlgmr.msra.gmra.mxu2 %vm392_vm1, %v13356_v44  ;;  %2388 = vmatpush.msra.mxu1 %v13406_v59 }
 0x191   : > { %2411 = vmatpush.msra.mxu2 %v13411_v12  ;;  %2365 = vmatpush.msra.mxu0 %v13420_v11 }
 0x192   : > { %11803 = vmatmul.msk.f32.vlgmr.msra.gmra.mxu3 %vm392_vm1, %v13356_v44 }
 0x193   : > { %v1307_v30 = vpop.f32.mrf.mxu2  ;;  %2434 = vmatpush.msra.mxu3 %v13426_v10 }
 0x194   : > { %v13433_v33 = vadd.f32 %v1307_v30, %v1111_v4  ;;  %v13435_v63 = vpop.f32.mrf.mxu0  ;;  %v13437_v5 = vpop.f32.mrf.mxu1  ;;  %v12436_v4 = vunpack.i.h.bf16 %v12434_v60  ;;  %v12435_v30 = vunpack.i.l.bf16 %v12434_v60 }
 0x195   : > { %v1330_v49 = vpop.f32.mrf.mxu3 }
 0x196   : > { %v13439_v7 = vadd.f32 %v1330_v49, %v1134_v26  ;;  %v13463_v32 = vsel %vm2329_vm4, %v12440_v57, %v12435_v30  ;;  %v13466_v60 = vsel %vm2329_vm4, %v12435_v30, %v12436_v4  ;;  %v2539_v30 = vpop.permute.xlu0 %2538 }
 0x197   : > { %11798 = vmatmul.msk.f32.gmra.mxu0 %vm392_vm1, %v2082_v16  ;;  %11800 = vmatmul.msk.f32.gmra.mxu1 %vm392_vm1, %v2082_v16 }
 0x198   : > { %11802 = vmatmul.msk.f32.gmra.mxu2 %vm392_vm1, %v2082_v16 }
 0x19a   : > { %11804 = vmatmul.msk.f32.gmra.mxu3 %vm392_vm1, %v2082_v16 }
 0x19b   : > { %v1310_v17 = vpop.f32.mrf.mxu2 }
 0x19c   : > { %v13449_v55 = vadd.f32 %v1310_v17, %v13359_v18  ;;  %v13451_v26 = vpop.f32.mrf.mxu0  ;;  %v13453_v49 = vpop.f32.mrf.mxu1  ;;  %v13478_v17 = vsel %vm2329_vm4, %v12436_v4, %v16805_v53 }
 0x19d   : > { %v1333_v39 = vpop.f32.mrf.mxu3  ;;  %16869 = vst [vmem:[#allocation13_spill] sm:$0xff] %v13478_v17 }
 0x19e   : > { %v13460_v20 = vadd.f32 %v1333_v39, %v13365_v9 }
 0x19f   : > { %11805 = vmatmul.msk.f32.vlgmr.msrb.gmra.mxu0 %vm392_vm1, %v13356_v44  ;;  %11807 = vmatmul.msk.f32.vlgmr.msrb.gmra.mxu1 %vm392_vm1, %v13356_v44 }
 0x1a0   : > { %11809 = vmatmul.msk.f32.vlgmr.msrb.gmra.mxu2 %vm392_vm1, %v13356_v44  ;;  %2457 = vmatpush.msrb.mxu0 %v13457_v35 }
 0x1a1   : > { %2480 = vmatpush.msrb.mxu1 %v13463_v32  ;;  %2503 = vmatpush.msrb.mxu2 %v13466_v60 }
 0x1a2   : > { %11811 = vmatmul.msk.f32.vlgmr.msrb.gmra.mxu3 %vm392_vm1, %v13356_v44  ;;  %v13498_v44 = vpop.permute.xlu2 %2307 }
 0x1a3   : > { %v1399_v57 = vpop.f32.mrf.mxu2  ;;  %2526 = vmatpush.msrb.mxu3 %v13478_v17 }
 0x1a4   : > { %v13486_v18 = vadd.f32 %v1399_v57, %v13379_v34  ;;  %v13488_v9 = vpop.f32.mrf.mxu0  ;;  %v13490_v39 = vpop.f32.mrf.mxu1  ;;  %v631_v34 = vadd.f32 %v13181_v42, %v13101_v22  ;;  %v608_v57 = vadd.f32 %v13179_v41, %v13099_v21 }
 0x1a5   : > { %v1422_v0 = vpop.f32.mrf.mxu3 }
 0x1a6   : > { %16870 = vst [vmem:[#allocation14_spill] sm:$0xff] %v13486_v18  ;;  %v13493_v4 = vadd.f32 %v1422_v0, %v13385_v43  ;;  %v1262_v43 = vadd.f32 %v13399_v14, %v13335_v1  ;;  %v1285_v0 = vadd.f32 %v13401_v56, %v13337_v3  ;;  %v974_v13 = vadd.f32 %v13274_v29, %v631_v34 }
 0x1a7   : > { %11806 = vmatmul.msk.f32.gmra.mxu0 %vm392_vm1, %v2082_v16  ;;  %11808 = vmatmul.msk.f32.gmra.mxu1 %vm392_vm1, %v2082_v16  ;;  %v973_v42 = vadd.f32 %v13276_v15, %v608_v57  ;;  %v611_v15 = vadd.f32 %v13218_v50, %v13117_v6 }
 0x1a8   : > { %16871 = vst [vmem:[#allocation15_spill] sm:$0xff] %v13493_v4  ;;  %11810 = vmatmul.msk.f32.gmra.mxu2 %vm392_vm1, %v2082_v16 }
 0x1a9   : > { %v981_v50 = vadd.f32 %v13293_v38, %v611_v15  ;;  %v700_v38 = vadd.f32 %v13233_v62, %v13135_v27 }
 0x1aa   : > { %11812 = vmatmul.msk.f32.gmra.mxu3 %vm392_vm1, %v2082_v16  ;;  %v16872_v16 = vunpack.i.l.bf16 %v13392_v54  ;;  %v1288_v54 = vadd.f32 %v13437_v5, %v13351_v25  ;;  %v13543_v56 = vpop.permute.xlu2 %2309 }
 0x1ab   : > { %v1402_v53 = vpop.f32.mrf.mxu2 }
 0x1ac   : > { %v13511_v17 = vadd.f32 %v1402_v53, %v13396_v8  ;;  %v1457_v4 = vpop.f32.mrf.mxu0  ;;  %v1480_v22 = vpop.f32.mrf.mxu1  ;;  %v2540_v21 = vsel %vm2329_vm4, %v2539_v30, %v16872_v16  ;;  %v634_v53 = vadd.f32 %v13220_v51, %v13119_v23 }
 0x1ad   : > { %v1425_v41 = vpop.f32.mrf.mxu3  ;;  %v1624_v18 = vadd.f32 %v1457_v4, %v1262_v43  ;;  %v1625_v1 = vadd.f32 %v1480_v22, %v1285_v0  ;;  %v13579_v43 = vld [vmem:[%s16796_s1 + $0x8] sm:$0xff] }
 0x1ae   : > { %v13518_v14 = vadd.f32 %v1425_v41, %v13403_v58  ;;  %v982_v6 = vadd.f32 %v13291_v37, %v634_v53  ;;  %3989 = vrot.lane.b32.xlu0 %v13579_v43, %s12753_s22  ;;  %v16877_v41 = vld [vmem:[#allocation14_spill] sm:$0xff]  ;;  %v16878_v53 = vld [vmem:[#allocation5_spill] sm:$0xff] }
 0x1af   : > { %v13520_v3 = vadd.f32 %v1624_v18, %v973_v42  ;;  %v13522_v29 = vadd.f32 %v1625_v1, %v974_v13  ;;  %11813 = vmatmul.msk.f32.vlgmr.msra.gmra.mxu0 %vm392_vm1, %v13498_v44  ;;  %11815 = vmatmul.msk.f32.vlgmr.msra.gmra.mxu1 %vm392_vm1, %v13498_v44  ;;  %v1265_v13 = vadd.f32 %v13435_v63, %v13349_v24  ;;  %v16876_v42 = vld [vmem:[#allocation11_spill] sm:$0xff] }
 0x1b0   : > { %11817 = vmatmul.msk.f32.vlgmr.msra.gmra.mxu2 %vm392_vm1, %v13498_v44  ;;  %2561 = vmatpush.msra.mxu0 %v2540_v21  ;;  %v1380_v16 = vadd.f32 %v13490_v39, %v16876_v42  ;;  %v16881_v39 = vld [vmem:[#allocation15_spill] sm:$0xff] }
 0x1b1   : > { %2584 = vmatpush.msra.mxu1 %v13420_v11  ;;  %2607 = vmatpush.msra.mxu2 %v13406_v59  ;;  %v13715_v42 = vld [vmem:[%s12828_s13 + $0x28] sm:$0xff] }
 0x1b2   : > { %11819 = vmatmul.msk.f32.vlgmr.msra.gmra.mxu3 %vm392_vm1, %v13498_v44 }
 0x1b3   : > { %2630 = vmatpush.msra.mxu3 %v13411_v12  ;;  %v1503_v8 = vpop.f32.mrf.mxu2 }
 0x1b4   : > { %v1626_v58 = vadd.f32 %v1503_v8, %v13433_v33  ;;  %v1460_v11 = vpop.f32.mrf.mxu0  ;;  %v1483_v18 = vpop.f32.mrf.mxu1  ;;  %v1354_v33 = vadd.f32 %v13451_v26, %v13361_v46 }
 0x1b5   : > { %v1632_v23 = vadd.f32 %v1460_v11, %v1265_v13  ;;  %v1633_v51 = vadd.f32 %v1483_v18, %v1288_v54  ;;  %v1526_v4 = vpop.f32.mrf.mxu3 }
 0x1b6   : > { %v13549_v24 = vadd.f32 %v1626_v58, %v13289_v36  ;;  %v1627_v25 = vadd.f32 %v1526_v4, %v13439_v7  ;;  %v723_v36 = vadd.f32 %v13231_v61, %v13137_v28  ;;  %v1377_v7 = vadd.f32 %v13453_v49, %v13363_v2  ;;  %v13639_v4 = vld [vmem:[%s12828_s13 + $0x18] sm:$0xff] }
 0x1b7   : > { %v13552_v63 = vadd.f32 %v1632_v23, %v981_v50  ;;  %v13554_v5 = vadd.f32 %v1633_v51, %v982_v6  ;;  %11814 = vmatmul.msk.f32.gmra.mxu0 %vm392_vm1, %v13543_v56  ;;  %11816 = vmatmul.msk.f32.gmra.mxu1 %vm392_vm1, %v13543_v56  ;;  %v977_v28 = vadd.f32 %v13305_v48, %v700_v38  ;;  %v16874_v48 = vld [vmem:[#allocation3_spill] sm:$0xff] }
 0x1b8   : > { %v13561_v37 = vadd.f32 %v1627_v25, %v13295_v40  ;;  %11818 = vmatmul.msk.f32.gmra.mxu2 %vm392_vm1, %v13543_v56  ;;  %v978_v27 = vadd.f32 %v13303_v47, %v723_v36  ;;  %v16882_v23 = vld [vmem:[#allocation7_spill] sm:$0xff]  ;;  %v13642_v25 = vld [vmem:[%s12828_s13 + $0x10] sm:$0xff] }
 0x1b9   : > { %v13646_v36 = vpack.i.bf16 %v13639_v4, %v13642_v25 }
 0x1ba   : > { %11820 = vmatmul.msk.f32.gmra.mxu3 %vm392_vm1, %v13543_v56 }
 0x1bb   : > { %v1506_v40 = vpop.f32.mrf.mxu2  ;;  %12448 = vrot.lane.b32.xlu1 %v13646_v36, %s12754_s18 }
 0x1bc   : > { %v1634_v34 = vadd.f32 %v1506_v40, %v13449_v55  ;;  %v1549_v30 = vpop.f32.mrf.mxu0  ;;  %v1572_v57 = vpop.f32.mrf.mxu1 }
 0x1bd   : > { %v1529_v61 = vpop.f32.mrf.mxu3  ;;  %v1628_v62 = vadd.f32 %v1549_v30, %v1354_v33  ;;  %v1629_v46 = vadd.f32 %v1572_v57, %v1377_v7  ;;  %v2535_v33 = vpop.permute.xlu2 %2534  ;;  %v16884_v30 = vld [vmem:[#allocation8_spill] sm:$0xff] }
 0x1be   : > { %v13586_v55 = vadd.f32 %v1634_v34, %v13301_v45  ;;  %v1635_v2 = vadd.f32 %v1529_v61, %v13460_v20  ;;  %v703_v20 = vadd.f32 %v13264_v19, %v13157_v31  ;;  %v16873_v45 = vld [vmem:[#allocation2_spill] sm:$0xff] }
 0x1bf   : > { %v13589_v26 = vadd.f32 %v1628_v62, %v977_v28  ;;  %v13591_v49 = vadd.f32 %v1629_v46, %v978_v27  ;;  %11821 = vmatmul.msk.f32.vlgmr.msrb.gmra.mxu0 %vm392_vm1, %v13498_v44  ;;  %11823 = vmatmul.msk.f32.vlgmr.msrb.gmra.mxu1 %vm392_vm1, %v13498_v44  ;;  %v726_v0 = vadd.f32 %v16874_v48, %v16873_v45  ;;  %v16879_v19 = vld [vmem:[#allocation6_spill] sm:$0xff]  ;;  %v13701_v48 = vld [vmem:[%s12828_s13 + $0x8] sm:$0xff] }
 0x1c0   : > { %v13598_v47 = vadd.f32 %v1635_v2, %v13311_v52  ;;  %11825 = vmatmul.msk.f32.vlgmr.msrb.gmra.mxu2 %vm392_vm1, %v13498_v44  ;;  %2653 = vmatpush.msrb.mxu0 %v13426_v10  ;;  %v16875_v52 = vld [vmem:[#allocation10_spill] sm:$0xff]  ;;  %v985_v31 = vadd.f32 %v16878_v53, %v703_v20  ;;  %16883 = vst [vmem:[#allocation2_spill] sm:$0xff] %v13646_v36 }
 0x1c1   : > { %2676 = vmatpush.msrb.mxu1 %v13457_v35  ;;  %2699 = vmatpush.msrb.mxu2 %v13463_v32  ;;  %v1357_v22 = vadd.f32 %v13488_v9, %v16875_v52  ;;  %v986_v13 = vadd.f32 %v16879_v19, %v726_v0  ;;  %v16880_v9 = vld [vmem:[#allocation4_spill] sm:$0xff]  ;;  %v13670_v61 = vld [vmem:[%s12828_s13 + $0x40] sm:$0xff]  ;;  %16888 = vst [vmem:[#allocation11_spill] sm:$0xff] %v13701_v48 }
 0x1c2   : > { %11827 = vmatmul.msk.f32.vlgmr.msrb.gmra.mxu3 %vm392_vm1, %v13498_v44  ;;  %v13749_v19 = vld [vmem:[%s12828_s13 + $0x30] sm:$0xff] }
 0x1c3   : > { %2722 = vmatpush.msrb.mxu3 %v13466_v60  ;;  %v1595_v21 = vpop.f32.mrf.mxu2 }
 0x1c4   : > { %v1630_v1 = vadd.f32 %v1595_v21, %v16877_v41  ;;  %v1552_v15 = vpop.f32.mrf.mxu0  ;;  %v1575_v44 = vpop.f32.mrf.mxu1  ;;  %v16889_v21 = vld [vmem:[#allocation13_spill] sm:$0xff]  ;;  %v16890_v41 = vld [vmem:[#allocation12_spill] sm:$0xff] }
 0x1c5   : > { %v1636_v54 = vadd.f32 %v1552_v15, %v1357_v22  ;;  %v1637_v8 = vadd.f32 %v1575_v44, %v1380_v16  ;;  %v1618_v58 = vpop.f32.mrf.mxu3  ;;  %v13712_v22 = vld [vmem:[%s12828_s13 + $0x20] sm:$0xff] }
 0x1c6   : > { %v13620_v11 = vadd.f32 %v1630_v1, %v16880_v9  ;;  %v1631_v18 = vadd.f32 %v1618_v58, %v16881_v39  ;;  %v13719_v16 = vpack.i.bf16 %v13715_v42, %v13712_v22  ;;  %v16891_v1 = vunpack.i.h.bf16 %v16890_v41  ;;  %v13758_v9 = vld [vmem:[%s16796_s1] sm:$0xff] }
 0x1c7   : > { %v13623_v6 = vadd.f32 %v1636_v54, %v985_v31  ;;  %v13625_v50 = vadd.f32 %v1637_v8, %v986_v13  ;;  %11822 = vmatmul.msk.f32.gmra.mxu0 %vm392_vm1, %v13543_v56  ;;  %11824 = vmatmul.msk.f32.gmra.mxu1 %vm392_vm1, %v13543_v56  ;;  %v2731_v54 = vpop.permute.xlu2 %2730  ;;  %16893 = vst [vmem:[#allocation5_spill] sm:$0xff] %v13758_v9 }
 0x1c8   : > { %v13632_v51 = vadd.f32 %v1631_v18, %v16882_v23  ;;  %11826 = vmatmul.msk.f32.gmra.mxu2 %vm392_vm1, %v13543_v56  ;;  %12443 = vrot.lane.b32.xlu2 %v13719_v16, %s12754_s18  ;;  %v13769_v18 = vld [vmem:[%s12828_s13 + $0x38] sm:$0xff]  ;;  %v13772_v23 = vld [vmem:[%s12828_s13 + $0x50] sm:$0xff] }
 0x1c9   : > { %16894 = vst [vmem:[#allocation6_spill] sm:$0xff] %v13772_v23  ;;  %12463 = vrot.lane.b32.xlu0 %v13719_v16, %s16832_s21 }
 0x1ca   : > { %11828 = vmatmul.msk.f32.gmra.mxu3 %vm392_vm1, %v13543_v56 }
 0x1cb   : > { %v1598_v38 = vpop.f32.mrf.mxu2 }
 0x1cc   : > { %v1638_v7 = vadd.f32 %v1598_v38, %v13511_v17  ;;  %v13649_v40 = vpop.f32.mrf.mxu0  ;;  %v13651_v34 = vpop.f32.mrf.mxu1  ;;  %v16885_v17 = vld [vmem:[#allocation9_spill] sm:$0xff]  ;;  %v13776_v38 = vpack.i.bf16 %v13772_v23, %v13769_v18 }
 0x1cd   : > { %v1621_v56 = vpop.f32.mrf.mxu3 }
 0x1ce   : > { %v13656_v57 = vadd.f32 %v1638_v7, %v16884_v30  ;;  %v1639_v27 = vadd.f32 %v1621_v56, %v13518_v14  ;;  %v13673_v14 = vld [vmem:[%s12828_s13 + $0x48] sm:$0xff]  ;;  %16895 = vst [vmem:[#allocation4_spill] sm:$0xff] %v13776_v38  ;;  %v2733_v7 = vpop.permute.xlu0 %2732 }
 0x1cf   : > { %11829 = vmatmul.msk.f32.vlgmr.msra.gmra.mxu0 %vm392_vm1, %v2535_v33  ;;  %11831 = vmatmul.msk.f32.vlgmr.msra.gmra.mxu1 %vm392_vm1, %v2535_v33  ;;  %16886 = vst [vmem:[#allocation3_spill] sm:$0xff] %v13673_v14  ;;  %v13677_v62 = vpack.i.bf16 %v13673_v14, %v13670_v61 }
 0x1d0   : > { %v13662_v28 = vadd.f32 %v1639_v27, %v16885_v17  ;;  %11833 = vmatmul.msk.f32.vlgmr.msra.gmra.mxu2 %vm392_vm1, %v2535_v33  ;;  %2757 = vmatpush.msra.mxu0 %v13406_v59  ;;  %v13790_v17 = vld [vmem:[%s16796_s1 + $0x10] sm:$0xff] }
 0x1d1   : > { %2780 = vmatpush.msra.mxu1 %v13411_v12  ;;  %2803 = vmatpush.msra.mxu2 %v13426_v10  ;;  %16887 = vst [vmem:[#allocation10_spill] sm:$0xff] %v13677_v62  ;;  %v2537_v10 = vpop.permute.xlu1 %2536 }
 0x1d2   : > { %11835 = vmatmul.msk.f32.vlgmr.msra.gmra.mxu3 %vm392_vm1, %v2535_v33  ;;  %12453 = vrot.lane.b32.xlu1 %v13677_v62, %s12754_s18  ;;  %16896 = vst [vmem:[#allocation15_spill] sm:$0xff] %v13790_v17 }
 0x1d3   : > { %2826 = vmatpush.msra.mxu3 %v13457_v35  ;;  %v13680_v46 = vpop.f32.mrf.mxu2  ;;  %3578 = vrot.lane.b32.xlu2 %v13749_v19, %s12754_s18 }
 0x1d4   : > { %v13682_v59 = vpop.f32.mrf.mxu0  ;;  %v13684_v12 = vpop.f32.mrf.mxu1  ;;  %4230 = vrot.lane.b32.xlu0 %v13749_v19, %s16832_s21 }
 0x1d5   : > { %v13688_v2 = vpop.f32.mrf.mxu3 }
 0x1d7   : > { %11830 = vmatmul.msk.f32.gmra.mxu0 %vm392_vm1, %v2537_v10  ;;  %11832 = vmatmul.msk.f32.gmra.mxu1 %vm392_vm1, %v2537_v10 }
 0x1d8   : > { %11834 = vmatmul.msk.f32.gmra.mxu2 %vm392_vm1, %v2537_v10 }
 0x1d9   : > { %v2735_v52 = vpop.permute.xlu1 %2734 }
 0x1da   : > { %11836 = vmatmul.msk.f32.gmra.mxu3 %vm392_vm1, %v2537_v10  ;;  %3797 = vrot.lane.b32.xlu1 %v13701_v48, %s12754_s18  ;;  %v2736_v15 = vsel %vm2329_vm4, %v16891_v1, %v2735_v52 }
 0x1db   : > { %v13694_v35 = vpop.f32.mrf.mxu2  ;;  %12458 = vrot.lane.b32.xlu2 %v13776_v38, %s12754_s18 }
 0x1dc   : > { %v13696_v20 = vpop.f32.mrf.mxu0  ;;  %v13698_v45 = vpop.f32.mrf.mxu1  ;;  %12478 = vrot.lane.b32.xlu0 %v13776_v38, %s16832_s21 }
 0x1dd   : > { %v13705_v0 = vpop.f32.mrf.mxu3 }
 0x1df   : > { %11837 = vmatmul.msk.f32.vlgmr.msrb.gmra.mxu0 %vm392_vm1, %v2535_v33  ;;  %11839 = vmatmul.msk.f32.vlgmr.msrb.gmra.mxu1 %vm392_vm1, %v2535_v33 }
 0x1e0   : > { %11841 = vmatmul.msk.f32.vlgmr.msrb.gmra.mxu2 %vm392_vm1, %v2535_v33  ;;  %2849 = vmatpush.msrb.mxu0 %v13463_v32 }
 0x1e1   : > { %2872 = vmatpush.msrb.mxu1 %v13466_v60  ;;  %2895 = vmatpush.msrb.mxu2 %v16889_v21  ;;  %v13738_v60 = vld [vmem:[%s16796_s1 + $0x18] sm:$0xff] }
 0x1e2   : > { %11843 = vmatmul.msk.f32.vlgmr.msrb.gmra.mxu3 %vm392_vm1, %v2535_v33  ;;  %16892 = vst [vmem:[#allocation14_spill] sm:$0xff] %v13738_v60  ;;  %3991 = vrot.lane.b32.xlu1 %v13738_v60, %s12753_s22 }
 0x1e3   : > { %2918 = vmatpush.msrb.mxu3 %v2736_v15  ;;  %v13729_v32 = vpop.f32.mrf.mxu2  ;;  %3795 = vrot.lane.b32.xlu2 %v13790_v17, %s12748_s11 }
 0x1e4   : > { %v13731_v44 = vpop.f32.mrf.mxu0  ;;  %v13733_v53 = vpop.f32.mrf.mxu1 }
 0x1e5   : > { %v13742_v31 = vpop.f32.mrf.mxu3 }
 0x1e7   : > { %11838 = vmatmul.msk.f32.gmra.mxu0 %vm392_vm1, %v2537_v10  ;;  %11840 = vmatmul.msk.f32.gmra.mxu1 %vm392_vm1, %v2537_v10 }
 0x1e8   : > { %11842 = vmatmul.msk.f32.gmra.mxu2 %vm392_vm1, %v2537_v10 }
 0x1ea   : > { %11844 = vmatmul.msk.f32.gmra.mxu3 %vm392_vm1, %v2537_v10  ;;  %4218 = vrot.lane.b32.xlu1 %v13758_v9, %s16834_s17 }
 0x1eb   : > { %v13753_v13 = vpop.f32.mrf.mxu2 }
 0x1ec   : > { %v1912_v8 = vpop.f32.mrf.mxu0  ;;  %v1935_v58 = vpop.f32.mrf.mxu1 }
 0x1ed   : > { %v13762_v39 = vpop.f32.mrf.mxu3 }
 0x1ef   : > { %11845 = vmatmul.msk.f32.vlgmr.msra.gmra.mxu0 %vm392_vm1, %v2731_v54  ;;  %11847 = vmatmul.msk.f32.vlgmr.msra.gmra.mxu1 %vm392_vm1, %v2731_v54 }
 0x1f0   : > { %11849 = vmatmul.msk.f32.vlgmr.msra.gmra.mxu2 %vm392_vm1, %v2731_v54  ;;  %2981 = vmatpush.msra.mxu0 %v13642_v25 }
 0x1f1   : > { %3027 = vmatpush.msra.mxu2 %v13712_v22  ;;  %3004 = vmatpush.msra.mxu1 %v13639_v4 }
 0x1f2   : > { %11851 = vmatmul.msk.f32.vlgmr.msra.gmra.mxu3 %vm392_vm1, %v2731_v54  ;;  %4220 = vrot.lane.b32.xlu1 %v13790_v17, %s16834_s17  ;;  %s12759_s17 = smov 117  }
 0x1f3   : > { %v1958_v33 = vpop.f32.mrf.mxu2  ;;  %3050 = vmatpush.msra.mxu3 %v13715_v42 }
 0x1f4   : > { %v13785_v56 = vadd.f32 %v1958_v33, %v13680_v46  ;;  %v1915_v30 = vpop.f32.mrf.mxu0  ;;  %v1938_v27 = vpop.f32.mrf.mxu1 }
 0x1f5   : > { %v1981_v10 = vpop.f32.mrf.mxu3 }
 0x1f6   : > { %v13795_v52 = vadd.f32 %v1981_v10, %v13688_v2 }
 0x1f7   : > { %11846 = vmatmul.msk.f32.gmra.mxu0 %vm392_vm1, %v2733_v7  ;;  %11848 = vmatmul.msk.f32.gmra.mxu1 %vm392_vm1, %v2733_v7 }
 0x1f8   : > { %11850 = vmatmul.msk.f32.gmra.mxu2 %vm392_vm1, %v2733_v7 }
 0x1fa   : > { %11852 = vmatmul.msk.f32.gmra.mxu3 %vm392_vm1, %v2733_v7  ;;  %4445 = vrot.lane.b32.xlu1 %v13758_v9, %s16824_s16  ;;  %v2959_v9 = vpop.permute.xlu2 %2958 }
 0x1fb   : > { %v1961_v46 = vpop.f32.mrf.mxu2 }
 0x1fc   : > { %v13804_v21 = vadd.f32 %v1961_v46, %v13694_v35  ;;  %v13806_v41 = vpop.f32.mrf.mxu0  ;;  %v13808_v2 = vpop.f32.mrf.mxu1  ;;  %v13823_v35 = vld [vmem:[%s12828_s13 + $0x58] sm:$0xff] }
 0x1fd   : > { %v1984_v1 = vpop.f32.mrf.mxu3  ;;  %16897 = vst [vmem:[#allocation7_spill] sm:$0xff] %v13823_v35  ;;  %3994 = vrot.lane.b32.xlu2 %v13823_v35, %s12754_s18 }
 0x1fe   : > { %v13813_v15 = vadd.f32 %v1984_v1, %v13705_v0 }
 0x1ff   : > { %11853 = vmatmul.msk.f32.vlgmr.msrb.gmra.mxu0 %vm392_vm1, %v2731_v54  ;;  %11855 = vmatmul.msk.f32.vlgmr.msrb.gmra.mxu1 %vm392_vm1, %v2731_v54 }
 0x200   : > { %11857 = vmatmul.msk.f32.vlgmr.msrb.gmra.mxu2 %vm392_vm1, %v2731_v54  ;;  %3073 = vmatpush.msrb.mxu0 %v13749_v19 }
 0x201   : > { %3119 = vmatpush.msrb.mxu2 %v13670_v61  ;;  %3096 = vmatpush.msrb.mxu1 %v13769_v18 }
 0x202   : > { %11859 = vmatmul.msk.f32.vlgmr.msrb.gmra.mxu3 %vm392_vm1, %v2731_v54  ;;  %v1913_v54 = vadd.f32 %v1912_v8, %v13649_v40  ;;  %4641 = vrot.lane.b32.xlu1 %v13579_v43, %s12756_s10 }
 0x203   : > { %v2050_v33 = vpop.f32.mrf.mxu2  ;;  %3142 = vmatpush.msrb.mxu3 %v13673_v14 }
 0x204   : > { %v13829_v0 = vadd.f32 %v2050_v33, %v13729_v32  ;;  %v13831_v10 = vpop.f32.mrf.mxu0  ;;  %v13833_v46 = vpop.f32.mrf.mxu1  ;;  %v1936_v32 = vadd.f32 %v1935_v58, %v13651_v34 }
 0x205   : > { %v2073_v1 = vpop.f32.mrf.mxu3  ;;  %v2961_v34 = vpop.permute.xlu0 %2960 }
 0x206   : > { %v13836_v60 = vadd.f32 %v2073_v1, %v13742_v31 }
 0x207   : > { %11854 = vmatmul.msk.f32.gmra.mxu0 %vm392_vm1, %v2733_v7  ;;  %11856 = vmatmul.msk.f32.gmra.mxu1 %vm392_vm1, %v2733_v7 }
 0x208   : > { %11858 = vmatmul.msk.f32.gmra.mxu2 %vm392_vm1, %v2733_v7 }
 0x20a   : > { %11860 = vmatmul.msk.f32.gmra.mxu3 %vm392_vm1, %v2733_v7 }
 0x20b   : > { %v2053_v33 = vpop.f32.mrf.mxu2 }
 0x20c   : > { %v13845_v62 = vadd.f32 %v2053_v33, %v13753_v13  ;;  %v2108_v35 = vpop.f32.mrf.mxu0  ;;  %v2131_v31 = vpop.f32.mrf.mxu1 }
 0x20d   : > { %v2076_v1 = vpop.f32.mrf.mxu3  ;;  %v2275_v36 = vadd.f32 %v2108_v35, %v1913_v54  ;;  %v2276_v23 = vadd.f32 %v2131_v31, %v1936_v32 }
 0x20e   : > { %v13848_v17 = vadd.f32 %v2076_v1, %v13762_v39 }
 0x20f   : > { %v13851_v14 = vadd.f32 %v2275_v36, %v13520_v3  ;;  %v13854_v40 = vadd.f32 %v2276_v23, %v13522_v29  ;;  %11861 = vmatmul.msk.f32.vlgmr.msra.gmra.mxu0 %vm392_vm1, %v2959_v9  ;;  %11863 = vmatmul.msk.f32.vlgmr.msra.gmra.mxu1 %vm392_vm1, %v2959_v9  ;;  %v1916_v3 = vadd.f32 %v1915_v30, %v13682_v59 }
 0x210   : > { %11865 = vmatmul.msk.f32.vlgmr.msra.gmra.mxu2 %vm392_vm1, %v2959_v9  ;;  %3173 = vmatpush.msra.mxu0 %v13701_v48  ;;  %v1939_v36 = vadd.f32 %v1938_v27, %v13684_v12 }
 0x211   : > { %3219 = vmatpush.msra.mxu2 %v13639_v4  ;;  %3196 = vmatpush.msra.mxu1 %v13642_v25 }
 0x212   : > { %11867 = vmatmul.msk.f32.vlgmr.msra.gmra.mxu3 %vm392_vm1, %v2959_v9 }
 0x213   : > { %v2154_v29 = vpop.f32.mrf.mxu2  ;;  %3242 = vmatpush.msra.mxu3 %v13712_v22 }
 0x214   : > { %v2277_v13 = vadd.f32 %v2154_v29, %v13785_v56  ;;  %v2111_v8 = vpop.f32.mrf.mxu0  ;;  %v2134_v58 = vpop.f32.mrf.mxu1 }
 0x215   : > { %v2283_v39 = vadd.f32 %v2111_v8, %v1916_v3  ;;  %v2284_v23 = vadd.f32 %v2134_v58, %v1939_v36  ;;  %v2177_v7 = vpop.f32.mrf.mxu3 }
 0x216   : > { %v13868_v35 = vadd.f32 %v2277_v13, %v13549_v24  ;;  %v2278_v25 = vadd.f32 %v2177_v7, %v13795_v52  ;;  %v2005_v24 = vadd.f32 %v13806_v41, %v13696_v20  ;;  %v16899_v7 = vld [vmem:[#allocation15_spill] sm:$0xff] }
 0x217   : > { %v13872_v59 = vadd.f32 %v2283_v39, %v13552_v63  ;;  %v13875_v12 = vadd.f32 %v2284_v23, %v13554_v5  ;;  %11862 = vmatmul.msk.f32.gmra.mxu0 %vm392_vm1, %v2961_v34  ;;  %11864 = vmatmul.msk.f32.gmra.mxu1 %vm392_vm1, %v2961_v34  ;;  %v2028_v63 = vadd.f32 %v13808_v2, %v13698_v45  ;;  %v16898_v23 = vld [vmem:[#allocation3_spill] sm:$0xff] }
 0x218   : > { %v13880_v56 = vadd.f32 %v2278_v25, %v13561_v37  ;;  %11866 = vmatmul.msk.f32.gmra.mxu2 %vm392_vm1, %v2961_v34  ;;  %4447 = vrot.lane.b32.xlu0 %v16899_v7, %s16824_s16  ;;  %s16838_s16 = smov 118  }
 0x219   : > { %12483 = vrot.lane.b32.xlu1 %v13719_v16, %s16838_s16 }
 0x21a   : > { %11868 = vmatmul.msk.f32.gmra.mxu3 %vm392_vm1, %v2961_v34 }
 0x21b   : > { %v2157_v30 = vpop.f32.mrf.mxu2 }
 0x21c   : > { %v2285_v5 = vadd.f32 %v2157_v30, %v13804_v21  ;;  %v2200_v27 = vpop.f32.mrf.mxu0  ;;  %v2223_v52 = vpop.f32.mrf.mxu1 }
 0x21d   : > { %v2180_v37 = vpop.f32.mrf.mxu3  ;;  %v2279_v54 = vadd.f32 %v2200_v27, %v2005_v24  ;;  %v2280_v32 = vadd.f32 %v2223_v52, %v2028_v63  ;;  %v16900_v24 = vld [vmem:[#allocation6_spill] sm:$0xff] }
 0x21e   : > { %v13892_v33 = vadd.f32 %v2285_v5, %v13586_v55  ;;  %v2286_v20 = vadd.f32 %v2180_v37, %v13813_v15  ;;  %v2008_v55 = vadd.f32 %v13831_v10, %v13731_v44  ;;  %v3343_v37 = vpop.permute.xlu0 %3342 }
 0x21f   : > { %v13896_v41 = vadd.f32 %v2279_v54, %v13589_v26  ;;  %v13899_v45 = vadd.f32 %v2280_v32, %v13591_v49  ;;  %11869 = vmatmul.msk.f32.vlgmr.msrb.gmra.mxu0 %vm392_vm1, %v2959_v9  ;;  %11871 = vmatmul.msk.f32.vlgmr.msrb.gmra.mxu1 %vm392_vm1, %v2959_v9  ;;  %v2031_v26 = vadd.f32 %v13833_v46, %v13733_v53  ;;  %v16902_v32 = vld [vmem:[#allocation7_spill] sm:$0xff] }
 0x220   : > { %v13904_v21 = vadd.f32 %v2286_v20, %v13598_v47  ;;  %11873 = vmatmul.msk.f32.vlgmr.msrb.gmra.mxu2 %vm392_vm1, %v2959_v9  ;;  %3265 = vmatpush.msrb.mxu0 %v13715_v42 }
 0x221   : > { %3311 = vmatpush.msrb.mxu2 %v13769_v18  ;;  %3288 = vmatpush.msrb.mxu1 %v13749_v19 }
 0x222   : > { %11875 = vmatmul.msk.f32.vlgmr.msrb.gmra.mxu3 %vm392_vm1, %v2959_v9  ;;  %4645 = vrot.lane.b32.xlu0 %v16902_v32, %s16832_s21 }
 0x223   : > { %v2246_v49 = vpop.f32.mrf.mxu2  ;;  %3334 = vmatpush.msrb.mxu3 %v13670_v61 }
 0x224   : > { %v2281_v47 = vadd.f32 %v2246_v49, %v13829_v0  ;;  %v2203_v2 = vpop.f32.mrf.mxu0  ;;  %v2226_v15 = vpop.f32.mrf.mxu1 }
 0x225   : > { %v2287_v31 = vadd.f32 %v2203_v2, %v2008_v55  ;;  %v2288_v1 = vadd.f32 %v2226_v15, %v2031_v26  ;;  %v2269_v3 = vpop.f32.mrf.mxu3  ;;  %v16903_v2 = vld [vmem:[#allocation10_spill] sm:$0xff] }
 0x226   : > { %v13918_v36 = vadd.f32 %v2281_v47, %v13620_v11  ;;  %v2282_v9 = vadd.f32 %v2269_v3, %v13836_v60  ;;  %12493 = vrot.lane.b32.xlu1 %v16903_v2, %s16838_s16 }
 0x227   : > { %v13922_v44 = vadd.f32 %v2287_v31, %v13623_v6  ;;  %v13925_v53 = vadd.f32 %v2288_v1, %v13625_v50  ;;  %11870 = vmatmul.msk.f32.gmra.mxu0 %vm392_vm1, %v2961_v34  ;;  %11872 = vmatmul.msk.f32.gmra.mxu1 %vm392_vm1, %v2961_v34  ;;  %v3151_v6 = vpop.permute.xlu1 %3150 }
 0x228   : > { %v13930_v0 = vadd.f32 %v2282_v9, %v13632_v51  ;;  %11874 = vmatmul.msk.f32.gmra.mxu2 %vm392_vm1, %v2961_v34 }
 0x22a   : > { %11876 = vmatmul.msk.f32.gmra.mxu3 %vm392_vm1, %v2961_v34  ;;  %4877 = vrot.lane.b32.xlu0 %v13749_v19, %s16838_s16 }
 0x22b   : > { %v2249_v11 = vpop.f32.mrf.mxu2 }
 0x22c   : > { %v2289_v50 = vadd.f32 %v2249_v11, %v13845_v62  ;;  %v13937_v60 = vpop.f32.mrf.mxu0  ;;  %v13939_v10 = vpop.f32.mrf.mxu1 }
 0x22d   : > { %v2272_v46 = vpop.f32.mrf.mxu3  ;;  %v3153_v62 = vpop.permute.xlu2 %3152 }
 0x22e   : > { %v13942_v51 = vadd.f32 %v2289_v50, %v13656_v57  ;;  %v2290_v29 = vadd.f32 %v2272_v46, %v13848_v17 }
 0x22f   : > { %11877 = vmatmul.msk.f32.vlgmr.msra.gmra.mxu0 %vm392_vm1, %v3151_v6  ;;  %11879 = vmatmul.msk.f32.vlgmr.msra.gmra.mxu1 %vm392_vm1, %v3151_v6  ;;  %v13980_v58 = vpop.permute.xlu1 %3344 }
 0x230   : > { %v13948_v34 = vadd.f32 %v2290_v29, %v13662_v28  ;;  %11881 = vmatmul.msk.f32.vlgmr.msra.gmra.mxu2 %vm392_vm1, %v3151_v6  ;;  %3365 = vmatpush.msra.mxu0 %v13639_v4 }
 0x231   : > { %3411 = vmatpush.msra.mxu2 %v13715_v42  ;;  %3388 = vmatpush.msra.mxu1 %v13712_v22 }
 0x232   : > { %11883 = vmatmul.msk.f32.vlgmr.msra.gmra.mxu3 %vm392_vm1, %v3151_v6 }
 0x233   : > { %v13957_v57 = vpop.f32.mrf.mxu2  ;;  %3434 = vmatpush.msra.mxu3 %v13749_v19 }
 0x234   : > { %v13960_v28 = vpop.f32.mrf.mxu0  ;;  %v13962_v17 = vpop.f32.mrf.mxu1 }
 0x235   : > { %v13964_v13 = vpop.f32.mrf.mxu3  ;;  %v12444_v39 = vpop.permute.xlu2 %12443 }
 0x236   : > { %v12445_v27 = vunpack.i.l.bf16 %v12444_v39  ;;  %v12446_v54 = vunpack.i.h.bf16 %v12444_v39 }
 0x237   : > { %11878 = vmatmul.msk.f32.gmra.mxu0 %vm392_vm1, %v3153_v62  ;;  %11880 = vmatmul.msk.f32.gmra.mxu1 %vm392_vm1, %v3153_v62 }
 0x238   : > { %11882 = vmatmul.msk.f32.gmra.mxu2 %vm392_vm1, %v3153_v62  ;;  %v14026_v1 = vsel %vm3588_vm5, %v12445_v27, %v12446_v54 }
 0x23a   : > { %11884 = vmatmul.msk.f32.gmra.mxu3 %vm392_vm1, %v3153_v62 }
 0x23b   : > { %v13972_v4 = vpop.f32.mrf.mxu2 }
 0x23c   : > { %v13974_v22 = vpop.f32.mrf.mxu0  ;;  %v13976_v42 = vpop.f32.mrf.mxu1 }
 0x23d   : > { %v13978_v8 = vpop.f32.mrf.mxu3  ;;  %v3579_v26 = vpop.permute.xlu2 %3578 }
 0x23e   : > { %v14037_v9 = vsel %vm3588_vm5, %v12446_v54, %v3579_v26 }
 0x23f   : > { %11885 = vmatmul.msk.f32.vlgmr.msrb.gmra.mxu0 %vm392_vm1, %v3151_v6  ;;  %11887 = vmatmul.msk.f32.vlgmr.msrb.gmra.mxu1 %vm392_vm1, %v3151_v6 }
 0x240   : > { %11889 = vmatmul.msk.f32.vlgmr.msrb.gmra.mxu2 %vm392_vm1, %v3151_v6  ;;  %3457 = vmatpush.msrb.mxu0 %v13769_v18  ;;  %v16901_v18 = vld [vmem:[#allocation2_spill] sm:$0xff] }
 0x241   : > { %3503 = vmatpush.msrb.mxu2 %v16898_v23  ;;  %3480 = vmatpush.msrb.mxu1 %v13670_v61  ;;  %v14005_v61 = vpop.permute.xlu1 %12448 }
 0x242   : > { %11891 = vmatmul.msk.f32.vlgmr.msrb.gmra.mxu3 %vm392_vm1, %v3151_v6  ;;  %12468 = vrot.lane.b32.xlu2 %v16901_v18, %s16832_s21  ;;  %v12451_v52 = vunpack.i.h.bf16 %v14005_v61  ;;  %v16826_v55 = vunpack.i.l.bf16 %v14005_v61  ;;  %v16908_v18 = vunpack.i.l.bf16 %v14005_v61 }
 0x243   : > { %v13991_v25 = vpop.f32.mrf.mxu2  ;;  %3526 = vmatpush.msrb.mxu3 %v16900_v24  ;;  %v16905_v24 = vld [vmem:[#allocation5_spill] sm:$0xff] }
 0x244   : > { %v13994_v63 = vpop.f32.mrf.mxu0  ;;  %v13996_v30 = vpop.f32.mrf.mxu1  ;;  %v14023_v31 = vsel %vm3588_vm5, %v12451_v52, %v12445_v27  ;;  %v14033_v3 = vsel %vm3588_vm5, %v16826_v55, %v12451_v52  ;;  %5092 = vrot.lane.b32.xlu0 %v16905_v24, %s12753_s22  ;;  %v16906_v55 = vld [vmem:[#allocation14_spill] sm:$0xff] }
 0x245   : > { %v14000_v5 = vpop.f32.mrf.mxu3  ;;  %v14058_v39 = vpop.permute.xlu2 %12458 }
 0x246   : > { %16904 = vst [vmem:[#allocation8_spill] sm:$0xff] %v14058_v39 }
 0x247   : > { %11886 = vmatmul.msk.f32.gmra.mxu0 %vm392_vm1, %v3153_v62  ;;  %11888 = vmatmul.msk.f32.gmra.mxu1 %vm392_vm1, %v3153_v62 }
 0x248   : > { %11890 = vmatmul.msk.f32.gmra.mxu2 %vm392_vm1, %v3153_v62 }
 0x249   : > { %v12454_v19 = vpop.permute.xlu1 %12453 }
 0x24a   : > { %11892 = vmatmul.msk.f32.gmra.mxu3 %vm392_vm1, %v3153_v62  ;;  %12473 = vrot.lane.b32.xlu2 %v16903_v2, %s16832_s21  ;;  %v12456_v23 = vunpack.i.h.bf16 %v12454_v19  ;;  %v16909_v2 = vld [vmem:[#allocation11_spill] sm:$0xff] }
 0x24b   : > { %v14011_v20 = vpop.f32.mrf.mxu2  ;;  %5096 = vrot.lane.b32.xlu1 %v16909_v2, %s16838_s16 }
 0x24c   : > { %v14014_v49 = vpop.f32.mrf.mxu0  ;;  %v14016_v47 = vpop.f32.mrf.mxu1  ;;  %5288 = vrot.lane.b32.xlu0 %v13579_v43, %s12737_s9 }
 0x24d   : > { %v14020_v15 = vpop.f32.mrf.mxu3  ;;  %v14124_v43 = vpop.permute.xlu0 %3566 }
 0x24f   : > { %11893 = vmatmul.msk.f32.vlgmr.msra.gmra.mxu0 %vm392_vm1, %v3343_v37  ;;  %11895 = vmatmul.msk.f32.vlgmr.msra.gmra.mxu1 %vm392_vm1, %v3343_v37 }
 0x250   : > { %11897 = vmatmul.msk.f32.vlgmr.msra.gmra.mxu2 %vm392_vm1, %v3343_v37  ;;  %3647 = vmatpush.msra.mxu1 %v14023_v31 }
 0x251   : > { %3670 = vmatpush.msra.mxu2 %v14026_v1  ;;  %3624 = vmatpush.msra.mxu0 %v14033_v3 }
 0x252   : > { %11899 = vmatmul.msk.f32.vlgmr.msra.gmra.mxu3 %vm392_vm1, %v3343_v37  ;;  %4449 = vrot.lane.b32.xlu2 %v13701_v48, %s16832_s21 }
 0x253   : > { %v2609_v11 = vpop.f32.mrf.mxu2  ;;  %3693 = vmatpush.msra.mxu3 %v14037_v9 }
 0x254   : > { %v14047_v6 = vadd.f32 %v2609_v11, %v13957_v57  ;;  %v14049_v50 = vpop.f32.mrf.mxu0  ;;  %v14051_v46 = vpop.f32.mrf.mxu1  ;;  %v12460_v57 = vunpack.i.l.bf16 %v14058_v39 }
 0x255   : > { %v2632_v29 = vpop.f32.mrf.mxu3 }
 0x256   : > { %v14056_v62 = vadd.f32 %v2632_v29, %v13964_v13  ;;  %v12455_v13 = vunpack.i.l.bf16 %v12454_v19  ;;  %v16827_v29 = vunpack.i.h.bf16 %v14058_v39  ;;  %v14082_v7 = vsel %vm3588_vm5, %v3579_v26, %v12460_v57 }
 0x257   : > { %11894 = vmatmul.msk.f32.gmra.mxu0 %vm392_vm1, %v13980_v58  ;;  %11896 = vmatmul.msk.f32.gmra.mxu1 %vm392_vm1, %v13980_v58 }
 0x258   : > { %11898 = vmatmul.msk.f32.gmra.mxu2 %vm392_vm1, %v13980_v58  ;;  %v14088_v24 = vsel %vm3588_vm5, %v12460_v57, %v12455_v13  ;;  %v14100_v26 = vsel %vm3588_vm5, %v12456_v23, %v16827_v29 }
 0x259   : > { %16907 = vst [vmem:[#allocation9_spill] sm:$0xff] %v14100_v26 }
 0x25a   : > { %11900 = vmatmul.msk.f32.gmra.mxu3 %vm392_vm1, %v13980_v58  ;;  %4643 = vrot.lane.b32.xlu2 %v16906_v55, %s12756_s10 }
 0x25b   : > { %v2612_v27 = vpop.f32.mrf.mxu2 }
 0x25c   : > { %v14072_v52 = vadd.f32 %v2612_v27, %v13972_v4  ;;  %v14074_v54 = vpop.f32.mrf.mxu0  ;;  %v14076_v11 = vpop.f32.mrf.mxu1  ;;  %v14091_v4 = vsel %vm3588_vm5, %v12455_v13, %v12456_v23 }
 0x25d   : > { %v2635_v32 = vpop.f32.mrf.mxu3 }
 0x25e   : > { %v14085_v19 = vadd.f32 %v2635_v32, %v13978_v8 }
 0x25f   : > { %11901 = vmatmul.msk.f32.vlgmr.msrb.gmra.mxu0 %vm392_vm1, %v3343_v37  ;;  %11903 = vmatmul.msk.f32.vlgmr.msrb.gmra.mxu1 %vm392_vm1, %v3343_v37 }
 0x260   : > { %11905 = vmatmul.msk.f32.vlgmr.msrb.gmra.mxu2 %vm392_vm1, %v3343_v37  ;;  %3716 = vmatpush.msrb.mxu0 %v14082_v7 }
 0x261   : > { %3739 = vmatpush.msrb.mxu1 %v14088_v24  ;;  %3762 = vmatpush.msrb.mxu2 %v14091_v4 }
 0x262   : > { %11907 = vmatmul.msk.f32.vlgmr.msrb.gmra.mxu3 %vm392_vm1, %v3343_v37  ;;  %v2564_v37 = vadd.f32 %v14014_v49, %v13937_v60 }
 0x263   : > { %v2701_v8 = vpop.f32.mrf.mxu2  ;;  %3785 = vmatpush.msrb.mxu3 %v14100_v26 }
 0x264   : > { %v14109_v32 = vadd.f32 %v2701_v8, %v13991_v25  ;;  %v14111_v57 = vpop.f32.mrf.mxu0  ;;  %v14113_v13 = vpop.f32.mrf.mxu1 }
 0x265   : > { %v2724_v23 = vpop.f32.mrf.mxu3  ;;  %v3798_v25 = vpop.permute.xlu1 %3797 }
 0x266   : > { %v14116_v27 = vadd.f32 %v2724_v23, %v14000_v5  ;;  %v2587_v5 = vadd.f32 %v14016_v47, %v13939_v10  ;;  %v3799_v55 = vsel %vm3588_vm5, %v3798_v25, %v16908_v18  ;;  %v3569_v18 = vpop.permute.xlu0 %3568 }
 0x267   : > { %11902 = vmatmul.msk.f32.gmra.mxu0 %vm392_vm1, %v13980_v58  ;;  %11904 = vmatmul.msk.f32.gmra.mxu1 %vm392_vm1, %v13980_v58 }
 0x268   : > { %11906 = vmatmul.msk.f32.gmra.mxu2 %vm392_vm1, %v13980_v58 }
 0x26a   : > { %11908 = vmatmul.msk.f32.gmra.mxu3 %vm392_vm1, %v13980_v58 }
 0x26b   : > { %v2704_v8 = vpop.f32.mrf.mxu2 }
 0x26c   : > { %v14133_v23 = vadd.f32 %v2704_v8, %v14011_v20  ;;  %v2759_v29 = vpop.f32.mrf.mxu0  ;;  %v2782_v38 = vpop.f32.mrf.mxu1 }
 0x26d   : > { %v2727_v39 = vpop.f32.mrf.mxu3  ;;  %v2926_v26 = vadd.f32 %v2759_v29, %v2564_v37  ;;  %v2927_v58 = vadd.f32 %v2782_v38, %v2587_v5  ;;  %v2590_v38 = vadd.f32 %v14051_v46, %v13962_v17 }
 0x26e   : > { %v14139_v48 = vadd.f32 %v2727_v39, %v14020_v15 }
 0x26f   : > { %v14142_v60 = vadd.f32 %v2926_v26, %v13851_v14  ;;  %v14145_v10 = vadd.f32 %v2927_v58, %v13854_v40  ;;  %11909 = vmatmul.msk.f32.vlgmr.msra.gmra.mxu0 %vm392_vm1, %v14124_v43  ;;  %11911 = vmatmul.msk.f32.vlgmr.msra.gmra.mxu1 %vm392_vm1, %v14124_v43  ;;  %v2567_v14 = vadd.f32 %v14049_v50, %v13960_v28 }
 0x270   : > { %11913 = vmatmul.msk.f32.vlgmr.msra.gmra.mxu2 %vm392_vm1, %v14124_v43  ;;  %3820 = vmatpush.msra.mxu0 %v3799_v55 }
 0x271   : > { %3843 = vmatpush.msra.mxu1 %v14033_v3  ;;  %3866 = vmatpush.msra.mxu2 %v14023_v31 }
 0x272   : > { %11915 = vmatmul.msk.f32.vlgmr.msra.gmra.mxu3 %vm392_vm1, %v14124_v43 }
 0x273   : > { %3889 = vmatpush.msra.mxu3 %v14026_v1  ;;  %v2805_v40 = vpop.f32.mrf.mxu2 }
 0x274   : > { %v2928_v61 = vadd.f32 %v2805_v40, %v14047_v6  ;;  %v2762_v20 = vpop.f32.mrf.mxu0  ;;  %v2785_v55 = vpop.f32.mrf.mxu1 }
 0x275   : > { %v2934_v49 = vadd.f32 %v2762_v20, %v2567_v14  ;;  %v2935_v47 = vadd.f32 %v2785_v55, %v2590_v38  ;;  %v2828_v15 = vpop.f32.mrf.mxu3  ;;  %v16911_v55 = vld [vmem:[#allocation8_spill] sm:$0xff] }
 0x276   : > { %v14164_v3 = vadd.f32 %v2928_v61, %v13868_v35  ;;  %v2929_v39 = vadd.f32 %v2828_v15, %v14056_v62  ;;  %v2656_v35 = vadd.f32 %v14074_v54, %v13974_v22  ;;  %v16910_v61 = vld [vmem:[#allocation9_spill] sm:$0xff] }
 0x277   : > { %v14168_v28 = vadd.f32 %v2934_v49, %v13872_v59  ;;  %v14171_v17 = vadd.f32 %v2935_v47, %v13875_v12  ;;  %11910 = vmatmul.msk.f32.gmra.mxu0 %vm392_vm1, %v3569_v18  ;;  %11912 = vmatmul.msk.f32.gmra.mxu1 %vm392_vm1, %v3569_v18  ;;  %v2679_v59 = vadd.f32 %v14076_v11, %v13976_v42  ;;  %v16912_v49 = vunpack.i.h.bf16 %v16911_v55  ;;  %v16917_v55 = vld [vmem:[#allocation15_spill] sm:$0xff] }
 0x278   : > { %v14176_v6 = vadd.f32 %v2929_v39, %v13880_v56  ;;  %11914 = vmatmul.msk.f32.gmra.mxu2 %vm392_vm1, %v3569_v18 }
 0x27a   : > { %11916 = vmatmul.msk.f32.gmra.mxu3 %vm392_vm1, %v3569_v18 }
 0x27b   : > { %v2808_v50 = vpop.f32.mrf.mxu2 }
 0x27c   : > { %v2936_v12 = vadd.f32 %v2808_v50, %v14072_v52  ;;  %v2851_v46 = vpop.f32.mrf.mxu0  ;;  %v2874_v62 = vpop.f32.mrf.mxu1 }
 0x27d   : > { %v2831_v29 = vpop.f32.mrf.mxu3  ;;  %v2930_v26 = vadd.f32 %v2851_v46, %v2656_v35  ;;  %v2931_v25 = vadd.f32 %v2874_v62, %v2679_v59  ;;  %v16914_v62 = vld [vmem:[#allocation2_spill] sm:$0xff] }
 0x27e   : > { %v14186_v56 = vadd.f32 %v2936_v12, %v13892_v33  ;;  %v2937_v37 = vadd.f32 %v2831_v29, %v14085_v19  ;;  %v2659_v33 = vadd.f32 %v14111_v57, %v13994_v63  ;;  %v3794_v57 = vpop.permute.xlu0 %3793  ;;  %12488 = vrot.lane.b32.xlu2 %v16914_v62, %s16838_s16 }
 0x27f   : > { %v14190_v5 = vadd.f32 %v2930_v26, %v13896_v41  ;;  %v14193_v22 = vadd.f32 %v2931_v25, %v13899_v45  ;;  %11917 = vmatmul.msk.f32.vlgmr.msrb.gmra.mxu0 %vm392_vm1, %v14124_v43  ;;  %11919 = vmatmul.msk.f32.vlgmr.msrb.gmra.mxu1 %vm392_vm1, %v14124_v43  ;;  %v2682_v41 = vadd.f32 %v14113_v13, %v13996_v30 }
 0x280   : > { %v14200_v42 = vadd.f32 %v2937_v37, %v13904_v21  ;;  %11921 = vmatmul.msk.f32.vlgmr.msrb.gmra.mxu2 %vm392_vm1, %v14124_v43  ;;  %3912 = vmatpush.msrb.mxu0 %v14037_v9 }
 0x281   : > { %3935 = vmatpush.msrb.mxu1 %v14082_v7  ;;  %3958 = vmatpush.msrb.mxu2 %v14088_v24 }
 0x282   : > { %11923 = vmatmul.msk.f32.vlgmr.msrb.gmra.mxu3 %vm392_vm1, %v14124_v43 }
 0x283   : > { %3981 = vmatpush.msrb.mxu3 %v14091_v4  ;;  %v2897_v45 = vpop.f32.mrf.mxu2 }
 0x284   : > { %v2932_v21 = vadd.f32 %v2897_v45, %v14109_v32  ;;  %v2854_v52 = vpop.f32.mrf.mxu0  ;;  %v2877_v54 = vpop.f32.mrf.mxu1 }
 0x285   : > { %v2938_v11 = vadd.f32 %v2854_v52, %v2659_v33  ;;  %v2939_v19 = vadd.f32 %v2877_v54, %v2682_v41  ;;  %v2920_v8 = vpop.f32.mrf.mxu3  ;;  %v14319_v41 = vld [vmem:[%s16796_s1 + $0x8] sm:$0xff] }
 0x286   : > { %v14216_v58 = vadd.f32 %v2932_v21, %v13918_v36  ;;  %v2933_v43 = vadd.f32 %v2920_v8, %v14116_v27  ;;  %16915 = vst [vmem:[#allocation13_spill] sm:$0xff] %v14319_v41  ;;  %v3992_v8 = vpop.permute.xlu1 %3991 }
 0x287   : > { %v14220_v63 = vadd.f32 %v2938_v11, %v13922_v44  ;;  %v14223_v30 = vadd.f32 %v2939_v19, %v13925_v53  ;;  %11918 = vmatmul.msk.f32.gmra.mxu0 %vm392_vm1, %v3569_v18  ;;  %11920 = vmatmul.msk.f32.gmra.mxu1 %vm392_vm1, %v3569_v18 }
 0x288   : > { %v14228_v32 = vadd.f32 %v2933_v43, %v13930_v0  ;;  %11922 = vmatmul.msk.f32.gmra.mxu2 %vm392_vm1, %v3569_v18  ;;  %v16916_v43 = vld [vmem:[#allocation4_spill] sm:$0xff] }
 0x289   : > { %12498 = vrot.lane.b32.xlu2 %v16916_v43, %s16838_s16  ;;  %v16919_v43 = vld [vmem:[#allocation7_spill] sm:$0xff] }
 0x28a   : > { %11924 = vmatmul.msk.f32.gmra.mxu3 %vm392_vm1, %v3569_v18 }
 0x28b   : > { %v2900_v36 = vpop.f32.mrf.mxu2 }
 0x28c   : > { %v2940_v13 = vadd.f32 %v2900_v36, %v14133_v23  ;;  %v14233_v44 = vpop.f32.mrf.mxu0  ;;  %v14235_v27 = vpop.f32.mrf.mxu1 }
 0x28d   : > { %v2923_v53 = vpop.f32.mrf.mxu3 }
 0x28e   : > { %v14240_v14 = vadd.f32 %v2940_v13, %v13942_v51  ;;  %v2941_v0 = vadd.f32 %v2923_v53, %v14139_v48 }
 0x28f   : > { %11925 = vmatmul.msk.f32.vlgmr.msra.gmra.mxu0 %vm392_vm1, %v3794_v57  ;;  %11927 = vmatmul.msk.f32.vlgmr.msra.gmra.mxu1 %vm392_vm1, %v3794_v57 }
 0x290   : > { %v14246_v38 = vadd.f32 %v2941_v0, %v13948_v34  ;;  %11929 = vmatmul.msk.f32.vlgmr.msra.gmra.mxu2 %vm392_vm1, %v3794_v57  ;;  %4017 = vmatpush.msra.mxu0 %v14023_v31  ;;  %v3796_v34 = vpop.permute.xlu2 %3795  ;;  %v14267_v31 = vpop.permute.xlu0 %3989 }
 0x291   : > { %4040 = vmatpush.msra.mxu1 %v14026_v1  ;;  %4063 = vmatpush.msra.mxu2 %v14037_v9 }
 0x292   : > { %11931 = vmatmul.msk.f32.vlgmr.msra.gmra.mxu3 %vm392_vm1, %v3794_v57  ;;  %5094 = vrot.lane.b32.xlu2 %v16917_v55, %s12753_s22 }
 0x293   : > { %4086 = vmatpush.msra.mxu3 %v14082_v7  ;;  %v14254_v48 = vpop.f32.mrf.mxu2 }
 0x294   : > { %v14256_v16 = vpop.f32.mrf.mxu0  ;;  %v14258_v51 = vpop.f32.mrf.mxu1 }
 0x295   : > { %v14262_v23 = vpop.f32.mrf.mxu3 }
 0x297   : > { %11926 = vmatmul.msk.f32.gmra.mxu0 %vm392_vm1, %v3796_v34  ;;  %11928 = vmatmul.msk.f32.gmra.mxu1 %vm392_vm1, %v3796_v34 }
 0x298   : > { %11930 = vmatmul.msk.f32.gmra.mxu2 %vm392_vm1, %v3796_v34  ;;  %v3995_v18 = vpop.permute.xlu2 %3994  ;;  %v12464_v20 = vpop.permute.xlu0 %12463 }
 0x299   : > { %v3996_v47 = vsel %vm3588_vm5, %v16912_v49, %v3995_v18  ;;  %v12465_v50 = vunpack.i.l.bf16 %v12464_v20  ;;  %v12466_v46 = vunpack.i.h.bf16 %v12464_v20 }
 0x29a   : > { %11932 = vmatmul.msk.f32.gmra.mxu3 %vm392_vm1, %v3796_v34  ;;  %5292 = vrot.lane.b32.xlu2 %v16919_v43, %s16838_s16 }
 0x29b   : > { %v14270_v7 = vpop.f32.mrf.mxu2  ;;  %v14329_v52 = vsel %vm4240_vm6, %v12465_v50, %v12466_v46 }
 0x29c   : > { %v14272_v1 = vpop.f32.mrf.mxu0  ;;  %v14274_v9 = vpop.f32.mrf.mxu1 }
 0x29d   : > { %v14278_v40 = vpop.f32.mrf.mxu3 }
 0x29f   : > { %11933 = vmatmul.msk.f32.vlgmr.msrb.gmra.mxu0 %vm392_vm1, %v3794_v57  ;;  %11935 = vmatmul.msk.f32.vlgmr.msrb.gmra.mxu1 %vm392_vm1, %v3794_v57 }
 0x2a0   : > { %11937 = vmatmul.msk.f32.vlgmr.msrb.gmra.mxu2 %vm392_vm1, %v3794_v57  ;;  %4109 = vmatpush.msrb.mxu0 %v14088_v24  ;;  %v16913_v24 = vld [vmem:[#allocation14_spill] sm:$0xff]  ;;  %v14303_v59 = vpop.permute.xlu2 %12468  ;;  %v4231_v25 = vpop.permute.xlu0 %4230 }
 0x2a1   : > { %4132 = vmatpush.msrb.mxu1 %v14091_v4  ;;  %4155 = vmatpush.msrb.mxu2 %v16910_v61  ;;  %v12471_v12 = vunpack.i.h.bf16 %v14303_v59  ;;  %v12470_v26 = vunpack.i.l.bf16 %v14303_v59  ;;  %v14343_v11 = vsel %vm4240_vm6, %v12466_v46, %v4231_v25 }
 0x2a2   : > { %11939 = vmatmul.msk.f32.vlgmr.msrb.gmra.mxu3 %vm392_vm1, %v3794_v57  ;;  %5290 = vrot.lane.b32.xlu1 %v16913_v24, %s12737_s9 }
 0x2a3   : > { %4178 = vmatpush.msrb.mxu3 %v3996_v47  ;;  %v14290_v15 = vpop.f32.mrf.mxu2  ;;  %v14326_v21 = vsel %vm4240_vm6, %v12471_v12, %v12465_v50  ;;  %v14338_v54 = vsel %vm4240_vm6, %v12470_v26, %v12471_v12  ;;  %v16918_v50 = vld [vmem:[#allocation5_spill] sm:$0xff] }
 0x2a4   : > { %v14292_v39 = vpop.f32.mrf.mxu0  ;;  %v14294_v35 = vpop.f32.mrf.mxu1 }
 0x2a5   : > { %v14298_v4 = vpop.f32.mrf.mxu3 }
 0x2a7   : > { %11934 = vmatmul.msk.f32.gmra.mxu0 %vm392_vm1, %v3796_v34  ;;  %11936 = vmatmul.msk.f32.gmra.mxu1 %vm392_vm1, %v3796_v34 }
 0x2a8   : > { %11938 = vmatmul.msk.f32.gmra.mxu2 %vm392_vm1, %v3796_v34 }
 0x2aa   : > { %11940 = vmatmul.msk.f32.gmra.mxu3 %vm392_vm1, %v3796_v34  ;;  %5516 = vrot.lane.b32.xlu1 %v14319_v41, %s12742_s24  ;;  %v14365_v34 = vpop.permute.xlu0 %12478 }
 0x2ab   : > { %v14309_v29 = vpop.f32.mrf.mxu2  ;;  %v12480_v2 = vunpack.i.l.bf16 %v14365_v34 }
 0x2ac   : > { %v14312_v37 = vpop.f32.mrf.mxu0  ;;  %v14314_v33 = vpop.f32.mrf.mxu1 }
 0x2ad   : > { %v14323_v45 = vpop.f32.mrf.mxu3  ;;  %v14385_v46 = vsel %vm4240_vm6, %v4231_v25, %v12480_v2  ;;  %v3199_v55 = vadd.f32 %v14314_v33, %v14235_v27 }
 0x2af   : > { %11941 = vmatmul.msk.f32.vlgmr.msra.gmra.mxu0 %vm392_vm1, %v14267_v31  ;;  %11943 = vmatmul.msk.f32.vlgmr.msra.gmra.mxu1 %vm392_vm1, %v14267_v31 }
 0x2b0   : > { %11945 = vmatmul.msk.f32.vlgmr.msra.gmra.mxu2 %vm392_vm1, %v14267_v31  ;;  %4299 = vmatpush.msra.mxu1 %v14326_v21 }
 0x2b1   : > { %4322 = vmatpush.msra.mxu2 %v14329_v52  ;;  %4276 = vmatpush.msra.mxu0 %v14338_v54 }
 0x2b2   : > { %11947 = vmatmul.msk.f32.vlgmr.msra.gmra.mxu3 %vm392_vm1, %v14267_v31  ;;  %5518 = vrot.lane.b32.xlu1 %v16913_v24, %s12742_s24  ;;  %v16835_v24 = vunpack.i.h.bf16 %v14365_v34 }
 0x2b3   : > { %v3221_v19 = vpop.f32.mrf.mxu2  ;;  %4345 = vmatpush.msra.mxu3 %v14343_v11 }
 0x2b4   : > { %v14354_v36 = vadd.f32 %v3221_v19, %v14254_v48  ;;  %v14356_v57 = vpop.f32.mrf.mxu0  ;;  %v14358_v13 = vpop.f32.mrf.mxu1 }
 0x2b5   : > { %v3244_v53 = vpop.f32.mrf.mxu3  ;;  %v12474_v48 = vpop.permute.xlu2 %12473 }
 0x2b6   : > { %v14363_v0 = vadd.f32 %v3244_v53, %v14262_v23  ;;  %v12476_v18 = vunpack.i.h.bf16 %v12474_v48  ;;  %v12475_v61 = vunpack.i.l.bf16 %v12474_v48 }
 0x2b7   : > { %11942 = vmatmul.msk.f32.gmra.mxu0 %vm392_vm1, %v3992_v8  ;;  %11944 = vmatmul.msk.f32.gmra.mxu1 %vm392_vm1, %v3992_v8 }
 0x2b8   : > { %11946 = vmatmul.msk.f32.gmra.mxu2 %vm392_vm1, %v3992_v8  ;;  %v14391_v19 = vsel %vm4240_vm6, %v12480_v2, %v12475_v61 }
 0x2ba   : > { %11948 = vmatmul.msk.f32.gmra.mxu3 %vm392_vm1, %v3992_v8  ;;  %5743 = vrot.lane.b32.xlu1 %v16918_v50, %s12756_s10 }
 0x2bb   : > { %v3224_v20 = vpop.f32.mrf.mxu2 }
 0x2bc   : > { %v14375_v23 = vadd.f32 %v3224_v20, %v14270_v7  ;;  %v14377_v49 = vpop.f32.mrf.mxu0  ;;  %v14379_v47 = vpop.f32.mrf.mxu1  ;;  %v14394_v7 = vsel %vm4240_vm6, %v12475_v61, %v12476_v18  ;;  %v3176_v20 = vadd.f32 %v14312_v37, %v14233_v44 }
 0x2bd   : > { %v3247_v12 = vpop.f32.mrf.mxu3 }
 0x2be   : > { %v14388_v62 = vadd.f32 %v3247_v12, %v14278_v40  ;;  %v14406_v40 = vsel %vm4240_vm6, %v12476_v18, %v16835_v24 }
 0x2bf   : > { %11949 = vmatmul.msk.f32.vlgmr.msrb.gmra.mxu0 %vm392_vm1, %v14267_v31  ;;  %11951 = vmatmul.msk.f32.vlgmr.msrb.gmra.mxu1 %vm392_vm1, %v14267_v31 }
 0x2c0   : > { %11953 = vmatmul.msk.f32.vlgmr.msrb.gmra.mxu2 %vm392_vm1, %v14267_v31  ;;  %4368 = vmatpush.msrb.mxu0 %v14385_v46 }
 0x2c1   : > { %4391 = vmatpush.msrb.mxu1 %v14391_v19  ;;  %4414 = vmatpush.msrb.mxu2 %v14394_v7 }
 0x2c2   : > { %11955 = vmatmul.msk.f32.vlgmr.msrb.gmra.mxu3 %vm392_vm1, %v14267_v31  ;;  %5939 = vrot.lane.b32.xlu1 %v14319_v41, %s12741_s23  ;;  %v14430_v31 = vpop.permute.xlu1 %4218 }
 0x2c3   : > { %v3313_v25 = vpop.f32.mrf.mxu2  ;;  %4437 = vmatpush.msrb.mxu3 %v14406_v40 }
 0x2c4   : > { %v14416_v53 = vadd.f32 %v3313_v25, %v14290_v15  ;;  %v14418_v48 = vpop.f32.mrf.mxu0  ;;  %v14420_v2 = vpop.f32.mrf.mxu1 }
 0x2c5   : > { %v3336_v18 = vpop.f32.mrf.mxu3  ;;  %v4450_v15 = vpop.permute.xlu2 %4449 }
 0x2c6   : > { %v14425_v61 = vadd.f32 %v3336_v18, %v14298_v4  ;;  %v4451_v43 = vsel %vm4240_vm6, %v4450_v15, %v12470_v26 }
 0x2c7   : > { %11950 = vmatmul.msk.f32.gmra.mxu0 %vm392_vm1, %v3992_v8  ;;  %11952 = vmatmul.msk.f32.gmra.mxu1 %vm392_vm1, %v3992_v8 }
 0x2c8   : > { %11954 = vmatmul.msk.f32.gmra.mxu2 %vm392_vm1, %v3992_v8 }
 0x2ca   : > { %11956 = vmatmul.msk.f32.gmra.mxu3 %vm392_vm1, %v3992_v8 }
 0x2cb   : > { %v3316_v50 = vpop.f32.mrf.mxu2 }
 0x2cc   : > { %v14438_v4 = vadd.f32 %v3316_v50, %v14309_v29  ;;  %v3367_v12 = vpop.f32.mrf.mxu0  ;;  %v3390_v25 = vpop.f32.mrf.mxu1 }
 0x2cd   : > { %v3339_v18 = vpop.f32.mrf.mxu3  ;;  %v3534_v24 = vadd.f32 %v3367_v12, %v3176_v20  ;;  %v3535_v8 = vadd.f32 %v3390_v25, %v3199_v55  ;;  %v4221_v29 = vpop.permute.xlu1 %4220 }
 0x2ce   : > { %v14444_v41 = vadd.f32 %v3339_v18, %v14323_v45 }
 0x2cf   : > { %v14447_v44 = vadd.f32 %v3534_v24, %v14142_v60  ;;  %v14450_v27 = vadd.f32 %v3535_v8, %v14145_v10  ;;  %11957 = vmatmul.msk.f32.vlgmr.msra.gmra.mxu0 %vm392_vm1, %v14430_v31  ;;  %11959 = vmatmul.msk.f32.vlgmr.msra.gmra.mxu1 %vm392_vm1, %v14430_v31  ;;  %v3179_v60 = vadd.f32 %v14356_v57, %v14256_v16 }
 0x2d0   : > { %11961 = vmatmul.msk.f32.vlgmr.msra.gmra.mxu2 %vm392_vm1, %v14430_v31  ;;  %4472 = vmatpush.msra.mxu0 %v4451_v43  ;;  %v3202_v10 = vadd.f32 %v14358_v13, %v14258_v51 }
 0x2d1   : > { %4495 = vmatpush.msra.mxu1 %v14338_v54  ;;  %4518 = vmatpush.msra.mxu2 %v14326_v21 }
 0x2d2   : > { %11963 = vmatmul.msk.f32.vlgmr.msra.gmra.mxu3 %vm392_vm1, %v14430_v31 }
 0x2d3   : > { %4541 = vmatpush.msra.mxu3 %v14329_v52  ;;  %v3413_v59 = vpop.f32.mrf.mxu2 }
 0x2d4   : > { %v3536_v26 = vadd.f32 %v3413_v59, %v14354_v36  ;;  %v3370_v37 = vpop.f32.mrf.mxu0  ;;  %v3393_v33 = vpop.f32.mrf.mxu1 }
 0x2d5   : > { %v3542_v45 = vadd.f32 %v3370_v37, %v3179_v60  ;;  %v3543_v54 = vadd.f32 %v3393_v33, %v3202_v10  ;;  %v3436_v24 = vpop.f32.mrf.mxu3  ;;  %v4448_v37 = vpop.permute.xlu0 %4447 }
 0x2d6   : > { %v14469_v15 = vadd.f32 %v3536_v26, %v14164_v3  ;;  %v3537_v20 = vadd.f32 %v3436_v24, %v14363_v0  ;;  %v3268_v3 = vadd.f32 %v14377_v49, %v14272_v1 }
 0x2d7   : > { %v14473_v16 = vadd.f32 %v3542_v45, %v14168_v28  ;;  %v14476_v51 = vadd.f32 %v3543_v54, %v14171_v17  ;;  %11958 = vmatmul.msk.f32.gmra.mxu0 %vm392_vm1, %v4221_v29  ;;  %11960 = vmatmul.msk.f32.gmra.mxu1 %vm392_vm1, %v4221_v29  ;;  %v3291_v28 = vadd.f32 %v14379_v47, %v14274_v9 }
 0x2d8   : > { %v14481_v36 = vadd.f32 %v3537_v20, %v14176_v6  ;;  %11962 = vmatmul.msk.f32.gmra.mxu2 %vm392_vm1, %v4221_v29 }
 0x2da   : > { %11964 = vmatmul.msk.f32.gmra.mxu3 %vm392_vm1, %v4221_v29 }
 0x2db   : > { %v3416_v57 = vpop.f32.mrf.mxu2 }
 0x2dc   : > { %v3544_v17 = vadd.f32 %v3416_v57, %v14375_v23  ;;  %v3459_v13 = vpop.f32.mrf.mxu0  ;;  %v3482_v0 = vpop.f32.mrf.mxu1 }
 0x2dd   : > { %v3439_v55 = vpop.f32.mrf.mxu3  ;;  %v3538_v50 = vadd.f32 %v3459_v13, %v3268_v3  ;;  %v3539_v12 = vadd.f32 %v3482_v0, %v3291_v28  ;;  %v4646_v20 = vpop.permute.xlu0 %4645  ;;  %v16920_v28 = vunpack.i.h.bf16 %v14365_v34  ;;  %v12712_v13 = vld [vmem:[%s16796_s1 + $0x10] sm:$0xff] }
 0x2de   : > { %v14491_v6 = vadd.f32 %v3544_v17, %v14186_v56  ;;  %v3545_v25 = vadd.f32 %v3439_v55, %v14388_v62  ;;  %v3271_v56 = vadd.f32 %v14418_v48, %v14292_v39  ;;  %v14597_v17 = vpop.permute.xlu2 %4643 }
 0x2df   : > { %v14495_v43 = vadd.f32 %v3538_v50, %v14190_v5  ;;  %v14498_v1 = vadd.f32 %v3539_v12, %v14193_v22  ;;  %11965 = vmatmul.msk.f32.vlgmr.msrb.gmra.mxu0 %vm392_vm1, %v14430_v31  ;;  %11967 = vmatmul.msk.f32.vlgmr.msrb.gmra.mxu1 %vm392_vm1, %v14430_v31  ;;  %v3294_v5 = vadd.f32 %v14420_v2, %v14294_v35  ;;  %v12707_v2 = vld [vmem:[%s12828_s13 + $0x20] sm:$0xff] }
 0x2e0   : > { %v14505_v9 = vadd.f32 %v3545_v25, %v14200_v42  ;;  %11969 = vmatmul.msk.f32.vlgmr.msrb.gmra.mxu2 %vm392_vm1, %v14430_v31  ;;  %4564 = vmatpush.msrb.mxu0 %v14343_v11  ;;  %v4647_v57 = vsel %vm4240_vm6, %v16920_v28, %v4646_v20 }
 0x2e1   : > { %4587 = vmatpush.msrb.mxu1 %v14385_v46  ;;  %4610 = vmatpush.msrb.mxu2 %v14391_v19 }
 0x2e2   : > { %11971 = vmatmul.msk.f32.vlgmr.msrb.gmra.mxu3 %vm392_vm1, %v14430_v31 }
 0x2e3   : > { %4633 = vmatpush.msrb.mxu3 %v14394_v7  ;;  %v3505_v22 = vpop.f32.mrf.mxu2 }
 0x2e4   : > { %v3540_v42 = vadd.f32 %v3505_v22, %v14416_v53  ;;  %v3462_v23 = vpop.f32.mrf.mxu0  ;;  %v3485_v49 = vpop.f32.mrf.mxu1  ;;  %v12715_v22 = vld [vmem:[%s12828_s13 + $0x58] sm:$0xff] }
 0x2e5   : > { %v3546_v47 = vadd.f32 %v3462_v23, %v3271_v56  ;;  %v3547_v62 = vadd.f32 %v3485_v49, %v3294_v5  ;;  %v3528_v18 = vpop.f32.mrf.mxu3  ;;  %v12717_v23 = vld [vmem:[%s12828_s13 + $0x48] sm:$0xff] }
 0x2e6   : > { %v14521_v31 = vadd.f32 %v3540_v42, %v14216_v58  ;;  %v3541_v39 = vadd.f32 %v3528_v18, %v14425_v61  ;;  %v12708_v58 = vld [vmem:[%s12828_s13 + $0x28] sm:$0xff]  ;;  %v14618_v5 = vpop.permute.xlu2 %12488  ;;  %v12716_v42 = vld [vmem:[%s12828_s13 + $0x40] sm:$0xff] }
 0x2e7   : > { %v14525_v48 = vadd.f32 %v3546_v47, %v14220_v63  ;;  %v14528_v35 = vadd.f32 %v3547_v62, %v14223_v30  ;;  %11966 = vmatmul.msk.f32.gmra.mxu0 %vm392_vm1, %v4221_v29  ;;  %11968 = vmatmul.msk.f32.gmra.mxu1 %vm392_vm1, %v4221_v29  ;;  %v12502_v8 = vpack.i.bf16 %v12708_v58, %v12707_v2  ;;  %v4446_v30 = vpop.permute.xlu1 %4445  ;;  %v12491_v62 = vunpack.i.h.bf16 %v14618_v5 }
 0x2e8   : > { %v14533_v53 = vadd.f32 %v3541_v39, %v14228_v32  ;;  %11970 = vmatmul.msk.f32.gmra.mxu2 %vm392_vm1, %v4221_v29  ;;  %v12512_v49 = vpack.i.bf16 %v12717_v23, %v12716_v42  ;;  %v12490_v18 = vunpack.i.l.bf16 %v14618_v5 }
 0x2e9   : > { %12503 = vrot.lane.b32.xlu0 %v12502_v8, %s12759_s17  ;;  %v4878_v8 = vpop.permute.xlu0 %4877 }
 0x2ea   : > { %11972 = vmatmul.msk.f32.gmra.mxu3 %vm392_vm1, %v4221_v29 }
 0x2eb   : > { %v3508_v63 = vpop.f32.mrf.mxu2 }
 0x2ec   : > { %v3548_v61 = vadd.f32 %v3508_v63, %v14438_v4  ;;  %v14541_v60 = vpop.f32.mrf.mxu0  ;;  %v14543_v10 = vpop.f32.mrf.mxu1 }
 0x2ed   : > { %v3531_v32 = vpop.f32.mrf.mxu3 }
 0x2ee   : > { %v14546_v59 = vadd.f32 %v3548_v61, %v14240_v14  ;;  %v3549_v26 = vadd.f32 %v3531_v32, %v14444_v41  ;;  %v12709_v14 = vld [vmem:[%s12828_s13 + $0x30] sm:$0xff]  ;;  %v14648_v61 = vsel %vm4887_vm7, %v12490_v18, %v12491_v62  ;;  %v14673_v28 = vpop.permute.xlu2 %12498 }
 0x2ef   : > { %11973 = vmatmul.msk.f32.vlgmr.msra.gmra.mxu0 %vm392_vm1, %v4446_v30  ;;  %11975 = vmatmul.msk.f32.vlgmr.msra.gmra.mxu1 %vm392_vm1, %v4446_v30  ;;  %v14591_v3 = vpop.permute.xlu1 %4641 }
 0x2f0   : > { %v14552_v29 = vadd.f32 %v3549_v26, %v14246_v38  ;;  %11977 = vmatmul.msk.f32.vlgmr.msra.gmra.mxu2 %vm392_vm1, %v4446_v30  ;;  %4668 = vmatpush.msra.mxu0 %v14326_v21 }
 0x2f1   : > { %4691 = vmatpush.msra.mxu1 %v14329_v52  ;;  %4714 = vmatpush.msra.mxu2 %v14343_v11  ;;  %v12710_v52 = vld [vmem:[%s12828_s13 + $0x38] sm:$0xff]  ;;  %v12711_v11 = vld [vmem:[%s12828_s13 + $0x50] sm:$0xff] }
 0x2f2   : > { %11979 = vmatmul.msk.f32.vlgmr.msra.gmra.mxu3 %vm392_vm1, %v4446_v30  ;;  %5528 = vrot.lane.b32.xlu0 %v12709_v14, %s12759_s17  ;;  %v12517_v33 = vpack.i.bf16 %v12711_v11, %v12710_v52  ;;  %v12718_v11 = vld [vmem:[%s12828_s13 + $0x8] sm:$0xff] }
 0x2f3   : > { %4737 = vmatpush.msra.mxu3 %v14385_v46  ;;  %v14562_v41 = vpop.f32.mrf.mxu2 }
 0x2f4   : > { %v14564_v38 = vpop.f32.mrf.mxu0  ;;  %v14566_v4 = vpop.f32.mrf.mxu1 }
 0x2f5   : > { %v14568_v21 = vpop.f32.mrf.mxu3 }
 0x2f7   : > { %11974 = vmatmul.msk.f32.gmra.mxu0 %vm392_vm1, %v4448_v37  ;;  %11976 = vmatmul.msk.f32.gmra.mxu1 %vm392_vm1, %v4448_v37  ;;  %v12484_v12 = vpop.permute.xlu1 %12483 }
 0x2f8   : > { %11978 = vmatmul.msk.f32.gmra.mxu2 %vm392_vm1, %v4448_v37  ;;  %v12486_v25 = vunpack.i.h.bf16 %v12484_v12  ;;  %v12485_v56 = vunpack.i.l.bf16 %v12484_v12 }
 0x2fa   : > { %11980 = vmatmul.msk.f32.gmra.mxu3 %vm392_vm1, %v4448_v37  ;;  %12518 = vrot.lane.b32.xlu0 %v12517_v33, %s12759_s17  ;;  %v14636_v63 = vsel %vm4887_vm7, %v12485_v56, %v12486_v25  ;;  %v14653_v32 = vsel %vm4887_vm7, %v12486_v25, %v4878_v8  ;;  %v16840_v25 = vunpack.i.h.bf16 %v14673_v28 }
 0x2fb   : > { %v14577_v46 = vpop.f32.mrf.mxu2 }
 0x2fc   : > { %v14579_v45 = vpop.f32.mrf.mxu0  ;;  %v14581_v54 = vpop.f32.mrf.mxu1 }
 0x2fd   : > { %v14583_v24 = vpop.f32.mrf.mxu3 }
 0x2ff   : > { %11981 = vmatmul.msk.f32.vlgmr.msrb.gmra.mxu0 %vm392_vm1, %v4446_v30  ;;  %11983 = vmatmul.msk.f32.vlgmr.msrb.gmra.mxu1 %vm392_vm1, %v4446_v30 }
 0x300   : > { %11985 = vmatmul.msk.f32.vlgmr.msrb.gmra.mxu2 %vm392_vm1, %v4446_v30  ;;  %4760 = vmatpush.msrb.mxu0 %v14391_v19  ;;  %v12713_v19 = vld [vmem:[%s12828_s13 + $0x18] sm:$0xff] }
 0x301   : > { %4783 = vmatpush.msrb.mxu1 %v14394_v7  ;;  %4806 = vmatpush.msrb.mxu2 %v14406_v40  ;;  %v12714_v7 = vld [vmem:[%s12828_s13 + $0x10] sm:$0xff] }
 0x302   : > { %11987 = vmatmul.msk.f32.vlgmr.msrb.gmra.mxu3 %vm392_vm1, %v4446_v30  ;;  %5745 = vrot.lane.b32.xlu0 %v12712_v13, %s12756_s10  ;;  %v12507_v40 = vpack.i.bf16 %v12713_v19, %v12714_v7  ;;  %v14643_v30 = vsel %vm4887_vm7, %v12491_v62, %v12485_v56  ;;  %v14695_v56 = vld [vmem:[%s16796_s1 + $0x18] sm:$0xff] }
 0x303   : > { %4829 = vmatpush.msrb.mxu3 %v4647_v57  ;;  %v14605_v0 = vpop.f32.mrf.mxu2  ;;  %v12500_v57 = vunpack.i.l.bf16 %v14673_v28 }
 0x304   : > { %v14607_v34 = vpop.f32.mrf.mxu0  ;;  %v14609_v55 = vpop.f32.mrf.mxu1  ;;  %12508 = vrot.lane.b32.xlu2 %v12507_v40, %s12759_s17 }
 0x305   : > { %v14612_v50 = vpop.f32.mrf.mxu3  ;;  %v14700_v42 = vsel %vm4887_vm7, %v4878_v8, %v12500_v57 }
 0x307   : > { %11982 = vmatmul.msk.f32.gmra.mxu0 %vm392_vm1, %v4448_v37  ;;  %11984 = vmatmul.msk.f32.gmra.mxu1 %vm392_vm1, %v4448_v37 }
 0x308   : > { %11986 = vmatmul.msk.f32.gmra.mxu2 %vm392_vm1, %v4448_v37 }
 0x30a   : > { %11988 = vmatmul.msk.f32.gmra.mxu3 %vm392_vm1, %v4448_v37  ;;  %5943 = vrot.lane.b32.xlu0 %v12715_v22, %s12759_s17 }
 0x30b   : > { %v14624_v47 = vpop.f32.mrf.mxu2 }
 0x30c   : > { %v14628_v39 = vpop.f32.mrf.mxu0  ;;  %v14630_v2 = vpop.f32.mrf.mxu1  ;;  %12513 = vrot.lane.b32.xlu2 %v12512_v49, %s12759_s17 }
 0x30d   : > { %v14633_v58 = vpop.f32.mrf.mxu3 }
 0x30f   : > { %11989 = vmatmul.msk.f32.vlgmr.msra.gmra.mxu0 %vm392_vm1, %v14591_v3  ;;  %11991 = vmatmul.msk.f32.vlgmr.msra.gmra.mxu1 %vm392_vm1, %v14591_v3 }
 0x310   : > { %11993 = vmatmul.msk.f32.vlgmr.msra.gmra.mxu2 %vm392_vm1, %v14591_v3  ;;  %4946 = vmatpush.msra.mxu1 %v14643_v30 }
 0x311   : > { %4969 = vmatpush.msra.mxu2 %v14636_v63  ;;  %4923 = vmatpush.msra.mxu0 %v14648_v61 }
 0x312   : > { %11995 = vmatmul.msk.f32.vlgmr.msra.gmra.mxu3 %vm392_vm1, %v14591_v3 }
 0x313   : > { %v3868_v26 = vpop.f32.mrf.mxu2  ;;  %4992 = vmatpush.msra.mxu3 %v14653_v32 }
 0x314   : > { %v14662_v14 = vadd.f32 %v3868_v26, %v14562_v41  ;;  %v14664_v37 = vpop.f32.mrf.mxu0  ;;  %v14666_v52 = vpop.f32.mrf.mxu1  ;;  %5747 = vrot.lane.b32.xlu2 %v12718_v11, %s12759_s17 }
 0x315   : > { %v3891_v33 = vpop.f32.mrf.mxu3  ;;  %v12494_v41 = vpop.permute.xlu1 %12493 }
 0x316   : > { %v14671_v20 = vadd.f32 %v3891_v33, %v14568_v21  ;;  %v12496_v13 = vunpack.i.h.bf16 %v12494_v41  ;;  %v12495_v21 = vunpack.i.l.bf16 %v12494_v41 }
 0x317   : > { %11990 = vmatmul.msk.f32.gmra.mxu0 %vm392_vm1, %v14597_v17  ;;  %11992 = vmatmul.msk.f32.gmra.mxu1 %vm392_vm1, %v14597_v17 }
 0x318   : > { %11994 = vmatmul.msk.f32.gmra.mxu2 %vm392_vm1, %v14597_v17  ;;  %v14706_v23 = vsel %vm4887_vm7, %v12500_v57, %v12495_v21  ;;  %v14709_v49 = vsel %vm4887_vm7, %v12495_v21, %v12496_v13 }
 0x31a   : > { %11996 = vmatmul.msk.f32.gmra.mxu3 %vm392_vm1, %v14597_v17 }
 0x31b   : > { %v3871_v19 = vpop.f32.mrf.mxu2 }
 0x31c   : > { %v14685_v7 = vadd.f32 %v3871_v19, %v14577_v46  ;;  %v14687_v40 = vpop.f32.mrf.mxu0  ;;  %v14689_v12 = vpop.f32.mrf.mxu1  ;;  %5941 = vrot.lane.b32.xlu2 %v14695_v56, %s12741_s23 }
 0x31d   : > { %v3894_v22 = vpop.f32.mrf.mxu3 }
 0x31e   : > { %v14703_v46 = vadd.f32 %v3894_v22, %v14583_v24  ;;  %v14721_v24 = vsel %vm4887_vm7, %v12496_v13, %v16840_v25 }
 0x31f   : > { %11997 = vmatmul.msk.f32.vlgmr.msrb.gmra.mxu0 %vm392_vm1, %v14591_v3  ;;  %11999 = vmatmul.msk.f32.vlgmr.msrb.gmra.mxu1 %vm392_vm1, %v14591_v3 }
 0x320   : > { %12001 = vmatmul.msk.f32.vlgmr.msrb.gmra.mxu2 %vm392_vm1, %v14591_v3  ;;  %5015 = vmatpush.msrb.mxu0 %v14700_v42 }
 0x321   : > { %5038 = vmatpush.msrb.mxu1 %v14706_v23  ;;  %5061 = vmatpush.msrb.mxu2 %v14709_v49 }
 0x322   : > { %12003 = vmatmul.msk.f32.vlgmr.msrb.gmra.mxu3 %vm392_vm1, %v14591_v3  ;;  %v5097_v3 = vpop.permute.xlu1 %5096 }
 0x323   : > { %v3960_v62 = vpop.f32.mrf.mxu2  ;;  %5084 = vmatpush.msrb.mxu3 %v14721_v24  ;;  %v5098_v22 = vsel %vm4887_vm7, %v5097_v3, %v12490_v18 }
 0x324   : > { %v14729_v8 = vadd.f32 %v3960_v62, %v14605_v0  ;;  %v14731_v26 = vpop.f32.mrf.mxu0  ;;  %v14733_v11 = vpop.f32.mrf.mxu1  ;;  %v3823_v0 = vadd.f32 %v14628_v39, %v14541_v60 }
 0x325   : > { %v3983_v33 = vpop.f32.mrf.mxu3 }
 0x326   : > { %v14736_v41 = vadd.f32 %v3983_v33, %v14612_v50  ;;  %v3846_v50 = vadd.f32 %v14630_v2, %v14543_v10 }
 0x327   : > { %11998 = vmatmul.msk.f32.gmra.mxu0 %vm392_vm1, %v14597_v17  ;;  %12000 = vmatmul.msk.f32.gmra.mxu1 %vm392_vm1, %v14597_v17 }
 0x328   : > { %12002 = vmatmul.msk.f32.gmra.mxu2 %vm392_vm1, %v14597_v17 }
 0x32a   : > { %12004 = vmatmul.msk.f32.gmra.mxu3 %vm392_vm1, %v14597_v17 }
 0x32b   : > { %v3963_v57 = vpop.f32.mrf.mxu2 }
 0x32c   : > { %v14751_v13 = vadd.f32 %v3963_v57, %v14624_v47  ;;  %v4019_v21 = vpop.f32.mrf.mxu0  ;;  %v4042_v19 = vpop.f32.mrf.mxu1  ;;  %v16921_v47 = vld [vmem:[#allocation13_spill] sm:$0xff] }
 0x32d   : > { %v3986_v62 = vpop.f32.mrf.mxu3  ;;  %v4186_v33 = vadd.f32 %v4019_v21, %v3823_v0  ;;  %v4187_v17 = vadd.f32 %v4042_v19, %v3846_v50 }
 0x32e   : > { %v14757_v25 = vadd.f32 %v3986_v62, %v14633_v58 }
 0x32f   : > { %v14760_v60 = vadd.f32 %v4186_v33, %v14447_v44  ;;  %v14763_v10 = vadd.f32 %v4187_v17, %v14450_v27  ;;  %12005 = vmatmul.msk.f32.vlgmr.msra.gmra.mxu0 %vm392_vm1, %v16921_v47  ;;  %12007 = vmatmul.msk.f32.vlgmr.msra.gmra.mxu1 %vm392_vm1, %v16921_v47  ;;  %v3826_v44 = vadd.f32 %v14664_v37, %v14564_v38 }
 0x330   : > { %12009 = vmatmul.msk.f32.vlgmr.msra.gmra.mxu2 %vm392_vm1, %v16921_v47  ;;  %5119 = vmatpush.msra.mxu0 %v5098_v22  ;;  %v3849_v27 = vadd.f32 %v14666_v52, %v14566_v4 }
 0x331   : > { %5142 = vmatpush.msra.mxu1 %v14648_v61  ;;  %5165 = vmatpush.msra.mxu2 %v14643_v30 }
 0x332   : > { %12011 = vmatmul.msk.f32.vlgmr.msra.gmra.mxu3 %vm392_vm1, %v16921_v47 }
 0x333   : > { %5188 = vmatpush.msra.mxu3 %v14636_v63  ;;  %v4065_v5 = vpop.f32.mrf.mxu2 }
 0x334   : > { %v4188_v18 = vadd.f32 %v4065_v5, %v14662_v14  ;;  %v4022_v39 = vpop.f32.mrf.mxu0  ;;  %v4045_v2 = vpop.f32.mrf.mxu1 }
 0x335   : > { %v4194_v58 = vadd.f32 %v4022_v39, %v3826_v44  ;;  %v4195_v61 = vadd.f32 %v4045_v2, %v3849_v27  ;;  %v4088_v3 = vpop.f32.mrf.mxu3  ;;  %v5095_v27 = vpop.permute.xlu2 %5094  ;;  %v16922_v2 = vunpack.i.h.bf16 %v14673_v28 }
 0x336   : > { %v14782_v0 = vadd.f32 %v4188_v18, %v14469_v15  ;;  %v4189_v50 = vadd.f32 %v4088_v3, %v14671_v20  ;;  %v3915_v15 = vadd.f32 %v14687_v40, %v14579_v45 }
 0x337   : > { %v14786_v38 = vadd.f32 %v4194_v58, %v14473_v16  ;;  %v14789_v4 = vadd.f32 %v4195_v61, %v14476_v51  ;;  %12006 = vmatmul.msk.f32.gmra.mxu0 %vm392_vm1, %v14695_v56  ;;  %12008 = vmatmul.msk.f32.gmra.mxu1 %vm392_vm1, %v14695_v56  ;;  %v3938_v16 = vadd.f32 %v14689_v12, %v14581_v54 }
 0x338   : > { %v14796_v14 = vadd.f32 %v4189_v50, %v14481_v36  ;;  %12010 = vmatmul.msk.f32.gmra.mxu2 %vm392_vm1, %v14695_v56 }
 0x33a   : > { %12012 = vmatmul.msk.f32.gmra.mxu3 %vm392_vm1, %v14695_v56 }
 0x33b   : > { %v4068_v51 = vpop.f32.mrf.mxu2 }
 0x33c   : > { %v4196_v37 = vadd.f32 %v4068_v51, %v14685_v7  ;;  %v4111_v52 = vpop.f32.mrf.mxu0  ;;  %v4134_v20 = vpop.f32.mrf.mxu1 }
 0x33d   : > { %v4091_v57 = vpop.f32.mrf.mxu3  ;;  %v4190_v36 = vadd.f32 %v4111_v52, %v3915_v15  ;;  %v4191_v21 = vadd.f32 %v4134_v20, %v3938_v16  ;;  %v5293_v18 = vpop.permute.xlu2 %5292 }
 0x33e   : > { %v14808_v19 = vadd.f32 %v4196_v37, %v14491_v6  ;;  %v4197_v22 = vadd.f32 %v4091_v57, %v14703_v46  ;;  %v3918_v6 = vadd.f32 %v14731_v26, %v14607_v34  ;;  %v5294_v58 = vsel %vm4887_vm7, %v16922_v2, %v5293_v18 }
 0x33f   : > { %v14812_v62 = vadd.f32 %v4190_v36, %v14495_v43  ;;  %v14815_v45 = vadd.f32 %v4191_v21, %v14498_v1  ;;  %12013 = vmatmul.msk.f32.vlgmr.msrb.gmra.mxu0 %vm392_vm1, %v16921_v47  ;;  %12015 = vmatmul.msk.f32.vlgmr.msrb.gmra.mxu1 %vm392_vm1, %v16921_v47  ;;  %v3941_v43 = vadd.f32 %v14733_v11, %v14609_v55 }
 0x340   : > { %v14822_v54 = vadd.f32 %v4197_v22, %v14505_v9  ;;  %12017 = vmatmul.msk.f32.vlgmr.msrb.gmra.mxu2 %vm392_vm1, %v16921_v47  ;;  %5211 = vmatpush.msrb.mxu0 %v14653_v32 }
 0x341   : > { %5234 = vmatpush.msrb.mxu1 %v14700_v42  ;;  %5257 = vmatpush.msrb.mxu2 %v14706_v23 }
 0x342   : > { %12019 = vmatmul.msk.f32.vlgmr.msrb.gmra.mxu3 %vm392_vm1, %v16921_v47 }
 0x343   : > { %5280 = vmatpush.msrb.mxu3 %v14709_v49  ;;  %v4157_v1 = vpop.f32.mrf.mxu2 }
 0x344   : > { %v4192_v9 = vadd.f32 %v4157_v1, %v14729_v8  ;;  %v4114_v7 = vpop.f32.mrf.mxu0  ;;  %v4137_v40 = vpop.f32.mrf.mxu1 }
 0x345   : > { %v4198_v12 = vadd.f32 %v4114_v7, %v3918_v6  ;;  %v4199_v46 = vadd.f32 %v4137_v40, %v3941_v43  ;;  %v4180_v33 = vpop.f32.mrf.mxu3  ;;  %v5291_v1 = vpop.permute.xlu1 %5290 }
 0x346   : > { %v14838_v17 = vadd.f32 %v4192_v9, %v14521_v31  ;;  %v4193_v47 = vadd.f32 %v4180_v33, %v14736_v41 }
 0x347   : > { %v14842_v34 = vadd.f32 %v4198_v12, %v14525_v48  ;;  %v14845_v55 = vadd.f32 %v4199_v46, %v14528_v35  ;;  %12014 = vmatmul.msk.f32.gmra.mxu0 %vm392_vm1, %v14695_v56  ;;  %12016 = vmatmul.msk.f32.gmra.mxu1 %vm392_vm1, %v14695_v56  ;;  %v5093_v48 = vpop.permute.xlu0 %5092 }
 0x348   : > { %v14852_v8 = vadd.f32 %v4193_v47, %v14533_v53  ;;  %12018 = vmatmul.msk.f32.gmra.mxu2 %vm392_vm1, %v14695_v56 }
 0x34a   : > { %12020 = vmatmul.msk.f32.gmra.mxu3 %vm392_vm1, %v14695_v56 }
 0x34b   : > { %v4160_v31 = vpop.f32.mrf.mxu2 }
 0x34c   : > { %v4200_v35 = vadd.f32 %v4160_v31, %v14751_v13  ;;  %v14859_v26 = vpop.f32.mrf.mxu0  ;;  %v14861_v11 = vpop.f32.mrf.mxu1 }
 0x34d   : > { %v4183_v41 = vpop.f32.mrf.mxu3 }
 0x34e   : > { %v14864_v44 = vadd.f32 %v4200_v35, %v14546_v59  ;;  %v4201_v53 = vadd.f32 %v4183_v41, %v14757_v25 }
 0x34f   : > { %12021 = vmatmul.msk.f32.vlgmr.msra.gmra.mxu0 %vm392_vm1, %v5093_v48  ;;  %12023 = vmatmul.msk.f32.vlgmr.msra.gmra.mxu1 %vm392_vm1, %v5093_v48 }
 0x350   : > { %v14870_v56 = vadd.f32 %v4201_v53, %v14552_v29  ;;  %12025 = vmatmul.msk.f32.vlgmr.msra.gmra.mxu2 %vm392_vm1, %v5093_v48  ;;  %5315 = vmatpush.msra.mxu0 %v14643_v30 }
 0x351   : > { %5338 = vmatpush.msra.mxu1 %v14636_v63  ;;  %5361 = vmatpush.msra.mxu2 %v14653_v32  ;;  %v14885_v63 = vpop.permute.xlu0 %5288 }
 0x352   : > { %12027 = vmatmul.msk.f32.vlgmr.msra.gmra.mxu3 %vm392_vm1, %v5093_v48 }
 0x353   : > { %5384 = vmatpush.msra.mxu3 %v14700_v42  ;;  %v4324_v59 = vpop.f32.mrf.mxu2 }
 0x354   : > { %v14878_v25 = vpop.f32.mrf.mxu0  ;;  %v14880_v13 = vpop.f32.mrf.mxu1 }
 0x355   : > { %v4347_v29 = vpop.f32.mrf.mxu3 }
 0x357   : > { %12022 = vmatmul.msk.f32.gmra.mxu0 %vm392_vm1, %v5095_v27  ;;  %12024 = vmatmul.msk.f32.gmra.mxu1 %vm392_vm1, %v5095_v27 }
 0x358   : > { %12026 = vmatmul.msk.f32.gmra.mxu2 %vm392_vm1, %v5095_v27 }
 0x35a   : > { %12028 = vmatmul.msk.f32.gmra.mxu3 %vm392_vm1, %v5095_v27 }
 0x35b   : > { %v14888_v30 = vpop.f32.mrf.mxu2  ;;  %v12504_v39 = vpop.permute.xlu0 %12503 }
 0x35c   : > { %v14890_v32 = vpop.f32.mrf.mxu0  ;;  %v14892_v42 = vpop.f32.mrf.mxu1 }
 0x35d   : > { %v14894_v5 = vpop.f32.mrf.mxu3 }
 0x35e   : > { %v14917_v28 = vpop.permute.xlu2 %12508 }
 0x35f   : > { %12029 = vmatmul.msk.f32.vlgmr.msrb.gmra.mxu0 %vm392_vm1, %v5093_v48  ;;  %12031 = vmatmul.msk.f32.vlgmr.msrb.gmra.mxu1 %vm392_vm1, %v5093_v48  ;;  %v12510_v51 = vunpack.i.l.bf16 %v14917_v28 }
 0x360   : > { %12033 = vmatmul.msk.f32.vlgmr.msrb.gmra.mxu2 %vm392_vm1, %v5093_v48  ;;  %5407 = vmatpush.msrb.mxu0 %v14706_v23  ;;  %v12505_v23 = vunpack.i.l.bf16 %v12504_v39 }
 0x361   : > { %5430 = vmatpush.msrb.mxu1 %v14709_v49  ;;  %5453 = vmatpush.msrb.mxu2 %v14721_v24  ;;  %v12511_v49 = vunpack.i.h.bf16 %v14917_v28  ;;  %v12506_v24 = vunpack.i.h.bf16 %v12504_v39 }
 0x362   : > { %12035 = vmatmul.msk.f32.vlgmr.msrb.gmra.mxu3 %vm392_vm1, %v5093_v48 }
 0x363   : > { %5476 = vmatpush.msrb.mxu3 %v5294_v58  ;;  %v14906_v61 = vpop.f32.mrf.mxu2  ;;  %v14927_v36 = vsel %vm5538_vm8, %v12511_v49, %v12505_v23  ;;  %v14930_v21 = vsel %vm5538_vm8, %v12505_v23, %v12506_v24  ;;  %v14939_v22 = vsel %vm5538_vm8, %v12510_v51, %v12511_v49 }
 0x364   : > { %v14908_v3 = vpop.f32.mrf.mxu0  ;;  %v14910_v50 = vpop.f32.mrf.mxu1 }
 0x365   : > { %v14912_v15 = vpop.f32.mrf.mxu3  ;;  %v5529_v37 = vpop.permute.xlu0 %5528 }
 0x366   : > { %v14944_v6 = vsel %vm5538_vm8, %v12506_v24, %v5529_v37  ;;  %v12514_v47 = vpop.permute.xlu2 %12513 }
 0x367   : > { %12030 = vmatmul.msk.f32.gmra.mxu0 %vm392_vm1, %v5095_v27  ;;  %12032 = vmatmul.msk.f32.gmra.mxu1 %vm392_vm1, %v5095_v27  ;;  %v12516_v48 = vunpack.i.h.bf16 %v12514_v47  ;;  %v12515_v35 = vunpack.i.l.bf16 %v12514_v47 }
 0x368   : > { %12034 = vmatmul.msk.f32.gmra.mxu2 %vm392_vm1, %v5095_v27 }
 0x369   : > { %v14985_v23 = vsel %vm5538_vm8, %v12515_v35, %v12516_v48 }
 0x36a   : > { %12036 = vmatmul.msk.f32.gmra.mxu3 %vm392_vm1, %v5095_v27 }
 0x36b   : > { %v14921_v16 = vpop.f32.mrf.mxu2 }
 0x36c   : > { %v4474_v52 = vpop.f32.mrf.mxu0  ;;  %v4497_v20 = vpop.f32.mrf.mxu1 }
 0x36d   : > { %v14924_v57 = vpop.f32.mrf.mxu3  ;;  %v14960_v33 = vpop.permute.xlu0 %12518  ;;  %v4475_v47 = vadd.f32 %v4474_v52, %v14859_v26 }
 0x36e   : > { %v12520_v31 = vunpack.i.l.bf16 %v14960_v33 }
 0x36f   : > { %12037 = vmatmul.msk.f32.vlgmr.msra.gmra.mxu0 %vm392_vm1, %v14885_v63  ;;  %12039 = vmatmul.msk.f32.vlgmr.msra.gmra.mxu1 %vm392_vm1, %v14885_v63 }
 0x370   : > { %12041 = vmatmul.msk.f32.vlgmr.msra.gmra.mxu2 %vm392_vm1, %v14885_v63  ;;  %5597 = vmatpush.msra.mxu1 %v14927_v36  ;;  %v14976_v39 = vsel %vm5538_vm8, %v5529_v37, %v12520_v31  ;;  %v14982_v58 = vsel %vm5538_vm8, %v12520_v31, %v12515_v35  ;;  %v4498_v31 = vadd.f32 %v4497_v20, %v14861_v11 }
 0x371   : > { %5620 = vmatpush.msra.mxu2 %v14930_v21  ;;  %5574 = vmatpush.msra.mxu0 %v14939_v22 }
 0x372   : > { %12043 = vmatmul.msk.f32.vlgmr.msra.gmra.mxu3 %vm392_vm1, %v14885_v63 }
 0x373   : > { %v4520_v43 = vpop.f32.mrf.mxu2  ;;  %5643 = vmatpush.msra.mxu3 %v14944_v6 }
 0x374   : > { %v14952_v9 = vadd.f32 %v4520_v43, %v4324_v59  ;;  %v14954_v7 = vpop.f32.mrf.mxu0  ;;  %v14956_v40 = vpop.f32.mrf.mxu1 }
 0x375   : > { %v4543_v12 = vpop.f32.mrf.mxu3 }
 0x376   : > { %v14958_v46 = vadd.f32 %v4543_v12, %v4347_v29  ;;  %v16841_v29 = vunpack.i.h.bf16 %v14960_v33 }
 0x377   : > { %12038 = vmatmul.msk.f32.gmra.mxu0 %vm392_vm1, %v5291_v1  ;;  %12040 = vmatmul.msk.f32.gmra.mxu1 %vm392_vm1, %v5291_v1 }
 0x378   : > { %12042 = vmatmul.msk.f32.gmra.mxu2 %vm392_vm1, %v5291_v1 }
 0x37a   : > { %12044 = vmatmul.msk.f32.gmra.mxu3 %vm392_vm1, %v5291_v1 }
 0x37b   : > { %v4523_v41 = vpop.f32.mrf.mxu2 }
 0x37c   : > { %v14968_v53 = vadd.f32 %v4523_v41, %v14888_v30  ;;  %v14970_v59 = vpop.f32.mrf.mxu0  ;;  %v14972_v27 = vpop.f32.mrf.mxu1  ;;  %v14997_v30 = vsel %vm5538_vm8, %v12516_v48, %v16841_v29 }
 0x37d   : > { %v4546_v18 = vpop.f32.mrf.mxu3 }
 0x37e   : > { %v14979_v2 = vadd.f32 %v4546_v18, %v14894_v5 }
 0x37f   : > { %12045 = vmatmul.msk.f32.vlgmr.msrb.gmra.mxu0 %vm392_vm1, %v14885_v63  ;;  %12047 = vmatmul.msk.f32.vlgmr.msrb.gmra.mxu1 %vm392_vm1, %v14885_v63 }
 0x380   : > { %12049 = vmatmul.msk.f32.vlgmr.msrb.gmra.mxu2 %vm392_vm1, %v14885_v63  ;;  %5666 = vmatpush.msrb.mxu0 %v14976_v39 }
 0x381   : > { %5689 = vmatpush.msrb.mxu1 %v14982_v58  ;;  %5712 = vmatpush.msrb.mxu2 %v14985_v23 }
 0x382   : > { %12051 = vmatmul.msk.f32.vlgmr.msrb.gmra.mxu3 %vm392_vm1, %v14885_v63  ;;  %v15017_v63 = vpop.permute.xlu1 %5516 }
 0x383   : > { %v4612_v5 = vpop.f32.mrf.mxu2  ;;  %5735 = vmatpush.msrb.mxu3 %v14997_v30 }
 0x384   : > { %v15005_v49 = vadd.f32 %v4612_v5, %v14906_v61  ;;  %v15007_v24 = vpop.f32.mrf.mxu0  ;;  %v15009_v37 = vpop.f32.mrf.mxu1 }
 0x385   : > { %v4635_v43 = vpop.f32.mrf.mxu3  ;;  %v5748_v61 = vpop.permute.xlu2 %5747 }
 0x386   : > { %v15012_v12 = vadd.f32 %v4635_v43, %v14912_v15  ;;  %v5749_v18 = vsel %vm5538_vm8, %v5748_v61, %v12510_v51 }
 0x387   : > { %12046 = vmatmul.msk.f32.gmra.mxu0 %vm392_vm1, %v5291_v1  ;;  %12048 = vmatmul.msk.f32.gmra.mxu1 %vm392_vm1, %v5291_v1 }
 0x388   : > { %12050 = vmatmul.msk.f32.gmra.mxu2 %vm392_vm1, %v5291_v1 }
 0x38a   : > { %12052 = vmatmul.msk.f32.gmra.mxu3 %vm392_vm1, %v5291_v1 }
 0x38b   : > { %v4615_v48 = vpop.f32.mrf.mxu2 }
 0x38c   : > { %v15023_v35 = vadd.f32 %v4615_v48, %v14921_v16  ;;  %v4670_v15 = vpop.f32.mrf.mxu0  ;;  %v4693_v41 = vpop.f32.mrf.mxu1 }
 0x38d   : > { %v4638_v5 = vpop.f32.mrf.mxu3  ;;  %v4837_v43 = vadd.f32 %v4670_v15, %v4475_v47  ;;  %v4838_v29 = vadd.f32 %v4693_v41, %v4498_v31  ;;  %v5519_v16 = vpop.permute.xlu1 %5518 }
 0x38e   : > { %v15029_v1 = vadd.f32 %v4638_v5, %v14924_v57 }
 0x38f   : > { %v15032_v26 = vadd.f32 %v4837_v43, %v14760_v60  ;;  %v15035_v11 = vadd.f32 %v4838_v29, %v14763_v10  ;;  %12053 = vmatmul.msk.f32.vlgmr.msra.gmra.mxu0 %vm392_vm1, %v15017_v63  ;;  %12055 = vmatmul.msk.f32.vlgmr.msra.gmra.mxu1 %vm392_vm1, %v15017_v63  ;;  %v4478_v60 = vadd.f32 %v14954_v7, %v14878_v25 }
 0x390   : > { %12057 = vmatmul.msk.f32.vlgmr.msra.gmra.mxu2 %vm392_vm1, %v15017_v63  ;;  %5770 = vmatpush.msra.mxu0 %v5749_v18  ;;  %v4501_v10 = vadd.f32 %v14956_v40, %v14880_v13 }
 0x391   : > { %5793 = vmatpush.msra.mxu1 %v14939_v22  ;;  %5816 = vmatpush.msra.mxu2 %v14927_v36 }
 0x392   : > { %12059 = vmatmul.msk.f32.vlgmr.msra.gmra.mxu3 %vm392_vm1, %v15017_v63 }
 0x393   : > { %5839 = vmatpush.msra.mxu3 %v14930_v21  ;;  %v4716_v28 = vpop.f32.mrf.mxu2 }
 0x394   : > { %v4839_v51 = vadd.f32 %v4716_v28, %v14952_v9  ;;  %v4673_v52 = vpop.f32.mrf.mxu0  ;;  %v4696_v20 = vpop.f32.mrf.mxu1 }
 0x395   : > { %v4845_v57 = vadd.f32 %v4673_v52, %v4478_v60  ;;  %v4846_v22 = vadd.f32 %v4696_v20, %v4501_v10  ;;  %v4739_v29 = vpop.f32.mrf.mxu3  ;;  %v16933_v52 = vunpack.i.h.bf16 %v14960_v33 }
 0x396   : > { %v15054_v61 = vadd.f32 %v4839_v51, %v14782_v0  ;;  %v4840_v47 = vadd.f32 %v4739_v29, %v14958_v46  ;;  %v4567_v0 = vadd.f32 %v14970_v59, %v14890_v32  ;;  %v336_v51 = vld [vmem:[%s16797_s2] sm:$0xff] }
 0x397   : > { %v15058_v25 = vadd.f32 %v4845_v57, %v14786_v38  ;;  %v15061_v13 = vadd.f32 %v4846_v22, %v14789_v4  ;;  %12054 = vmatmul.msk.f32.gmra.mxu0 %vm392_vm1, %v5519_v16  ;;  %12056 = vmatmul.msk.f32.gmra.mxu1 %vm392_vm1, %v5519_v16  ;;  %v4590_v38 = vadd.f32 %v14972_v27, %v14892_v42  ;;  %v12760_v57 = vmov 0  }
 0x398   : > { %v15066_v9 = vadd.f32 %v4840_v47, %v14796_v14  ;;  %12058 = vmatmul.msk.f32.gmra.mxu2 %vm392_vm1, %v5519_v16  ;;  %12522 = vset.pattern.permute.xlu1 %v12760_v57 }
 0x399   : > { %16923 = vst [vmem:[#allocation12_spill] sm:$0xff] %v15058_v25  ;;  %6169 = vperm.xlu1 %12522, %v336_v51   ;;  %12683 = vset.pattern.permute.xlu0 %v12760_v57 }
 0x39a   : > { %16924 = vst [vmem:[#allocation3_spill] sm:$0xff] %v15061_v13  ;;  %12060 = vmatmul.msk.f32.gmra.mxu3 %vm392_vm1, %v5519_v16 }
 0x39b   : > { %v4719_v7 = vpop.f32.mrf.mxu2 }
 0x39c   : > { %v4847_v4 = vadd.f32 %v4719_v7, %v14968_v53  ;;  %v4762_v40 = vpop.f32.mrf.mxu0  ;;  %v4785_v46 = vpop.f32.mrf.mxu1 }
 0x39d   : > { %v4742_v31 = vpop.f32.mrf.mxu3  ;;  %v4841_v48 = vadd.f32 %v4762_v40, %v4567_v0  ;;  %v4842_v15 = vadd.f32 %v4785_v46, %v4590_v38 }
 0x39e   : > { %v15076_v14 = vadd.f32 %v4847_v4, %v14808_v19  ;;  %v4848_v41 = vadd.f32 %v4742_v31, %v14979_v2  ;;  %v4570_v19 = vadd.f32 %v15007_v24, %v14908_v3  ;;  %v5744_v24 = vpop.permute.xlu1 %5743  ;;  %v5942_v4 = vpop.permute.xlu2 %5941 }
 0x39f   : > { %v15080_v18 = vadd.f32 %v4841_v48, %v14812_v62  ;;  %v15083_v32 = vadd.f32 %v4842_v15, %v14815_v45  ;;  %12061 = vmatmul.msk.f32.vlgmr.msrb.gmra.mxu0 %vm392_vm1, %v15017_v63  ;;  %12063 = vmatmul.msk.f32.vlgmr.msrb.gmra.mxu1 %vm392_vm1, %v15017_v63  ;;  %v4593_v62 = vadd.f32 %v15009_v37, %v14910_v50 }
 0x3a0   : > { %16925 = vst [vmem:[#allocation6_spill] sm:$0xff] %v15076_v14  ;;  %v15090_v42 = vadd.f32 %v4848_v41, %v14822_v54  ;;  %12065 = vmatmul.msk.f32.vlgmr.msrb.gmra.mxu2 %vm392_vm1, %v15017_v63  ;;  %5862 = vmatpush.msrb.mxu0 %v14944_v6 }
 0x3a1   : > { %5885 = vmatpush.msrb.mxu1 %v14976_v39  ;;  %5908 = vmatpush.msrb.mxu2 %v14982_v58 }
 0x3a2   : > { %16926 = vst [vmem:[#allocation10_spill] sm:$0xff] %v15090_v42  ;;  %12067 = vmatmul.msk.f32.vlgmr.msrb.gmra.mxu3 %vm392_vm1, %v15017_v63 }
 0x3a3   : > { %5931 = vmatpush.msrb.mxu3 %v14985_v23  ;;  %v4808_v45 = vpop.f32.mrf.mxu2 }
 0x3a4   : > { %v4843_v54 = vadd.f32 %v4808_v45, %v15005_v49  ;;  %v4765_v53 = vpop.f32.mrf.mxu0  ;;  %v4788_v59 = vpop.f32.mrf.mxu1 }
 0x3a5   : > { %v4849_v27 = vadd.f32 %v4765_v53, %v4570_v19  ;;  %v4850_v2 = vadd.f32 %v4788_v59, %v4593_v62  ;;  %v4831_v5 = vpop.f32.mrf.mxu3 }
 0x3a6   : > { %v15106_v43 = vadd.f32 %v4843_v54, %v14838_v17  ;;  %v4844_v63 = vadd.f32 %v4831_v5, %v15012_v12 }
 0x3a7   : > { %v15110_v3 = vadd.f32 %v4849_v27, %v14842_v34  ;;  %v15113_v50 = vadd.f32 %v4850_v2, %v14845_v55  ;;  %12062 = vmatmul.msk.f32.gmra.mxu0 %vm392_vm1, %v5519_v16  ;;  %12064 = vmatmul.msk.f32.gmra.mxu1 %vm392_vm1, %v5519_v16 }
 0x3a8   : > { %v15118_v49 = vadd.f32 %v4844_v63, %v14852_v8  ;;  %12066 = vmatmul.msk.f32.gmra.mxu2 %vm392_vm1, %v5519_v16 }
 0x3a9   : > { %16927 = vst [vmem:[#allocation11_spill] sm:$0xff] %v15110_v3 }
 0x3aa   : > { %16928 = vst [vmem:[#allocation9_spill] sm:$0xff] %v15113_v50  ;;  %12068 = vmatmul.msk.f32.gmra.mxu3 %vm392_vm1, %v5519_v16 }
 0x3ab   : > { %v4811_v17 = vpop.f32.mrf.mxu2 }
 0x3ac   : > { %v4851_v37 = vadd.f32 %v4811_v17, %v15023_v35  ;;  %v15123_v34 = vpop.f32.mrf.mxu0  ;;  %v15125_v12 = vpop.f32.mrf.mxu1 }
 0x3ad   : > { %v4834_v55 = vpop.f32.mrf.mxu3 }
 0x3ae   : > { %v15128_v60 = vadd.f32 %v4851_v37, %v14864_v44  ;;  %v4852_v10 = vadd.f32 %v4834_v55, %v15029_v1 }
 0x3af   : > { %12069 = vmatmul.msk.f32.vlgmr.msra.gmra.mxu0 %vm392_vm1, %v5744_v24  ;;  %12071 = vmatmul.msk.f32.vlgmr.msra.gmra.mxu1 %vm392_vm1, %v5744_v24 }
 0x3b0   : > { %16929 = vst [vmem:[#allocation8_spill] sm:$0xff] %v15128_v60  ;;  %v15134_v8 = vadd.f32 %v4852_v10, %v14870_v56  ;;  %12073 = vmatmul.msk.f32.vlgmr.msra.gmra.mxu2 %vm392_vm1, %v5744_v24  ;;  %5966 = vmatpush.msra.mxu0 %v14927_v36  ;;  %v5746_v56 = vpop.permute.xlu0 %5745 }
 0x3b1   : > { %5989 = vmatpush.msra.mxu1 %v14930_v21  ;;  %6012 = vmatpush.msra.mxu2 %v14944_v6 }
 0x3b2   : > { %16930 = vst [vmem:[#allocation14_spill] sm:$0xff] %v15134_v8  ;;  %12075 = vmatmul.msk.f32.vlgmr.msra.gmra.mxu3 %vm392_vm1, %v5744_v24 }
 0x3b3   : > { %6035 = vmatpush.msra.mxu3 %v14976_v39  ;;  %v15142_v44 = vpop.f32.mrf.mxu2 }
 0x3b4   : > { %v15144_v35 = vpop.f32.mrf.mxu0  ;;  %v15146_v1 = vpop.f32.mrf.mxu1 }
 0x3b5   : > { %v15148_v28 = vpop.f32.mrf.mxu3 }
 0x3b7   : > { %12070 = vmatmul.msk.f32.gmra.mxu0 %vm392_vm1, %v5746_v56  ;;  %12072 = vmatmul.msk.f32.gmra.mxu1 %vm392_vm1, %v5746_v56 }
 0x3b8   : > { %12074 = vmatmul.msk.f32.gmra.mxu2 %vm392_vm1, %v5746_v56  ;;  %v5944_v16 = vpop.permute.xlu0 %5943 }
 0x3b9   : > { %v5945_v20 = vsel %vm5538_vm8, %v16933_v52, %v5944_v16 }
 0x3ba   : > { %12076 = vmatmul.msk.f32.gmra.mxu3 %vm392_vm1, %v5746_v56 }
 0x3bb   : > { %v15154_v36 = vpop.f32.mrf.mxu2 }
 0x3bc   : > { %16931 = vst [vmem:[#allocation2_spill] sm:$0xff] %v15154_v36  ;;  %v15156_v21 = vpop.f32.mrf.mxu0  ;;  %v15158_v6 = vpop.f32.mrf.mxu1 }
 0x3bd   : > { %v15160_v39 = vpop.f32.mrf.mxu3 }
 0x3be   : > { %16932 = vst [vmem:[#allocation4_spill] sm:$0xff] %v15160_v39 }
 0x3bf   : > { %12077 = vmatmul.msk.f32.vlgmr.msrb.gmra.mxu0 %vm392_vm1, %v5744_v24  ;;  %12079 = vmatmul.msk.f32.vlgmr.msrb.gmra.mxu1 %vm392_vm1, %v5744_v24 }
 0x3c0   : > { %12081 = vmatmul.msk.f32.vlgmr.msrb.gmra.mxu2 %vm392_vm1, %v5744_v24  ;;  %6058 = vmatpush.msrb.mxu0 %v14982_v58 }
 0x3c1   : > { %6081 = vmatpush.msrb.mxu1 %v14985_v23  ;;  %6104 = vmatpush.msrb.mxu2 %v14997_v30  ;;  %v5940_v30 = vpop.permute.xlu1 %5939 }
 0x3c2   : > { %12083 = vmatmul.msk.f32.vlgmr.msrb.gmra.mxu3 %vm392_vm1, %v5744_v24 }
 0x3c3   : > { %6127 = vmatpush.msrb.mxu3 %v5945_v20  ;;  %v15175_v22 = vpop.f32.mrf.mxu2 }
 0x3c4   : > { %v15177_v58 = vpop.f32.mrf.mxu0  ;;  %v15179_v29 = vpop.f32.mrf.mxu1 }
 0x3c5   : > { %16934 = vst [vmem:[#allocation15_spill] sm:$0xff] %v15177_v58  ;;  %v15181_v23 = vpop.f32.mrf.mxu3 }
 0x3c6   : > { %16935 = vst [vmem:[#allocation5_spill] sm:$0xff] %v15179_v29 }
 0x3c7   : > { %12078 = vmatmul.msk.f32.gmra.mxu0 %vm392_vm1, %v5746_v56  ;;  %12080 = vmatmul.msk.f32.gmra.mxu1 %vm392_vm1, %v5746_v56 }
 0x3c8   : > { %12082 = vmatmul.msk.f32.gmra.mxu2 %vm392_vm1, %v5746_v56 }
 0x3ca   : > { %12084 = vmatmul.msk.f32.gmra.mxu3 %vm392_vm1, %v5746_v56 }
 0x3cb   : > { %v15187_v33 = vpop.f32.mrf.mxu2 }
 0x3cc   : > { %16936 = vst [vmem:[#allocation7_spill] sm:$0xff] %v15187_v33  ;;  %v15189_v47 = vpop.f32.mrf.mxu0  ;;  %v15191_v0 = vpop.f32.mrf.mxu1 }
 0x3cd   : > { %v15193_v38 = vpop.f32.mrf.mxu3 }
 0x3ce   : > { %16937 = vst [vmem:[#allocation13_spill] sm:$0xff] %v15193_v38 }
 0x3cf   : > { %12085 = vmatmul.msk.f32.vlgmr.msra.gmra.mxu0 %vm392_vm1, %v5940_v30  ;;  %12087 = vmatmul.msk.f32.vlgmr.msra.gmra.mxu1 %vm392_vm1, %v5940_v30 }
 0x3d0   : > { %12089 = vmatmul.msk.f32.vlgmr.msra.gmra.mxu2 %vm392_vm1, %v5940_v30 }
 0x3d2   : > { %12091 = vmatmul.msk.f32.vlgmr.msra.gmra.mxu3 %vm392_vm1, %v5940_v30 }
 0x3d3   : > { %v15199_v7 = vpop.f32.mrf.mxu2 }
 0x3d4   : > { %v15201_v40 = vpop.f32.mrf.mxu0  ;;  %v15203_v46 = vpop.f32.mrf.mxu1 }
 0x3d5   : > { %16938 = vst [vmem:[#allocation16_spill] sm:$0xff] %v15203_v46  ;;  %v15205_v31 = vpop.f32.mrf.mxu3  ;;  %v5168_v46 = vadd.f32 %v15199_v7, %v15142_v44 }
 0x3d7   : > { %12086 = vmatmul.msk.f32.gmra.mxu0 %vm392_vm1, %v5942_v4  ;;  %12088 = vmatmul.msk.f32.gmra.mxu1 %vm392_vm1, %v5942_v4 }
 0x3d8   : > { %12090 = vmatmul.msk.f32.gmra.mxu2 %vm392_vm1, %v5942_v4 }
 0x3da   : > { %12092 = vmatmul.msk.f32.gmra.mxu3 %vm392_vm1, %v5942_v4 }
 0x3db   : > { %v15211_v48 = vpop.f32.mrf.mxu2 }
 0x3dc   : > { %16939 = vst [vmem:[#allocation17_spill] sm:$0xff] %v15211_v48  ;;  %v15213_v15 = vpop.f32.mrf.mxu0  ;;  %v15215_v41 = vpop.f32.mrf.mxu1 }
 0x3dd   : > { %v15217_v19 = vpop.f32.mrf.mxu3 }
 0x3de   : > { %16940 = vst [vmem:[#allocation18_spill] sm:$0xff] %v15217_v19 }
 0x3df   : > { %12093 = vmatmul.msk.f32.vlgmr.msrb.gmra.mxu0 %vm392_vm1, %v5940_v30  ;;  %12095 = vmatmul.msk.f32.vlgmr.msrb.gmra.mxu1 %vm392_vm1, %v5940_v30 }
 0x3e0   : > { %12097 = vmatmul.msk.f32.vlgmr.msrb.gmra.mxu2 %vm392_vm1, %v5940_v30 }
 0x3e2   : > { %12099 = vmatmul.msk.f32.vlgmr.msrb.gmra.mxu3 %vm392_vm1, %v5940_v30 }
 0x3e3   : > { %v15223_v62 = vpop.f32.mrf.mxu2 }
 0x3e4   : > { %v15225_v45 = vpop.f32.mrf.mxu0  ;;  %v15227_v54 = vpop.f32.mrf.mxu1 }
 0x3e5   : > { %16941 = vst [vmem:[#allocation19_spill] sm:$0xff] %v15225_v45  ;;  %v15229_v53 = vpop.f32.mrf.mxu3 }
 0x3e6   : > { %16942 = vst [vmem:[#allocation20_spill] sm:$0xff] %v15227_v54 }
 0x3e7   : > { %12094 = vmatmul.msk.f32.gmra.mxu0 %vm392_vm1, %v5942_v4  ;;  %12096 = vmatmul.msk.f32.gmra.mxu1 %vm392_vm1, %v5942_v4 }
 0x3e8   : > { %12098 = vmatmul.msk.f32.gmra.mxu2 %vm392_vm1, %v5942_v4 }
 0x3ea   : > { %12100 = vmatmul.msk.f32.gmra.mxu3 %vm392_vm1, %v5942_v4 }
 0x3eb   : > { %v15235_v59 = vpop.f32.mrf.mxu2 }
 0x3ec   : > { %16943 = vst [vmem:[#allocation21_spill] sm:$0xff] %v15235_v59  ;;  %v5317_v27 = vpop.f32.mrf.mxu0  ;;  %v5340_v2 = vpop.f32.mrf.mxu1 }
 0x3ed   : > { %v15237_v5 = vpop.f32.mrf.mxu3 }
 0x3ee   : > { %16944 = vst [vmem:[#allocation22_spill] sm:$0xff] %v15237_v5 }
 0x3f3   : > { %v5363_v63 = vpop.f32.mrf.mxu2 }
 0x3f4   : > { %v15239_v17 = vpop.f32.mrf.mxu0  ;;  %v15241_v24 = vpop.f32.mrf.mxu1 }
 0x3f5   : > { %16945 = vst [vmem:[#allocation23_spill] sm:$0xff] %v15239_v17  ;;  %v5386_v37 = vpop.f32.mrf.mxu3 }
 0x3f6   : > { %16946 = vst [vmem:[#allocation24_spill] sm:$0xff] %v15241_v24 }
 0x3fb   : > { %v15243_v55 = vpop.f32.mrf.mxu2 }
 0x3fc   : > { %16947 = vst [vmem:[#allocation25_spill] sm:$0xff] %v15243_v55  ;;  %v15245_v10 = vpop.f32.mrf.mxu0  ;;  %v15247_v56 = vpop.f32.mrf.mxu1 }
 0x3fd   : > { %v15249_v16 = vpop.f32.mrf.mxu3 }
 0x3fe   : > { %16948 = vst [vmem:[#allocation26_spill] sm:$0xff] %v15249_v16 }
 0x403   : > { %v15251_v51 = vpop.f32.mrf.mxu2 }
 0x404   : > { %v15253_v52 = vpop.f32.mrf.mxu0  ;;  %v15255_v20 = vpop.f32.mrf.mxu1 }
 0x405   : > { %16949 = vst [vmem:[#allocation27_spill] sm:$0xff] %v15253_v52  ;;  %v15257_v57 = vpop.f32.mrf.mxu3 }
 0x406   : > { %16950 = vst [vmem:[#allocation28_spill] sm:$0xff] %v15255_v20 }
 0x40b   : > { %v15259_v30 = vpop.f32.mrf.mxu2 }
 0x40c   : > { %16951 = vst [vmem:[#allocation29_spill] sm:$0xff] %v15259_v30  ;;  %v5576_v4 = vpop.f32.mrf.mxu0  ;;  %v5599_v8 = vpop.f32.mrf.mxu1 }
 0x40d   : > { %v15261_v60 = vpop.f32.mrf.mxu3 }
 0x40e   : > { %16952 = vst [vmem:[#allocation30_spill] sm:$0xff] %v15261_v60 }
 0x413   : > { %v5622_v50 = vpop.f32.mrf.mxu2 }
 0x414   : > { %v15263_v3 = vpop.f32.mrf.mxu0  ;;  %v15265_v42 = vpop.f32.mrf.mxu1 }
 0x415   : > { %16953 = vst [vmem:[#allocation31_spill] sm:$0xff] %v15263_v3  ;;  %v5645_v14 = vpop.f32.mrf.mxu3 }
 0x416   : > { %16954 = vst [vmem:[#allocation32_spill] sm:$0xff] %v15265_v42 }
 0x41b   : > { %v15267_v13 = vpop.f32.mrf.mxu2 }
 0x41c   : > { %16955 = vst [vmem:[#allocation33_spill] sm:$0xff] %v15267_v13  ;;  %v15269_v25 = vpop.f32.mrf.mxu0  ;;  %v15271_v52 = vpop.f32.mrf.mxu1 }
 0x41d   : > { %v15273_v20 = vpop.f32.mrf.mxu3 }
 0x41e   : > { %16956 = vst [vmem:[#allocation34_spill] sm:$0xff] %v15273_v20 }
 0x423   : > { %v15275_v5 = vpop.f32.mrf.mxu2 }
 0x424   : > { %v15277_v30 = vpop.f32.mrf.mxu0  ;;  %v15279_v38 = vpop.f32.mrf.mxu1 }
 0x425   : > { %16957 = vst [vmem:[#allocation35_spill] sm:$0xff] %v15277_v30  ;;  %v15281_v60 = vpop.f32.mrf.mxu3 }
 0x426   : > { %16958 = vst [vmem:[#allocation36_spill] sm:$0xff] %v15279_v38 }
 0x42b   : > { %v15283_v3 = vpop.f32.mrf.mxu2 }
 0x42c   : > { %16959 = vst [vmem:[#allocation37_spill] sm:$0xff] %v15283_v3  ;;  %v5772_v42 = vpop.f32.mrf.mxu0  ;;  %v5795_v59 = vpop.f32.mrf.mxu1 }
 0x42d   : > { %v15285_v33 = vpop.f32.mrf.mxu3  ;;  %v5773_v17 = vadd.f32 %v5772_v42, %v5576_v4  ;;  %v5796_v19 = vadd.f32 %v5795_v59, %v5599_v8  ;;  %v5486_v42 = vadd.f32 %v5363_v63, %v5168_v46  ;;  %v15317_v59 = vpop.permute.xlu1 %6169 }
 0x42e   : > { %16960 = vst [vmem:[#allocation38_spill] sm:$0xff] %v15285_v33  ;;  %v5122_v33 = vadd.f32 %v15189_v47, %v15123_v34 }
 0x433   : > { %v5818_v13 = vpop.f32.mrf.mxu2 }
 0x434   : > { %v15287_v54 = vpop.f32.mrf.mxu0  ;;  %v15289_v29 = vpop.f32.mrf.mxu1 }
 0x435   : > { %16961 = vst [vmem:[#allocation39_spill] sm:$0xff] %v15287_v54  ;;  %v5841_v20 = vpop.f32.mrf.mxu3  ;;  %v5484_v54 = vadd.f32 %v5317_v27, %v5122_v33 }
 0x436   : > { %16962 = vst [vmem:[#allocation40_spill] sm:$0xff] %v15289_v29  ;;  %v5145_v29 = vadd.f32 %v15191_v0, %v15125_v12  ;;  %v5191_v12 = vadd.f32 %v15205_v31, %v15148_v28  ;;  %v5819_v0 = vadd.f32 %v5818_v13, %v5622_v50  ;;  %v5842_v7 = vadd.f32 %v5841_v20, %v5645_v14 }
 0x437   : > { %v5500_v34 = vadd.f32 %v5484_v54, %v15032_v26  ;;  %v5214_v26 = vadd.f32 %v15213_v15, %v15156_v21 }
 0x438   : > { %v5487_v33 = vadd.f32 %v5386_v37, %v5191_v12 }
 0x439   : > { %v5488_v27 = vadd.f32 %v15245_v10, %v5214_v26 }
 0x43a   : > { %v5503_v14 = vadd.f32 %v5487_v33, %v15066_v9 }
 0x43b   : > { %v15291_v45 = vpop.f32.mrf.mxu2  ;;  %v5504_v20 = vadd.f32 %v5488_v27, %v15080_v18  ;;  %v5283_v18 = vadd.f32 %v15229_v53, %v15181_v23 }
 0x43c   : > { %16963 = vst [vmem:[#allocation41_spill] sm:$0xff] %v15291_v45  ;;  %v5864_v58 = vpop.f32.mrf.mxu0  ;;  %v5887_v30 = vpop.f32.mrf.mxu1  ;;  %v5485_v45 = vadd.f32 %v5340_v2, %v5145_v29 }
 0x43d   : > { %v15293_v16 = vpop.f32.mrf.mxu3  ;;  %v5491_v23 = vadd.f32 %v15257_v57, %v5283_v18 }
 0x43e   : > { %16964 = vst [vmem:[#allocation42_spill] sm:$0xff] %v15293_v16  ;;  %v5501_v47 = vadd.f32 %v5485_v45, %v15035_v11  ;;  %v5502_v11 = vadd.f32 %v5486_v42, %v15054_v61  ;;  %v5237_v61 = vadd.f32 %v15215_v41, %v15158_v6  ;;  %v5865_v6 = vadd.f32 %v5864_v58, %v15269_v25 }
 0x43f   : > { %v5888_v41 = vadd.f32 %v5887_v30, %v15271_v52  ;;  %v5260_v52 = vadd.f32 %v15223_v62, %v15175_v22 }
 0x440   : > { %v5489_v2 = vadd.f32 %v15247_v56, %v5237_v61 }
 0x441   : > { %v5490_v26 = vadd.f32 %v15251_v51, %v5260_v52 }
 0x442   : > { %v5505_v4 = vadd.f32 %v5489_v2, %v15083_v32 }
 0x443   : > { %v15295_v38 = vpop.f32.mrf.mxu2  ;;  %v5506_v57 = vadd.f32 %v5490_v26, %v15106_v43 }
 0x444   : > { %v15297_v55 = vpop.f32.mrf.mxu0  ;;  %v15299_v3 = vpop.f32.mrf.mxu1 }
 0x445   : > { %16965 = vst [vmem:[#allocation43_spill] sm:$0xff] %v15297_v55  ;;  %v15301_v24 = vpop.f32.mrf.mxu3 }
 0x446   : > { %16966 = vst [vmem:[#allocation44_spill] sm:$0xff] %v15299_v3  ;;  %v5934_v61 = vadd.f32 %v15301_v24, %v15281_v60 }
 0x44b   : > { %v15307_v39 = vpop.f32.mrf.mxu2 }
 0x44c   : > { %v5968_v16 = vpop.f32.mrf.mxu0  ;;  %v5991_v48 = vpop.f32.mrf.mxu1 }
 0x44d   : > { %v15309_v36 = vpop.f32.mrf.mxu3  ;;  %v6135_v55 = vadd.f32 %v5968_v16, %v5773_v17  ;;  %v6136_v3 = vadd.f32 %v5991_v48, %v5796_v19  ;;  %v15322_v48 = vld [vmem:[%s16802_s7] sm:$0xff] }
 0x44e   : > { %v15334_v19 = vperm.slane %v15322_v48, 0  ;;  %v15337_v45 = vperm.slane %v15322_v48, 1  ;;  %v15343_v54 = vperm.slane %v15322_v48, 2  ;;  %v15355_v9 = vperm.slane %v15322_v48, 3 }
 0x44f   : > { %v6151_v8 = vadd.f32 %v6135_v55, %v5500_v34  ;;  %v6152_v29 = vadd.f32 %v6136_v3, %v5501_v47  ;;  %v15378_v32 = vperm.slane %v15322_v48, 4  ;;  %v15410_v27 = vperm.slane %v15322_v48, 6 }
 0x451   : > { %v6172_v13 = vadd.f32 %v15317_v59, %v6151_v8  ;;  %v6173_v50 = vadd.f32 %v15317_v59, %v6152_v29 }
 0x453   : > { %v6014_v44 = vpop.f32.mrf.mxu2  ;;  %v15349_v37 = vmul.f32 %v6172_v13, %v15334_v19  ;;  %v15352_v55 = vmul.f32 %v6173_v50, %v15337_v45 }
 0x454   : > { %v6137_v28 = vadd.f32 %v6014_v44, %v5819_v0  ;;  %v15327_v46 = vpop.f32.mrf.mxu0  ;;  %v15329_v3 = vpop.f32.mrf.mxu1 }
 0x455   : > { %v6037_v31 = vpop.f32.mrf.mxu3  ;;  %v6198_v25 = vmul.f32 %v15349_v37, %v15349_v37  ;;  %v6199_v58 = vmul.f32 %v15352_v55, %v15352_v55  ;;  %v6188_v30 = vadd.f32 %v15352_v55, %v15349_v37 }
 0x456   : > { %v6153_v21 = vadd.f32 %v6137_v28, %v5502_v11  ;;  %v6138_v15 = vadd.f32 %v6037_v31, %v5842_v7  ;;  %v5911_v11 = vadd.f32 %v15295_v38, %v15275_v5  ;;  %v15394_v7 = vperm.slane %v15322_v48, 5 }
 0x457   : > { %v6206_v53 = vadd.f32 %v6199_v58, %v6198_v25  ;;  %v5507_v5 = vadd.f32 %v5491_v23, %v15118_v49 }
 0x458   : > { %v6174_v63 = vadd.f32 %v15317_v59, %v6153_v21  ;;  %v6154_v17 = vadd.f32 %v6138_v15, %v5503_v14 }
 0x45a   : > { %v15360_v10 = vmul.f32 %v6174_v63, %v15343_v54  ;;  %v6175_v56 = vadd.f32 %v15317_v59, %v6154_v17 }
 0x45b   : > { %v15363_v16 = vpop.f32.mrf.mxu2 }
 0x45c   : > { %v6060_v34 = vpop.f32.mrf.mxu0  ;;  %v6083_v47 = vpop.f32.mrf.mxu1  ;;  %v6200_v29 = vmul.f32 %v15360_v10, %v15360_v10  ;;  %v15385_v33 = vmul.f32 %v6175_v56, %v15355_v9  ;;  %v6189_v22 = vadd.f32 %v6188_v30, %v15360_v10 }
 0x45d   : > { %v15367_v12 = vpop.f32.mrf.mxu3  ;;  %v6139_v42 = vadd.f32 %v6060_v34, %v5865_v6  ;;  %v6140_v8 = vadd.f32 %v6083_v47, %v5888_v41  ;;  %v15416_v41 = vperm.slane %v15322_v48, 7  ;;  %v15424_v48 = vld [vmem:[%s16798_s3] sm:$0xff] }
 0x45e   : > { %v6201_v51 = vmul.f32 %v15385_v33, %v15385_v33  ;;  %v6207_v31 = vadd.f32 %v6206_v53, %v6200_v29  ;;  %v6190_v38 = vadd.f32 %v6189_v22, %v15385_v33  ;;  %6360 = vrot.lane.b32.xlu1 %v15424_v48, %s12737_s9 }
 0x45f   : > { %v6155_v0 = vadd.f32 %v6139_v42, %v5504_v20  ;;  %v6156_v44 = vadd.f32 %v6140_v8, %v5505_v4 }
 0x460   : > { %v6208_v6 = vadd.f32 %v6207_v31, %v6201_v51 }
 0x461   : > { %v6176_v62 = vadd.f32 %v15317_v59, %v6155_v0  ;;  %v6177_v13 = vadd.f32 %v15317_v59, %v6156_v44 }
 0x463   : > { %v15397_v28 = vmul.f32 %v6176_v62, %v15378_v32  ;;  %v6106_v50 = vpop.f32.mrf.mxu2  ;;  %v6185_v43 = vmul.f32 %v6177_v13, %v15394_v7 }
 0x464   : > { %v6141_v14 = vadd.f32 %v6106_v50, %v5911_v11 }
 0x465   : > { %v6129_v21 = vpop.f32.mrf.mxu3  ;;  %v6202_v15 = vmul.f32 %v15397_v28, %v15397_v28  ;;  %v6191_v17 = vadd.f32 %v6190_v38, %v15397_v28  ;;  %v6203_v34 = vmul.f32 %v6185_v43, %v6185_v43 }
 0x466   : > { %v6157_v2 = vadd.f32 %v6141_v14, %v5506_v57  ;;  %v6142_v63 = vadd.f32 %v6129_v21, %v5934_v61 }
 0x467   : > { %v6209_v49 = vadd.f32 %v6208_v6, %v6202_v15  ;;  %v6192_v4 = vadd.f32 %v6191_v17, %v6185_v43 }
 0x468   : > { %v6178_v60 = vadd.f32 %v15317_v59, %v6157_v2  ;;  %v6158_v24 = vadd.f32 %v6142_v63, %v5507_v5 }
 0x469   : > { %v6210_v25 = vadd.f32 %v6209_v49, %v6203_v34 }
 0x46a   : > { %v6186_v56 = vmul.f32 %v6178_v60, %v15410_v27  ;;  %v6179_v20 = vadd.f32 %v15317_v59, %v6158_v24 }
 0x46c   : > { %v6187_v47 = vmul.f32 %v6179_v20, %v15416_v41  ;;  %v6193_v42 = vadd.f32 %v6192_v4, %v6186_v56  ;;  %v6204_v8 = vmul.f32 %v6186_v56, %v6186_v56 }
 0x46e   : > { %v6194_v58 = vadd.f32 %v6193_v42, %v6187_v47  ;;  %v6205_v52 = vmul.f32 %v6187_v47, %v6187_v47  ;;  %v6211_v18 = vadd.f32 %v6210_v25, %v6204_v8 }
 0x470   : > { %6195 = vadd.xlane.f32.xlu2 %v6194_v58  ;;  %v6212_v30 = vadd.f32 %v6211_v18, %v6205_v52 }
 0x472   : > { %6213 = vadd.xlane.f32.xlu0 %v6212_v30 }
 0x4e3   : > { %v6196_v59 = vpop.xlane.xlu2 %6195 }
 0x4e4   : > { %v6197_v29 = vmul.f32 0.001953125, %v6196_v59 }
 0x4e5   : > { %v6214_v0 = vpop.xlane.xlu0 %6213 }
 0x4e6   : > { %v6216_v44 = vmul.f32 %v6197_v29, %v6197_v29  ;;  %v6215_v26 = vmul.f32 0.001953125, %v6214_v0  ;;  %v6219_v57 = vsub.f32 %v15349_v37, %v6197_v29  ;;  %v6220_v61 = vsub.f32 %v15352_v55, %v6197_v29 }
 0x4e7   : > { %v6221_v14 = vsub.f32 %v15360_v10, %v6197_v29  ;;  %v6222_v38 = vsub.f32 %v15385_v33, %v6197_v29  ;;  %v6224_v5 = vsub.f32 %v6185_v43, %v6197_v29  ;;  %v6226_v21 = vsub.f32 %v6187_v47, %v6197_v29 }
 0x4e8   : > { %v6217_v22 = vsub.f32 %v6215_v26, %v6216_v44  ;;  %v6223_v2 = vsub.f32 %v15397_v28, %v6197_v29  ;;  %v6225_v63 = vsub.f32 %v6186_v56, %v6197_v29  ;;  %v16842_v26 = vmov 0.0  }
 0x4ea   : > { %v6218_v23 = vmax.f32 %v6217_v22, 0.0 }
 0x4ec   : > { %v6227_v62 = vadd.f32 1e-05, %v6218_v23  ;;  %v15475_v23 = vld [vmem:[%s16798_s3 + $0x8] sm:$0xff] }
 0x4ee   : > { %12684 = vrsqrt.f32 %v6227_v62  ;;  %vm6234_vm10 = vweird.f32 %v6227_v62 }
 0x4f4   : > { %v12685_v53 = vpop.eup %12684 }
 0x4f5   : > { %v6229_v11 = vmul.f32 %v12685_v53, %v6227_v62  ;;  %vm6235_vm9 = vweird.f32 %v12685_v53 }
 0x4f6   : > { %vm6236_vm11 = vmor %vm6234_vm10, %vm6235_vm9 }
 0x4f7   : > { %v6230_v13 = vmul.f32 %v12685_v53, %v6229_v11 }
 0x4f9   : > { %v6231_v50 = vmul.f32 0.5, %v6230_v13 }
 0x4fb   : > { %v6232_v51 = vsub.f32 1.5, %v6231_v50  ;;  %v6361_v50 = vpop.permute.xlu1 %6360 }
 0x4fd   : > { %v6233_v31 = vmul.f32 %v12685_v53, %v6232_v51 }
 0x4ff   : > { %v6237_v15 = vsel %vm6236_vm11, %v12685_v53, %v6233_v31 }
 0x500   : > { %v6239_v17 = vmul.f32 %v6237_v15, %v6220_v61  ;;  %v6240_v6 = vmul.f32 %v6237_v15, %v6221_v14  ;;  %v6238_v60 = vmul.f32 %v6237_v15, %v6219_v57  ;;  %v6241_v24 = vmul.f32 %v6237_v15, %v6222_v38 }
 0x501   : > { %v6243_v49 = vmul.f32 %v6237_v15, %v6224_v5  ;;  %v6245_v20 = vmul.f32 %v6237_v15, %v6226_v21  ;;  %v6242_v37 = vmul.f32 %v6237_v15, %v6223_v2  ;;  %v6244_v4 = vmul.f32 %v6237_v15, %v6225_v63 }
 0x502   : > { %v6247_v55 = vmax.f32 %v6239_v17, 0.0  ;;  %v6248_v34 = vmax.f32 %v6240_v6, 0.0  ;;  %v6246_v43 = vmax.f32 %v6238_v60, 0.0  ;;  %v6249_v28 = vmax.f32 %v6241_v24, 0.0 }
 0x503   : > { %v6253_v10 = vmax.f32 %v6245_v20, 0.0  ;;  %v6251_v56 = vmax.f32 %v6243_v49, 0.0  ;;  %v6250_v8 = vmax.f32 %v6242_v37, 0.0  ;;  %v6252_v25 = vmax.f32 %v6244_v4, 0.0 }
 0x504   : > { %v15434_v42 = vmul.f32 %v6247_v55, %v15337_v45  ;;  %v15437_v33 = vmul.f32 %v6248_v34, %v15343_v54  ;;  %v15449_v52 = vmul.f32 %v6249_v28, %v15355_v9  ;;  %v15455_v30 = vmul.f32 %v6246_v43, %v15334_v19 }
 0x505   : > { %v15440_v47 = vmul.f32 %v6253_v10, %v15416_v41  ;;  %v15452_v18 = vmul.f32 %v6251_v56, %v15394_v7  ;;  %v15458_v59 = vmul.f32 %v6250_v8, %v15378_v32  ;;  %v15461_v29 = vmul.f32 %v6252_v25, %v15410_v27 }
 0x506   : > { %v12543_v58 = vpack.i.bf16 %v15437_v33, %v15434_v42  ;;  %v12528_v22 = vpack.i.bf16 %v15455_v30, %v16842_v26  ;;  %v15512_v62 = vpack.i.bf16 %v15449_v52, %v15437_v33  ;;  %v15538_v13 = vpack.i.bf16 %v15434_v42, %v15455_v30 }
 0x507   : > { %6387 = vrot.lane.b32.xlu2 %v15440_v47, %s12738_s14  ;;  %v12553_v0 = vpack.i.bf16 %v15452_v18, %v15449_v52  ;;  %v12558_v44 = vpack.i.bf16 %v15458_v59, %v15461_v29  ;;  %v15521_v53 = vpack.i.bf16 %v15461_v29, %v15458_v59  ;;  %v12618_v11 = vpack.i.bf16 %v15452_v18, %v15440_v47 }
 0x508   : > { %12544 = vrot.lane.b32.xlu0 %v12543_v58, %s12740_s20  ;;  %12524 = vrot.lane.b32.xlu1 %v12543_v58, %s12738_s14 }
 0x50f   : > { %12554 = vrot.lane.b32.xlu2 %v12553_v0, %s12740_s20 }
 0x510   : > { %12559 = vrot.lane.b32.xlu0 %v12558_v44, %s12740_s20  ;;  %12529 = vrot.lane.b32.xlu1 %v12528_v22, %s12738_s14 }
 0x517   : > { %7111 = vrot.lane.b32.xlu2 %v15424_v48, %s12742_s24 }
 0x518   : > { %7276 = vrot.lane.b32.xlu0 %v15475_v23, %s12743_s25  ;;  %12534 = vrot.lane.b32.xlu1 %v12553_v0, %s12738_s14 }
 0x51f   : > { %7458 = vrot.lane.b32.xlu2 %v15424_v48, %s12744_s26  ;;  %s16970_s26 = smov 119  }
 0x520   : > { %12569 = vrot.lane.b32.xlu0 %v12528_v22, %s12746_s30  ;;  %12539 = vrot.lane.b32.xlu1 %v12558_v44, %s12738_s14  ;;  %s16967_s14 = smov 16  }
 0x527   : > { %12579 = vrot.lane.b32.xlu2 %v12558_v44, %s12746_s30 }
 0x528   : > { %7476 = vrot.lane.b32.xlu0 %v15440_v47, %s12746_s30  ;;  %6731 = vrot.lane.b32.xlu1 %v15475_v23, %s12739_s19 }
 0x52f   : > { %7821 = vrot.lane.b32.xlu2 %v15475_v23, %s12745_s29 }
 0x530   : > { %12584 = vrot.lane.b32.xlu0 %v12543_v58, %s12749_s12  ;;  %6913 = vrot.lane.b32.xlu1 %v15424_v48, %s12741_s23 }
 0x537   : > { %12589 = vrot.lane.b32.xlu2 %v12528_v22, %s12749_s12 }
 0x538   : > { %12594 = vrot.lane.b32.xlu0 %v12553_v0, %s12749_s12  ;;  %12549 = vrot.lane.b32.xlu1 %v12528_v22, %s12740_s20 }
 0x53f   : > { %8021 = vrot.lane.b32.xlu2 %v15440_v47, %s12749_s12 }
 0x540   : > { %8201 = vrot.lane.b32.xlu0 %v15424_v48, %s12743_s25  ;;  %6931 = vrot.lane.b32.xlu1 %v15440_v47, %s12740_s20  ;;  %s16968_s20 = smov 32   ;;  %s16969_s25 = smov 8  }
 0x547   : > { %8548 = vrot.lane.b32.xlu2 %v15424_v48, %s12750_s15 }
 0x548   : > { %8712 = vrot.lane.b32.xlu0 %v15424_v48, %s12745_s29  ;;  %12564 = vrot.lane.b32.xlu1 %v12543_v58, %s12746_s30  ;;  %s16972_s29 = smov 80  }
 0x54f   : > { %12604 = vrot.lane.b32.xlu2 %v15512_v62, %s12754_s18 }
 0x550   : > { %9056 = vrot.lane.b32.xlu0 %v15424_v48, %s16967_s14  ;;  %12574 = vrot.lane.b32.xlu1 %v12553_v0, %s12746_s30 }
 0x557   : > { %12614 = vrot.lane.b32.xlu2 %v15521_v53, %s12754_s18 }
 0x558   : > { %12619 = vrot.lane.b32.xlu0 %v12618_v11, %s12754_s18  ;;  %7656 = vrot.lane.b32.xlu1 %v15424_v48, %s12739_s19  ;;  %s16971_s19 = smov 118  }
 0x55f   : > { %9254 = vrot.lane.b32.xlu2 %v15424_v48, %s12748_s11 }
 0x560   : > { %9420 = vrot.lane.b32.xlu0 %v15475_v23, %s12753_s22  ;;  %8003 = vrot.lane.b32.xlu1 %v15424_v48, %s16968_s20 }
 0x561   : > { %v6388_v34 = vpop.permute.xlu2 %6387 }
 0x567   : > { %9601 = vrot.lane.b32.xlu2 %v15424_v48, %s16969_s25 }
 0x568   : > { %12629 = vrot.lane.b32.xlu0 %v15538_v13, %s16970_s26  ;;  %12599 = vrot.lane.b32.xlu1 %v12558_v44, %s12749_s12  ;;  %v337_v44 = vld [vmem:[%s16797_s2 + $0x8] sm:$0xff] }
 0x56f   : > { %12639 = vrot.lane.b32.xlu2 %v12618_v11, %s16970_s26 }
 0x570   : > { %9619 = vrot.lane.b32.xlu0 %v16842_v26, %s16970_s26  ;;  %8366 = vrot.lane.b32.xlu1 %v15475_v23, %s12748_s11 }
 0x577   : > { %9965 = vrot.lane.b32.xlu2 %v15475_v23, %s12756_s10 }
 0x578   : > { %12644 = vrot.lane.b32.xlu0 %v15512_v62, %s16971_s19  ;;  %8876 = vrot.lane.b32.xlu1 %v15475_v23, %s16972_s29 }
 0x57a   : > { %v15556_v51 = vpop.permute.xlu0 %12544  ;;  %v12525_v31 = vpop.permute.xlu1 %12524 }
 0x57b   : > { %v12527_v57 = vunpack.i.h.bf16 %v12525_v31  ;;  %v12526_v61 = vunpack.i.l.bf16 %v12525_v31 }
 0x57d   : > { %v15559_v14 = vsel %vm375_vm0, %v12526_v61, %v12527_v57 }
 0x57e   : > { %6462 = vmatpush.msra.mxu2 %v15559_v14 }
 0x57f   : > { %12654 = vrot.lane.b32.xlu2 %v15521_v53, %s16971_s19  ;;  %12103 = vmatmul.msk.f32.vlgmr.msra.gmra.mxu2 %vm392_vm1, %v6361_v50 }
 0x580   : > { %12659 = vrot.lane.b32.xlu0 %v12618_v11, %s16971_s19  ;;  %12609 = vrot.lane.b32.xlu1 %v15538_v13, %s12754_s18 }
 0x582   : > { %v15568_v38 = vpop.permute.xlu0 %12559  ;;  %v12530_v5 = vpop.permute.xlu1 %12529 }
 0x583   : > { %v12532_v21 = vunpack.i.h.bf16 %v12530_v5  ;;  %v15570_v15 = vunpack.i.l.bf16 %v12530_v5 }
 0x585   : > { %v6389_v2 = vsel %vm375_vm0, %v15570_v15, %v12532_v21  ;;  %v6390_v63 = vsel %vm375_vm0, %v12532_v21, %v12526_v61 }
 0x586   : > { %6422 = vmatpush.msra.mxu0 %v6389_v2  ;;  %6442 = vmatpush.msra.mxu1 %v6390_v63 }
 0x587   : > { %10342 = vrot.lane.b32.xlu2 %v15424_v48, %s12753_s22  ;;  %12101 = vmatmul.msk.f32.vlgmr.msra.gmra.mxu0 %vm392_vm1, %v6361_v50 }
 0x588   : > { %12102 = vmatmul.msk.f32.vlgmr.msra.gmra.mxu1 %vm392_vm1, %v6361_v50  ;;  %10508 = vrot.lane.b32.xlu0 %v15475_v23, %s12737_s9 }
 0x589   : > { %9074 = vrot.lane.b32.xlu1 %v16842_v26, %s12754_s18 }
 0x58a   : > { %v15583_v17 = vpop.permute.xlu0 %7276  ;;  %v12535_v6 = vpop.permute.xlu1 %12534 }
 0x58b   : > { %v12536_v60 = vunpack.i.l.bf16 %v12535_v6  ;;  %v12537_v37 = vunpack.i.h.bf16 %v12535_v6 }
 0x58d   : > { %v6392_v24 = vsel %vm375_vm0, %v12527_v57, %v12536_v60 }
 0x58e   : > { %6482 = vmatpush.msra.mxu3 %v6392_v24 }
 0x58f   : > { %10689 = vrot.lane.b32.xlu2 %v15475_v23, %s12742_s24  ;;  %12104 = vmatmul.msk.f32.vlgmr.msra.gmra.mxu3 %vm392_vm1, %v6361_v50 }
 0x590   : > { %12669 = vrot.lane.b32.xlu0 %v15538_v13, %s12759_s17 }
 0x591   : > { %12624 = vrot.lane.b32.xlu1 %v15512_v62, %s16970_s26 }
 0x592   : > { %v15593_v49 = vpop.permute.xlu0 %12569  ;;  %v12540_v20 = vpop.permute.xlu1 %12539 }
 0x593   : > { %v12542_v4 = vunpack.i.h.bf16 %v12540_v20  ;;  %v12541_v55 = vunpack.i.l.bf16 %v12540_v20  ;;  %v15602_v8 = vunpack.i.l.bf16 %v15593_v49 }
 0x595   : > { %v6393_v10 = vsel %vm375_vm0, %v12536_v60, %v12542_v4  ;;  %v6394_v43 = vsel %vm375_vm0, %v12542_v4, %v12537_v37  ;;  %v6395_v28 = vsel %vm375_vm0, %v12537_v37, %v12541_v55  ;;  %v6396_v56 = vsel %vm375_vm0, %v12541_v55, %v6388_v34 }
 0x596   : > { %6502 = vmatpush.msrb.mxu0 %v6393_v10  ;;  %6522 = vmatpush.msrb.mxu1 %v6394_v43  ;;  %v12562_v37 = vunpack.i.h.bf16 %v15568_v38  ;;  %v12561_v4 = vunpack.i.l.bf16 %v15568_v38 }
 0x597   : > { %12679 = vrot.lane.b32.xlu2 %v12618_v11, %s12759_s17  ;;  %6542 = vmatpush.msrb.mxu2 %v6395_v28  ;;  %v6733_v11 = vsel %vm375_vm0, %v6388_v34, %v15570_v15 }
 0x598   : > { %6562 = vmatpush.msrb.mxu3 %v6396_v56  ;;  %12105 = vmatmul.msk.f32.vlgmr.msrb.gmra.mxu0 %vm392_vm1, %v6361_v50 }
 0x599   : > { %12106 = vmatmul.msk.f32.vlgmr.msrb.gmra.mxu1 %vm392_vm1, %v6361_v50  ;;  %12107 = vmatmul.msk.f32.vlgmr.msrb.gmra.mxu2 %vm392_vm1, %v6361_v50 }
 0x59a   : > { %12108 = vmatmul.msk.f32.vlgmr.msrb.gmra.mxu3 %vm392_vm1, %v6361_v50  ;;  %6585 = vmatpush.msra.mxu0 %v15570_v15  ;;  %v15608_v25 = vpop.permute.xlu0 %7476  ;;  %v15610_v58 = vpop.permute.xlu1 %6731 }
 0x59b   : > { %6605 = vmatpush.msra.mxu1 %v6389_v2  ;;  %6625 = vmatpush.msra.mxu2 %v6390_v63  ;;  %v15615_v0 = vsel %vm1678_vm3, %v15608_v25, %v15602_v8  ;;  %v12555_v15 = vpop.permute.xlu2 %12554  ;;  %v12547_v2 = vunpack.i.h.bf16 %v15556_v51 }
 0x59c   : > { %6645 = vmatpush.msra.mxu3 %v15559_v14  ;;  %10707 = vrot.lane.b32.xlu0 %v16842_v26, %s12759_s17  ;;  %v12556_v60 = vunpack.i.l.bf16 %v12555_v15  ;;  %v12557_v55 = vunpack.i.h.bf16 %v12555_v15 }
 0x59d   : > { %12634 = vrot.lane.b32.xlu1 %v15521_v53, %s16970_s26  ;;  %6665 = vmatpush.msrb.mxu0 %v6392_v24 }
 0x59e   : > { %6685 = vmatpush.msrb.mxu1 %v6393_v10  ;;  %6705 = vmatpush.msrb.mxu2 %v6394_v43  ;;  %v6936_v20 = vsel %vm1027_vm2, %v12547_v2, %v12556_v60  ;;  %v6939_v38 = vsel %vm1027_vm2, %v12557_v55, %v12561_v4 }
 0x59f   : > { %6725 = vmatpush.msrb.mxu3 %v6395_v28  ;;  %11053 = vrot.lane.b32.xlu2 %v15475_v23, %s12741_s23 }
 0x5a0   : > { %12109 = vmatmul.msk.f32.vlgmr.msra.gmra.mxu0 %vm392_vm1, %v15424_v48 }
 0x5a1   : > { %12110 = vmatmul.msk.f32.vlgmr.msra.gmra.mxu1 %vm392_vm1, %v15424_v48  ;;  %12111 = vmatmul.msk.f32.vlgmr.msra.gmra.mxu2 %vm392_vm1, %v15424_v48 }
 0x5a2   : > { %12112 = vmatmul.msk.f32.vlgmr.msra.gmra.mxu3 %vm392_vm1, %v15424_v48  ;;  %6752 = vmatpush.msra.mxu0 %v6390_v63  ;;  %v15635_v22 = vpop.permute.xlu0 %12584  ;;  %v15637_v23 = vpop.permute.xlu1 %6913  ;;  %v12546_v63 = vunpack.i.l.bf16 %v15556_v51 }
 0x5a3   : > { %6772 = vmatpush.msra.mxu1 %v15559_v14  ;;  %6792 = vmatpush.msra.mxu2 %v6392_v24  ;;  %v16845_v57 = vunpack.i.h.bf16 %v15635_v22 }
 0x5a4   : > { %6812 = vmatpush.msra.mxu3 %v6393_v10  ;;  %6264 = vperm.xlu0 %12683, %v337_v44   ;;  %v6935_v51 = vsel %vm1027_vm2, %v12546_v63, %v12547_v2  ;;  %v6937_v10 = vsel %vm1027_vm2, %v12556_v60, %v12562_v37  ;;  %v12572_v2 = vunpack.i.h.bf16 %v15593_v49 }
 0x5a5   : > { %9799 = vrot.lane.b32.xlu1 %v15424_v48, %s16972_s29 }
 0x5a8   : > { %12113 = vmatmul.msk.f32.vlgmr.msrb.gmra.mxu0 %vm392_vm1, %v15424_v48 }
 0x5a9   : > { %12114 = vmatmul.msk.f32.vlgmr.msrb.gmra.mxu1 %vm392_vm1, %v15424_v48  ;;  %12115 = vmatmul.msk.f32.vlgmr.msrb.gmra.mxu2 %vm392_vm1, %v15424_v48 }
 0x5aa   : > { %12116 = vmatmul.msk.f32.vlgmr.msrb.gmra.mxu3 %vm392_vm1, %v15424_v48  ;;  %6832 = vmatpush.msrb.mxu0 %v6394_v43  ;;  %v15652_v50 = vpop.permute.xlu0 %12594  ;;  %v12550_v31 = vpop.permute.xlu1 %12549  ;;  %v6938_v43 = vsel %vm1027_vm2, %v12562_v37, %v12557_v55 }
 0x5ab   : > { %6852 = vmatpush.msrb.mxu1 %v6395_v28  ;;  %6872 = vmatpush.msrb.mxu2 %v6396_v56  ;;  %v16844_v61 = vunpack.i.l.bf16 %v15652_v50  ;;  %v12552_v14 = vunpack.i.h.bf16 %v12550_v31  ;;  %v15656_v5 = vunpack.i.l.bf16 %v12550_v31 }
 0x5ac   : > { %6892 = vmatpush.msrb.mxu3 %v6733_v11 }
 0x5ad   : > { %12649 = vrot.lane.b32.xlu1 %v15538_v13, %s16971_s19  ;;  %v15665_v21 = vsel %vm2329_vm4, %v16845_v57, %v16844_v61  ;;  %v6933_v6 = vsel %vm1027_vm2, %v15656_v5, %v12552_v14  ;;  %v6934_v13 = vsel %vm1027_vm2, %v12552_v14, %v12546_v63  ;;  %v17000_v57 = vld [vmem:[#allocation12_spill] sm:$0xff] }
 0x5b0   : > { %12117 = vmatmul.msk.f32.vlgmr.msra.gmra.mxu0 %vm392_vm1, %v15610_v58 }
 0x5b1   : > { %12118 = vmatmul.msk.f32.vlgmr.msra.gmra.mxu1 %vm392_vm1, %v15610_v58  ;;  %12119 = vmatmul.msk.f32.vlgmr.msra.gmra.mxu2 %vm392_vm1, %v15610_v58 }
 0x5b2   : > { %12120 = vmatmul.msk.f32.vlgmr.msra.gmra.mxu3 %vm392_vm1, %v15610_v58  ;;  %6966 = vmatpush.msra.mxu0 %v6933_v6  ;;  %v15681_v24 = vpop.permute.xlu0 %8201  ;;  %v6932_v34 = vpop.permute.xlu1 %6931 }
 0x5b3   : > { %6986 = vmatpush.msra.mxu1 %v6934_v13  ;;  %7006 = vmatpush.msra.mxu2 %v6935_v51  ;;  %v6940_v56 = vsel %vm1027_vm2, %v12561_v4, %v6932_v34  ;;  %v7278_v14 = vsel %vm1027_vm2, %v6932_v34, %v15656_v5 }
 0x5b4   : > { %7026 = vmatpush.msra.mxu3 %v6936_v20 }
 0x5b5   : > { %10162 = vrot.lane.b32.xlu1 %v16842_v26, %s16971_s19  ;;  %v16990_v26 = vld [vmem:[#allocation25_spill] sm:$0xff] }
 0x5b8   : > { %12121 = vmatmul.msk.f32.vlgmr.msrb.gmra.mxu0 %vm392_vm1, %v15610_v58 }
 0x5b9   : > { %12122 = vmatmul.msk.f32.vlgmr.msrb.gmra.mxu1 %vm392_vm1, %v15610_v58  ;;  %12123 = vmatmul.msk.f32.vlgmr.msrb.gmra.mxu2 %vm392_vm1, %v15610_v58 }
 0x5ba   : > { %12124 = vmatmul.msk.f32.vlgmr.msrb.gmra.mxu3 %vm392_vm1, %v15610_v58  ;;  %7046 = vmatpush.msrb.mxu0 %v6937_v10  ;;  %v15699_v28 = vpop.permute.xlu0 %8712  ;;  %v12565_v44 = vpop.permute.xlu1 %12564 }
 0x5bb   : > { %16973 = vst [vmem:[#allocation45_spill] sm:$0xff] %v15699_v28  ;;  %7066 = vmatpush.msrb.mxu1 %v6938_v43  ;;  %7086 = vmatpush.msrb.mxu2 %v6939_v38  ;;  %v12567_v63 = vunpack.i.h.bf16 %v12565_v44 }
 0x5bc   : > { %7106 = vmatpush.msrb.mxu3 %v6940_v56 }
 0x5bd   : > { %12664 = vrot.lane.b32.xlu1 %v15512_v62, %s12759_s17 }
 0x5c0   : > { %12125 = vmatmul.msk.f32.vlgmr.msra.gmra.mxu0 %vm392_vm1, %v15637_v23 }
 0x5c1   : > { %12126 = vmatmul.msk.f32.vlgmr.msra.gmra.mxu1 %vm392_vm1, %v15637_v23  ;;  %12127 = vmatmul.msk.f32.vlgmr.msra.gmra.mxu2 %vm392_vm1, %v15637_v23 }
 0x5c2   : > { %12128 = vmatmul.msk.f32.vlgmr.msra.gmra.mxu3 %vm392_vm1, %v15637_v23  ;;  %7131 = vmatpush.msra.mxu0 %v15656_v5  ;;  %v15713_v58 = vpop.permute.xlu0 %9056  ;;  %v12575_v15 = vpop.permute.xlu1 %12574  ;;  %v7478_v5 = vsel %vm1678_vm3, %v15602_v8, %v12572_v2 }
 0x5c3   : > { %16974 = vst [vmem:[#allocation46_spill] sm:$0xff] %v15713_v58  ;;  %7151 = vmatpush.msra.mxu1 %v6933_v6  ;;  %7171 = vmatpush.msra.mxu2 %v6934_v13  ;;  %v12566_v6 = vunpack.i.l.bf16 %v12565_v44  ;;  %v12577_v4 = vunpack.i.h.bf16 %v12575_v15 }
 0x5c4   : > { %7191 = vmatpush.msra.mxu3 %v6935_v51 }
 0x5c5   : > { %12674 = vrot.lane.b32.xlu1 %v15521_v53, %s12759_s17  ;;  %v7112_v53 = vpop.permute.xlu2 %7111  ;;  %v7479_v49 = vsel %vm1678_vm3, %v12572_v2, %v12566_v6  ;;  %v7480_v60 = vsel %vm1678_vm3, %v12566_v6, %v12567_v63  ;;  %v16985_v6 = vld [vmem:[#allocation17_spill] sm:$0xff]  ;;  %s12327_s17 = sshll.u32 %s17048_s28, 6 }
 0x5c6   : > { %s305_s21 = scalar_lea.vmem %s16803_s8, %s12327_s17 }
 0x5c8   : > { %12129 = vmatmul.msk.f32.vlgmr.msrb.gmra.mxu0 %vm392_vm1, %v15637_v23 }
 0x5c9   : > { %12130 = vmatmul.msk.f32.vlgmr.msrb.gmra.mxu1 %vm392_vm1, %v15637_v23  ;;  %12131 = vmatmul.msk.f32.vlgmr.msrb.gmra.mxu2 %vm392_vm1, %v15637_v23 }
 0x5ca   : > { %12132 = vmatmul.msk.f32.vlgmr.msrb.gmra.mxu3 %vm392_vm1, %v15637_v23  ;;  %7211 = vmatpush.msrb.mxu0 %v6936_v20  ;;  %v15725_v62 = vpop.permute.xlu0 %12619  ;;  %v11234_v23 = vld [vmem:[%s16799_s4] sm:$0xff] }
 0x5cb   : > { %16975 = vst [vmem:[#allocation47_spill] sm:$0xff] %v15725_v62  ;;  %7231 = vmatpush.msrb.mxu1 %v6937_v10  ;;  %7251 = vmatpush.msrb.mxu2 %v6938_v43 }
 0x5cc   : > { %7271 = vmatpush.msrb.mxu3 %v6939_v38 }
 0x5cd   : > { %10887 = vrot.lane.b32.xlu1 %v15424_v48, %s12756_s10  ;;  %v7459_v48 = vpop.permute.xlu2 %7458 }
 0x5d0   : > { %12133 = vmatmul.msk.f32.vlgmr.msra.gmra.mxu0 %vm392_vm1, %v7112_v53 }
 0x5d1   : > { %12134 = vmatmul.msk.f32.vlgmr.msra.gmra.mxu1 %vm392_vm1, %v7112_v53  ;;  %12135 = vmatmul.msk.f32.vlgmr.msra.gmra.mxu2 %vm392_vm1, %v7112_v53 }
 0x5d2   : > { %12136 = vmatmul.msk.f32.vlgmr.msra.gmra.mxu3 %vm392_vm1, %v7112_v53  ;;  %7297 = vmatpush.msra.mxu0 %v6934_v13  ;;  %v15736_v11 = vpop.permute.xlu0 %9420  ;;  %v12576_v13 = vunpack.i.l.bf16 %v12575_v15  ;;  %v16983_v15 = vld [vmem:[#allocation16_spill] sm:$0xff] }
 0x5d3   : > { %16976 = vst [vmem:[#allocation48_spill] sm:$0xff] %v15736_v11  ;;  %7317 = vmatpush.msra.mxu1 %v6935_v51  ;;  %7337 = vmatpush.msra.mxu2 %v6936_v20  ;;  %v5148_v2 = vadd.f32 %v16983_v15, %v15146_v1  ;;  %v16992_v15 = vld [vmem:[#allocation15_spill] sm:$0xff]  ;;  %v17016_v11 = vld [vmem:[#allocation41_spill] sm:$0xff] }
 0x5d4   : > { %7357 = vmatpush.msra.mxu3 %v6937_v10  ;;  %v7481_v20 = vsel %vm1678_vm3, %v12567_v63, %v12576_v13  ;;  %v16984_v63 = vld [vmem:[#allocation2_spill] sm:$0xff] }
 0x5d5   : > { %11237 = vperm.xlu1 %12522, %v11234_v23   ;;  %v12580_v37 = vpop.permute.xlu2 %12579 }
 0x5d6   : > { %v12582_v55 = vunpack.i.h.bf16 %v12580_v37  ;;  %v12581_v34 = vunpack.i.l.bf16 %v12580_v37  ;;  %v16986_v37 = vld [vmem:[#allocation4_spill] sm:$0xff] }
 0x5d8   : > { %12137 = vmatmul.msk.f32.vlgmr.msrb.gmra.mxu0 %vm392_vm1, %v7112_v53  ;;  %v7482_v10 = vsel %vm1678_vm3, %v12576_v13, %v12582_v55  ;;  %v5171_v13 = vadd.f32 %v16985_v6, %v16984_v63  ;;  %v16993_v63 = vld [vmem:[#allocation19_spill] sm:$0xff] }
 0x5d9   : > { %12138 = vmatmul.msk.f32.vlgmr.msrb.gmra.mxu1 %vm392_vm1, %v7112_v53  ;;  %12139 = vmatmul.msk.f32.vlgmr.msrb.gmra.mxu2 %vm392_vm1, %v7112_v53  ;;  %v5217_v6 = vadd.f32 %v16993_v63, %v16992_v15  ;;  %v6109_v15 = vpop.f32.mrf.mxu2  ;;  %v17003_v63 = vld [vmem:[#allocation10_spill] sm:$0xff] }
 0x5da   : > { %12140 = vmatmul.msk.f32.vlgmr.msrb.gmra.mxu3 %vm392_vm1, %v7112_v53  ;;  %7377 = vmatpush.msrb.mxu0 %v6938_v43  ;;  %v15742_v31 = vpop.permute.xlu0 %12629  ;;  %v7483_v43 = vsel %vm1678_vm3, %v12582_v55, %v12577_v4  ;;  %v7485_v53 = vsel %vm1678_vm3, %v12581_v34, %v15608_v25  ;;  %v5494_v61 = vadd.f32 %v16990_v26, %v5171_v13  ;;  %v16997_v26 = vld [vmem:[#allocation21_spill] sm:$0xff] }
 0x5db   : > { %16977 = vst [vmem:[#allocation49_spill] sm:$0xff] %v15742_v31  ;;  %7397 = vmatpush.msrb.mxu1 %v6939_v38  ;;  %7417 = vmatpush.msrb.mxu2 %v6940_v56  ;;  %v7484_v38 = vsel %vm1678_vm3, %v12577_v4, %v12581_v34  ;;  %v16987_v4 = vld [vmem:[#allocation18_spill] sm:$0xff]  ;;  %v16989_v34 = vld [vmem:[#allocation24_spill] sm:$0xff] }
 0x5dc   : > { %7437 = vmatpush.msrb.mxu3 %v7278_v14  ;;  %v5125_v14 = vadd.f32 %v15201_v40, %v15144_v35  ;;  %v16991_v35 = vld [vmem:[#allocation26_spill] sm:$0xff] }
 0x5dd   : > { %v15790_v44 = vpop.permute.xlu2 %7821 }
 0x5e0   : > { %12141 = vmatmul.msk.f32.vlgmr.msra.gmra.mxu0 %vm392_vm1, %v15583_v17 }
 0x5e1   : > { %12142 = vmatmul.msk.f32.vlgmr.msra.gmra.mxu1 %vm392_vm1, %v15583_v17  ;;  %12143 = vmatmul.msk.f32.vlgmr.msra.gmra.mxu2 %vm392_vm1, %v15583_v17 }
 0x5e2   : > { %12144 = vmatmul.msk.f32.vlgmr.msra.gmra.mxu3 %vm392_vm1, %v15583_v17  ;;  %7511 = vmatpush.msra.mxu0 %v7478_v5  ;;  %v15759_v51 = vpop.permute.xlu0 %9619 }
 0x5e3   : > { %16978 = vst [vmem:[#allocation50_spill] sm:$0xff] %v15759_v51  ;;  %7531 = vmatpush.msra.mxu1 %v7479_v49  ;;  %7551 = vmatpush.msra.mxu2 %v7480_v60  ;;  %v17015_v51 = vld [vmem:[#allocation33_spill] sm:$0xff] }
 0x5e4   : > { %7571 = vmatpush.msra.mxu3 %v7481_v20  ;;  %v5822_v31 = vadd.f32 %v17016_v11, %v17015_v51 }
 0x5e5   : > { %v12590_v40 = vpop.permute.xlu2 %12589 }
 0x5e8   : > { %12145 = vmatmul.msk.f32.vlgmr.msrb.gmra.mxu0 %vm392_vm1, %v15583_v17 }
 0x5e9   : > { %12146 = vmatmul.msk.f32.vlgmr.msrb.gmra.mxu1 %vm392_vm1, %v15583_v17  ;;  %12147 = vmatmul.msk.f32.vlgmr.msrb.gmra.mxu2 %vm392_vm1, %v15583_v17 }
 0x5ea   : > { %12148 = vmatmul.msk.f32.vlgmr.msrb.gmra.mxu3 %vm392_vm1, %v15583_v17  ;;  %7591 = vmatpush.msrb.mxu0 %v7482_v10  ;;  %v15773_v56 = vpop.permute.xlu0 %12644 }
 0x5eb   : > { %16979 = vst [vmem:[#allocation51_spill] sm:$0xff] %v15773_v56  ;;  %7611 = vmatpush.msrb.mxu1 %v7483_v43  ;;  %7631 = vmatpush.msrb.mxu2 %v7484_v38  ;;  %v15834_v56 = vunpack.i.l.bf16 %v12590_v40 }
 0x5ec   : > { %7651 = vmatpush.msrb.mxu3 %v7485_v53 }
 0x5f0   : > { %12149 = vmatmul.msk.f32.vlgmr.msra.gmra.mxu0 %vm392_vm1, %v7459_v48 }
 0x5f1   : > { %12150 = vmatmul.msk.f32.vlgmr.msra.gmra.mxu1 %vm392_vm1, %v7459_v48  ;;  %12151 = vmatmul.msk.f32.vlgmr.msra.gmra.mxu2 %vm392_vm1, %v7459_v48 }
 0x5f2   : > { %12152 = vmatmul.msk.f32.vlgmr.msra.gmra.mxu3 %vm392_vm1, %v7459_v48  ;;  %7676 = vmatpush.msra.mxu0 %v15602_v8  ;;  %v15782_v17 = vpop.permute.xlu0 %12659  ;;  %v7657_v8 = vpop.permute.xlu1 %7656 }
 0x5f3   : > { %16980 = vst [vmem:[#allocation52_spill] sm:$0xff] %v15782_v17  ;;  %7696 = vmatpush.msra.mxu1 %v7478_v5  ;;  %7716 = vmatpush.msra.mxu2 %v7479_v49  ;;  %v15804_v5 = vpop.f32.mrf.mxu1 }
 0x5f4   : > { %7736 = vmatpush.msra.mxu3 %v7480_v60 }
 0x5f8   : > { %12153 = vmatmul.msk.f32.vlgmr.msrb.gmra.mxu0 %vm392_vm1, %v7459_v48 }
 0x5f9   : > { %12154 = vmatmul.msk.f32.vlgmr.msrb.gmra.mxu1 %vm392_vm1, %v7459_v48  ;;  %12155 = vmatmul.msk.f32.vlgmr.msrb.gmra.mxu2 %vm392_vm1, %v7459_v48 }
 0x5fa   : > { %12156 = vmatmul.msk.f32.vlgmr.msrb.gmra.mxu3 %vm392_vm1, %v7459_v48  ;;  %7756 = vmatpush.msrb.mxu0 %v7481_v20  ;;  %v15788_v25 = vpop.permute.xlu0 %10508  ;;  %v6063_v48 = vpop.f32.mrf.mxu0 }
 0x5fb   : > { %16981 = vst [vmem:[#allocation53_spill] sm:$0xff] %v15788_v25  ;;  %7776 = vmatpush.msrb.mxu1 %v7482_v10  ;;  %7796 = vmatpush.msrb.mxu2 %v7483_v43 }
 0x5fc   : > { %7816 = vmatpush.msrb.mxu3 %v7484_v38 }
 0x600   : > { %12157 = vmatmul.msk.f32.vlgmr.msra.gmra.mxu0 %vm392_vm1, %v7657_v8 }
 0x601   : > { %12158 = vmatmul.msk.f32.vlgmr.msra.gmra.mxu1 %vm392_vm1, %v7657_v8  ;;  %12159 = vmatmul.msk.f32.vlgmr.msra.gmra.mxu2 %vm392_vm1, %v7657_v8 }
 0x602   : > { %12160 = vmatmul.msk.f32.vlgmr.msra.gmra.mxu3 %vm392_vm1, %v7657_v8  ;;  %7842 = vmatpush.msra.mxu0 %v7479_v49  ;;  %v15796_v23 = vpop.permute.xlu0 %12669  ;;  %v5194_v49 = vadd.f32 %v16987_v4, %v16986_v37  ;;  %v16995_v37 = vld [vmem:[#allocation20_spill] sm:$0xff]  ;;  %v16996_v4 = vld [vmem:[#allocation7_spill] sm:$0xff] }
 0x603   : > { %7862 = vmatpush.msra.mxu1 %v7480_v60  ;;  %7882 = vmatpush.msra.mxu2 %v7481_v20  ;;  %16982 = vst [vmem:[#allocation54_spill] sm:$0xff] %v15796_v23  ;;  %v15808_v60 = vpop.permute.xlu1 %8003  ;;  %v16988_v20 = vld [vmem:[#allocation23_spill] sm:$0xff]  ;;  %v5263_v13 = vadd.f32 %v16997_v26, %v16996_v4  ;;  %v17002_v23 = vld [vmem:[#allocation6_spill] sm:$0xff]  ;;  %v12592_v26 = vunpack.i.h.bf16 %v12590_v40 }
 0x604   : > { %7902 = vmatpush.msra.mxu3 %v7482_v10  ;;  %v5492_v55 = vadd.f32 %v16988_v20, %v5125_v14  ;;  %v5493_v10 = vadd.f32 %v16989_v34, %v5148_v2  ;;  %v5495_v1 = vadd.f32 %v16991_v35, %v5194_v49  ;;  %v16994_v14 = vld [vmem:[#allocation5_spill] sm:$0xff]  ;;  %v15824_v20 = vpop.f32.mrf.mxu3  ;;  %v16999_v34 = vld [vmem:[#allocation22_spill] sm:$0xff]  ;;  %v5510_v17 = vadd.f32 %v5494_v61, %v17002_v23 }
 0x605   : > { %v5240_v2 = vadd.f32 %v16995_v37, %v16994_v14  ;;  %v16998_v49 = vld [vmem:[#allocation13_spill] sm:$0xff]  ;;  %v17004_v37 = vld [vmem:[#allocation27_spill] sm:$0xff]  ;;  %v12586_v23 = vunpack.i.l.bf16 %v15635_v22  ;;  %v17014_v40 = vld [vmem:[#allocation30_spill] sm:$0xff] }
 0x606   : > { %v5286_v35 = vadd.f32 %v16999_v34, %v16998_v49  ;;  %v5508_v25 = vadd.f32 %v5492_v55, %v17000_v57  ;;  %v5511_v14 = vadd.f32 %v5495_v1, %v17003_v63  ;;  %v5496_v4 = vadd.f32 %v17004_v37, %v5217_v6  ;;  %v17007_v34 = vld [vmem:[#allocation31_spill] sm:$0xff]  ;;  %v17013_v6 = vld [vmem:[#allocation29_spill] sm:$0xff] }
 0x607   : > { %v17008_v57 = vld [vmem:[#allocation39_spill] sm:$0xff]  ;;  %v5498_v63 = vadd.f32 %v17013_v6, %v5263_v13  ;;  %v6145_v13 = vadd.f32 %v15363_v16, %v5822_v31  ;;  %v17023_v16 = vunpack.i.h.bf16 %v15635_v22  ;;  %v17026_v6 = vld [vmem:[#allocation8_spill] sm:$0xff] }
 0x608   : > { %12161 = vmatmul.msk.f32.vlgmr.msrb.gmra.mxu0 %vm392_vm1, %v7657_v8  ;;  %v5776_v55 = vadd.f32 %v17008_v57, %v17007_v34  ;;  %v5499_v37 = vadd.f32 %v17014_v40, %v5286_v35  ;;  %v17019_v34 = vld [vmem:[#allocation35_spill] sm:$0xff]  ;;  %v15870_v35 = vsel %vm2329_vm4, %v15834_v56, %v12592_v26 }
 0x609   : > { %12162 = vmatmul.msk.f32.vlgmr.msrb.gmra.mxu1 %vm392_vm1, %v7657_v8  ;;  %12163 = vmatmul.msk.f32.vlgmr.msrb.gmra.mxu2 %vm392_vm1, %v7657_v8  ;;  %v17020_v57 = vld [vmem:[#allocation43_spill] sm:$0xff]  ;;  %v5514_v40 = vadd.f32 %v5498_v63, %v17026_v6 }
 0x60a   : > { %12164 = vmatmul.msk.f32.vlgmr.msrb.gmra.mxu3 %vm392_vm1, %v7657_v8  ;;  %7922 = vmatpush.msrb.mxu0 %v7483_v43  ;;  %v17001_v8 = vld [vmem:[#allocation3_spill] sm:$0xff]  ;;  %v5868_v62 = vadd.f32 %v17020_v57, %v17019_v34  ;;  %v15894_v34 = vpop.f32.mrf.mxu2 }
 0x60b   : > { %7942 = vmatpush.msrb.mxu1 %v7484_v38  ;;  %7962 = vmatpush.msrb.mxu2 %v7485_v53  ;;  %v5509_v43 = vadd.f32 %v5493_v10, %v17001_v8  ;;  %v15836_v38 = vpop.f32.mrf.mxu0  ;;  %v17006_v53 = vld [vmem:[#allocation28_spill] sm:$0xff]  ;;  %v12600_v51 = vpop.permute.xlu1 %12599 }
 0x60c   : > { %7982 = vmatpush.msrb.mxu3 %v15615_v0  ;;  %17005 = vst [vmem:[#allocation16_spill] sm:$0xff] %v15836_v38  ;;  %v5497_v49 = vadd.f32 %v17006_v53, %v5240_v2  ;;  %v17009_v10 = vld [vmem:[#allocation32_spill] sm:$0xff]  ;;  %v15844_v0 = vpop.f32.mrf.mxu1  ;;  %v17017_v2 = vld [vmem:[#allocation34_spill] sm:$0xff] }
 0x60d   : > { %v17010_v8 = vld [vmem:[#allocation40_spill] sm:$0xff]  ;;  %17011 = vst [vmem:[#allocation2_spill] sm:$0xff] %v15844_v0  ;;  %v17018_v53 = vld [vmem:[#allocation42_spill] sm:$0xff]  ;;  %v6143_v0 = vadd.f32 %v15327_v46, %v5776_v55  ;;  %v6147_v46 = vadd.f32 %v6063_v48, %v5868_v62  ;;  %v17025_v55 = vld [vmem:[#allocation9_spill] sm:$0xff] }
 0x60e   : > { %v5799_v61 = vadd.f32 %v17010_v8, %v17009_v10  ;;  %v15846_v1 = vpop.permute.xlu0 %10707  ;;  %v5845_v58 = vadd.f32 %v17018_v53, %v17017_v2  ;;  %v17021_v10 = vld [vmem:[#allocation36_spill] sm:$0xff]  ;;  %v17027_v48 = vld [vmem:[#allocation14_spill] sm:$0xff]  ;;  %v17028_v2 = vld [vmem:[#allocation37_spill] sm:$0xff]  ;;  %v12602_v53 = vunpack.i.h.bf16 %v12600_v51 }
 0x60f   : > { %17012 = vst [vmem:[#allocation17_spill] sm:$0xff] %v15846_v1  ;;  %v17022_v8 = vld [vmem:[#allocation44_spill] sm:$0xff]  ;;  %v5914_v22 = vadd.f32 %v15307_v39, %v17028_v2  ;;  %v6159_v63 = vadd.f32 %v6143_v0, %v5508_v25 }
 0x610   : > { %v5891_v28 = vadd.f32 %v17022_v8, %v17021_v10  ;;  %v6144_v1 = vadd.f32 %v15329_v3, %v5799_v61  ;;  %12165 = vmatmul.msk.f32.vlgmr.msra.gmra.mxu0 %vm392_vm1, %v15790_v44  ;;  %v6146_v11 = vadd.f32 %v15367_v12, %v5845_v58  ;;  %v15876_v3 = vsel %vm2329_vm4, %v12592_v26, %v12586_v23  ;;  %v17024_v58 = vld [vmem:[#allocation11_spill] sm:$0xff] }
 0x611   : > { %12166 = vmatmul.msk.f32.vlgmr.msra.gmra.mxu1 %vm392_vm1, %v15790_v44  ;;  %12167 = vmatmul.msk.f32.vlgmr.msra.gmra.mxu2 %vm392_vm1, %v15790_v44  ;;  %v15881_v12 = vsel %vm2329_vm4, %v12586_v23, %v17023_v16  ;;  %v5512_v31 = vadd.f32 %v5496_v4, %v17024_v58  ;;  %v5513_v61 = vadd.f32 %v5497_v49, %v17025_v55  ;;  %v17029_v4 = vld [vmem:[#allocation38_spill] sm:$0xff]  ;;  %v12601_v55 = vunpack.i.l.bf16 %v12600_v51 }
 0x612   : > { %12168 = vmatmul.msk.f32.vlgmr.msra.gmra.mxu3 %vm392_vm1, %v15790_v44  ;;  %8056 = vmatpush.msra.mxu0 %v15870_v35  ;;  %v15888_v62 = vpop.f32.mrf.mxu3  ;;  %v5515_v26 = vadd.f32 %v5499_v37, %v17027_v48  ;;  %v6148_v23 = vadd.f32 %v15804_v5, %v5891_v28  ;;  %v5937_v49 = vadd.f32 %v15309_v36, %v17029_v4  ;;  %v12597_v28 = vunpack.i.h.bf16 %v15652_v50 }
 0x613   : > { %8076 = vmatpush.msra.mxu1 %v15876_v3  ;;  %8096 = vmatpush.msra.mxu2 %v15881_v12  ;;  %v6160_v57 = vadd.f32 %v6144_v1, %v5509_v43  ;;  %v6161_v10 = vadd.f32 %v6145_v13, %v5510_v17  ;;  %v6162_v16 = vadd.f32 %v6146_v11, %v5511_v14  ;;  %v17030_v17 = vunpack.i.l.bf16 %v15652_v50  ;;  %v15925_v50 = vpop.permute.xlu2 %8021 }
 0x614   : > { %8116 = vmatpush.msra.mxu3 %v15665_v21  ;;  %v6163_v37 = vadd.f32 %v6147_v46, %v5512_v31  ;;  %v6149_v58 = vadd.f32 %v6109_v15, %v5914_v22  ;;  %v6164_v38 = vadd.f32 %v6148_v23, %v5513_v61  ;;  %v6150_v36 = vadd.f32 %v15824_v20, %v5937_v49 }
 0x615   : > { %v15899_v8 = vpop.f32.mrf.mxu0  ;;  %v15910_v25 = vsel %vm2329_vm4, %v17030_v17, %v12602_v53  ;;  %v15917_v15 = vsel %vm2329_vm4, %v12602_v53, %v12597_v28  ;;  %v15931_v0 = vsel %vm2329_vm4, %v12597_v28, %v12601_v55  ;;  %v15940_v51 = vsel %vm2329_vm4, %v12601_v55, %v15925_v50 }
 0x616   : > { %v6265_v39 = vpop.permute.xlu0 %6264  ;;  %v15901_v6 = vpop.f32.mrf.mxu1  ;;  %v6165_v11 = vadd.f32 %v6149_v58, %v5514_v40  ;;  %v6166_v23 = vadd.f32 %v6150_v36, %v5515_v26 }
 0x617   : > { %v6267_v5 = vadd.f32 %v6265_v39, %v6159_v63  ;;  %v6268_v48 = vadd.f32 %v6265_v39, %v6160_v57  ;;  %v6269_v2 = vadd.f32 %v6265_v39, %v6161_v10  ;;  %v6270_v43 = vadd.f32 %v6265_v39, %v6162_v16 }
 0x618   : > { %12169 = vmatmul.msk.f32.vlgmr.msrb.gmra.mxu0 %vm392_vm1, %v15790_v44  ;;  %v6271_v1 = vadd.f32 %v6265_v39, %v6163_v37  ;;  %v6272_v31 = vadd.f32 %v6265_v39, %v6164_v38  ;;  %v6273_v57 = vadd.f32 %v6265_v39, %v6165_v11  ;;  %v6274_v26 = vadd.f32 %v6265_v39, %v6166_v23 }
 0x619   : > { %12170 = vmatmul.msk.f32.vlgmr.msrb.gmra.mxu1 %vm392_vm1, %v15790_v44  ;;  %12171 = vmatmul.msk.f32.vlgmr.msrb.gmra.mxu2 %vm392_vm1, %v15790_v44  ;;  %v15920_v20 = vmul.f32 %v6267_v5, %v15334_v19  ;;  %v15923_v14 = vmul.f32 %v6268_v48, %v15337_v45  ;;  %v15934_v13 = vmul.f32 %v6269_v2, %v15343_v54 }
 0x61a   : > { %12172 = vmatmul.msk.f32.vlgmr.msrb.gmra.mxu3 %vm392_vm1, %v15790_v44  ;;  %8136 = vmatpush.msrb.mxu0 %v15910_v25  ;;  %v15946_v61 = vmul.f32 %v6270_v43, %v15355_v9  ;;  %v15958_v38 = vmul.f32 %v6271_v1, %v15378_v32  ;;  %v15966_v58 = vmul.f32 %v6272_v31, %v15394_v7 }
 0x61b   : > { %8156 = vmatpush.msrb.mxu1 %v15917_v15  ;;  %8176 = vmatpush.msrb.mxu2 %v15931_v0  ;;  %v6283_v44 = vadd.f32 %v15923_v14, %v15920_v20  ;;  %v6293_v40 = vmul.f32 %v15920_v20, %v15920_v20  ;;  %v6294_v22 = vmul.f32 %v15923_v14, %v15923_v14 }
 0x61c   : > { %8196 = vmatpush.msrb.mxu3 %v15940_v51  ;;  %v6544_v46 = vpop.f32.mrf.mxu2  ;;  %v6295_v10 = vmul.f32 %v15934_v13, %v15934_v13  ;;  %v6296_v55 = vmul.f32 %v15946_v61, %v15946_v61  ;;  %v15979_v39 = vmul.f32 %v6273_v57, %v15410_v27  ;;  %v6297_v48 = vmul.f32 %v15958_v38, %v15958_v38 }
 0x61d   : > { %v6564_v53 = vpop.f32.mrf.mxu3  ;;  %v15952_v4 = vpop.f32.mrf.mxu0  ;;  %v6284_v49 = vadd.f32 %v6283_v44, %v15934_v13  ;;  %v6301_v16 = vadd.f32 %v6294_v22, %v6293_v40  ;;  %v15988_v43 = vmul.f32 %v6274_v26, %v15416_v41  ;;  %v6298_v1 = vmul.f32 %v15966_v58, %v15966_v58 }
 0x61e   : > { %v15955_v63 = vpop.f32.mrf.mxu1 }
 0x61f   : > { %v6285_v37 = vadd.f32 %v6284_v49, %v15946_v61  ;;  %v6302_v28 = vadd.f32 %v6301_v16, %v6295_v10  ;;  %17031 = vst [vmem:[#allocation4_spill] sm:$0xff] %v15988_v43  ;;  %v6299_v49 = vmul.f32 %v15979_v39, %v15979_v39  ;;  %v6300_v16 = vmul.f32 %v15988_v43, %v15988_v43 }
 0x620   : > { %12173 = vmatmul.msk.f32.vlgmr.msra.gmra.mxu0 %vm392_vm1, %v15808_v60 }
 0x621   : > { %12174 = vmatmul.msk.f32.vlgmr.msra.gmra.mxu1 %vm392_vm1, %v15808_v60  ;;  %12175 = vmatmul.msk.f32.vlgmr.msra.gmra.mxu2 %vm392_vm1, %v15808_v60  ;;  %v6286_v5 = vadd.f32 %v6285_v37, %v15958_v38  ;;  %v6303_v2 = vadd.f32 %v6302_v28, %v6296_v55 }
 0x622   : > { %12176 = vmatmul.msk.f32.vlgmr.msra.gmra.mxu3 %vm392_vm1, %v15808_v60  ;;  %8221 = vmatpush.msra.mxu0 %v15834_v56 }
 0x623   : > { %8241 = vmatpush.msra.mxu1 %v15870_v35  ;;  %8261 = vmatpush.msra.mxu2 %v15876_v3  ;;  %v6287_v36 = vadd.f32 %v6286_v5, %v15966_v58  ;;  %v6304_v11 = vadd.f32 %v6303_v2, %v6297_v48 }
 0x624   : > { %8281 = vmatpush.msra.mxu3 %v15881_v12  ;;  %v6627_v17 = vpop.f32.mrf.mxu2 }
 0x625   : > { %v6628_v44 = vadd.f32 %v6627_v17, %v15894_v34  ;;  %v6647_v31 = vpop.f32.mrf.mxu3  ;;  %v15993_v40 = vpop.f32.mrf.mxu0  ;;  %v6288_v35 = vadd.f32 %v6287_v36, %v15979_v39  ;;  %v6305_v57 = vadd.f32 %v6304_v11, %v6298_v1 }
 0x626   : > { %v6648_v22 = vadd.f32 %v6647_v31, %v15888_v62  ;;  %v15997_v23 = vpop.f32.mrf.mxu1 }
 0x627   : > { %v6289_v10 = vadd.f32 %v6288_v35, %v15988_v43  ;;  %v6306_v37 = vadd.f32 %v6305_v57, %v6299_v49  ;;  %v8549_v49 = vpop.permute.xlu2 %8548  ;;  %v17032_v57 = vmov 0.0  }
 0x628   : > { %12177 = vmatmul.msk.f32.vlgmr.msrb.gmra.mxu0 %vm392_vm1, %v15808_v60 }
 0x629   : > { %6290 = vadd.xlane.f32.xlu2 %v6289_v10  ;;  %12178 = vmatmul.msk.f32.vlgmr.msrb.gmra.mxu1 %vm392_vm1, %v15808_v60  ;;  %v6307_v62 = vadd.f32 %v6306_v37, %v6300_v16 }
 0x62a   : > { %12179 = vmatmul.msk.f32.vlgmr.msrb.gmra.mxu2 %vm392_vm1, %v15808_v60  ;;  %12180 = vmatmul.msk.f32.vlgmr.msrb.gmra.mxu3 %vm392_vm1, %v15808_v60 }
 0x62b   : > { %8301 = vmatpush.msrb.mxu0 %v15665_v21  ;;  %8321 = vmatpush.msrb.mxu1 %v15910_v25 }
 0x62c   : > { %6308 = vadd.xlane.f32.xlu0 %v6307_v62  ;;  %8341 = vmatpush.msrb.mxu2 %v15917_v15  ;;  %v6707_v34 = vpop.f32.mrf.mxu2 }
 0x62d   : > { %8361 = vmatpush.msrb.mxu3 %v15931_v0  ;;  %v6708_v26 = vadd.f32 %v6707_v34, %v6544_v46  ;;  %v6727_v55 = vpop.f32.mrf.mxu3  ;;  %v16016_v28 = vpop.f32.mrf.mxu0 }
 0x62e   : > { %v6728_v5 = vadd.f32 %v6727_v55, %v6564_v53  ;;  %v16018_v48 = vpop.f32.mrf.mxu1 }
 0x630   : > { %12181 = vmatmul.msk.f32.vlgmr.msra.gmra.mxu0 %vm392_vm1, %v15681_v24 }
 0x631   : > { %12182 = vmatmul.msk.f32.vlgmr.msra.gmra.mxu1 %vm392_vm1, %v15681_v24  ;;  %8387 = vmatpush.msra.mxu0 %v15876_v3 }
 0x632   : > { %12183 = vmatmul.msk.f32.vlgmr.msra.gmra.mxu2 %vm392_vm1, %v15681_v24  ;;  %12184 = vmatmul.msk.f32.vlgmr.msra.gmra.mxu3 %vm392_vm1, %v15681_v24 }
 0x633   : > { %8407 = vmatpush.msra.mxu1 %v15881_v12  ;;  %8427 = vmatpush.msra.mxu2 %v15665_v21  ;;  %v8368_v21 = vsel %vm2329_vm4, %v15925_v50, %v15834_v56 }
 0x634   : > { %8447 = vmatpush.msra.mxu3 %v15910_v25  ;;  %v6794_v60 = vpop.f32.mrf.mxu2 }
 0x635   : > { %v16032_v46 = vadd.f32 %v6794_v60, %v6628_v44  ;;  %v6814_v53 = vpop.f32.mrf.mxu3  ;;  %v16034_v2 = vpop.f32.mrf.mxu0 }
 0x636   : > { %v16036_v36 = vadd.f32 %v6814_v53, %v6648_v22  ;;  %v16038_v3 = vpop.f32.mrf.mxu1  ;;  %v8367_v44 = vpop.permute.xlu1 %8366  ;;  %v17034_v53 = vld [vmem:[#allocation2_spill] sm:$0xff] }
 0x638   : > { %12185 = vmatmul.msk.f32.vlgmr.msrb.gmra.mxu0 %vm392_vm1, %v15681_v24 }
 0x639   : > { %12186 = vmatmul.msk.f32.vlgmr.msrb.gmra.mxu1 %vm392_vm1, %v15681_v24  ;;  %8467 = vmatpush.msrb.mxu0 %v15917_v15 }
 0x63a   : > { %12187 = vmatmul.msk.f32.vlgmr.msrb.gmra.mxu2 %vm392_vm1, %v15681_v24  ;;  %12188 = vmatmul.msk.f32.vlgmr.msrb.gmra.mxu3 %vm392_vm1, %v15681_v24 }
 0x63b   : > { %8487 = vmatpush.msrb.mxu1 %v15931_v0  ;;  %8507 = vmatpush.msrb.mxu2 %v15940_v51 }
 0x63c   : > { %8527 = vmatpush.msrb.mxu3 %v8368_v21  ;;  %v6874_v12 = vpop.f32.mrf.mxu2  ;;  %v6608_v21 = vadd.f32 %v15955_v63, %v17034_v53 }
 0x63d   : > { %v16054_v25 = vadd.f32 %v6874_v12, %v6708_v26  ;;  %v6894_v17 = vpop.f32.mrf.mxu3  ;;  %v6968_v15 = vpop.f32.mrf.mxu0 }
 0x63e   : > { %v16056_v1 = vadd.f32 %v6894_v17, %v6728_v5  ;;  %v6988_v11 = vpop.f32.mrf.mxu1  ;;  %v16099_v43 = vpop.permute.xlu1 %8876 }
 0x640   : > { %12189 = vmatmul.msk.f32.vlgmr.msra.gmra.mxu0 %vm392_vm1, %v8367_v44 }
 0x641   : > { %12190 = vmatmul.msk.f32.vlgmr.msra.gmra.mxu1 %vm392_vm1, %v8367_v44  ;;  %8567 = vmatpush.msra.mxu0 %v15455_v30 }
 0x642   : > { %12191 = vmatmul.msk.f32.vlgmr.msra.gmra.mxu2 %vm392_vm1, %v8367_v44  ;;  %12192 = vmatmul.msk.f32.vlgmr.msra.gmra.mxu3 %vm392_vm1, %v8367_v44 }
 0x643   : > { %8587 = vmatpush.msra.mxu1 %v15434_v42  ;;  %8607 = vmatpush.msra.mxu2 %v15437_v33 }
 0x644   : > { %8627 = vmatpush.msra.mxu3 %v15449_v52  ;;  %v7008_v24 = vpop.f32.mrf.mxu2 }
 0x645   : > { %v7028_v56 = vpop.f32.mrf.mxu3  ;;  %v16066_v50 = vpop.f32.mrf.mxu0 }
 0x646   : > { %v16068_v0 = vpop.f32.mrf.mxu1 }
 0x648   : > { %12193 = vmatmul.msk.f32.vlgmr.msrb.gmra.mxu0 %vm392_vm1, %v8367_v44 }
 0x649   : > { %12194 = vmatmul.msk.f32.vlgmr.msrb.gmra.mxu1 %vm392_vm1, %v8367_v44  ;;  %8647 = vmatpush.msrb.mxu0 %v15458_v59 }
 0x64a   : > { %12195 = vmatmul.msk.f32.vlgmr.msrb.gmra.mxu2 %vm392_vm1, %v8367_v44  ;;  %12196 = vmatmul.msk.f32.vlgmr.msrb.gmra.mxu3 %vm392_vm1, %v8367_v44 }
 0x64b   : > { %8667 = vmatpush.msrb.mxu1 %v15452_v18  ;;  %8687 = vmatpush.msrb.mxu2 %v15461_v29 }
 0x64c   : > { %8707 = vmatpush.msrb.mxu3 %v15440_v47  ;;  %v7088_v51 = vpop.f32.mrf.mxu2 }
 0x64d   : > { %v7108_v31 = vpop.f32.mrf.mxu3  ;;  %v7133_v35 = vpop.f32.mrf.mxu0 }
 0x64e   : > { %v7153_v22 = vpop.f32.mrf.mxu1  ;;  %v7134_v5 = vadd.f32 %v7133_v35, %v6968_v15 }
 0x64f   : > { %v7154_v12 = vadd.f32 %v7153_v22, %v6988_v11 }
 0x650   : > { %12197 = vmatmul.msk.f32.vlgmr.msra.gmra.mxu0 %vm392_vm1, %v8549_v49 }
 0x651   : > { %12198 = vmatmul.msk.f32.vlgmr.msra.gmra.mxu1 %vm392_vm1, %v8549_v49  ;;  %8731 = vmatpush.msra.mxu0 %v17032_v57 }
 0x652   : > { %12199 = vmatmul.msk.f32.vlgmr.msra.gmra.mxu2 %vm392_vm1, %v8549_v49  ;;  %12200 = vmatmul.msk.f32.vlgmr.msra.gmra.mxu3 %vm392_vm1, %v8549_v49 }
 0x653   : > { %8751 = vmatpush.msra.mxu1 %v15455_v30  ;;  %8771 = vmatpush.msra.mxu2 %v15434_v42  ;;  %v17033_v30 = vld [vmem:[#allocation16_spill] sm:$0xff] }
 0x654   : > { %8791 = vmatpush.msra.mxu3 %v15437_v33  ;;  %v7173_v10 = vpop.f32.mrf.mxu2  ;;  %v6588_v55 = vadd.f32 %v15952_v4, %v17033_v30  ;;  %v6898_v4 = vadd.f32 %v16018_v48, %v6608_v21  ;;  %v17035_v30 = vld [vmem:[#allocation45_spill] sm:$0xff]  ;;  %v6668_v48 = vadd.f32 %v15993_v40, %v15899_v8 }
 0x655   : > { %v7174_v16 = vadd.f32 %v7173_v10, %v7008_v24  ;;  %v7193_v37 = vpop.f32.mrf.mxu3  ;;  %v7213_v62 = vpop.f32.mrf.mxu0 }
 0x656   : > { %v7194_v34 = vadd.f32 %v7193_v37, %v7028_v56  ;;  %v7233_v26 = vpop.f32.mrf.mxu1  ;;  %v6897_v56 = vadd.f32 %v16016_v28, %v6588_v55  ;;  %v12605_v28 = vpop.permute.xlu2 %12604  ;;  %v7214_v11 = vadd.f32 %v7213_v62, %v16066_v50 }
 0x658   : > { %12201 = vmatmul.msk.f32.vlgmr.msrb.gmra.mxu0 %vm392_vm1, %v8549_v49 }
 0x659   : > { %12202 = vmatmul.msk.f32.vlgmr.msrb.gmra.mxu1 %vm392_vm1, %v8549_v49  ;;  %8811 = vmatpush.msrb.mxu0 %v15449_v52 }
 0x65a   : > { %12203 = vmatmul.msk.f32.vlgmr.msrb.gmra.mxu2 %vm392_vm1, %v8549_v49  ;;  %12204 = vmatmul.msk.f32.vlgmr.msrb.gmra.mxu3 %vm392_vm1, %v8549_v49 }
 0x65b   : > { %8831 = vmatpush.msrb.mxu1 %v15458_v59  ;;  %8851 = vmatpush.msrb.mxu2 %v15452_v18 }
 0x65c   : > { %8871 = vmatpush.msrb.mxu3 %v15461_v29  ;;  %v7253_v60 = vpop.f32.mrf.mxu2 }
 0x65d   : > { %v7254_v17 = vadd.f32 %v7253_v60, %v7088_v51  ;;  %v7273_v44 = vpop.f32.mrf.mxu3  ;;  %v7299_v24 = vpop.f32.mrf.mxu0 }
 0x65e   : > { %v7274_v49 = vadd.f32 %v7273_v44, %v7108_v31  ;;  %v7442_v10 = vadd.f32 %v7299_v24, %v7134_v5  ;;  %v7319_v37 = vpop.f32.mrf.mxu1  ;;  %v7234_v31 = vadd.f32 %v7233_v26, %v16068_v0  ;;  %v12606_v26 = vunpack.i.l.bf16 %v12605_v28  ;;  %v17036_v24 = vld [vmem:[#allocation47_spill] sm:$0xff] }
 0x65f   : > { %v7443_v15 = vadd.f32 %v7319_v37, %v7154_v12 }
 0x660   : > { %v16102_v35 = vadd.f32 %v7442_v10, %v6897_v56  ;;  %12205 = vmatmul.msk.f32.vlgmr.msra.gmra.mxu0 %vm392_vm1, %v17035_v30  ;;  %v12622_v56 = vunpack.i.h.bf16 %v17036_v24 }
 0x661   : > { %v16106_v63 = vadd.f32 %v7443_v15, %v6898_v4  ;;  %12206 = vmatmul.msk.f32.vlgmr.msra.gmra.mxu1 %vm392_vm1, %v17035_v30  ;;  %8895 = vmatpush.msra.mxu0 %v15434_v42  ;;  %v6688_v42 = vadd.f32 %v15997_v23, %v15901_v6  ;;  %v12610_v23 = vpop.permute.xlu1 %12609  ;;  %v12621_v4 = vunpack.i.l.bf16 %v17036_v24 }
 0x662   : > { %12207 = vmatmul.msk.f32.vlgmr.msra.gmra.mxu2 %vm392_vm1, %v17035_v30  ;;  %12208 = vmatmul.msk.f32.vlgmr.msra.gmra.mxu3 %vm392_vm1, %v17035_v30 }
 0x663   : > { %8915 = vmatpush.msra.mxu1 %v15437_v33  ;;  %8935 = vmatpush.msra.mxu2 %v15449_v52  ;;  %v6901_v33 = vadd.f32 %v16034_v2, %v6668_v48  ;;  %v6902_v8 = vadd.f32 %v16038_v3, %v6688_v42  ;;  %v12612_v2 = vunpack.i.h.bf16 %v12610_v23 }
 0x664   : > { %8955 = vmatpush.msra.mxu3 %v15458_v59  ;;  %v7339_v51 = vpop.f32.mrf.mxu2 }
 0x665   : > { %v7444_v22 = vadd.f32 %v7339_v51, %v7174_v16  ;;  %v7359_v55 = vpop.f32.mrf.mxu3  ;;  %v7379_v5 = vpop.f32.mrf.mxu0 }
 0x666   : > { %v7445_v60 = vadd.f32 %v7359_v55, %v7194_v34  ;;  %v7446_v52 = vadd.f32 %v7379_v5, %v7214_v11  ;;  %v7399_v53 = vpop.f32.mrf.mxu1  ;;  %v17037_v5 = vld [vmem:[#allocation46_spill] sm:$0xff] }
 0x667   : > { %v16127_v40 = vadd.f32 %v7444_v22, %v16032_v46  ;;  %v7447_v59 = vadd.f32 %v7399_v53, %v7234_v31  ;;  %v12615_v46 = vpop.permute.xlu2 %12614 }
 0x668   : > { %v16130_v50 = vadd.f32 %v7445_v60, %v16036_v36  ;;  %v16132_v6 = vadd.f32 %v7446_v52, %v6901_v33  ;;  %12209 = vmatmul.msk.f32.vlgmr.msrb.gmra.mxu0 %vm392_vm1, %v17035_v30  ;;  %v12611_v36 = vunpack.i.l.bf16 %v12610_v23  ;;  %v12616_v44 = vunpack.i.l.bf16 %v12615_v46 }
 0x669   : > { %v16136_v0 = vadd.f32 %v7447_v59, %v6902_v8  ;;  %12210 = vmatmul.msk.f32.vlgmr.msrb.gmra.mxu1 %vm392_vm1, %v17035_v30  ;;  %8975 = vmatpush.msrb.mxu0 %v15452_v18  ;;  %v12607_v18 = vunpack.i.h.bf16 %v12605_v28  ;;  %v16185_v28 = vpop.permute.xlu1 %9074 }
 0x66a   : > { %12211 = vmatmul.msk.f32.vlgmr.msrb.gmra.mxu2 %vm392_vm1, %v17035_v30  ;;  %12212 = vmatmul.msk.f32.vlgmr.msrb.gmra.mxu3 %vm392_vm1, %v17035_v30  ;;  %v12617_v30 = vunpack.i.h.bf16 %v12615_v46  ;;  %v9080_v48 = vsel %vm3588_vm5, %v12616_v44, %v12622_v56  ;;  %v16206_v42 = vsel %vm3588_vm5, %v12621_v4, %v16185_v28  ;;  %v9256_v33 = vsel %vm3588_vm5, %v16185_v28, %v12611_v36 }
 0x66b   : > { %8995 = vmatpush.msrb.mxu1 %v15461_v29  ;;  %9015 = vmatpush.msrb.mxu2 %v15440_v47 }
 0x66c   : > { %v7419_v3 = vpop.f32.mrf.mxu2  ;;  %9035 = vmatpush.msrb.mxu3 %v17032_v57  ;;  %v9076_v57 = vsel %vm3588_vm5, %v12611_v36, %v12612_v2  ;;  %v16197_v11 = vsel %vm3588_vm5, %v12622_v56, %v12617_v30  ;;  %v16200_v51 = vsel %vm3588_vm5, %v12617_v30, %v12621_v4 }
 0x66d   : > { %v7448_v16 = vadd.f32 %v7419_v3, %v7254_v17  ;;  %v7439_v62 = vpop.f32.mrf.mxu3  ;;  %v16148_v34 = vpop.f32.mrf.mxu0  ;;  %v16176_v17 = vsel %vm3588_vm5, %v12607_v18, %v12616_v44 }
 0x66e   : > { %v7449_v21 = vadd.f32 %v7439_v62, %v7274_v49  ;;  %v16150_v12 = vpop.f32.mrf.mxu1 }
 0x66f   : > { %v16153_v29 = vadd.f32 %v7448_v16, %v16054_v25  ;;  %v16168_v25 = vsel %vm3588_vm5, %v12612_v2, %v12606_v26  ;;  %v9255_v44 = vpop.permute.xlu2 %9254 }
 0x670   : > { %v16156_v47 = vadd.f32 %v7449_v21, %v16056_v1  ;;  %12213 = vmatmul.msk.f32.vlgmr.msra.gmra.mxu0 %vm392_vm1, %v16099_v43  ;;  %v16171_v1 = vsel %vm3588_vm5, %v12606_v26, %v12607_v18 }
 0x671   : > { %12214 = vmatmul.msk.f32.vlgmr.msra.gmra.mxu1 %vm392_vm1, %v16099_v43  ;;  %9109 = vmatpush.msra.mxu0 %v9076_v57 }
 0x672   : > { %12215 = vmatmul.msk.f32.vlgmr.msra.gmra.mxu2 %vm392_vm1, %v16099_v43  ;;  %12216 = vmatmul.msk.f32.vlgmr.msra.gmra.mxu3 %vm392_vm1, %v16099_v43 }
 0x673   : > { %9129 = vmatpush.msra.mxu1 %v16168_v25  ;;  %9149 = vmatpush.msra.mxu2 %v16171_v1 }
 0x674   : > { %9169 = vmatpush.msra.mxu3 %v16176_v17  ;;  %v7553_v49 = vpop.f32.mrf.mxu2 }
 0x675   : > { %v7573_v10 = vpop.f32.mrf.mxu3  ;;  %v16180_v37 = vpop.f32.mrf.mxu0 }
 0x676   : > { %v16183_v15 = vpop.f32.mrf.mxu1 }
 0x678   : > { %12217 = vmatmul.msk.f32.vlgmr.msrb.gmra.mxu0 %vm392_vm1, %v16099_v43 }
 0x679   : > { %12218 = vmatmul.msk.f32.vlgmr.msrb.gmra.mxu1 %vm392_vm1, %v16099_v43  ;;  %9189 = vmatpush.msrb.mxu0 %v9080_v48 }
 0x67a   : > { %12219 = vmatmul.msk.f32.vlgmr.msrb.gmra.mxu2 %vm392_vm1, %v16099_v43  ;;  %12220 = vmatmul.msk.f32.vlgmr.msrb.gmra.mxu3 %vm392_vm1, %v16099_v43 }
 0x67b   : > { %9209 = vmatpush.msrb.mxu1 %v16197_v11  ;;  %9229 = vmatpush.msrb.mxu2 %v16200_v51 }
 0x67c   : > { %9249 = vmatpush.msrb.mxu3 %v16206_v42  ;;  %v7633_v31 = vpop.f32.mrf.mxu2 }
 0x67d   : > { %v7653_v22 = vpop.f32.mrf.mxu3  ;;  %v7678_v55 = vpop.f32.mrf.mxu0 }
 0x67e   : > { %v7698_v43 = vpop.f32.mrf.mxu1  ;;  %v7679_v46 = vadd.f32 %v7678_v55, %v16148_v34 }
 0x67f   : > { %v7699_v36 = vadd.f32 %v7698_v43, %v16150_v12  ;;  %v12625_v12 = vpop.permute.xlu1 %12624 }
 0x680   : > { %12221 = vmatmul.msk.f32.vlgmr.msra.gmra.mxu0 %vm392_vm1, %v17037_v5 }
 0x681   : > { %12222 = vmatmul.msk.f32.vlgmr.msra.gmra.mxu1 %vm392_vm1, %v17037_v5  ;;  %9275 = vmatpush.msra.mxu0 %v9256_v33 }
 0x682   : > { %12223 = vmatmul.msk.f32.vlgmr.msra.gmra.mxu2 %vm392_vm1, %v17037_v5  ;;  %12224 = vmatmul.msk.f32.vlgmr.msra.gmra.mxu3 %vm392_vm1, %v17037_v5 }
 0x683   : > { %9295 = vmatpush.msra.mxu1 %v9076_v57  ;;  %9315 = vmatpush.msra.mxu2 %v16168_v25 }
 0x684   : > { %9335 = vmatpush.msra.mxu3 %v16171_v1  ;;  %v7718_v60 = vpop.f32.mrf.mxu2 }
 0x685   : > { %v7719_v52 = vadd.f32 %v7718_v60, %v7553_v49  ;;  %v7738_v53 = vpop.f32.mrf.mxu3  ;;  %v7758_v8 = vpop.f32.mrf.mxu0  ;;  %v12626_v60 = vunpack.i.l.bf16 %v12625_v12 }
 0x686   : > { %v7739_v59 = vadd.f32 %v7738_v53, %v7573_v10  ;;  %v7778_v23 = vpop.f32.mrf.mxu1 }
 0x688   : > { %12225 = vmatmul.msk.f32.vlgmr.msrb.gmra.mxu0 %vm392_vm1, %v17037_v5 }
 0x689   : > { %12226 = vmatmul.msk.f32.vlgmr.msrb.gmra.mxu1 %vm392_vm1, %v17037_v5  ;;  %9355 = vmatpush.msrb.mxu0 %v16176_v17 }
 0x68a   : > { %12227 = vmatmul.msk.f32.vlgmr.msrb.gmra.mxu2 %vm392_vm1, %v17037_v5  ;;  %12228 = vmatmul.msk.f32.vlgmr.msrb.gmra.mxu3 %vm392_vm1, %v17037_v5 }
 0x68b   : > { %9375 = vmatpush.msrb.mxu1 %v9080_v48  ;;  %9395 = vmatpush.msrb.mxu2 %v16197_v11 }
 0x68c   : > { %9415 = vmatpush.msrb.mxu3 %v16200_v51  ;;  %v7798_v2 = vpop.f32.mrf.mxu2 }
 0x68d   : > { %v7799_v3 = vadd.f32 %v7798_v2, %v7633_v31  ;;  %v7818_v16 = vpop.f32.mrf.mxu3  ;;  %v7844_v62 = vpop.f32.mrf.mxu0 }
 0x68e   : > { %v7819_v18 = vadd.f32 %v7818_v16, %v7653_v22  ;;  %v7987_v26 = vadd.f32 %v7844_v62, %v7679_v46  ;;  %v7864_v21 = vpop.f32.mrf.mxu1 }
 0x68f   : > { %v7988_v57 = vadd.f32 %v7864_v21, %v7699_v36 }
 0x690   : > { %v16235_v24 = vadd.f32 %v7987_v26, %v16102_v35  ;;  %12229 = vmatmul.msk.f32.vlgmr.msra.gmra.mxu0 %vm392_vm1, %v9255_v44  ;;  %v7759_v35 = vadd.f32 %v7758_v8, %v16180_v37  ;;  %v16259_v37 = vpop.permute.xlu2 %9601 }
 0x691   : > { %v16239_v34 = vadd.f32 %v7988_v57, %v16106_v63  ;;  %12230 = vmatmul.msk.f32.vlgmr.msra.gmra.mxu1 %vm392_vm1, %v9255_v44  ;;  %9440 = vmatpush.msra.mxu0 %v16168_v25  ;;  %v7779_v63 = vadd.f32 %v7778_v23, %v16183_v15 }
 0x692   : > { %12231 = vmatmul.msk.f32.vlgmr.msra.gmra.mxu2 %vm392_vm1, %v9255_v44  ;;  %12232 = vmatmul.msk.f32.vlgmr.msra.gmra.mxu3 %vm392_vm1, %v9255_v44 }
 0x693   : > { %9460 = vmatpush.msra.mxu1 %v16171_v1  ;;  %9480 = vmatpush.msra.mxu2 %v16176_v17 }
 0x694   : > { %9500 = vmatpush.msra.mxu3 %v9080_v48  ;;  %v7884_v56 = vpop.f32.mrf.mxu2  ;;  %v12635_v48 = vpop.permute.xlu1 %12634 }
 0x695   : > { %v7989_v49 = vadd.f32 %v7884_v56, %v7719_v52  ;;  %v7904_v10 = vpop.f32.mrf.mxu3  ;;  %v7924_v4 = vpop.f32.mrf.mxu0  ;;  %v12637_v62 = vunpack.i.h.bf16 %v12635_v48 }
 0x696   : > { %v7990_v30 = vadd.f32 %v7904_v10, %v7739_v59  ;;  %v7991_v25 = vadd.f32 %v7924_v4, %v7759_v35  ;;  %v7944_v31 = vpop.f32.mrf.mxu1  ;;  %v17039_v59 = vld [vmem:[#allocation48_spill] sm:$0xff] }
 0x697   : > { %v16250_v22 = vadd.f32 %v7989_v49, %v16127_v40  ;;  %v7992_v55 = vadd.f32 %v7944_v31, %v7779_v63  ;;  %v17038_v40 = vld [vmem:[#allocation49_spill] sm:$0xff] }
 0x698   : > { %v16253_v1 = vadd.f32 %v7990_v30, %v16130_v50  ;;  %v16256_v17 = vadd.f32 %v7991_v25, %v16132_v6  ;;  %12233 = vmatmul.msk.f32.vlgmr.msrb.gmra.mxu0 %vm392_vm1, %v9255_v44  ;;  %v12632_v50 = vunpack.i.h.bf16 %v17038_v40  ;;  %v12631_v6 = vunpack.i.l.bf16 %v17038_v40  ;;  %v12640_v23 = vpop.permute.xlu2 %12639 }
 0x699   : > { %v16262_v15 = vadd.f32 %v7992_v55, %v16136_v0  ;;  %12234 = vmatmul.msk.f32.vlgmr.msrb.gmra.mxu1 %vm392_vm1, %v9255_v44  ;;  %9520 = vmatpush.msrb.mxu0 %v16197_v11  ;;  %v12627_v11 = vunpack.i.h.bf16 %v12625_v12  ;;  %v12642_v16 = vunpack.i.h.bf16 %v12640_v23  ;;  %v12641_v26 = vunpack.i.l.bf16 %v12640_v23  ;;  %v17040_v12 = vld [vmem:[#allocation50_spill] sm:$0xff] }
 0x69a   : > { %12235 = vmatmul.msk.f32.vlgmr.msrb.gmra.mxu2 %vm392_vm1, %v9255_v44  ;;  %12236 = vmatmul.msk.f32.vlgmr.msrb.gmra.mxu3 %vm392_vm1, %v9255_v44  ;;  %v9801_v4 = vsel %vm4240_vm6, %v17040_v12, %v12631_v6 }
 0x69b   : > { %9540 = vmatpush.msrb.mxu1 %v16200_v51  ;;  %9560 = vmatpush.msrb.mxu2 %v16206_v42  ;;  %v12636_v51 = vunpack.i.l.bf16 %v12635_v48  ;;  %v16318_v44 = vsel %vm4240_vm6, %v12642_v16, %v12637_v62  ;;  %v16321_v57 = vsel %vm4240_vm6, %v12637_v62, %v12641_v26  ;;  %v16327_v35 = vsel %vm4240_vm6, %v12641_v26, %v17040_v12 }
 0x69c   : > { %9580 = vmatpush.msrb.mxu3 %v16185_v28  ;;  %v7964_v0 = vpop.f32.mrf.mxu2  ;;  %v9621_v28 = vsel %vm4240_vm6, %v12631_v6, %v12632_v50 }
 0x69d   : > { %v7993_v43 = vadd.f32 %v7964_v0, %v7799_v3  ;;  %v7984_v5 = vpop.f32.mrf.mxu3  ;;  %v16273_v33 = vpop.f32.mrf.mxu0  ;;  %v16301_v46 = vsel %vm4240_vm6, %v12627_v11, %v12636_v51  ;;  %v9625_v21 = vsel %vm4240_vm6, %v12636_v51, %v12642_v16 }
 0x69e   : > { %v7994_v52 = vadd.f32 %v7984_v5, %v7819_v18  ;;  %v16275_v53 = vpop.f32.mrf.mxu1  ;;  %v9800_v51 = vpop.permute.xlu1 %9799 }
 0x69f   : > { %v16278_v42 = vadd.f32 %v7993_v43, %v16153_v29  ;;  %v16293_v29 = vsel %vm4240_vm6, %v12632_v50, %v12626_v60 }
 0x6a0   : > { %v16281_v8 = vadd.f32 %v7994_v52, %v16156_v47  ;;  %12237 = vmatmul.msk.f32.vlgmr.msra.gmra.mxu0 %vm392_vm1, %v17039_v59  ;;  %v16296_v47 = vsel %vm4240_vm6, %v12626_v60, %v12627_v11 }
 0x6a1   : > { %12238 = vmatmul.msk.f32.vlgmr.msra.gmra.mxu1 %vm392_vm1, %v17039_v59  ;;  %9654 = vmatpush.msra.mxu0 %v9621_v28 }
 0x6a2   : > { %12239 = vmatmul.msk.f32.vlgmr.msra.gmra.mxu2 %vm392_vm1, %v17039_v59  ;;  %12240 = vmatmul.msk.f32.vlgmr.msra.gmra.mxu3 %vm392_vm1, %v17039_v59 }
 0x6a3   : > { %9674 = vmatpush.msra.mxu1 %v16293_v29  ;;  %9694 = vmatpush.msra.mxu2 %v16296_v47 }
 0x6a4   : > { %9714 = vmatpush.msra.mxu3 %v16301_v46  ;;  %v8098_v2 = vpop.f32.mrf.mxu2 }
 0x6a5   : > { %v8118_v36 = vpop.f32.mrf.mxu3  ;;  %v16304_v3 = vpop.f32.mrf.mxu0 }
 0x6a6   : > { %v16306_v18 = vpop.f32.mrf.mxu1 }
 0x6a8   : > { %12241 = vmatmul.msk.f32.vlgmr.msrb.gmra.mxu0 %vm392_vm1, %v17039_v59 }
 0x6a9   : > { %12242 = vmatmul.msk.f32.vlgmr.msrb.gmra.mxu1 %vm392_vm1, %v17039_v59  ;;  %9734 = vmatpush.msrb.mxu0 %v9625_v21 }
 0x6aa   : > { %12243 = vmatmul.msk.f32.vlgmr.msrb.gmra.mxu2 %vm392_vm1, %v17039_v59  ;;  %12244 = vmatmul.msk.f32.vlgmr.msrb.gmra.mxu3 %vm392_vm1, %v17039_v59 }
 0x6ab   : > { %9754 = vmatpush.msrb.mxu1 %v16318_v44  ;;  %9774 = vmatpush.msrb.mxu2 %v16321_v57 }
 0x6ac   : > { %9794 = vmatpush.msrb.mxu3 %v16327_v35 }
 0x6ad   : > { %v8178_v56 = vpop.f32.mrf.mxu2  ;;  %v8198_v63 = vpop.f32.mrf.mxu3 }
 0x6ae   : > { %v8223_v49 = vpop.f32.mrf.mxu0  ;;  %v8243_v10 = vpop.f32.mrf.mxu1 }
 0x6af   : > { %v8224_v6 = vadd.f32 %v8223_v49, %v16273_v33  ;;  %v8244_v48 = vadd.f32 %v8243_v10, %v16275_v53  ;;  %v16364_v33 = vpop.permute.xlu2 %9965  ;;  %v17041_v49 = vld [vmem:[#allocation51_spill] sm:$0xff] }
 0x6b0   : > { %12245 = vmatmul.msk.f32.vlgmr.msra.gmra.mxu0 %vm392_vm1, %v16259_v37  ;;  %v12647_v10 = vunpack.i.h.bf16 %v17041_v49 }
 0x6b1   : > { %12246 = vmatmul.msk.f32.vlgmr.msra.gmra.mxu1 %vm392_vm1, %v16259_v37  ;;  %9820 = vmatpush.msra.mxu0 %v9801_v4 }
 0x6b2   : > { %12247 = vmatmul.msk.f32.vlgmr.msra.gmra.mxu2 %vm392_vm1, %v16259_v37  ;;  %12248 = vmatmul.msk.f32.vlgmr.msra.gmra.mxu3 %vm392_vm1, %v16259_v37 }
 0x6b3   : > { %9840 = vmatpush.msra.mxu1 %v9621_v28  ;;  %9860 = vmatpush.msra.mxu2 %v16293_v29 }
 0x6b4   : > { %9880 = vmatpush.msra.mxu3 %v16296_v47 }
 0x6b5   : > { %v8263_v30 = vpop.f32.mrf.mxu2  ;;  %v8283_v25 = vpop.f32.mrf.mxu3 }
 0x6b6   : > { %v8264_v31 = vadd.f32 %v8263_v30, %v8098_v2  ;;  %v8284_v55 = vadd.f32 %v8283_v25, %v8118_v36  ;;  %v8303_v40 = vpop.f32.mrf.mxu0  ;;  %v8323_v50 = vpop.f32.mrf.mxu1 }
 0x6b8   : > { %12249 = vmatmul.msk.f32.vlgmr.msrb.gmra.mxu0 %vm392_vm1, %v16259_v37 }
 0x6b9   : > { %12250 = vmatmul.msk.f32.vlgmr.msrb.gmra.mxu1 %vm392_vm1, %v16259_v37  ;;  %9900 = vmatpush.msrb.mxu0 %v16301_v46 }
 0x6ba   : > { %12251 = vmatmul.msk.f32.vlgmr.msrb.gmra.mxu2 %vm392_vm1, %v16259_v37  ;;  %12252 = vmatmul.msk.f32.vlgmr.msrb.gmra.mxu3 %vm392_vm1, %v16259_v37 }
 0x6bb   : > { %9920 = vmatpush.msrb.mxu1 %v9625_v21  ;;  %9940 = vmatpush.msrb.mxu2 %v16318_v44 }
 0x6bc   : > { %9960 = vmatpush.msrb.mxu3 %v16321_v57 }
 0x6bd   : > { %v8343_v0 = vpop.f32.mrf.mxu2  ;;  %v8363_v43 = vpop.f32.mrf.mxu3 }
 0x6be   : > { %v8344_v5 = vadd.f32 %v8343_v0, %v8178_v56  ;;  %v8364_v11 = vadd.f32 %v8363_v43, %v8198_v63  ;;  %v8389_v60 = vpop.f32.mrf.mxu0  ;;  %v8409_v52 = vpop.f32.mrf.mxu1 }
 0x6bf   : > { %v8532_v59 = vadd.f32 %v8389_v60, %v8224_v6  ;;  %v8533_v28 = vadd.f32 %v8409_v52, %v8244_v48 }
 0x6c0   : > { %12253 = vmatmul.msk.f32.vlgmr.msra.gmra.mxu0 %vm392_vm1, %v9800_v51 }
 0x6c1   : > { %v16357_v37 = vadd.f32 %v8532_v59, %v16235_v24  ;;  %v16360_v23 = vadd.f32 %v8533_v28, %v16239_v34  ;;  %12254 = vmatmul.msk.f32.vlgmr.msra.gmra.mxu1 %vm392_vm1, %v9800_v51  ;;  %9985 = vmatpush.msra.mxu0 %v16293_v29  ;;  %v8304_v24 = vadd.f32 %v8303_v40, %v16304_v3 }
 0x6c2   : > { %12255 = vmatmul.msk.f32.vlgmr.msra.gmra.mxu2 %vm392_vm1, %v9800_v51  ;;  %12256 = vmatmul.msk.f32.vlgmr.msra.gmra.mxu3 %vm392_vm1, %v9800_v51  ;;  %v8324_v34 = vadd.f32 %v8323_v50, %v16306_v18  ;;  %v17042_v50 = vld [vmem:[#allocation52_spill] sm:$0xff] }
 0x6c3   : > { %10005 = vmatpush.msra.mxu1 %v16296_v47  ;;  %10025 = vmatpush.msra.mxu2 %v16301_v46  ;;  %v16379_v46 = vpop.permute.xlu1 %12649  ;;  %v12662_v6 = vunpack.i.h.bf16 %v17042_v50  ;;  %v12661_v43 = vunpack.i.l.bf16 %v17042_v50 }
 0x6c4   : > { %10045 = vmatpush.msra.mxu3 %v9625_v21 }
 0x6c5   : > { %v8429_v53 = vpop.f32.mrf.mxu2  ;;  %v8449_v2 = vpop.f32.mrf.mxu3 }
 0x6c6   : > { %v8534_v36 = vadd.f32 %v8429_v53, %v8264_v31  ;;  %v8535_v16 = vadd.f32 %v8449_v2, %v8284_v55  ;;  %v8469_v29 = vpop.f32.mrf.mxu0  ;;  %v8489_v62 = vpop.f32.mrf.mxu1 }
 0x6c7   : > { %v8536_v26 = vadd.f32 %v8469_v29, %v8304_v24  ;;  %v8537_v56 = vadd.f32 %v8489_v62, %v8324_v34 }
 0x6c8   : > { %v16373_v63 = vadd.f32 %v8534_v36, %v16250_v22  ;;  %v16376_v47 = vadd.f32 %v8535_v16, %v16253_v1  ;;  %12257 = vmatmul.msk.f32.vlgmr.msrb.gmra.mxu0 %vm392_vm1, %v9800_v51  ;;  %v12655_v22 = vpop.permute.xlu2 %12654  ;;  %v12652_v1 = vunpack.i.h.bf16 %v16379_v46  ;;  %v12720_v36 = vld [vmem:[%s16798_s3 + $0x8] sm:$0xff] }
 0x6c9   : > { %v16382_v3 = vadd.f32 %v8536_v26, %v16256_v17  ;;  %v16385_v18 = vadd.f32 %v8537_v56, %v16262_v15  ;;  %12258 = vmatmul.msk.f32.vlgmr.msrb.gmra.mxu1 %vm392_vm1, %v9800_v51  ;;  %10065 = vmatpush.msrb.mxu0 %v16318_v44  ;;  %v12651_v17 = vunpack.i.l.bf16 %v16379_v46  ;;  %v12646_v44 = vunpack.i.l.bf16 %v17041_v49 }
 0x6ca   : > { %12259 = vmatmul.msk.f32.vlgmr.msrb.gmra.mxu2 %vm392_vm1, %v9800_v51  ;;  %12260 = vmatmul.msk.f32.vlgmr.msrb.gmra.mxu3 %vm392_vm1, %v9800_v51  ;;  %v12656_v55 = vunpack.i.l.bf16 %v12655_v22  ;;  %v12657_v60 = vunpack.i.h.bf16 %v12655_v22 }
 0x6cb   : > { %10085 = vmatpush.msrb.mxu1 %v16321_v57  ;;  %10105 = vmatpush.msrb.mxu2 %v16327_v35  ;;  %v16435_v52 = vpop.permute.xlu1 %10162 }
 0x6cc   : > { %10125 = vmatpush.msrb.mxu3 %v17040_v12  ;;  %v10164_v12 = vsel %vm4887_vm7, %v12651_v17, %v12652_v1  ;;  %v16426_v40 = vsel %vm4887_vm7, %v12647_v10, %v12656_v55  ;;  %v10168_v51 = vsel %vm4887_vm7, %v12656_v55, %v12662_v6  ;;  %v16447_v59 = vsel %vm4887_vm7, %v12662_v6, %v12657_v60 }
 0x6cd   : > { %v8509_v15 = vpop.f32.mrf.mxu2  ;;  %v8529_v21 = vpop.f32.mrf.mxu3  ;;  %v16450_v28 = vsel %vm4887_vm7, %v12657_v60, %v12661_v43  ;;  %v16456_v24 = vsel %vm4887_vm7, %v12661_v43, %v16435_v52  ;;  %v10344_v16 = vsel %vm4887_vm7, %v16435_v52, %v12651_v17 }
 0x6ce   : > { %v8538_v4 = vadd.f32 %v8509_v15, %v8344_v5  ;;  %v8539_v30 = vadd.f32 %v8529_v21, %v8364_v11  ;;  %v16398_v25 = vpop.f32.mrf.mxu0  ;;  %v16400_v57 = vpop.f32.mrf.mxu1 }
 0x6d0   : > { %v16403_v35 = vadd.f32 %v8538_v4, %v16278_v42  ;;  %v16406_v31 = vadd.f32 %v8539_v30, %v16281_v8  ;;  %12261 = vmatmul.msk.f32.vlgmr.msra.gmra.mxu0 %vm392_vm1, %v16364_v33  ;;  %v16418_v42 = vsel %vm4887_vm7, %v12652_v1, %v12646_v44  ;;  %v16421_v8 = vsel %vm4887_vm7, %v12646_v44, %v12647_v10  ;;  %v10343_v30 = vpop.permute.xlu2 %10342 }
 0x6d1   : > { %12262 = vmatmul.msk.f32.vlgmr.msra.gmra.mxu1 %vm392_vm1, %v16364_v33  ;;  %10197 = vmatpush.msra.mxu0 %v10164_v12 }
 0x6d2   : > { %12263 = vmatmul.msk.f32.vlgmr.msra.gmra.mxu2 %vm392_vm1, %v16364_v33  ;;  %12264 = vmatmul.msk.f32.vlgmr.msra.gmra.mxu3 %vm392_vm1, %v16364_v33 }
 0x6d3   : > { %10217 = vmatpush.msra.mxu1 %v16418_v42  ;;  %10237 = vmatpush.msra.mxu2 %v16421_v8 }
 0x6d4   : > { %10257 = vmatpush.msra.mxu3 %v16426_v40 }
 0x6d5   : > { %v8609_v48 = vpop.f32.mrf.mxu2  ;;  %v8629_v0 = vpop.f32.mrf.mxu3 }
 0x6d6   : > { %v16431_v5 = vpop.f32.mrf.mxu0  ;;  %v16433_v11 = vpop.f32.mrf.mxu1 }
 0x6d8   : > { %12265 = vmatmul.msk.f32.vlgmr.msrb.gmra.mxu0 %vm392_vm1, %v16364_v33 }
 0x6d9   : > { %12266 = vmatmul.msk.f32.vlgmr.msrb.gmra.mxu1 %vm392_vm1, %v16364_v33  ;;  %10277 = vmatpush.msrb.mxu0 %v10168_v51 }
 0x6da   : > { %12267 = vmatmul.msk.f32.vlgmr.msrb.gmra.mxu2 %vm392_vm1, %v16364_v33  ;;  %12268 = vmatmul.msk.f32.vlgmr.msrb.gmra.mxu3 %vm392_vm1, %v16364_v33 }
 0x6db   : > { %10297 = vmatpush.msrb.mxu1 %v16447_v59  ;;  %10317 = vmatpush.msrb.mxu2 %v16450_v28 }
 0x6dc   : > { %10337 = vmatpush.msrb.mxu3 %v16456_v24 }
 0x6dd   : > { %v8689_v34 = vpop.f32.mrf.mxu2  ;;  %v8709_v53 = vpop.f32.mrf.mxu3 }
 0x6de   : > { %v8733_v2 = vpop.f32.mrf.mxu0  ;;  %v8753_v33 = vpop.f32.mrf.mxu1 }
 0x6df   : > { %v8734_v1 = vadd.f32 %v8733_v2, %v16398_v25  ;;  %v8754_v17 = vadd.f32 %v8753_v33, %v16400_v57  ;;  %v12665_v25 = vpop.permute.xlu1 %12664 }
 0x6e0   : > { %12269 = vmatmul.msk.f32.vlgmr.msra.gmra.mxu0 %vm392_vm1, %v12720_v36 }
 0x6e1   : > { %12270 = vmatmul.msk.f32.vlgmr.msra.gmra.mxu1 %vm392_vm1, %v12720_v36  ;;  %10363 = vmatpush.msra.mxu0 %v10344_v16  ;;  %v12666_v16 = vunpack.i.l.bf16 %v12665_v25 }
 0x6e2   : > { %12271 = vmatmul.msk.f32.vlgmr.msra.gmra.mxu2 %vm392_vm1, %v12720_v36  ;;  %12272 = vmatmul.msk.f32.vlgmr.msra.gmra.mxu3 %vm392_vm1, %v12720_v36 }
 0x6e3   : > { %10383 = vmatpush.msra.mxu1 %v10164_v12  ;;  %10403 = vmatpush.msra.mxu2 %v16418_v42 }
 0x6e4   : > { %10423 = vmatpush.msra.mxu3 %v16421_v8 }
 0x6e5   : > { %v8773_v29 = vpop.f32.mrf.mxu2  ;;  %v8793_v62 = vpop.f32.mrf.mxu3 }
 0x6e6   : > { %v8774_v26 = vadd.f32 %v8773_v29, %v8609_v48  ;;  %v8794_v56 = vadd.f32 %v8793_v62, %v8629_v0  ;;  %v8813_v46 = vpop.f32.mrf.mxu0  ;;  %v8833_v22 = vpop.f32.mrf.mxu1 }
 0x6e7   : > { %v8834_v57 = vadd.f32 %v8833_v22, %v16433_v11 }
 0x6e8   : > { %12273 = vmatmul.msk.f32.vlgmr.msrb.gmra.mxu0 %vm392_vm1, %v12720_v36 }
 0x6e9   : > { %12274 = vmatmul.msk.f32.vlgmr.msrb.gmra.mxu1 %vm392_vm1, %v12720_v36  ;;  %10443 = vmatpush.msrb.mxu0 %v16426_v40 }
 0x6ea   : > { %12275 = vmatmul.msk.f32.vlgmr.msrb.gmra.mxu2 %vm392_vm1, %v12720_v36  ;;  %12276 = vmatmul.msk.f32.vlgmr.msrb.gmra.mxu3 %vm392_vm1, %v12720_v36  ;;  %v12667_v36 = vunpack.i.h.bf16 %v12665_v25  ;;  %v17045_v25 = vld [vmem:[#allocation17_spill] sm:$0xff] }
 0x6eb   : > { %10463 = vmatpush.msrb.mxu1 %v10168_v51  ;;  %10483 = vmatpush.msrb.mxu2 %v16447_v59 }
 0x6ec   : > { %10503 = vmatpush.msrb.mxu3 %v16450_v28 }
 0x6ed   : > { %v8853_v15 = vpop.f32.mrf.mxu2  ;;  %v8873_v21 = vpop.f32.mrf.mxu3 }
 0x6ee   : > { %v8854_v49 = vadd.f32 %v8853_v15, %v8689_v34  ;;  %v8874_v10 = vadd.f32 %v8873_v21, %v8709_v53  ;;  %v8897_v44 = vpop.f32.mrf.mxu0  ;;  %v8917_v4 = vpop.f32.mrf.mxu1 }
 0x6ef   : > { %v9040_v12 = vadd.f32 %v8897_v44, %v8734_v1  ;;  %v9041_v55 = vadd.f32 %v8917_v4, %v8754_v17 }
 0x6f0   : > { %12277 = vmatmul.msk.f32.vlgmr.msra.gmra.mxu0 %vm392_vm1, %v10343_v30 }
 0x6f1   : > { %v16481_v50 = vadd.f32 %v9040_v12, %v16357_v37  ;;  %v16484_v6 = vadd.f32 %v9041_v55, %v16360_v23  ;;  %12278 = vmatmul.msk.f32.vlgmr.msra.gmra.mxu1 %vm392_vm1, %v10343_v30  ;;  %10528 = vmatpush.msra.mxu0 %v16418_v42  ;;  %v8814_v37 = vadd.f32 %v8813_v46, %v16431_v5  ;;  %v17044_v46 = vld [vmem:[#allocation53_spill] sm:$0xff] }
 0x6f2   : > { %12279 = vmatmul.msk.f32.vlgmr.msra.gmra.mxu2 %vm392_vm1, %v10343_v30  ;;  %12280 = vmatmul.msk.f32.vlgmr.msra.gmra.mxu3 %vm392_vm1, %v10343_v30 }
 0x6f3   : > { %10548 = vmatpush.msra.mxu1 %v16421_v8  ;;  %10568 = vmatpush.msra.mxu2 %v16426_v40  ;;  %v16501_v40 = vpop.permute.xlu2 %10689 }
 0x6f4   : > { %10588 = vmatpush.msra.mxu3 %v10168_v51  ;;  %v12675_v51 = vpop.permute.xlu1 %12674 }
 0x6f5   : > { %v8937_v23 = vpop.f32.mrf.mxu2  ;;  %v8957_v48 = vpop.f32.mrf.mxu3 }
 0x6f6   : > { %v9042_v0 = vadd.f32 %v8937_v23, %v8774_v26  ;;  %v9043_v43 = vadd.f32 %v8957_v48, %v8794_v56  ;;  %v8977_v60 = vpop.f32.mrf.mxu0  ;;  %v8997_v42 = vpop.f32.mrf.mxu1  ;;  %v12676_v56 = vunpack.i.l.bf16 %v12675_v51 }
 0x6f7   : > { %v9044_v34 = vadd.f32 %v8977_v60, %v8814_v37  ;;  %v9045_v53 = vadd.f32 %v8997_v42, %v8834_v57 }
 0x6f8   : > { %v16495_v2 = vadd.f32 %v9042_v0, %v16373_v63  ;;  %v16498_v8 = vadd.f32 %v9043_v43, %v16376_v47  ;;  %12281 = vmatmul.msk.f32.vlgmr.msrb.gmra.mxu0 %vm392_vm1, %v10343_v30  ;;  %v17043_v63 = vld [vmem:[#allocation54_spill] sm:$0xff]  ;;  %v10712_v1 = vsel %vm5538_vm8, %v12667_v36, %v12676_v56 }
 0x6f9   : > { %v16504_v5 = vadd.f32 %v9044_v34, %v16382_v3  ;;  %v16507_v11 = vadd.f32 %v9045_v53, %v16385_v18  ;;  %12282 = vmatmul.msk.f32.vlgmr.msrb.gmra.mxu1 %vm392_vm1, %v10343_v30  ;;  %10608 = vmatpush.msrb.mxu0 %v16447_v59  ;;  %v12672_v47 = vunpack.i.h.bf16 %v17043_v63  ;;  %v12671_v3 = vunpack.i.l.bf16 %v17043_v63 }
 0x6fa   : > { %12283 = vmatmul.msk.f32.vlgmr.msrb.gmra.mxu2 %vm392_vm1, %v10343_v30  ;;  %12284 = vmatmul.msk.f32.vlgmr.msrb.gmra.mxu3 %vm392_vm1, %v10343_v30 }
 0x6fb   : > { %10628 = vmatpush.msrb.mxu1 %v16450_v28  ;;  %10648 = vmatpush.msrb.mxu2 %v16456_v24  ;;  %v12680_v22 = vpop.permute.xlu2 %12679  ;;  %v10889_v43 = vsel %vm5538_vm8, %v17045_v25, %v12671_v3 }
 0x6fc   : > { %10668 = vmatpush.msrb.mxu3 %v16435_v52  ;;  %v10709_v52 = vsel %vm5538_vm8, %v12671_v3, %v12672_v47  ;;  %v12682_v21 = vunpack.i.h.bf16 %v12680_v22  ;;  %v12681_v4 = vunpack.i.l.bf16 %v12680_v22 }
 0x6fd   : > { %v9017_v18 = vpop.f32.mrf.mxu2  ;;  %v9037_v33 = vpop.f32.mrf.mxu3 }
 0x6fe   : > { %v9046_v59 = vadd.f32 %v9017_v18, %v8854_v49  ;;  %v9047_v29 = vadd.f32 %v9037_v33, %v8874_v10  ;;  %v9111_v62 = vpop.f32.mrf.mxu0  ;;  %v9131_v26 = vpop.f32.mrf.mxu1  ;;  %v12677_v49 = vunpack.i.h.bf16 %v12675_v51  ;;  %v10713_v30 = vsel %vm5538_vm8, %v12676_v56, %v12682_v21 }
 0x6ff   : > { %v16561_v37 = vsel %vm5538_vm8, %v12681_v4, %v17045_v25 }
 0x700   : > { %v16519_v28 = vadd.f32 %v9046_v59, %v16403_v35  ;;  %v16522_v24 = vadd.f32 %v9047_v29, %v16406_v31  ;;  %12285 = vmatmul.msk.f32.vlgmr.msra.gmra.mxu0 %vm392_vm1, %v17044_v46  ;;  %v16534_v35 = vsel %vm5538_vm8, %v12672_v47, %v12666_v16  ;;  %v16537_v31 = vsel %vm5538_vm8, %v12666_v16, %v12667_v36  ;;  %v10888_v36 = vpop.permute.xlu1 %10887 }
 0x701   : > { %12286 = vmatmul.msk.f32.vlgmr.msra.gmra.mxu1 %vm392_vm1, %v17044_v46  ;;  %10742 = vmatpush.msra.mxu0 %v10709_v52  ;;  %v16552_v12 = vsel %vm5538_vm8, %v12682_v21, %v12677_v49  ;;  %v16555_v55 = vsel %vm5538_vm8, %v12677_v49, %v12681_v4 }
 0x702   : > { %12287 = vmatmul.msk.f32.vlgmr.msra.gmra.mxu2 %vm392_vm1, %v17044_v46  ;;  %12288 = vmatmul.msk.f32.vlgmr.msra.gmra.mxu3 %vm392_vm1, %v17044_v46 }
 0x703   : > { %10762 = vmatpush.msra.mxu1 %v16534_v35  ;;  %10782 = vmatpush.msra.mxu2 %v16537_v31 }
 0x704   : > { %10802 = vmatpush.msra.mxu3 %v10712_v1 }
 0x705   : > { %v9151_v17 = vpop.f32.mrf.mxu2  ;;  %v9171_v15 = vpop.f32.mrf.mxu3 }
 0x706   : > { %v9191_v10 = vpop.f32.mrf.mxu0  ;;  %v9211_v44 = vpop.f32.mrf.mxu1 }
 0x708   : > { %12289 = vmatmul.msk.f32.vlgmr.msrb.gmra.mxu0 %vm392_vm1, %v17044_v46 }
 0x709   : > { %12290 = vmatmul.msk.f32.vlgmr.msrb.gmra.mxu1 %vm392_vm1, %v17044_v46  ;;  %10822 = vmatpush.msrb.mxu0 %v10713_v30 }
 0x70a   : > { %12291 = vmatmul.msk.f32.vlgmr.msrb.gmra.mxu2 %vm392_vm1, %v17044_v46  ;;  %12292 = vmatmul.msk.f32.vlgmr.msrb.gmra.mxu3 %vm392_vm1, %v17044_v46 }
 0x70b   : > { %10842 = vmatpush.msrb.mxu1 %v16552_v12  ;;  %10862 = vmatpush.msrb.mxu2 %v16555_v55 }
 0x70c   : > { %10882 = vmatpush.msrb.mxu3 %v16561_v37 }
 0x70d   : > { %v16564_v57 = vpop.f32.mrf.mxu2  ;;  %v16566_v23 = vpop.f32.mrf.mxu3 }
 0x70e   : > { %v9277_v48 = vpop.f32.mrf.mxu0  ;;  %v9297_v0 = vpop.f32.mrf.mxu1 }
 0x70f   : > { %v9278_v63 = vadd.f32 %v9277_v48, %v9111_v62  ;;  %v9298_v47 = vadd.f32 %v9297_v0, %v9131_v26 }
 0x710   : > { %12293 = vmatmul.msk.f32.vlgmr.msra.gmra.mxu0 %vm392_vm1, %v16501_v40 }
 0x711   : > { %12294 = vmatmul.msk.f32.vlgmr.msra.gmra.mxu1 %vm392_vm1, %v16501_v40  ;;  %10908 = vmatpush.msra.mxu0 %v10889_v43 }
 0x712   : > { %12295 = vmatmul.msk.f32.vlgmr.msra.gmra.mxu2 %vm392_vm1, %v16501_v40  ;;  %12296 = vmatmul.msk.f32.vlgmr.msra.gmra.mxu3 %vm392_vm1, %v16501_v40 }
 0x713   : > { %10928 = vmatpush.msra.mxu1 %v10709_v52  ;;  %10948 = vmatpush.msra.mxu2 %v16534_v35 }
 0x714   : > { %10968 = vmatpush.msra.mxu3 %v16537_v31 }
 0x715   : > { %v9317_v60 = vpop.f32.mrf.mxu2  ;;  %v9337_v42 = vpop.f32.mrf.mxu3 }
 0x716   : > { %v9357_v34 = vpop.f32.mrf.mxu0  ;;  %v9377_v53 = vpop.f32.mrf.mxu1  ;;  %v9318_v62 = vadd.f32 %v9317_v60, %v9151_v17  ;;  %v9338_v26 = vadd.f32 %v9337_v42, %v9171_v15 }
 0x717   : > { %v9358_v56 = vadd.f32 %v9357_v34, %v9191_v10 }
 0x718   : > { %12297 = vmatmul.msk.f32.vlgmr.msrb.gmra.mxu0 %vm392_vm1, %v16501_v40 }
 0x719   : > { %12298 = vmatmul.msk.f32.vlgmr.msrb.gmra.mxu1 %vm392_vm1, %v16501_v40  ;;  %10988 = vmatpush.msrb.mxu0 %v10712_v1 }
 0x71a   : > { %12299 = vmatmul.msk.f32.vlgmr.msrb.gmra.mxu2 %vm392_vm1, %v16501_v40  ;;  %12300 = vmatmul.msk.f32.vlgmr.msrb.gmra.mxu3 %vm392_vm1, %v16501_v40 }
 0x71b   : > { %11008 = vmatpush.msrb.mxu1 %v10713_v30  ;;  %11028 = vmatpush.msrb.mxu2 %v16552_v12 }
 0x71c   : > { %11048 = vmatpush.msrb.mxu3 %v16555_v55 }
 0x71d   : > { %v9397_v3 = vpop.f32.mrf.mxu2  ;;  %v9417_v51 = vpop.f32.mrf.mxu3 }
 0x71e   : > { %v9442_v18 = vpop.f32.mrf.mxu0  ;;  %v9462_v33 = vpop.f32.mrf.mxu1 }
 0x71f   : > { %v9585_v16 = vadd.f32 %v9442_v18, %v9278_v63  ;;  %v9586_v59 = vadd.f32 %v9462_v33, %v9298_v47 }
 0x720   : > { %12301 = vmatmul.msk.f32.vlgmr.msra.gmra.mxu0 %vm392_vm1, %v10888_v36 }
 0x721   : > { %v16592_v29 = vadd.f32 %v9585_v16, %v16481_v50  ;;  %v16595_v40 = vadd.f32 %v9586_v59, %v16484_v6  ;;  %12302 = vmatmul.msk.f32.vlgmr.msra.gmra.mxu1 %vm392_vm1, %v10888_v36  ;;  %11073 = vmatpush.msra.mxu0 %v16534_v35  ;;  %v9378_v50 = vadd.f32 %v9377_v53, %v9211_v44 }
 0x722   : > { %12303 = vmatmul.msk.f32.vlgmr.msra.gmra.mxu2 %vm392_vm1, %v10888_v36  ;;  %12304 = vmatmul.msk.f32.vlgmr.msra.gmra.mxu3 %vm392_vm1, %v10888_v36 }
 0x723   : > { %11093 = vmatpush.msra.mxu1 %v16537_v31  ;;  %11113 = vmatpush.msra.mxu2 %v10712_v1 }
 0x724   : > { %11133 = vmatpush.msra.mxu3 %v10713_v30  ;;  %v11054_v30 = vpop.permute.xlu2 %11053 }
 0x725   : > { %v9482_v46 = vpop.f32.mrf.mxu2  ;;  %v9502_v52 = vpop.f32.mrf.mxu3 }
 0x726   : > { %v9587_v6 = vadd.f32 %v9482_v46, %v9318_v62  ;;  %v9588_v22 = vadd.f32 %v9502_v52, %v9338_v26  ;;  %v9522_v21 = vpop.f32.mrf.mxu0  ;;  %v9542_v49 = vpop.f32.mrf.mxu1 }
 0x727   : > { %v9589_v4 = vadd.f32 %v9522_v21, %v9358_v56  ;;  %v9590_v35 = vadd.f32 %v9542_v49, %v9378_v50 }
 0x728   : > { %v16603_v48 = vadd.f32 %v9587_v6, %v16495_v2  ;;  %v16606_v0 = vadd.f32 %v9588_v22, %v16498_v8  ;;  %12305 = vmatmul.msk.f32.vlgmr.msrb.gmra.mxu0 %vm392_vm1, %v10888_v36  ;;  %v9398_v2 = vadd.f32 %v9397_v3, %v16564_v57  ;;  %v9418_v8 = vadd.f32 %v9417_v51, %v16566_v23 }
 0x729   : > { %v16610_v31 = vadd.f32 %v9589_v4, %v16504_v5  ;;  %v16613_v1 = vadd.f32 %v9590_v35, %v16507_v11  ;;  %12306 = vmatmul.msk.f32.vlgmr.msrb.gmra.mxu1 %vm392_vm1, %v10888_v36  ;;  %11153 = vmatpush.msrb.mxu0 %v16552_v12 }
 0x72a   : > { %12307 = vmatmul.msk.f32.vlgmr.msrb.gmra.mxu2 %vm392_vm1, %v10888_v36  ;;  %12308 = vmatmul.msk.f32.vlgmr.msrb.gmra.mxu3 %vm392_vm1, %v10888_v36 }
 0x72b   : > { %11173 = vmatpush.msrb.mxu1 %v16555_v55  ;;  %11193 = vmatpush.msrb.mxu2 %v16561_v37 }
 0x72c   : > { %11213 = vmatpush.msrb.mxu3 %v17045_v25 }
 0x72d   : > { %v9562_v5 = vpop.f32.mrf.mxu2  ;;  %v9582_v11 = vpop.f32.mrf.mxu3 }
 0x72e   : > { %v9591_v17 = vadd.f32 %v9562_v5, %v9398_v2  ;;  %v9592_v15 = vadd.f32 %v9582_v11, %v9418_v8  ;;  %v9656_v10 = vpop.f32.mrf.mxu0  ;;  %v9676_v44 = vpop.f32.mrf.mxu1 }
 0x730   : > { %v9599_v12 = vadd.f32 %v9591_v17, %v16519_v28  ;;  %v9600_v43 = vadd.f32 %v9592_v15, %v16522_v24  ;;  %12309 = vmatmul.msk.f32.vlgmr.msra.gmra.mxu0 %vm392_vm1, %v11054_v30 }
 0x731   : > { %12310 = vmatmul.msk.f32.vlgmr.msra.gmra.mxu1 %vm392_vm1, %v11054_v30 }
 0x732   : > { %12311 = vmatmul.msk.f32.vlgmr.msra.gmra.mxu2 %vm392_vm1, %v11054_v30  ;;  %12312 = vmatmul.msk.f32.vlgmr.msra.gmra.mxu3 %vm392_vm1, %v11054_v30 }
 0x735   : > { %v9696_v55 = vpop.f32.mrf.mxu2  ;;  %v9716_v25 = vpop.f32.mrf.mxu3 }
 0x736   : > { %v9736_v37 = vpop.f32.mrf.mxu0  ;;  %v9756_v57 = vpop.f32.mrf.mxu1 }
 0x738   : > { %12313 = vmatmul.msk.f32.vlgmr.msrb.gmra.mxu0 %vm392_vm1, %v11054_v30 }
 0x739   : > { %12314 = vmatmul.msk.f32.vlgmr.msrb.gmra.mxu1 %vm392_vm1, %v11054_v30 }
 0x73a   : > { %12315 = vmatmul.msk.f32.vlgmr.msrb.gmra.mxu2 %vm392_vm1, %v11054_v30  ;;  %12316 = vmatmul.msk.f32.vlgmr.msrb.gmra.mxu3 %vm392_vm1, %v11054_v30 }
 0x73d   : > { %v9776_v28 = vpop.f32.mrf.mxu2  ;;  %v9796_v24 = vpop.f32.mrf.mxu3 }
 0x73e   : > { %v9822_v23 = vpop.f32.mrf.mxu0  ;;  %v9842_v60 = vpop.f32.mrf.mxu1 }
 0x73f   : > { %v9823_v42 = vadd.f32 %v9822_v23, %v9656_v10  ;;  %v9843_v34 = vadd.f32 %v9842_v60, %v9676_v44 }
 0x745   : > { %v9862_v53 = vpop.f32.mrf.mxu2  ;;  %v9882_v63 = vpop.f32.mrf.mxu3 }
 0x746   : > { %v9863_v47 = vadd.f32 %v9862_v53, %v9696_v55  ;;  %v9883_v3 = vadd.f32 %v9882_v63, %v9716_v25  ;;  %v9902_v51 = vpop.f32.mrf.mxu0  ;;  %v9922_v18 = vpop.f32.mrf.mxu1 }
 0x747   : > { %v9903_v33 = vadd.f32 %v9902_v51, %v9736_v37  ;;  %v9923_v36 = vadd.f32 %v9922_v18, %v9756_v57 }
 0x74d   : > { %v9942_v16 = vpop.f32.mrf.mxu2  ;;  %v9962_v59 = vpop.f32.mrf.mxu3 }
 0x74e   : > { %v9943_v62 = vadd.f32 %v9942_v16, %v9776_v28  ;;  %v9963_v26 = vadd.f32 %v9962_v59, %v9796_v24  ;;  %v9987_v56 = vpop.f32.mrf.mxu0  ;;  %v10007_v50 = vpop.f32.mrf.mxu1 }
 0x74f   : > { %v10130_v46 = vadd.f32 %v9987_v56, %v9823_v42  ;;  %v10131_v52 = vadd.f32 %v10007_v50, %v9843_v34 }
 0x751   : > { %v10138_v6 = vadd.f32 %v10130_v46, %v16592_v29  ;;  %v10139_v22 = vadd.f32 %v10131_v52, %v16595_v40 }
 0x755   : > { %v10027_v21 = vpop.f32.mrf.mxu2  ;;  %v10047_v49 = vpop.f32.mrf.mxu3 }
 0x756   : > { %v10132_v4 = vadd.f32 %v10027_v21, %v9863_v47  ;;  %v10133_v35 = vadd.f32 %v10047_v49, %v9883_v3  ;;  %v10067_v2 = vpop.f32.mrf.mxu0  ;;  %v10087_v8 = vpop.f32.mrf.mxu1 }
 0x757   : > { %v10134_v5 = vadd.f32 %v10067_v2, %v9903_v33  ;;  %v10135_v11 = vadd.f32 %v10087_v8, %v9923_v36 }
 0x758   : > { %v10140_v17 = vadd.f32 %v10132_v4, %v16603_v48  ;;  %v10141_v15 = vadd.f32 %v10133_v35, %v16606_v0 }
 0x759   : > { %v10142_v10 = vadd.f32 %v10134_v5, %v16610_v31  ;;  %v10143_v44 = vadd.f32 %v10135_v11, %v16613_v1 }
 0x75d   : > { %v10107_v30 = vpop.f32.mrf.mxu2  ;;  %v10127_v29 = vpop.f32.mrf.mxu3 }
 0x75e   : > { %v10136_v55 = vadd.f32 %v10107_v30, %v9943_v62  ;;  %v10137_v40 = vadd.f32 %v10127_v29, %v9963_v26  ;;  %v10199_v25 = vpop.f32.mrf.mxu0  ;;  %v10219_v37 = vpop.f32.mrf.mxu1 }
 0x760   : > { %v10144_v57 = vadd.f32 %v10136_v55, %v9599_v12  ;;  %v10145_v28 = vadd.f32 %v10137_v40, %v9600_v43 }
 0x765   : > { %v10239_v24 = vpop.f32.mrf.mxu2  ;;  %v10259_v23 = vpop.f32.mrf.mxu3 }
 0x766   : > { %v10279_v60 = vpop.f32.mrf.mxu0  ;;  %v10299_v42 = vpop.f32.mrf.mxu1 }
 0x76d   : > { %v10319_v34 = vpop.f32.mrf.mxu2  ;;  %v10339_v48 = vpop.f32.mrf.mxu3 }
 0x76e   : > { %v10365_v53 = vpop.f32.mrf.mxu0  ;;  %v10385_v0 = vpop.f32.mrf.mxu1 }
 0x76f   : > { %v10366_v3 = vadd.f32 %v10365_v53, %v10199_v25  ;;  %v10386_v51 = vadd.f32 %v10385_v0, %v10219_v37 }
 0x775   : > { %v10405_v63 = vpop.f32.mrf.mxu2  ;;  %v10425_v31 = vpop.f32.mrf.mxu3 }
 0x776   : > { %v10445_v47 = vpop.f32.mrf.mxu0  ;;  %v10465_v1 = vpop.f32.mrf.mxu1  ;;  %v10406_v26 = vadd.f32 %v10405_v63, %v10239_v24  ;;  %v10426_v56 = vadd.f32 %v10425_v31, %v10259_v23 }
 0x777   : > { %v10446_v50 = vadd.f32 %v10445_v47, %v10279_v60  ;;  %v10466_v46 = vadd.f32 %v10465_v1, %v10299_v42 }
 0x77d   : > { %v10485_v18 = vpop.f32.mrf.mxu2  ;;  %v10505_v33 = vpop.f32.mrf.mxu3 }
 0x77e   : > { %v10530_v36 = vpop.f32.mrf.mxu0  ;;  %v10550_v16 = vpop.f32.mrf.mxu1  ;;  %v10486_v40 = vadd.f32 %v10485_v18, %v10319_v34  ;;  %v10506_v25 = vadd.f32 %v10505_v33, %v10339_v48 }
 0x77f   : > { %v10673_v12 = vadd.f32 %v10530_v36, %v10366_v3  ;;  %v10674_v43 = vadd.f32 %v10550_v16, %v10386_v51 }
 0x781   : > { %v10681_v59 = vadd.f32 %v10673_v12, %v10138_v6  ;;  %v10682_v62 = vadd.f32 %v10674_v43, %v10139_v22 }
 0x785   : > { %v10570_v52 = vpop.f32.mrf.mxu2  ;;  %v10590_v21 = vpop.f32.mrf.mxu3 }
 0x786   : > { %v10675_v49 = vadd.f32 %v10570_v52, %v10406_v26  ;;  %v10676_v4 = vadd.f32 %v10590_v21, %v10426_v56  ;;  %v10610_v35 = vpop.f32.mrf.mxu0  ;;  %v10630_v2 = vpop.f32.mrf.mxu1 }
 0x787   : > { %v10677_v8 = vadd.f32 %v10610_v35, %v10446_v50  ;;  %v10678_v5 = vadd.f32 %v10630_v2, %v10466_v46  ;;  %v11238_v56 = vpop.permute.xlu1 %11237 }
 0x788   : > { %v10683_v11 = vadd.f32 %v10675_v49, %v10140_v17  ;;  %v10684_v30 = vadd.f32 %v10676_v4, %v10141_v15 }
 0x789   : > { %v10685_v29 = vadd.f32 %v10677_v8, %v10142_v10  ;;  %v10686_v55 = vadd.f32 %v10678_v5, %v10143_v44 }
 0x78d   : > { %v10650_v6 = vpop.f32.mrf.mxu2  ;;  %v10670_v22 = vpop.f32.mrf.mxu3 }
 0x78e   : > { %v10679_v37 = vadd.f32 %v10650_v6, %v10486_v40  ;;  %v10680_v24 = vadd.f32 %v10670_v22, %v10506_v25  ;;  %v10744_v23 = vpop.f32.mrf.mxu0  ;;  %v10764_v60 = vpop.f32.mrf.mxu1 }
 0x790   : > { %v16640_v42 = vadd.f32 %v10679_v37, %v10144_v57  ;;  %v16642_v53 = vadd.f32 %v10680_v24, %v10145_v28 }
 0x795   : > { %v10784_v0 = vpop.f32.mrf.mxu2  ;;  %v10804_v63 = vpop.f32.mrf.mxu3 }
 0x796   : > { %v10824_v31 = vpop.f32.mrf.mxu0  ;;  %v10844_v47 = vpop.f32.mrf.mxu1 }
 0x79d   : > { %v10864_v17 = vpop.f32.mrf.mxu2  ;;  %v10884_v15 = vpop.f32.mrf.mxu3 }
 0x79e   : > { %v10910_v10 = vpop.f32.mrf.mxu0  ;;  %v10930_v44 = vpop.f32.mrf.mxu1 }
 0x79f   : > { %v10911_v51 = vadd.f32 %v10910_v10, %v10744_v23  ;;  %v10931_v18 = vadd.f32 %v10930_v44, %v10764_v60 }
 0x7a5   : > { %v10950_v34 = vpop.f32.mrf.mxu2  ;;  %v10970_v48 = vpop.f32.mrf.mxu3 }
 0x7a6   : > { %v10990_v1 = vpop.f32.mrf.mxu0  ;;  %v11010_v3 = vpop.f32.mrf.mxu1  ;;  %v10951_v52 = vadd.f32 %v10950_v34, %v10784_v0  ;;  %v10971_v21 = vadd.f32 %v10970_v48, %v10804_v63 }
 0x7a7   : > { %v10991_v49 = vadd.f32 %v10990_v1, %v10824_v31  ;;  %v11011_v8 = vadd.f32 %v11010_v3, %v10844_v47 }
 0x7ad   : > { %v11030_v33 = vpop.f32.mrf.mxu2  ;;  %v11050_v36 = vpop.f32.mrf.mxu3 }
 0x7ae   : > { %v11075_v57 = vpop.f32.mrf.mxu0  ;;  %v11095_v16 = vpop.f32.mrf.mxu1  ;;  %v11031_v48 = vadd.f32 %v11030_v33, %v10864_v17  ;;  %v11051_v1 = vadd.f32 %v11050_v36, %v10884_v15 }
 0x7af   : > { %v11218_v28 = vadd.f32 %v11075_v57, %v10911_v51  ;;  %v11219_v12 = vadd.f32 %v11095_v16, %v10931_v18 }
 0x7b1   : > { %v11226_v43 = vadd.f32 %v11218_v28, %v10681_v59  ;;  %v11227_v26 = vadd.f32 %v11219_v12, %v10682_v62 }
 0x7b3   : > { %v11240_v50 = vadd.f32 %v11238_v56, %v11226_v43  ;;  %v11241_v46 = vadd.f32 %v11238_v56, %v11227_v26 }
 0x7b5   : > { %v16645_v4 = vmul.f32 %v11240_v50, %v15334_v19  ;;  %v11115_v35 = vpop.f32.mrf.mxu2  ;;  %v11135_v2 = vpop.f32.mrf.mxu3  ;;  %v16648_v5 = vmul.f32 %v11241_v46, %v15337_v45 }
 0x7b6   : > { %v11220_v40 = vadd.f32 %v11115_v35, %v10951_v52  ;;  %v11221_v25 = vadd.f32 %v11135_v2, %v10971_v21  ;;  %v11155_v6 = vpop.f32.mrf.mxu0  ;;  %v11175_v59 = vpop.f32.mrf.mxu1 }
 0x7b7   : > { %v11222_v62 = vadd.f32 %v11155_v6, %v10991_v49  ;;  %v11223_v24 = vadd.f32 %v11175_v59, %v11011_v8  ;;  %v11266_v23 = vmul.f32 %v16645_v4, %v16645_v4  ;;  %v11267_v0 = vmul.f32 %v16648_v5, %v16648_v5 }
 0x7b8   : > { %v11228_v22 = vadd.f32 %v11220_v40, %v10683_v11  ;;  %v11229_v37 = vadd.f32 %v11221_v25, %v10684_v30  ;;  %v11256_v44 = vadd.f32 %v16648_v5, %v16645_v4 }
 0x7b9   : > { %v11230_v60 = vadd.f32 %v11222_v62, %v10685_v29  ;;  %v11231_v47 = vadd.f32 %v11223_v24, %v10686_v55  ;;  %v11274_v51 = vadd.f32 %v11267_v0, %v11266_v23  ;;  %v6309_v23 = vpop.xlane.xlu0 %6308 }
 0x7ba   : > { %v11242_v63 = vadd.f32 %v11238_v56, %v11228_v22  ;;  %v11243_v31 = vadd.f32 %v11238_v56, %v11229_v37  ;;  %v11339_v22 = vld [vmem:[%s16801_s6] sm:$0xff]  ;;  %v6291_v37 = vpop.xlane.xlu2 %6290 }
 0x7bb   : > { %v11244_v10 = vadd.f32 %v11238_v56, %v11230_v60  ;;  %v11245_v30 = vadd.f32 %v11238_v56, %v11231_v47  ;;  %v6292_v24 = vmul.f32 0.001953125, %v6291_v37  ;;  %v6310_v60 = vmul.f32 0.001953125, %v6309_v23 }
 0x7bc   : > { %v16657_v34 = vmul.f32 %v11242_v63, %v15343_v54  ;;  %v16660_v11 = vmul.f32 %v11243_v31, %v15355_v9 }
 0x7bd   : > { %v11195_v29 = vpop.f32.mrf.mxu2  ;;  %v11215_v3 = vpop.f32.mrf.mxu3  ;;  %v16666_v57 = vmul.f32 %v11244_v10, %v15378_v32  ;;  %v16672_v15 = vmul.f32 %v11245_v30, %v15394_v7  ;;  %v6311_v0 = vmul.f32 %v6292_v24, %v6292_v24 }
 0x7be   : > { %v11257_v18 = vadd.f32 %v11256_v44, %v16657_v34  ;;  %v11268_v55 = vmul.f32 %v16657_v34, %v16657_v34  ;;  %v11224_v16 = vadd.f32 %v11195_v29, %v11031_v48  ;;  %v11225_v28 = vadd.f32 %v11215_v3, %v11051_v1 }
 0x7bf   : > { %v11269_v17 = vmul.f32 %v16660_v11, %v16660_v11  ;;  %v11270_v26 = vmul.f32 %v16666_v57, %v16666_v57  ;;  %v11271_v35 = vmul.f32 %v16672_v15, %v16672_v15  ;;  %v6312_v63 = vsub.f32 %v6310_v60, %v6311_v0 }
 0x7c0   : > { %v11275_v12 = vadd.f32 %v11274_v51, %v11268_v55  ;;  %v11258_v43 = vadd.f32 %v11257_v18, %v16660_v11  ;;  %v11232_v33 = vadd.f32 %v11224_v16, %v16640_v42  ;;  %v11233_v36 = vadd.f32 %v11225_v28, %v16642_v53 }
 0x7c1   : > { %v6313_v31 = vmax.f32 %v6312_v63, 0.0 }
 0x7c2   : > { %v11259_v50 = vadd.f32 %v11258_v43, %v16666_v57  ;;  %v11276_v46 = vadd.f32 %v11275_v12, %v11269_v17  ;;  %v11246_v52 = vadd.f32 %v11238_v56, %v11232_v33  ;;  %v11247_v21 = vadd.f32 %v11238_v56, %v11233_v36 }
 0x7c3   : > { %v6322_v47 = vadd.f32 1e-05, %v6313_v31  ;;  %v6314_v33 = vsub.f32 %v15920_v20, %v6292_v24  ;;  %v6315_v36 = vsub.f32 %v15923_v14, %v6292_v24  ;;  %v6320_v20 = vsub.f32 %v15979_v39, %v6292_v24 }
 0x7c4   : > { %v11260_v49 = vadd.f32 %v11259_v50, %v16672_v15  ;;  %v11277_v2 = vadd.f32 %v11276_v46, %v11270_v26  ;;  %v16683_v8 = vmul.f32 %v11246_v52, %v15410_v27  ;;  %v16686_v42 = vmul.f32 %v11247_v21, %v15416_v41 }
 0x7c5   : > { %12686 = vrsqrt.f32 %v6322_v47  ;;  %vm6329_vm13 = vweird.f32 %v6322_v47  ;;  %v6316_v26 = vsub.f32 %v15934_v13, %v6292_v24  ;;  %v6317_v46 = vsub.f32 %v15946_v61, %v6292_v24 }
 0x7c6   : > { %v11278_v53 = vadd.f32 %v11277_v2, %v11271_v35  ;;  %v11261_v40 = vadd.f32 %v11260_v49, %v16683_v8  ;;  %v11272_v25 = vmul.f32 %v16683_v8, %v16683_v8  ;;  %v11273_v6 = vmul.f32 %v16686_v42, %v16686_v42 }
 0x7c7   : > { %v6318_v52 = vsub.f32 %v15958_v38, %v6292_v24  ;;  %v6319_v21 = vsub.f32 %v15966_v58, %v6292_v24 }
 0x7c8   : > { %v11262_v56 = vadd.f32 %v11261_v40, %v16686_v42  ;;  %v11279_v59 = vadd.f32 %v11278_v53, %v11272_v25 }
 0x7ca   : > { %11263 = vadd.xlane.f32.xlu1 %v11262_v56  ;;  %v11280_v62 = vadd.f32 %v11279_v59, %v11273_v6 }
 0x7cb   : > { %v12687_v10 = vpop.eup %12686 }
 0x7cc   : > { %11281 = vadd.xlane.f32.xlu2 %v11280_v62  ;;  %v6324_v44 = vmul.f32 %v12687_v10, %v6322_v47  ;;  %vm6330_vm12 = vweird.f32 %v12687_v10  ;;  %v17046_v62 = vld [vmem:[#allocation4_spill] sm:$0xff] }
 0x7cd   : > { %vm6331_vm14 = vmor %vm6329_vm13, %vm6330_vm12 }
 0x7ce   : > { %v6325_v30 = vmul.f32 %v12687_v10, %v6324_v44 }
 0x7d0   : > { %v6326_v48 = vmul.f32 0.5, %v6325_v30 }
 0x7d2   : > { %v6327_v55 = vsub.f32 1.5, %v6326_v48 }
 0x7d4   : > { %v6328_v12 = vmul.f32 %v12687_v10, %v6327_v55 }
 0x7d6   : > { %v6332_v17 = vsel %vm6331_vm14, %v12687_v10, %v6328_v12 }
 0x7d7   : > { %v6333_v50 = vmul.f32 %v6332_v17, %v6314_v33  ;;  %v6334_v49 = vmul.f32 %v6332_v17, %v6315_v36  ;;  %v6335_v35 = vmul.f32 %v6332_v17, %v6316_v26  ;;  %v6336_v53 = vmul.f32 %v6332_v17, %v6317_v46 }
 0x7d8   : > { %v6337_v40 = vmul.f32 %v6332_v17, %v6318_v52  ;;  %v6338_v25 = vmul.f32 %v6332_v17, %v6319_v21  ;;  %v6339_v23 = vmul.f32 %v6332_v17, %v6320_v20 }
 0x7d9   : > { %v6341_v6 = vmax.f32 %v6333_v50, 0.0  ;;  %v6342_v59 = vmax.f32 %v6334_v49, 0.0  ;;  %v6343_v13 = vmax.f32 %v6335_v35, 0.0  ;;  %v6344_v61 = vmax.f32 %v6336_v53, 0.0 }
 0x7da   : > { %v6345_v37 = vmax.f32 %v6337_v40, 0.0  ;;  %v6346_v38 = vmax.f32 %v6338_v25, 0.0  ;;  %v6347_v44 = vmax.f32 %v6339_v23, 0.0 }
 0x7db   : > { %v6349_v0 = vmul.f32 %v6341_v6, %v15334_v19  ;;  %v6350_v31 = vmul.f32 %v6342_v59, %v15337_v45  ;;  %v6351_v47 = vmul.f32 %v6343_v13, %v15343_v54  ;;  %v6352_v39 = vmul.f32 %v6344_v61, %v15355_v9  ;;  %v11338_v13 = vld [vmem:[%s16800_s5] sm:$0xff] }
 0x7dc   : > { %v6353_v10 = vmul.f32 %v6345_v37, %v15378_v32 }
 0x7e3   : > { %11342 = vperm.xlu1 %12522, %v11339_v22   ;;  %v6321_v22 = vsub.f32 %v17046_v62, %v6292_v24  ;;  %v6354_v24 = vmul.f32 %v6346_v38, %v15394_v7  ;;  %v6355_v62 = vmul.f32 %v6347_v44, %v15410_v27 }
 0x7e5   : > { %v6340_v60 = vmul.f32 %v6332_v17, %v6321_v22 }
 0x83d   : > { %v11264_v1 = vpop.xlane.xlu1 %11263 }
 0x83e   : > { %v16697_v29 = vmul.f32 0.001953125, %v11264_v1  ;;  %v6348_v1 = vmax.f32 %v6340_v60, 0.0 }
 0x83f   : > { %v11282_v3 = vpop.xlane.xlu2 %11281 }
 0x840   : > { %v11283_v51 = vmul.f32 0.001953125, %v11282_v3  ;;  %v11284_v18 = vmul.f32 %v16697_v29, %v16697_v29  ;;  %v11287_v48 = vsub.f32 %v16645_v4, %v16697_v29  ;;  %v11288_v3 = vsub.f32 %v16648_v5, %v16697_v29 }
 0x841   : > { %v11291_v55 = vsub.f32 %v16666_v57, %v16697_v29  ;;  %v11293_v4 = vsub.f32 %v16683_v8, %v16697_v29  ;;  %v11294_v12 = vsub.f32 %v16686_v42, %v16697_v29  ;;  %v6356_v22 = vmul.f32 %v6348_v1, %v15416_v41 }
 0x842   : > { %v11285_v16 = vsub.f32 %v11283_v51, %v11284_v18  ;;  %v11289_v51 = vsub.f32 %v16657_v34, %v16697_v29  ;;  %v11290_v18 = vsub.f32 %v16660_v11, %v16697_v29 }
 0x844   : > { %v11286_v28 = vmax.f32 %v11285_v16, 0.0 }
 0x846   : > { %v11295_v43 = vadd.f32 1e-05, %v11286_v28  ;;  %v11292_v28 = vsub.f32 %v16672_v15, %v16697_v29 }
 0x848   : > { %12688 = vrsqrt.f32 %v11295_v43  ;;  %vm11302_vm0 = vweird.f32 %v11295_v43 }
 0x84e   : > { %v12689_v2 = vpop.eup %12688 }
 0x84f   : > { %v11297_v56 = vmul.f32 %v12689_v2, %v11295_v43  ;;  %vm11303_vm15 = vweird.f32 %v12689_v2 }
 0x850   : > { %vm11304_vm2 = vmor %vm11302_vm0, %vm11303_vm15 }
 0x851   : > { %v11298_v14 = vmul.f32 %v12689_v2, %v11297_v56 }
 0x853   : > { %v11299_v58 = vmul.f32 0.5, %v11298_v14 }
 0x855   : > { %v11300_v63 = vsub.f32 1.5, %v11299_v58  ;;  %v11343_v58 = vpop.permute.xlu1 %11342 }
 0x857   : > { %v11301_v30 = vmul.f32 %v12689_v2, %v11300_v63 }
 0x859   : > { %v11305_v16 = vsel %vm11304_vm2, %v12689_v2, %v11301_v30 }
 0x85a   : > { %v11306_v5 = vmul.f32 %v11305_v16, %v11287_v48  ;;  %v11307_v43 = vmul.f32 %v11305_v16, %v11288_v3  ;;  %v11308_v17 = vmul.f32 %v11305_v16, %v11289_v51  ;;  %v11309_v34 = vmul.f32 %v11305_v16, %v11290_v18 }
 0x85b   : > { %v11310_v33 = vmul.f32 %v11305_v16, %v11291_v55  ;;  %v11311_v36 = vmul.f32 %v11305_v16, %v11292_v28  ;;  %v11312_v11 = vmul.f32 %v11305_v16, %v11293_v4  ;;  %v11313_v26 = vmul.f32 %v11305_v16, %v11294_v12 }
 0x85c   : > { %v11314_v50 = vmax.f32 %v11306_v5, 0.0  ;;  %v11315_v57 = vmax.f32 %v11307_v43, 0.0  ;;  %v11316_v46 = vmax.f32 %v11308_v17, 0.0  ;;  %v11317_v52 = vmax.f32 %v11309_v34, 0.0 }
 0x85d   : > { %v11318_v21 = vmax.f32 %v11310_v33, 0.0  ;;  %v11319_v15 = vmax.f32 %v11311_v36, 0.0  ;;  %v11320_v49 = vmax.f32 %v11312_v11, 0.0  ;;  %v11321_v35 = vmax.f32 %v11313_v26, 0.0 }
 0x85e   : > { %v11322_v8 = vmul.f32 %v11314_v50, %v15334_v19  ;;  %v11323_v42 = vmul.f32 %v11315_v57, %v15337_v45  ;;  %v11324_v29 = vmul.f32 %v11316_v46, %v15343_v54  ;;  %v11325_v2 = vmul.f32 %v11317_v52, %v15355_v9 }
 0x85f   : > { %v11326_v53 = vmul.f32 %v11318_v21, %v15378_v32  ;;  %v11327_v40 = vmul.f32 %v11319_v15, %v15394_v7  ;;  %v11328_v25 = vmul.f32 %v11320_v49, %v15410_v27  ;;  %v11329_v56 = vmul.f32 %v11321_v35, %v15416_v41 }
 0x860   : > { %v11330_v6 = vmul.f32 %v11322_v8, %v6349_v0  ;;  %v11331_v20 = vmul.f32 %v11323_v42, %v6350_v31  ;;  %v11332_v14 = vmul.f32 %v11324_v29, %v6351_v47  ;;  %v11333_v59 = vmul.f32 %v11325_v2, %v6352_v39 }
 0x861   : > { %v11334_v61 = vmul.f32 %v11326_v53, %v6353_v10  ;;  %v11335_v37 = vmul.f32 %v11327_v40, %v6354_v24  ;;  %v11336_v38 = vmul.f32 %v11328_v25, %v6355_v62  ;;  %v11337_v23 = vmul.f32 %v11329_v56, %v6356_v22 }
 0x862   : > { %11363 = vmatpush.msra.mxu0 %v11330_v6  ;;  %11383 = vmatpush.msra.mxu1 %v11331_v20 }
 0x863   : > { %11403 = vmatpush.msra.mxu2 %v11332_v14  ;;  %11423 = vmatpush.msra.mxu3 %v11333_v59 }
 0x864   : > { %12317 = vmatmul.msk.f32.vlgmr.msra.gmra.mxu0 %vm392_vm1, %v11338_v13  ;;  %12318 = vmatmul.msk.f32.vlgmr.msra.gmra.mxu1 %vm392_vm1, %v11338_v13 }
 0x865   : > { %12319 = vmatmul.msk.f32.vlgmr.msra.gmra.mxu2 %vm392_vm1, %v11338_v13  ;;  %12320 = vmatmul.msk.f32.vlgmr.msra.gmra.mxu3 %vm392_vm1, %v11338_v13 }
 0x866   : > { %11443 = vmatpush.msrb.mxu0 %v11334_v61  ;;  %11463 = vmatpush.msrb.mxu1 %v11335_v37 }
 0x867   : > { %11483 = vmatpush.msrb.mxu2 %v11336_v38  ;;  %11503 = vmatpush.msrb.mxu3 %v11337_v23 }
 0x86c   : > { %12321 = vmatmul.msk.f32.vlgmr.msrb.gmra.mxu0 %vm392_vm1, %v11338_v13  ;;  %12322 = vmatmul.msk.f32.vlgmr.msrb.gmra.mxu1 %vm392_vm1, %v11338_v13 }
 0x86d   : > { %12323 = vmatmul.msk.f32.vlgmr.msrb.gmra.mxu2 %vm392_vm1, %v11338_v13  ;;  %12324 = vmatmul.msk.f32.vlgmr.msrb.gmra.mxu3 %vm392_vm1, %v11338_v13 }
 0x8e1   : > { %v11365_v60 = vpop.f32.mrf.mxu0  ;;  %v11385_v0 = vpop.f32.mrf.mxu1 }
 0x8e2   : > { %v11366_v63 = vadd.f32 %v11365_v60, %v11343_v58  ;;  %v11386_v31 = vadd.f32 %v11385_v0, %v11343_v58 }
 0x8e4   : > { %v16753_v47 = vmul.f32 %v11366_v63, %v15334_v19  ;;  %v16756_v39 = vmul.f32 %v11386_v31, %v15337_v45 }
 0x8e6   : > { %v11526_v44 = vmul.f32 %v16753_v47, %v16753_v47  ;;  %v11527_v30 = vmul.f32 %v16756_v39, %v16756_v39  ;;  %v11516_v16 = vadd.f32 %v16756_v39, %v16753_v47 }
 0x8e8   : > { %v11405_v10 = vpop.f32.mrf.mxu2  ;;  %v11425_v24 = vpop.f32.mrf.mxu3  ;;  %v11534_v5 = vadd.f32 %v11527_v30, %v11526_v44 }
 0x8e9   : > { %v11406_v48 = vadd.f32 %v11405_v10, %v11343_v58  ;;  %v11426_v1 = vadd.f32 %v11425_v24, %v11343_v58  ;;  %v11445_v3 = vpop.f32.mrf.mxu0  ;;  %v11465_v51 = vpop.f32.mrf.mxu1 }
 0x8ea   : > { %v11446_v18 = vadd.f32 %v11445_v3, %v11343_v58  ;;  %v11466_v55 = vadd.f32 %v11465_v51, %v11343_v58 }
 0x8eb   : > { %v11510_v28 = vmul.f32 %v11406_v48, %v15343_v54  ;;  %v11511_v4 = vmul.f32 %v11426_v1, %v15355_v9 }
 0x8ec   : > { %v11512_v12 = vmul.f32 %v11446_v18, %v15378_v32  ;;  %v11513_v34 = vmul.f32 %v11466_v55, %v15394_v7 }
 0x8ed   : > { %v11517_v43 = vadd.f32 %v11516_v16, %v11510_v28  ;;  %v11528_v17 = vmul.f32 %v11510_v28, %v11510_v28  ;;  %v11529_v11 = vmul.f32 %v11511_v4, %v11511_v4 }
 0x8ee   : > { %v11530_v26 = vmul.f32 %v11512_v12, %v11512_v12  ;;  %v11531_v49 = vmul.f32 %v11513_v34, %v11513_v34 }
 0x8ef   : > { %v11535_v33 = vadd.f32 %v11534_v5, %v11528_v17  ;;  %v11518_v36 = vadd.f32 %v11517_v43, %v11511_v4 }
 0x8f0   : > { %v11485_v50 = vpop.f32.mrf.mxu2  ;;  %v11505_v57 = vpop.f32.mrf.mxu3 }
 0x8f1   : > { %v11536_v46 = vadd.f32 %v11535_v33, %v11529_v11  ;;  %v11519_v52 = vadd.f32 %v11518_v36, %v11512_v12  ;;  %v11486_v21 = vadd.f32 %v11485_v50, %v11343_v58  ;;  %v11506_v15 = vadd.f32 %v11505_v57, %v11343_v58 }
 0x8f3   : > { %v11537_v35 = vadd.f32 %v11536_v46, %v11530_v26  ;;  %v11520_v8 = vadd.f32 %v11519_v52, %v11513_v34  ;;  %v11514_v42 = vmul.f32 %v11486_v21, %v15410_v27  ;;  %v11515_v29 = vmul.f32 %v11506_v15, %v15416_v41 }
 0x8f5   : > { %v11532_v2 = vmul.f32 %v11514_v42, %v11514_v42  ;;  %v11521_v53 = vadd.f32 %v11520_v8, %v11514_v42  ;;  %v11538_v40 = vadd.f32 %v11537_v35, %v11531_v49  ;;  %v11533_v56 = vmul.f32 %v11515_v29, %v11515_v29 }
 0x8f7   : > { %v11522_v25 = vadd.f32 %v11521_v53, %v11515_v29  ;;  %v11539_v6 = vadd.f32 %v11538_v40, %v11532_v2  ;;  %v12724_v2 = vld [vmem:[%s12828_s13 + $0x28] sm:$0xff]  ;;  %v12725_v40 = vld [vmem:[%s12828_s13 + $0x30] sm:$0xff] }
 0x8f9   : > { %11523 = vadd.xlane.f32.xlu2 %v11522_v25  ;;  %v11540_v20 = vadd.f32 %v11539_v6, %v11533_v56  ;;  %v12728_v6 = vld [vmem:[%s12828_s13 + $0x48] sm:$0xff] }
 0x8fb   : > { %11541 = vadd.xlane.f32.xlu0 %v11540_v20 }
 0x96c   : > { %v11524_v14 = vpop.xlane.xlu2 %11523 }
 0x96d   : > { %v11525_v59 = vmul.f32 0.001953125, %v11524_v14 }
 0x96e   : > { %v11542_v13 = vpop.xlane.xlu0 %11541 }
 0x96f   : > { %v11543_v62 = vmul.f32 0.001953125, %v11542_v13  ;;  %v11544_v22 = vmul.f32 %v11525_v59, %v11525_v59  ;;  %v11547_v31 = vsub.f32 %v16753_v47, %v11525_v59  ;;  %v11548_v24 = vsub.f32 %v16756_v39, %v11525_v59 }
 0x970   : > { %v11549_v44 = vsub.f32 %v11510_v28, %v11525_v59  ;;  %v11550_v30 = vsub.f32 %v11511_v4, %v11525_v59  ;;  %v11551_v48 = vsub.f32 %v11512_v12, %v11525_v59  ;;  %v11552_v1 = vsub.f32 %v11513_v34, %v11525_v59 }
 0x971   : > { %v11545_v61 = vsub.f32 %v11543_v62, %v11544_v22  ;;  %v11553_v3 = vsub.f32 %v11514_v42, %v11525_v59  ;;  %v11554_v51 = vsub.f32 %v11515_v29, %v11525_v59 }
 0x973   : > { %v11546_v37 = vmax.f32 %v11545_v61, 0.0 }
 0x975   : > { %v11555_v38 = vadd.f32 1e-05, %v11546_v37 }
 0x977   : > { %12690 = vrsqrt.f32 %v11555_v38  ;;  %vm11562_vm3 = vweird.f32 %v11555_v38 }
 0x97d   : > { %v12691_v23 = vpop.eup %12690 }
 0x97e   : > { %v11557_v58 = vmul.f32 %v12691_v23, %v11555_v38  ;;  %vm11563_vm1 = vweird.f32 %v12691_v23 }
 0x97f   : > { %vm11564_vm4 = vmor %vm11562_vm3, %vm11563_vm1 }
 0x980   : > { %v11558_v60 = vmul.f32 %v12691_v23, %v11557_v58 }
 0x982   : > { %v11559_v0 = vmul.f32 0.5, %v11558_v60 }
 0x984   : > { %v11560_v63 = vsub.f32 1.5, %v11559_v0 }
 0x986   : > { %v11561_v10 = vmul.f32 %v12691_v23, %v11560_v63 }
 0x988   : > { %v11565_v18 = vsel %vm11564_vm4, %v12691_v23, %v11561_v10 }
 0x989   : > { %v11566_v55 = vmul.f32 %v11565_v18, %v11547_v31  ;;  %v11567_v16 = vmul.f32 %v11565_v18, %v11548_v24  ;;  %v11568_v5 = vmul.f32 %v11565_v18, %v11549_v44  ;;  %v11569_v43 = vmul.f32 %v11565_v18, %v11550_v30 }
 0x98a   : > { %v11570_v17 = vmul.f32 %v11565_v18, %v11551_v48  ;;  %v11571_v33 = vmul.f32 %v11565_v18, %v11552_v1  ;;  %v11572_v47 = vmul.f32 %v11565_v18, %v11553_v3  ;;  %v11573_v36 = vmul.f32 %v11565_v18, %v11554_v51 }
 0x98b   : > { %v11574_v11 = vmax.f32 %v11566_v55, 0.0  ;;  %v11575_v39 = vmax.f32 %v11567_v16, 0.0  ;;  %v11576_v28 = vmax.f32 %v11568_v5, 0.0  ;;  %v11577_v4 = vmax.f32 %v11569_v43, 0.0 }
 0x98c   : > { %v11578_v12 = vmax.f32 %v11570_v17, 0.0  ;;  %v11579_v34 = vmax.f32 %v11571_v33, 0.0  ;;  %v11580_v26 = vmax.f32 %v11572_v47, 0.0  ;;  %v11581_v50 = vmax.f32 %v11573_v36, 0.0 }
 0x98d   : > { %v11582_v57 = vmul.f32 %v11574_v11, %v15334_v19  ;;  %v11583_v46 = vmul.f32 %v11575_v39, %v15337_v45  ;;  %v11584_v52 = vmul.f32 %v11576_v28, %v15343_v54  ;;  %v11585_v21 = vmul.f32 %v11577_v4, %v15355_v9  ;;  %v12721_v19 = vld [vmem:[%s12828_s13 + $0x10] sm:$0xff]  ;;  %v12722_v45 = vld [vmem:[%s12828_s13 + $0x18] sm:$0xff]  ;;  %v12723_v54 = vld [vmem:[%s12828_s13 + $0x20] sm:$0xff] }
 0x98e   : > { %v11586_v15 = vmul.f32 %v11578_v12, %v15378_v32  ;;  %v11587_v49 = vmul.f32 %v11579_v34, %v15394_v7  ;;  %v11588_v35 = vmul.f32 %v11580_v26, %v15410_v27  ;;  %v11589_v9 = vmul.f32 %v11581_v50, %v15416_v41  ;;  %v12726_v32 = vld [vmem:[%s12828_s13 + $0x38] sm:$0xff]  ;;  %v12727_v7 = vld [vmem:[%s12828_s13 + $0x40] sm:$0xff] }
 0x98f   : > { %v11590_v8 = vadd.f32 %v12721_v19, %v11582_v57  ;;  %v11591_v42 = vadd.f32 %v12722_v45, %v11583_v46  ;;  %v11592_v29 = vadd.f32 %v12723_v54, %v11584_v52  ;;  %v11593_v53 = vadd.f32 %v12724_v2, %v11585_v21 }
 0x990   : > { %v11594_v25 = vadd.f32 %v12725_v40, %v11586_v15  ;;  %v11595_v56 = vadd.f32 %v12726_v32, %v11587_v49  ;;  %v11596_v27 = vadd.f32 %v12727_v7, %v11588_v35  ;;  %v11597_v20 = vadd.f32 %v12728_v6, %v11589_v9 }
 0x991   : > { %11598 = vst [vmem:[%s305_s21] sm:$0xff] %v11590_v8 }
 0x992   : > { %11599 = vst [vmem:[%s305_s21 + $0x8] sm:$0xff] %v11591_v42 }
 0x993   : > { %11600 = vst [vmem:[%s305_s21 + $0x10] sm:$0xff] %v11592_v29 }
 0x994   : > { %11601 = vst [vmem:[%s305_s21 + $0x18] sm:$0xff] %v11593_v53 }
 0x995   : > { %11602 = vst [vmem:[%s305_s21 + $0x20] sm:$0xff] %v11594_v25 }
 0x996   : > { %11603 = vst [vmem:[%s305_s21 + $0x28] sm:$0xff] %v11595_v56 }
 0x997   : > { %11604 = vst [vmem:[%s305_s21 + $0x30] sm:$0xff] %v11596_v27 }
 0x998   : > { %11605 = vst [vmem:[%s305_s21 + $0x38] sm:$0xff] %v11597_v20 }
 0x999 PF: > { %s18_s27 = sadd.s32 1, %s12735_s27  }
 0x99a   : > { %p15_p4 = scmp.ge.s32.totalorder %s18_s27, 4  }
 0x99c   :  { %17 = sbr.rel (!%p15_p4) target bundleno = 1 (0x1), region = 82 }

</bundles_post_ra>
